<compile_context>
chip_gen: v5e
topology: v5e:2x2
jax: 0.10.0
libtpu: 0.0.40
codegen_flags: <defaults>
</compile_context>

<pallas_src>
import functools

import jax
import jax.numpy as jnp
from jax.experimental import pallas as pl
from jax.experimental.pallas import tpu as pltpu


# ------------------------------- fused kernel -------------------------------

def _ae_kernel(x_ref,
               w1, b1, w2, b2, w3, b3, w4, b4, w5, b5, w6, b6, w7, b7,
               out_ref,
               a1, p1, a2, p2, a3, p3, a4, u1, a5, u2, a6, u3,
               *, n):
    f32 = jnp.float32

    # Zero the buffers whose zero borders provide the convs' padding.
    for r in (p1, p2, p3, u1, u2, u3):
        r[...] = jnp.zeros(r.shape, r.dtype)

    def conv(inp, w_ref, b_ref, outp, hp, wp, cin, cout, sigmoid=False):
        """3x3 conv over a zero-padded (n*hp, wp, cin) buffer -> (n*hout, wout, cout)."""
        hout, wout = hp - 2, wp - 2
        wmat = w_ref[...]            # (9*cin, cout), K-order = (dy, dx, ci)
        bias = b_ref[...]            # (1, cout)
        for bi in range(n):
            base_in = bi * hp
            base_out = bi * hout

            def body(y, carry):
                rows = [inp[base_in + y + dy] for dy in range(3)]   # each (wp, cin)
                acc = jnp.zeros((wout, cout), f32)
                for dy in range(3):
                    for dx in range(3):
                        k = dy * 3 + dx
                        piece = rows[dy][dx:dx + wout, :]           # (wout, cin)
                        wtap = wmat[k * cin:(k + 1) * cin, :]       # (cin, cout)
                        if cin == 1:
                            acc = acc + piece * wtap                # outer product
                        else:
                            acc = acc + jnp.dot(piece, wtap,
                                                preferred_element_type=f32)
                acc = acc + bias
                if sigmoid:
                    acc = jax.nn.sigmoid(acc)
                outp[base_out + y] = acc.astype(outp.dtype)
                return carry

            jax.lax.fori_loop(0, hout, body, 0)

    def pool(inp, outp, h, w, c, pad, hp_out):
        """2x2/2 maxpool of (n*h, w, c) -> interior of padded (n*hp_out, w//2+2*pad, c)."""
        ho, wo = h // 2, w // 2
        rid = jax.lax.broadcasted_iota(jnp.int32, (wo, w - 1), 0)
        cid = jax.lax.broadcasted_iota(jnp.int32, (wo, w - 1), 1)
        sel = (cid == 2 * rid).astype(f32)          # picks even columns of m
        zp = jnp.zeros((pad, c), f32)
        for bi in range(n):
            base_in = bi * h
            base_out = bi * hp_out

            def body(yo, carry):
                r0 = inp[base_in + 2 * yo]
                r1 = inp[base_in + 2 * yo + 1]
                v = jnp.maximum(r0, r1)                              # (w, c)
                m = jnp.maximum(v[0:w - 1, :], v[1:w, :])            # (w-1, c)
                pooled = jnp.dot(sel, m, preferred_element_type=f32)  # (wo, c)
                outp[base_out + pad + yo] = jnp.concatenate(
                    [zp, pooled, zp], axis=0).astype(outp.dtype)
                return carry

            jax.lax.fori_loop(0, ho, body, 0)

    def upsample(inp, outp, h, w, c, pad, hp_out):
        """Nearest 2x upsample of (n*h, w, c) -> interior of padded (n*hp_out, 2w+2*pad, c)."""
        rid = jax.lax.broadcasted_iota(jnp.int32, (2 * w, w), 0)
        cid = jax.lax.broadcasted_iota(jnp.int32, (2 * w, w), 1)
        rep = ((rid == 2 * cid) | (rid == 2 * cid + 1)).astype(f32)  # (2w, w)
        zp = jnp.zeros((pad, c), f32)
        for bi in range(n):
            base_in = bi * h
            base_out = bi * hp_out

            def body(yi, carry):
                row = inp[base_in + yi]                               # (w, c)
                up = jnp.dot(rep, row, preferred_element_type=f32)    # (2w, c)
                full = jnp.concatenate([zp, up, zp], axis=0).astype(outp.dtype)
                r0 = base_out + pad + 2 * yi
                outp[r0] = full
                outp[r0 + 1] = full
                return carry

            jax.lax.fori_loop(0, h, body, 0)

    # ------------------------------- encoder --------------------------------
    conv(x_ref, w1, b1, a1, 18, 18, 1, 16)          # 16x16x16
    pool(a1, p1, 16, 16, 16, 1, 10)                 # -> padded 10x10x16
    conv(p1, w2, b2, a2, 10, 10, 16, 8)             # 8x8x8
    pool(a2, p2, 8, 8, 8, 1, 6)                     # -> padded 6x6x8
    conv(p2, w3, b3, a3, 6, 6, 8, 8)                # 4x4x8
    pool(a3, p3, 4, 4, 8, 1, 4)                     # -> padded 4x4x8
    conv(p3, w4, b4, a4, 4, 4, 8, 8)                # 2x2x8
    # ------------------------------- decoder --------------------------------
    upsample(a4, u1, 2, 2, 8, 1, 6)                 # -> padded 6x6x8
    conv(u1, w5, b5, a5, 6, 6, 8, 8)                # 4x4x8   (ConvT k3 p1)
    upsample(a5, u2, 4, 4, 8, 2, 12)                # -> padded 12x12x8
    conv(u2, w6, b6, a6, 12, 12, 8, 16)             # 10x10x16 (ConvT k3 p0)
    upsample(a6, u3, 10, 10, 16, 1, 22)             # -> padded 22x22x16
    conv(u3, w7, b7, out_ref, 22, 22, 16, 1, sigmoid=True)   # 20x20x1


# --------------------------------- wrapper ----------------------------------

def ae_forward(x_nchw, params):
    N, C, H, W = x_nchw.shape
    assert (C, H, W) == (1, 16, 16)
    f32 = jnp.float32

    x = jnp.transpose(x_nchw.astype(f32), (0, 2, 3, 1))     # NCHW -> NHWC
    x = jnp.pad(x, ((0, 0), (1, 1), (1, 1), (0, 0)))        # pad for enc1
    x = x.reshape(N * 18, 18, 1)

    flat = [x]
    for name in ('enc1', 'enc2', 'enc3', 'enc4', 'dec1', 'dec2', 'dec3'):
        w = params[f'{name}_w']                              # (3,3,cin,cout) HWIO
        cin, cout = w.shape[2], w.shape[3]
        flat.append(w.reshape(9 * cin, cout).astype(f32))
        flat.append(params[f'{name}_b'].reshape(1, cout).astype(f32))

    def fullspec(a):
        nd = a.ndim
        return pl.BlockSpec(a.shape, lambda i, _nd=nd: (0,) * _nd)

    scratch = [
        pltpu.VMEM((N * 16, 16, 16), f32),   # a1: enc1 out
        pltpu.VMEM((N * 10, 10, 16), f32),   # p1: pool1 out (padded)
        pltpu.VMEM((N * 8, 8, 8), f32),      # a2: enc2 out
        pltpu.VMEM((N * 6, 6, 8), f32),      # p2: pool2 out (padded)
        pltpu.VMEM((N * 4, 4, 8), f32),      # a3: enc3 out
        pltpu.VMEM((N * 4, 4, 8), f32),      # p3: pool3 out (padded)
        pltpu.VMEM((N * 2, 2, 8), f32),      # a4: enc4 out
        pltpu.VMEM((N * 6, 6, 8), f32),      # u1: up1 (padded)
        pltpu.VMEM((N * 4, 4, 8), f32),      # a5: dec1 out
        pltpu.VMEM((N * 12, 12, 8), f32),    # u2: up2 (padded, pad=2)
        pltpu.VMEM((N * 10, 10, 16), f32),   # a6: dec2 out
        pltpu.VMEM((N * 22, 22, 16), f32),   # u3: up3 (padded)
    ]

    out = pl.pallas_call(
        functools.partial(_ae_kernel, n=N),
        out_shape=jax.ShapeDtypeStruct((N * 20, 20, 1), f32),
        grid=(1,),
        in_specs=[fullspec(a) for a in flat],
        out_specs=pl.BlockSpec((N * 20, 20, 1), lambda i: (0, 0, 0)),
        scratch_shapes=scratch,
        compiler_params=pltpu.CompilerParams(
            dimension_semantics=("arbitrary",)),
    )(*flat)

    return jnp.transpose(out.reshape(N, 20, 20, 1), (0, 3, 1, 2))   # -> NCHW


# ------------------------- deterministic parameters -------------------------

def init_params(key):
    def norm(k, shape, scale=0.1):
        return scale * jax.random.normal(k, shape, jnp.float32)

    ks = list(jax.random.split(key, 14))
    p = {}
    # encoder: torch Conv2d weight is (Cout, Cin, 3, 3) -> HWIO
    for idx, (cout, cin) in enumerate([(16, 1), (8, 16), (8, 8), (8, 8)], start=1):
        w_oihw = norm(ks.pop(), (cout, cin, 3, 3))
        p[f'enc{idx}_w'] = jnp.transpose(w_oihw, (2, 3, 1, 0))
        p[f'enc{idx}_b'] = norm(ks.pop(), (cout,))
    # decoder: torch ConvTranspose2d weight is (Cin, Cout, 3, 3); stride-1
    # transpose conv == conv with spatially flipped, channel-swapped kernel.
    for idx, (cin, cout) in enumerate([(8, 8), (8, 16), (16, 1)], start=1):
        w_iohw = norm(ks.pop(), (cin, cout, 3, 3))
        p[f'dec{idx}_w'] = jnp.transpose(w_iohw[:, :, ::-1, ::-1], (2, 3, 0, 1))
        p[f'dec{idx}_b'] = norm(ks.pop(), (cout,))
    return p


# ------------------------------ pure-JAX reference --------------------------

def _upsample2x(x):
    return jnp.repeat(jnp.repeat(x, 2, axis=1), 2, axis=2)


def _ref_conv(x, w_hwio, b, pad):
    out = jax.lax.conv_general_dilated(
        x, w_hwio, window_strides=(1, 1), padding=[(pad, pad), (pad, pad)],
        dimension_numbers=('NHWC', 'HWIO', 'NHWC'))
    return out + b


def _ref_maxpool(x):
    return jax.lax.reduce_window(x, -jnp.inf, jax.lax.max,
                                 (1, 2, 2, 1), (1, 2, 2, 1), 'VALID')


def ref_forward(x_nchw, params):
    x = jnp.transpose(x_nchw, (0, 2, 3, 1))
    x = _ref_conv(x, params['enc1_w'], params['enc1_b'], 1); x = _ref_maxpool(x)
    x = _ref_conv(x, params['enc2_w'], params['enc2_b'], 1); x = _ref_maxpool(x)
    x = _ref_conv(x, params['enc3_w'], params['enc3_b'], 1); x = _ref_maxpool(x)
    x = _ref_conv(x, params['enc4_w'], params['enc4_b'], 1)
    x = _upsample2x(x); x = _ref_conv(x, params['dec1_w'], params['dec1_b'], 1)
    x = _upsample2x(x); x = _ref_conv(x, params['dec2_w'], params['dec2_b'], 2)
    x = _upsample2x(x); x = _ref_conv(x, params['dec3_w'], params['dec3_b'], 1)
    x = jax.nn.sigmoid(x)
    return jnp.transpose(x, (0, 3, 1, 2))


# ------------------------------------ main -----------------------------------

if __name__ == "__main__":
    root = jax.random.PRNGKey(0)
    pkey, xkey = jax.random.split(root)
    params = init_params(pkey)
    # NCHW input like the PyTorch module: batch=2, 1 channel, 16x16 spatial.
    x = jax.random.uniform(xkey, (2, 1, 16, 16), dtype=jnp.float32)

    fwd = jax.jit(functools.partial(ae_forward, params=params))
    out = jax.block_until_ready(fwd(x))
    # 16 ->(enc)-> 2 ->(dec: x2, same, x2, +2, x2, same)-> 20 (matches torch)
    assert out.shape == (2, 1, 20, 20), out.shape

    ref = jax.block_until_ready(jax.jit(
        functools.partial(ref_forward, params=params))(x))
    assert jnp.allclose(out, ref, atol=1e-4, rtol=1e-4), \
        float(jnp.max(jnp.abs(out - ref)))
    print("KERNEL_OK")
</pallas_src>

<mosaic_0001>
module attributes {stable_mosaic.version = 11 : i64} {
  func.func @_ae_kernel(%arg0: i32, %arg1: memref<36x18x1xf32, #tpu.memory_space<vmem>>, %arg2: memref<9x16xf32, #tpu.memory_space<vmem>>, %arg3: memref<1x16xf32, #tpu.memory_space<vmem>>, %arg4: memref<144x8xf32, #tpu.memory_space<vmem>>, %arg5: memref<1x8xf32, #tpu.memory_space<vmem>>, %arg6: memref<72x8xf32, #tpu.memory_space<vmem>>, %arg7: memref<1x8xf32, #tpu.memory_space<vmem>>, %arg8: memref<72x8xf32, #tpu.memory_space<vmem>>, %arg9: memref<1x8xf32, #tpu.memory_space<vmem>>, %arg10: memref<72x8xf32, #tpu.memory_space<vmem>>, %arg11: memref<1x8xf32, #tpu.memory_space<vmem>>, %arg12: memref<72x16xf32, #tpu.memory_space<vmem>>, %arg13: memref<1x16xf32, #tpu.memory_space<vmem>>, %arg14: memref<144x1xf32, #tpu.memory_space<vmem>>, %arg15: memref<1x1xf32, #tpu.memory_space<vmem>>, %arg16: memref<40x20x1xf32, #tpu.memory_space<vmem>>, %arg17: memref<32x16x16xf32, #tpu.memory_space<vmem>>, %arg18: memref<20x10x16xf32, #tpu.memory_space<vmem>>, %arg19: memref<16x8x8xf32, #tpu.memory_space<vmem>>, %arg20: memref<12x6x8xf32, #tpu.memory_space<vmem>>, %arg21: memref<8x4x8xf32, #tpu.memory_space<vmem>>, %arg22: memref<8x4x8xf32, #tpu.memory_space<vmem>>, %arg23: memref<4x2x8xf32, #tpu.memory_space<vmem>>, %arg24: memref<12x6x8xf32, #tpu.memory_space<vmem>>, %arg25: memref<8x4x8xf32, #tpu.memory_space<vmem>>, %arg26: memref<24x12x8xf32, #tpu.memory_space<vmem>>, %arg27: memref<20x10x16xf32, #tpu.memory_space<vmem>>, %arg28: memref<44x22x16xf32, #tpu.memory_space<vmem>>) attributes {dimension_semantics = [#tpu.dimension_semantics<arbitrary>], iteration_bounds = array<i64: 1>, scalar_prefetch = 0 : i64, scratch_operands = 12 : i64, tpu.core_type = #tpu.core_type<tc>, window_params = [{pipeline_mode = #tpu.pipeline_mode<synchronous>, transform_indices = @transform_0, window_bounds = array<i64: 36, 18, 1>}, {pipeline_mode = #tpu.pipeline_mode<synchronous>, transform_indices = @transform_1, window_bounds = array<i64: 9, 16>}, {pipeline_mode = #tpu.pipeline_mode<synchronous>, transform_indices = @transform_2, window_bounds = array<i64: 1, 16>}, {pipeline_mode = #tpu.pipeline_mode<synchronous>, transform_indices = @transform_3, window_bounds = array<i64: 144, 8>}, {pipeline_mode = #tpu.pipeline_mode<synchronous>, transform_indices = @transform_4, window_bounds = array<i64: 1, 8>}, {pipeline_mode = #tpu.pipeline_mode<synchronous>, transform_indices = @transform_5, window_bounds = array<i64: 72, 8>}, {pipeline_mode = #tpu.pipeline_mode<synchronous>, transform_indices = @transform_6, window_bounds = array<i64: 1, 8>}, {pipeline_mode = #tpu.pipeline_mode<synchronous>, transform_indices = @transform_7, window_bounds = array<i64: 72, 8>}, {pipeline_mode = #tpu.pipeline_mode<synchronous>, transform_indices = @transform_8, window_bounds = array<i64: 1, 8>}, {pipeline_mode = #tpu.pipeline_mode<synchronous>, transform_indices = @transform_9, window_bounds = array<i64: 72, 8>}, {pipeline_mode = #tpu.pipeline_mode<synchronous>, transform_indices = @transform_10, window_bounds = array<i64: 1, 8>}, {pipeline_mode = #tpu.pipeline_mode<synchronous>, transform_indices = @transform_11, window_bounds = array<i64: 72, 16>}, {pipeline_mode = #tpu.pipeline_mode<synchronous>, transform_indices = @transform_12, window_bounds = array<i64: 1, 16>}, {pipeline_mode = #tpu.pipeline_mode<synchronous>, transform_indices = @transform_13, window_bounds = array<i64: 144, 1>}, {pipeline_mode = #tpu.pipeline_mode<synchronous>, transform_indices = @transform_14, window_bounds = array<i64: 1, 1>}, {pipeline_mode = #tpu.pipeline_mode<synchronous>, transform_indices = @transform_15, window_bounds = array<i64: 40, 20, 1>}]} {
    %cst = arith.constant 0.000000e+00 : f32
    %0 = vector.broadcast %cst : f32 to vector<20x10x16xf32>
    %c0 = arith.constant 0 : index
    %c0_0 = arith.constant 0 : index
    %c0_1 = arith.constant 0 : index
    %1 = vector.load %arg18[%c0, %c0_0, %c0_1] : memref<20x10x16xf32, #tpu.memory_space<vmem>>, vector<20x10x16xf32>
    tpu.vector_store %arg18[%c0, %c0_0, %c0_1], %0 {strides = array<i32>} : memref<20x10x16xf32, #tpu.memory_space<vmem>>, vector<20x10x16xf32>,
    %cst_2 = arith.constant 0.000000e+00 : f32
    %2 = vector.broadcast %cst_2 : f32 to vector<12x6x8xf32>
    %c0_3 = arith.constant 0 : index
    %c0_4 = arith.constant 0 : index
    %c0_5 = arith.constant 0 : index
    %3 = vector.load %arg20[%c0_3, %c0_4, %c0_5] : memref<12x6x8xf32, #tpu.memory_space<vmem>>, vector<12x6x8xf32>
    tpu.vector_store %arg20[%c0_3, %c0_4, %c0_5], %2 {strides = array<i32>} : memref<12x6x8xf32, #tpu.memory_space<vmem>>, vector<12x6x8xf32>,
    %cst_6 = arith.constant 0.000000e+00 : f32
    %4 = vector.broadcast %cst_6 : f32 to vector<8x4x8xf32>
    %c0_7 = arith.constant 0 : index
    %c0_8 = arith.constant 0 : index
    %c0_9 = arith.constant 0 : index
    %5 = vector.load %arg22[%c0_7, %c0_8, %c0_9] : memref<8x4x8xf32, #tpu.memory_space<vmem>>, vector<8x4x8xf32>
    tpu.vector_store %arg22[%c0_7, %c0_8, %c0_9], %4 {strides = array<i32>} : memref<8x4x8xf32, #tpu.memory_space<vmem>>, vector<8x4x8xf32>,
    %cst_10 = arith.constant 0.000000e+00 : f32
    %6 = vector.broadcast %cst_10 : f32 to vector<12x6x8xf32>
    %c0_11 = arith.constant 0 : index
    %c0_12 = arith.constant 0 : index
    %c0_13 = arith.constant 0 : index
    %7 = vector.load %arg24[%c0_11, %c0_12, %c0_13] : memref<12x6x8xf32, #tpu.memory_space<vmem>>, vector<12x6x8xf32>
    tpu.vector_store %arg24[%c0_11, %c0_12, %c0_13], %6 {strides = array<i32>} : memref<12x6x8xf32, #tpu.memory_space<vmem>>, vector<12x6x8xf32>,
    %cst_14 = arith.constant 0.000000e+00 : f32
    %8 = vector.broadcast %cst_14 : f32 to vector<24x12x8xf32>
    %c0_15 = arith.constant 0 : index
    %c0_16 = arith.constant 0 : index
    %c0_17 = arith.constant 0 : index
    %9 = vector.load %arg26[%c0_15, %c0_16, %c0_17] : memref<24x12x8xf32, #tpu.memory_space<vmem>>, vector<24x12x8xf32>
    tpu.vector_store %arg26[%c0_15, %c0_16, %c0_17], %8 {strides = array<i32>} : memref<24x12x8xf32, #tpu.memory_space<vmem>>, vector<24x12x8xf32>,
    %cst_18 = arith.constant 0.000000e+00 : f32
    %10 = vector.broadcast %cst_18 : f32 to vector<44x22x16xf32>
    %c0_19 = arith.constant 0 : index
    %c0_20 = arith.constant 0 : index
    %c0_21 = arith.constant 0 : index
    %11 = vector.load %arg28[%c0_19, %c0_20, %c0_21] : memref<44x22x16xf32, #tpu.memory_space<vmem>>, vector<44x22x16xf32>
    tpu.vector_store %arg28[%c0_19, %c0_20, %c0_21], %10 {strides = array<i32>} : memref<44x22x16xf32, #tpu.memory_space<vmem>>, vector<44x22x16xf32>,
    %c0_22 = arith.constant 0 : index
    %c0_23 = arith.constant 0 : index
    %12 = vector.load %arg2[%c0_22, %c0_23] : memref<9x16xf32, #tpu.memory_space<vmem>>, vector<9x16xf32>
    %c0_24 = arith.constant 0 : index
    %c0_25 = arith.constant 0 : index
    %13 = vector.load %arg3[%c0_24, %c0_25] : memref<1x16xf32, #tpu.memory_space<vmem>>, vector<1x16xf32>
    %c0_i32 = arith.constant 0 : i32
    %c16_i32 = arith.constant 16 : i32
    %14 = arith.addi %c0_i32, %c16_i32 : i32
    %c1_i32 = arith.constant 1 : i32
    scf.for %arg29 = %c0_i32 to %14 step %c1_i32  : i32 {
      %c0_i32_164 = arith.constant 0 : i32
      %118 = arith.addi %c0_i32_164, %arg29 : i32
      %c0_i32_165 = arith.constant 0 : i32
      %119 = arith.addi %118, %c0_i32_165 : i32
      %120 = arith.index_cast %119 : i32 to index
      %c0_166 = arith.constant 0 : index
      %c0_167 = arith.constant 0 : index
      %121 = vector.load %arg1[%120, %c0_166, %c0_167] : memref<36x18x1xf32, #tpu.memory_space<vmem>>, vector<1x18x1xf32>
      %122 = vector.shape_cast %121 : vector<1x18x1xf32> to vector<18x1xf32>
      %c0_i32_168 = arith.constant 0 : i32
      %123 = arith.addi %c0_i32_168, %arg29 : i32
      %c1_i32_169 = arith.constant 1 : i32
      %124 = arith.addi %123, %c1_i32_169 : i32
      %125 = arith.index_cast %124 : i32 to index
      %c0_170 = arith.constant 0 : index
      %c0_171 = arith.constant 0 : index
      %126 = vector.load %arg1[%125, %c0_170, %c0_171] : memref<36x18x1xf32, #tpu.memory_space<vmem>>, vector<1x18x1xf32>
      %127 = vector.shape_cast %126 : vector<1x18x1xf32> to vector<18x1xf32>
      %c0_i32_172 = arith.constant 0 : i32
      %128 = arith.addi %c0_i32_172, %arg29 : i32
      %c2_i32_173 = arith.constant 2 : i32
      %129 = arith.addi %128, %c2_i32_173 : i32
      %130 = arith.index_cast %129 : i32 to index
      %c0_174 = arith.constant 0 : index
      %c0_175 = arith.constant 0 : index
      %131 = vector.load %arg1[%130, %c0_174, %c0_175] : memref<36x18x1xf32, #tpu.memory_space<vmem>>, vector<1x18x1xf32>
      %132 = vector.shape_cast %131 : vector<1x18x1xf32> to vector<18x1xf32>
      %cst_176 = arith.constant 0.000000e+00 : f32
      %133 = vector.broadcast %cst_176 : f32 to vector<16x16xf32>
      %134 = vector.extract_strided_slice %122 {offsets = [0, 0], sizes = [16, 1], strides = [1, 1]} : vector<18x1xf32> to vector<16x1xf32>
      %135 = vector.extract_strided_slice %12 {offsets = [0, 0], sizes = [1, 16], strides = [1, 1]} : vector<9x16xf32> to vector<1x16xf32>
      %136 = vector.broadcast %134 : vector<16x1xf32> to vector<16x16xf32>
      %137 = vector.broadcast %135 : vector<1x16xf32> to vector<16x16xf32>
      %138 = arith.mulf %136, %137 : vector<16x16xf32>
      %139 = arith.addf %133, %138 : vector<16x16xf32>
      %140 = vector.extract_strided_slice %122 {offsets = [1, 0], sizes = [16, 1], strides = [1, 1]} : vector<18x1xf32> to vector<16x1xf32>
      %141 = vector.extract_strided_slice %12 {offsets = [1, 0], sizes = [1, 16], strides = [1, 1]} : vector<9x16xf32> to vector<1x16xf32>
      %142 = vector.broadcast %140 : vector<16x1xf32> to vector<16x16xf32>
      %143 = vector.broadcast %141 : vector<1x16xf32> to vector<16x16xf32>
      %144 = arith.mulf %142, %143 : vector<16x16xf32>
      %145 = arith.addf %139, %144 : vector<16x16xf32>
      %146 = vector.extract_strided_slice %122 {offsets = [2, 0], sizes = [16, 1], strides = [1, 1]} : vector<18x1xf32> to vector<16x1xf32>
      %147 = vector.extract_strided_slice %12 {offsets = [2, 0], sizes = [1, 16], strides = [1, 1]} : vector<9x16xf32> to vector<1x16xf32>
      %148 = vector.broadcast %146 : vector<16x1xf32> to vector<16x16xf32>
      %149 = vector.broadcast %147 : vector<1x16xf32> to vector<16x16xf32>
      %150 = arith.mulf %148, %149 : vector<16x16xf32>
      %151 = arith.addf %145, %150 : vector<16x16xf32>
      %152 = vector.extract_strided_slice %127 {offsets = [0, 0], sizes = [16, 1], strides = [1, 1]} : vector<18x1xf32> to vector<16x1xf32>
      %153 = vector.extract_strided_slice %12 {offsets = [3, 0], sizes = [1, 16], strides = [1, 1]} : vector<9x16xf32> to vector<1x16xf32>
      %154 = vector.broadcast %152 : vector<16x1xf32> to vector<16x16xf32>
      %155 = vector.broadcast %153 : vector<1x16xf32> to vector<16x16xf32>
      %156 = arith.mulf %154, %155 : vector<16x16xf32>
      %157 = arith.addf %151, %156 : vector<16x16xf32>
      %158 = vector.extract_strided_slice %127 {offsets = [1, 0], sizes = [16, 1], strides = [1, 1]} : vector<18x1xf32> to vector<16x1xf32>
      %159 = vector.extract_strided_slice %12 {offsets = [4, 0], sizes = [1, 16], strides = [1, 1]} : vector<9x16xf32> to vector<1x16xf32>
      %160 = vector.broadcast %158 : vector<16x1xf32> to vector<16x16xf32>
      %161 = vector.broadcast %159 : vector<1x16xf32> to vector<16x16xf32>
      %162 = arith.mulf %160, %161 : vector<16x16xf32>
      %163 = arith.addf %157, %162 : vector<16x16xf32>
      %164 = vector.extract_strided_slice %127 {offsets = [2, 0], sizes = [16, 1], strides = [1, 1]} : vector<18x1xf32> to vector<16x1xf32>
      %165 = vector.extract_strided_slice %12 {offsets = [5, 0], sizes = [1, 16], strides = [1, 1]} : vector<9x16xf32> to vector<1x16xf32>
      %166 = vector.broadcast %164 : vector<16x1xf32> to vector<16x16xf32>
      %167 = vector.broadcast %165 : vector<1x16xf32> to vector<16x16xf32>
      %168 = arith.mulf %166, %167 : vector<16x16xf32>
      %169 = arith.addf %163, %168 : vector<16x16xf32>
      %170 = vector.extract_strided_slice %132 {offsets = [0, 0], sizes = [16, 1], strides = [1, 1]} : vector<18x1xf32> to vector<16x1xf32>
      %171 = vector.extract_strided_slice %12 {offsets = [6, 0], sizes = [1, 16], strides = [1, 1]} : vector<9x16xf32> to vector<1x16xf32>
      %172 = vector.broadcast %170 : vector<16x1xf32> to vector<16x16xf32>
      %173 = vector.broadcast %171 : vector<1x16xf32> to vector<16x16xf32>
      %174 = arith.mulf %172, %173 : vector<16x16xf32>
      %175 = arith.addf %169, %174 : vector<16x16xf32>
      %176 = vector.extract_strided_slice %132 {offsets = [1, 0], sizes = [16, 1], strides = [1, 1]} : vector<18x1xf32> to vector<16x1xf32>
      %177 = vector.extract_strided_slice %12 {offsets = [7, 0], sizes = [1, 16], strides = [1, 1]} : vector<9x16xf32> to vector<1x16xf32>
      %178 = vector.broadcast %176 : vector<16x1xf32> to vector<16x16xf32>
      %179 = vector.broadcast %177 : vector<1x16xf32> to vector<16x16xf32>
      %180 = arith.mulf %178, %179 : vector<16x16xf32>
      %181 = arith.addf %175, %180 : vector<16x16xf32>
      %182 = vector.extract_strided_slice %132 {offsets = [2, 0], sizes = [16, 1], strides = [1, 1]} : vector<18x1xf32> to vector<16x1xf32>
      %183 = vector.extract_strided_slice %12 {offsets = [8, 0], sizes = [1, 16], strides = [1, 1]} : vector<9x16xf32> to vector<1x16xf32>
      %184 = vector.broadcast %182 : vector<16x1xf32> to vector<16x16xf32>
      %185 = vector.broadcast %183 : vector<1x16xf32> to vector<16x16xf32>
      %186 = arith.mulf %184, %185 : vector<16x16xf32>
      %187 = arith.addf %181, %186 : vector<16x16xf32>
      %188 = vector.broadcast %13 : vector<1x16xf32> to vector<16x16xf32>
      %189 = arith.addf %187, %188 : vector<16x16xf32>
      %c0_i32_177 = arith.constant 0 : i32
      %190 = arith.addi %c0_i32_177, %arg29 : i32
      %191 = arith.index_cast %190 : i32 to index
      %c0_178 = arith.constant 0 : index
      %c0_179 = arith.constant 0 : index
      %192 = vector.load %arg17[%191, %c0_178, %c0_179] : memref<32x16x16xf32, #tpu.memory_space<vmem>>, vector<1x16x16xf32>
      %193 = vector.shape_cast %192 : vector<1x16x16xf32> to vector<16x16xf32>
      %194 = vector.shape_cast %189 : vector<16x16xf32> to vector<1x16x16xf32>
      tpu.vector_store %arg17[%191, %c0_178, %c0_179], %194 {strides = array<i32>} : memref<32x16x16xf32, #tpu.memory_space<vmem>>, vector<1x16x16xf32>,
    }
    %c16_i32_26 = arith.constant 16 : i32
    %c0_i32_27 = arith.constant 0 : i32
    %c16_i32_28 = arith.constant 16 : i32
    %15 = arith.addi %c0_i32_27, %c16_i32_28 : i32
    %c1_i32_29 = arith.constant 1 : i32
    scf.for %arg29 = %c0_i32_27 to %15 step %c1_i32_29  : i32 {
      %c18_i32 = arith.constant 18 : i32
      %118 = arith.addi %c18_i32, %arg29 : i32
      %c0_i32_164 = arith.constant 0 : i32
      %119 = arith.addi %118, %c0_i32_164 : i32
      %120 = arith.index_cast %119 : i32 to index
      %c0_165 = arith.constant 0 : index
      %c0_166 = arith.constant 0 : index
      %121 = vector.load %arg1[%120, %c0_165, %c0_166] : memref<36x18x1xf32, #tpu.memory_space<vmem>>, vector<1x18x1xf32>
      %122 = vector.shape_cast %121 : vector<1x18x1xf32> to vector<18x1xf32>
      %c18_i32_167 = arith.constant 18 : i32
      %123 = arith.addi %c18_i32_167, %arg29 : i32
      %c1_i32_168 = arith.constant 1 : i32
      %124 = arith.addi %123, %c1_i32_168 : i32
      %125 = arith.index_cast %124 : i32 to index
      %c0_169 = arith.constant 0 : index
      %c0_170 = arith.constant 0 : index
      %126 = vector.load %arg1[%125, %c0_169, %c0_170] : memref<36x18x1xf32, #tpu.memory_space<vmem>>, vector<1x18x1xf32>
      %127 = vector.shape_cast %126 : vector<1x18x1xf32> to vector<18x1xf32>
      %c18_i32_171 = arith.constant 18 : i32
      %128 = arith.addi %c18_i32_171, %arg29 : i32
      %c2_i32_172 = arith.constant 2 : i32
      %129 = arith.addi %128, %c2_i32_172 : i32
      %130 = arith.index_cast %129 : i32 to index
      %c0_173 = arith.constant 0 : index
      %c0_174 = arith.constant 0 : index
      %131 = vector.load %arg1[%130, %c0_173, %c0_174] : memref<36x18x1xf32, #tpu.memory_space<vmem>>, vector<1x18x1xf32>
      %132 = vector.shape_cast %131 : vector<1x18x1xf32> to vector<18x1xf32>
      %cst_175 = arith.constant 0.000000e+00 : f32
      %133 = vector.broadcast %cst_175 : f32 to vector<16x16xf32>
      %134 = vector.extract_strided_slice %122 {offsets = [0, 0], sizes = [16, 1], strides = [1, 1]} : vector<18x1xf32> to vector<16x1xf32>
      %135 = vector.extract_strided_slice %12 {offsets = [0, 0], sizes = [1, 16], strides = [1, 1]} : vector<9x16xf32> to vector<1x16xf32>
      %136 = vector.broadcast %134 : vector<16x1xf32> to vector<16x16xf32>
      %137 = vector.broadcast %135 : vector<1x16xf32> to vector<16x16xf32>
      %138 = arith.mulf %136, %137 : vector<16x16xf32>
      %139 = arith.addf %133, %138 : vector<16x16xf32>
      %140 = vector.extract_strided_slice %122 {offsets = [1, 0], sizes = [16, 1], strides = [1, 1]} : vector<18x1xf32> to vector<16x1xf32>
      %141 = vector.extract_strided_slice %12 {offsets = [1, 0], sizes = [1, 16], strides = [1, 1]} : vector<9x16xf32> to vector<1x16xf32>
      %142 = vector.broadcast %140 : vector<16x1xf32> to vector<16x16xf32>
      %143 = vector.broadcast %141 : vector<1x16xf32> to vector<16x16xf32>
      %144 = arith.mulf %142, %143 : vector<16x16xf32>
      %145 = arith.addf %139, %144 : vector<16x16xf32>
      %146 = vector.extract_strided_slice %122 {offsets = [2, 0], sizes = [16, 1], strides = [1, 1]} : vector<18x1xf32> to vector<16x1xf32>
      %147 = vector.extract_strided_slice %12 {offsets = [2, 0], sizes = [1, 16], strides = [1, 1]} : vector<9x16xf32> to vector<1x16xf32>
      %148 = vector.broadcast %146 : vector<16x1xf32> to vector<16x16xf32>
      %149 = vector.broadcast %147 : vector<1x16xf32> to vector<16x16xf32>
      %150 = arith.mulf %148, %149 : vector<16x16xf32>
      %151 = arith.addf %145, %150 : vector<16x16xf32>
      %152 = vector.extract_strided_slice %127 {offsets = [0, 0], sizes = [16, 1], strides = [1, 1]} : vector<18x1xf32> to vector<16x1xf32>
      %153 = vector.extract_strided_slice %12 {offsets = [3, 0], sizes = [1, 16], strides = [1, 1]} : vector<9x16xf32> to vector<1x16xf32>
      %154 = vector.broadcast %152 : vector<16x1xf32> to vector<16x16xf32>
      %155 = vector.broadcast %153 : vector<1x16xf32> to vector<16x16xf32>
      %156 = arith.mulf %154, %155 : vector<16x16xf32>
      %157 = arith.addf %151, %156 : vector<16x16xf32>
      %158 = vector.extract_strided_slice %127 {offsets = [1, 0], sizes = [16, 1], strides = [1, 1]} : vector<18x1xf32> to vector<16x1xf32>
      %159 = vector.extract_strided_slice %12 {offsets = [4, 0], sizes = [1, 16], strides = [1, 1]} : vector<9x16xf32> to vector<1x16xf32>
      %160 = vector.broadcast %158 : vector<16x1xf32> to vector<16x16xf32>
      %161 = vector.broadcast %159 : vector<1x16xf32> to vector<16x16xf32>
      %162 = arith.mulf %160, %161 : vector<16x16xf32>
      %163 = arith.addf %157, %162 : vector<16x16xf32>
      %164 = vector.extract_strided_slice %127 {offsets = [2, 0], sizes = [16, 1], strides = [1, 1]} : vector<18x1xf32> to vector<16x1xf32>
      %165 = vector.extract_strided_slice %12 {offsets = [5, 0], sizes = [1, 16], strides = [1, 1]} : vector<9x16xf32> to vector<1x16xf32>
      %166 = vector.broadcast %164 : vector<16x1xf32> to vector<16x16xf32>
      %167 = vector.broadcast %165 : vector<1x16xf32> to vector<16x16xf32>
      %168 = arith.mulf %166, %167 : vector<16x16xf32>
      %169 = arith.addf %163, %168 : vector<16x16xf32>
      %170 = vector.extract_strided_slice %132 {offsets = [0, 0], sizes = [16, 1], strides = [1, 1]} : vector<18x1xf32> to vector<16x1xf32>
      %171 = vector.extract_strided_slice %12 {offsets = [6, 0], sizes = [1, 16], strides = [1, 1]} : vector<9x16xf32> to vector<1x16xf32>
      %172 = vector.broadcast %170 : vector<16x1xf32> to vector<16x16xf32>
      %173 = vector.broadcast %171 : vector<1x16xf32> to vector<16x16xf32>
      %174 = arith.mulf %172, %173 : vector<16x16xf32>
      %175 = arith.addf %169, %174 : vector<16x16xf32>
      %176 = vector.extract_strided_slice %132 {offsets = [1, 0], sizes = [16, 1], strides = [1, 1]} : vector<18x1xf32> to vector<16x1xf32>
      %177 = vector.extract_strided_slice %12 {offsets = [7, 0], sizes = [1, 16], strides = [1, 1]} : vector<9x16xf32> to vector<1x16xf32>
      %178 = vector.broadcast %176 : vector<16x1xf32> to vector<16x16xf32>
      %179 = vector.broadcast %177 : vector<1x16xf32> to vector<16x16xf32>
      %180 = arith.mulf %178, %179 : vector<16x16xf32>
      %181 = arith.addf %175, %180 : vector<16x16xf32>
      %182 = vector.extract_strided_slice %132 {offsets = [2, 0], sizes = [16, 1], strides = [1, 1]} : vector<18x1xf32> to vector<16x1xf32>
      %183 = vector.extract_strided_slice %12 {offsets = [8, 0], sizes = [1, 16], strides = [1, 1]} : vector<9x16xf32> to vector<1x16xf32>
      %184 = vector.broadcast %182 : vector<16x1xf32> to vector<16x16xf32>
      %185 = vector.broadcast %183 : vector<1x16xf32> to vector<16x16xf32>
      %186 = arith.mulf %184, %185 : vector<16x16xf32>
      %187 = arith.addf %181, %186 : vector<16x16xf32>
      %188 = vector.broadcast %13 : vector<1x16xf32> to vector<16x16xf32>
      %189 = arith.addf %187, %188 : vector<16x16xf32>
      %c16_i32_176 = arith.constant 16 : i32
      %190 = arith.addi %c16_i32_176, %arg29 : i32
      %191 = arith.index_cast %190 : i32 to index
      %c0_177 = arith.constant 0 : index
      %c0_178 = arith.constant 0 : index
      %192 = vector.load %arg17[%191, %c0_177, %c0_178] : memref<32x16x16xf32, #tpu.memory_space<vmem>>, vector<1x16x16xf32>
      %193 = vector.shape_cast %192 : vector<1x16x16xf32> to vector<16x16xf32>
      %194 = vector.shape_cast %189 : vector<16x16xf32> to vector<1x16x16xf32>
      tpu.vector_store %arg17[%191, %c0_177, %c0_178], %194 {strides = array<i32>} : memref<32x16x16xf32, #tpu.memory_space<vmem>>, vector<1x16x16xf32>,
    }
    %c16_i32_30 = arith.constant 16 : i32
    %16 = tpu.iota {dimensions = array<i32: 0>} : vector<8x15xi32>
    %17 = tpu.iota {dimensions = array<i32: 1>} : vector<8x15xi32>
    %c2_i32 = arith.constant 2 : i32
    %18 = vector.broadcast %c2_i32 : i32 to vector<8x15xi32>
    %19 = arith.muli %18, %16 : vector<8x15xi32>
    %20 = arith.cmpi eq, %17, %19 : vector<8x15xi32>
    %21 = arith.extui %20 : vector<8x15xi1> to vector<8x15xi32>
    %22 = arith.sitofp %21 : vector<8x15xi32> to vector<8x15xf32>
    %cst_31 = arith.constant 0.000000e+00 : f32
    %23 = vector.broadcast %cst_31 : f32 to vector<1x16xf32>
    %c0_i32_32 = arith.constant 0 : i32
    %c8_i32 = arith.constant 8 : i32
    %24 = arith.addi %c0_i32_32, %c8_i32 : i32
    %c1_i32_33 = arith.constant 1 : i32
    scf.for %arg29 = %c0_i32_32 to %24 step %c1_i32_33  : i32 {
      %c2_i32_164 = arith.constant 2 : i32
      %118 = arith.muli %c2_i32_164, %arg29 : i32
      %c0_i32_165 = arith.constant 0 : i32
      %119 = arith.addi %c0_i32_165, %118 : i32
      %120 = arith.index_cast %119 : i32 to index
      %c0_166 = arith.constant 0 : index
      %c0_167 = arith.constant 0 : index
      %121 = vector.load %arg17[%120, %c0_166, %c0_167] : memref<32x16x16xf32, #tpu.memory_space<vmem>>, vector<1x16x16xf32>
      %122 = vector.shape_cast %121 : vector<1x16x16xf32> to vector<16x16xf32>
      %c2_i32_168 = arith.constant 2 : i32
      %123 = arith.muli %c2_i32_168, %arg29 : i32
      %c0_i32_169 = arith.constant 0 : i32
      %124 = arith.addi %c0_i32_169, %123 : i32
      %c1_i32_170 = arith.constant 1 : i32
      %125 = arith.addi %124, %c1_i32_170 : i32
      %126 = arith.index_cast %125 : i32 to index
      %c0_171 = arith.constant 0 : index
      %c0_172 = arith.constant 0 : index
      %127 = vector.load %arg17[%126, %c0_171, %c0_172] : memref<32x16x16xf32, #tpu.memory_space<vmem>>, vector<1x16x16xf32>
      %128 = vector.shape_cast %127 : vector<1x16x16xf32> to vector<16x16xf32>
      %129 = arith.maximumf %122, %128 : vector<16x16xf32>
      %130 = vector.extract_strided_slice %129 {offsets = [0, 0], sizes = [15, 16], strides = [1, 1]} : vector<16x16xf32> to vector<15x16xf32>
      %131 = vector.extract_strided_slice %129 {offsets = [1, 0], sizes = [15, 16], strides = [1, 1]} : vector<16x16xf32> to vector<15x16xf32>
      %132 = arith.maximumf %130, %131 : vector<15x16xf32>
      %cst_173 = arith.constant dense<0.000000e+00> : vector<8x16xf32>
      %133 = tpu.matmul %22, %132, %cst_173 {dimension_numbers = #tpu.dot_dimension_numbers<[1], [0], [0], [1], [0, 0, 1, 1], [], []>} : vector<8x15xf32>, vector<15x16xf32>, vector<8x16xf32> -> vector<8x16xf32>
      %134 = tpu.concatenate %23, %133, %23 in 0 : vector<1x16xf32>, vector<8x16xf32>, vector<1x16xf32> -> vector<10x16xf32>
      %c1_i32_174 = arith.constant 1 : i32
      %135 = arith.addi %c1_i32_174, %arg29 : i32
      %136 = arith.index_cast %135 : i32 to index
      %c0_175 = arith.constant 0 : index
      %c0_176 = arith.constant 0 : index
      %137 = vector.load %arg18[%136, %c0_175, %c0_176] : memref<20x10x16xf32, #tpu.memory_space<vmem>>, vector<1x10x16xf32>
      %138 = vector.shape_cast %137 : vector<1x10x16xf32> to vector<10x16xf32>
      %139 = vector.shape_cast %134 : vector<10x16xf32> to vector<1x10x16xf32>
      tpu.vector_store %arg18[%136, %c0_175, %c0_176], %139 {strides = array<i32>} : memref<20x10x16xf32, #tpu.memory_space<vmem>>, vector<1x10x16xf32>,
    }
    %c8_i32_34 = arith.constant 8 : i32
    %c0_i32_35 = arith.constant 0 : i32
    %c8_i32_36 = arith.constant 8 : i32
    %25 = arith.addi %c0_i32_35, %c8_i32_36 : i32
    %c1_i32_37 = arith.constant 1 : i32
    scf.for %arg29 = %c0_i32_35 to %25 step %c1_i32_37  : i32 {
      %c2_i32_164 = arith.constant 2 : i32
      %118 = arith.muli %c2_i32_164, %arg29 : i32
      %c16_i32_165 = arith.constant 16 : i32
      %119 = arith.addi %c16_i32_165, %118 : i32
      %120 = arith.index_cast %119 : i32 to index
      %c0_166 = arith.constant 0 : index
      %c0_167 = arith.constant 0 : index
      %121 = vector.load %arg17[%120, %c0_166, %c0_167] : memref<32x16x16xf32, #tpu.memory_space<vmem>>, vector<1x16x16xf32>
      %122 = vector.shape_cast %121 : vector<1x16x16xf32> to vector<16x16xf32>
      %c2_i32_168 = arith.constant 2 : i32
      %123 = arith.muli %c2_i32_168, %arg29 : i32
      %c16_i32_169 = arith.constant 16 : i32
      %124 = arith.addi %c16_i32_169, %123 : i32
      %c1_i32_170 = arith.constant 1 : i32
      %125 = arith.addi %124, %c1_i32_170 : i32
      %126 = arith.index_cast %125 : i32 to index
      %c0_171 = arith.constant 0 : index
      %c0_172 = arith.constant 0 : index
      %127 = vector.load %arg17[%126, %c0_171, %c0_172] : memref<32x16x16xf32, #tpu.memory_space<vmem>>, vector<1x16x16xf32>
      %128 = vector.shape_cast %127 : vector<1x16x16xf32> to vector<16x16xf32>
      %129 = arith.maximumf %122, %128 : vector<16x16xf32>
      %130 = vector.extract_strided_slice %129 {offsets = [0, 0], sizes = [15, 16], strides = [1, 1]} : vector<16x16xf32> to vector<15x16xf32>
      %131 = vector.extract_strided_slice %129 {offsets = [1, 0], sizes = [15, 16], strides = [1, 1]} : vector<16x16xf32> to vector<15x16xf32>
      %132 = arith.maximumf %130, %131 : vector<15x16xf32>
      %cst_173 = arith.constant dense<0.000000e+00> : vector<8x16xf32>
      %133 = tpu.matmul %22, %132, %cst_173 {dimension_numbers = #tpu.dot_dimension_numbers<[1], [0], [0], [1], [0, 0, 1, 1], [], []>} : vector<8x15xf32>, vector<15x16xf32>, vector<8x16xf32> -> vector<8x16xf32>
      %134 = tpu.concatenate %23, %133, %23 in 0 : vector<1x16xf32>, vector<8x16xf32>, vector<1x16xf32> -> vector<10x16xf32>
      %c11_i32 = arith.constant 11 : i32
      %135 = arith.addi %c11_i32, %arg29 : i32
      %136 = arith.index_cast %135 : i32 to index
      %c0_174 = arith.constant 0 : index
      %c0_175 = arith.constant 0 : index
      %137 = vector.load %arg18[%136, %c0_174, %c0_175] : memref<20x10x16xf32, #tpu.memory_space<vmem>>, vector<1x10x16xf32>
      %138 = vector.shape_cast %137 : vector<1x10x16xf32> to vector<10x16xf32>
      %139 = vector.shape_cast %134 : vector<10x16xf32> to vector<1x10x16xf32>
      tpu.vector_store %arg18[%136, %c0_174, %c0_175], %139 {strides = array<i32>} : memref<20x10x16xf32, #tpu.memory_space<vmem>>, vector<1x10x16xf32>,
    }
    %c8_i32_38 = arith.constant 8 : i32
    %c0_39 = arith.constant 0 : index
    %c0_40 = arith.constant 0 : index
    %26 = vector.load %arg4[%c0_39, %c0_40] : memref<144x8xf32, #tpu.memory_space<vmem>>, vector<144x8xf32>
    %c0_41 = arith.constant 0 : index
    %c0_42 = arith.constant 0 : index
    %27 = vector.load %arg5[%c0_41, %c0_42] : memref<1x8xf32, #tpu.memory_space<vmem>>, vector<1x8xf32>
    %c0_i32_43 = arith.constant 0 : i32
    %c8_i32_44 = arith.constant 8 : i32
    %28 = arith.addi %c0_i32_43, %c8_i32_44 : i32
    %c1_i32_45 = arith.constant 1 : i32
    scf.for %arg29 = %c0_i32_43 to %28 step %c1_i32_45  : i32 {
      %c0_i32_164 = arith.constant 0 : i32
      %118 = arith.addi %c0_i32_164, %arg29 : i32
      %c0_i32_165 = arith.constant 0 : i32
      %119 = arith.addi %118, %c0_i32_165 : i32
      %120 = arith.index_cast %119 : i32 to index
      %c0_166 = arith.constant 0 : index
      %c0_167 = arith.constant 0 : index
      %121 = vector.load %arg18[%120, %c0_166, %c0_167] : memref<20x10x16xf32, #tpu.memory_space<vmem>>, vector<1x10x16xf32>
      %122 = vector.shape_cast %121 : vector<1x10x16xf32> to vector<10x16xf32>
      %c0_i32_168 = arith.constant 0 : i32
      %123 = arith.addi %c0_i32_168, %arg29 : i32
      %c1_i32_169 = arith.constant 1 : i32
      %124 = arith.addi %123, %c1_i32_169 : i32
      %125 = arith.index_cast %124 : i32 to index
      %c0_170 = arith.constant 0 : index
      %c0_171 = arith.constant 0 : index
      %126 = vector.load %arg18[%125, %c0_170, %c0_171] : memref<20x10x16xf32, #tpu.memory_space<vmem>>, vector<1x10x16xf32>
      %127 = vector.shape_cast %126 : vector<1x10x16xf32> to vector<10x16xf32>
      %c0_i32_172 = arith.constant 0 : i32
      %128 = arith.addi %c0_i32_172, %arg29 : i32
      %c2_i32_173 = arith.constant 2 : i32
      %129 = arith.addi %128, %c2_i32_173 : i32
      %130 = arith.index_cast %129 : i32 to index
      %c0_174 = arith.constant 0 : index
      %c0_175 = arith.constant 0 : index
      %131 = vector.load %arg18[%130, %c0_174, %c0_175] : memref<20x10x16xf32, #tpu.memory_space<vmem>>, vector<1x10x16xf32>
      %132 = vector.shape_cast %131 : vector<1x10x16xf32> to vector<10x16xf32>
      %cst_176 = arith.constant 0.000000e+00 : f32
      %133 = vector.broadcast %cst_176 : f32 to vector<8x8xf32>
      %134 = vector.extract_strided_slice %122 {offsets = [0, 0], sizes = [8, 16], strides = [1, 1]} : vector<10x16xf32> to vector<8x16xf32>
      %135 = vector.extract_strided_slice %26 {offsets = [0, 0], sizes = [16, 8], strides = [1, 1]} : vector<144x8xf32> to vector<16x8xf32>
      %cst_177 = arith.constant dense<0.000000e+00> : vector<8x8xf32>
      %136 = tpu.matmul %134, %135, %cst_177 {dimension_numbers = #tpu.dot_dimension_numbers<[1], [0], [0], [1], [0, 0, 1, 1], [], []>} : vector<8x16xf32>, vector<16x8xf32>, vector<8x8xf32> -> vector<8x8xf32>
      %137 = arith.addf %133, %136 : vector<8x8xf32>
      %138 = vector.extract_strided_slice %122 {offsets = [1, 0], sizes = [8, 16], strides = [1, 1]} : vector<10x16xf32> to vector<8x16xf32>
      %139 = vector.extract_strided_slice %26 {offsets = [16, 0], sizes = [16, 8], strides = [1, 1]} : vector<144x8xf32> to vector<16x8xf32>
      %cst_178 = arith.constant dense<0.000000e+00> : vector<8x8xf32>
      %140 = tpu.matmul %138, %139, %cst_178 {dimension_numbers = #tpu.dot_dimension_numbers<[1], [0], [0], [1], [0, 0, 1, 1], [], []>} : vector<8x16xf32>, vector<16x8xf32>, vector<8x8xf32> -> vector<8x8xf32>
      %141 = arith.addf %137, %140 : vector<8x8xf32>
      %142 = vector.extract_strided_slice %122 {offsets = [2, 0], sizes = [8, 16], strides = [1, 1]} : vector<10x16xf32> to vector<8x16xf32>
      %143 = vector.extract_strided_slice %26 {offsets = [32, 0], sizes = [16, 8], strides = [1, 1]} : vector<144x8xf32> to vector<16x8xf32>
      %cst_179 = arith.constant dense<0.000000e+00> : vector<8x8xf32>
      %144 = tpu.matmul %142, %143, %cst_179 {dimension_numbers = #tpu.dot_dimension_numbers<[1], [0], [0], [1], [0, 0, 1, 1], [], []>} : vector<8x16xf32>, vector<16x8xf32>, vector<8x8xf32> -> vector<8x8xf32>
      %145 = arith.addf %141, %144 : vector<8x8xf32>
      %146 = vector.extract_strided_slice %127 {offsets = [0, 0], sizes = [8, 16], strides = [1, 1]} : vector<10x16xf32> to vector<8x16xf32>
      %147 = vector.extract_strided_slice %26 {offsets = [48, 0], sizes = [16, 8], strides = [1, 1]} : vector<144x8xf32> to vector<16x8xf32>
      %cst_180 = arith.constant dense<0.000000e+00> : vector<8x8xf32>
      %148 = tpu.matmul %146, %147, %cst_180 {dimension_numbers = #tpu.dot_dimension_numbers<[1], [0], [0], [1], [0, 0, 1, 1], [], []>} : vector<8x16xf32>, vector<16x8xf32>, vector<8x8xf32> -> vector<8x8xf32>
      %149 = arith.addf %145, %148 : vector<8x8xf32>
      %150 = vector.extract_strided_slice %127 {offsets = [1, 0], sizes = [8, 16], strides = [1, 1]} : vector<10x16xf32> to vector<8x16xf32>
      %151 = vector.extract_strided_slice %26 {offsets = [64, 0], sizes = [16, 8], strides = [1, 1]} : vector<144x8xf32> to vector<16x8xf32>
      %cst_181 = arith.constant dense<0.000000e+00> : vector<8x8xf32>
      %152 = tpu.matmul %150, %151, %cst_181 {dimension_numbers = #tpu.dot_dimension_numbers<[1], [0], [0], [1], [0, 0, 1, 1], [], []>} : vector<8x16xf32>, vector<16x8xf32>, vector<8x8xf32> -> vector<8x8xf32>
      %153 = arith.addf %149, %152 : vector<8x8xf32>
      %154 = vector.extract_strided_slice %127 {offsets = [2, 0], sizes = [8, 16], strides = [1, 1]} : vector<10x16xf32> to vector<8x16xf32>
      %155 = vector.extract_strided_slice %26 {offsets = [80, 0], sizes = [16, 8], strides = [1, 1]} : vector<144x8xf32> to vector<16x8xf32>
      %cst_182 = arith.constant dense<0.000000e+00> : vector<8x8xf32>
      %156 = tpu.matmul %154, %155, %cst_182 {dimension_numbers = #tpu.dot_dimension_numbers<[1], [0], [0], [1], [0, 0, 1, 1], [], []>} : vector<8x16xf32>, vector<16x8xf32>, vector<8x8xf32> -> vector<8x8xf32>
      %157 = arith.addf %153, %156 : vector<8x8xf32>
      %158 = vector.extract_strided_slice %132 {offsets = [0, 0], sizes = [8, 16], strides = [1, 1]} : vector<10x16xf32> to vector<8x16xf32>
      %159 = vector.extract_strided_slice %26 {offsets = [96, 0], sizes = [16, 8], strides = [1, 1]} : vector<144x8xf32> to vector<16x8xf32>
      %cst_183 = arith.constant dense<0.000000e+00> : vector<8x8xf32>
      %160 = tpu.matmul %158, %159, %cst_183 {dimension_numbers = #tpu.dot_dimension_numbers<[1], [0], [0], [1], [0, 0, 1, 1], [], []>} : vector<8x16xf32>, vector<16x8xf32>, vector<8x8xf32> -> vector<8x8xf32>
      %161 = arith.addf %157, %160 : vector<8x8xf32>
      %162 = vector.extract_strided_slice %132 {offsets = [1, 0], sizes = [8, 16], strides = [1, 1]} : vector<10x16xf32> to vector<8x16xf32>
      %163 = vector.extract_strided_slice %26 {offsets = [112, 0], sizes = [16, 8], strides = [1, 1]} : vector<144x8xf32> to vector<16x8xf32>
      %cst_184 = arith.constant dense<0.000000e+00> : vector<8x8xf32>
      %164 = tpu.matmul %162, %163, %cst_184 {dimension_numbers = #tpu.dot_dimension_numbers<[1], [0], [0], [1], [0, 0, 1, 1], [], []>} : vector<8x16xf32>, vector<16x8xf32>, vector<8x8xf32> -> vector<8x8xf32>
      %165 = arith.addf %161, %164 : vector<8x8xf32>
      %166 = vector.extract_strided_slice %132 {offsets = [2, 0], sizes = [8, 16], strides = [1, 1]} : vector<10x16xf32> to vector<8x16xf32>
      %167 = vector.extract_strided_slice %26 {offsets = [128, 0], sizes = [16, 8], strides = [1, 1]} : vector<144x8xf32> to vector<16x8xf32>
      %cst_185 = arith.constant dense<0.000000e+00> : vector<8x8xf32>
      %168 = tpu.matmul %166, %167, %cst_185 {dimension_numbers = #tpu.dot_dimension_numbers<[1], [0], [0], [1], [0, 0, 1, 1], [], []>} : vector<8x16xf32>, vector<16x8xf32>, vector<8x8xf32> -> vector<8x8xf32>
      %169 = arith.addf %165, %168 : vector<8x8xf32>
      %170 = vector.broadcast %27 : vector<1x8xf32> to vector<8x8xf32>
      %171 = arith.addf %169, %170 : vector<8x8xf32>
      %c0_i32_186 = arith.constant 0 : i32
      %172 = arith.addi %c0_i32_186, %arg29 : i32
      %173 = arith.index_cast %172 : i32 to index
      %c0_187 = arith.constant 0 : index
      %c0_188 = arith.constant 0 : index
      %174 = vector.load %arg19[%173, %c0_187, %c0_188] : memref<16x8x8xf32, #tpu.memory_space<vmem>>, vector<1x8x8xf32>
      %175 = vector.shape_cast %174 : vector<1x8x8xf32> to vector<8x8xf32>
      %176 = vector.shape_cast %171 : vector<8x8xf32> to vector<1x8x8xf32>
      tpu.vector_store %arg19[%173, %c0_187, %c0_188], %176 {strides = array<i32>} : memref<16x8x8xf32, #tpu.memory_space<vmem>>, vector<1x8x8xf32>,
    }
    %c8_i32_46 = arith.constant 8 : i32
    %c0_i32_47 = arith.constant 0 : i32
    %c8_i32_48 = arith.constant 8 : i32
    %29 = arith.addi %c0_i32_47, %c8_i32_48 : i32
    %c1_i32_49 = arith.constant 1 : i32
    scf.for %arg29 = %c0_i32_47 to %29 step %c1_i32_49  : i32 {
      %c10_i32_164 = arith.constant 10 : i32
      %118 = arith.addi %c10_i32_164, %arg29 : i32
      %c0_i32_165 = arith.constant 0 : i32
      %119 = arith.addi %118, %c0_i32_165 : i32
      %120 = arith.index_cast %119 : i32 to index
      %c0_166 = arith.constant 0 : index
      %c0_167 = arith.constant 0 : index
      %121 = vector.load %arg18[%120, %c0_166, %c0_167] : memref<20x10x16xf32, #tpu.memory_space<vmem>>, vector<1x10x16xf32>
      %122 = vector.shape_cast %121 : vector<1x10x16xf32> to vector<10x16xf32>
      %c10_i32_168 = arith.constant 10 : i32
      %123 = arith.addi %c10_i32_168, %arg29 : i32
      %c1_i32_169 = arith.constant 1 : i32
      %124 = arith.addi %123, %c1_i32_169 : i32
      %125 = arith.index_cast %124 : i32 to index
      %c0_170 = arith.constant 0 : index
      %c0_171 = arith.constant 0 : index
      %126 = vector.load %arg18[%125, %c0_170, %c0_171] : memref<20x10x16xf32, #tpu.memory_space<vmem>>, vector<1x10x16xf32>
      %127 = vector.shape_cast %126 : vector<1x10x16xf32> to vector<10x16xf32>
      %c10_i32_172 = arith.constant 10 : i32
      %128 = arith.addi %c10_i32_172, %arg29 : i32
      %c2_i32_173 = arith.constant 2 : i32
      %129 = arith.addi %128, %c2_i32_173 : i32
      %130 = arith.index_cast %129 : i32 to index
      %c0_174 = arith.constant 0 : index
      %c0_175 = arith.constant 0 : index
      %131 = vector.load %arg18[%130, %c0_174, %c0_175] : memref<20x10x16xf32, #tpu.memory_space<vmem>>, vector<1x10x16xf32>
      %132 = vector.shape_cast %131 : vector<1x10x16xf32> to vector<10x16xf32>
      %cst_176 = arith.constant 0.000000e+00 : f32
      %133 = vector.broadcast %cst_176 : f32 to vector<8x8xf32>
      %134 = vector.extract_strided_slice %122 {offsets = [0, 0], sizes = [8, 16], strides = [1, 1]} : vector<10x16xf32> to vector<8x16xf32>
      %135 = vector.extract_strided_slice %26 {offsets = [0, 0], sizes = [16, 8], strides = [1, 1]} : vector<144x8xf32> to vector<16x8xf32>
      %cst_177 = arith.constant dense<0.000000e+00> : vector<8x8xf32>
      %136 = tpu.matmul %134, %135, %cst_177 {dimension_numbers = #tpu.dot_dimension_numbers<[1], [0], [0], [1], [0, 0, 1, 1], [], []>} : vector<8x16xf32>, vector<16x8xf32>, vector<8x8xf32> -> vector<8x8xf32>
      %137 = arith.addf %133, %136 : vector<8x8xf32>
      %138 = vector.extract_strided_slice %122 {offsets = [1, 0], sizes = [8, 16], strides = [1, 1]} : vector<10x16xf32> to vector<8x16xf32>
      %139 = vector.extract_strided_slice %26 {offsets = [16, 0], sizes = [16, 8], strides = [1, 1]} : vector<144x8xf32> to vector<16x8xf32>
      %cst_178 = arith.constant dense<0.000000e+00> : vector<8x8xf32>
      %140 = tpu.matmul %138, %139, %cst_178 {dimension_numbers = #tpu.dot_dimension_numbers<[1], [0], [0], [1], [0, 0, 1, 1], [], []>} : vector<8x16xf32>, vector<16x8xf32>, vector<8x8xf32> -> vector<8x8xf32>
      %141 = arith.addf %137, %140 : vector<8x8xf32>
      %142 = vector.extract_strided_slice %122 {offsets = [2, 0], sizes = [8, 16], strides = [1, 1]} : vector<10x16xf32> to vector<8x16xf32>
      %143 = vector.extract_strided_slice %26 {offsets = [32, 0], sizes = [16, 8], strides = [1, 1]} : vector<144x8xf32> to vector<16x8xf32>
      %cst_179 = arith.constant dense<0.000000e+00> : vector<8x8xf32>
      %144 = tpu.matmul %142, %143, %cst_179 {dimension_numbers = #tpu.dot_dimension_numbers<[1], [0], [0], [1], [0, 0, 1, 1], [], []>} : vector<8x16xf32>, vector<16x8xf32>, vector<8x8xf32> -> vector<8x8xf32>
      %145 = arith.addf %141, %144 : vector<8x8xf32>
      %146 = vector.extract_strided_slice %127 {offsets = [0, 0], sizes = [8, 16], strides = [1, 1]} : vector<10x16xf32> to vector<8x16xf32>
      %147 = vector.extract_strided_slice %26 {offsets = [48, 0], sizes = [16, 8], strides = [1, 1]} : vector<144x8xf32> to vector<16x8xf32>
      %cst_180 = arith.constant dense<0.000000e+00> : vector<8x8xf32>
      %148 = tpu.matmul %146, %147, %cst_180 {dimension_numbers = #tpu.dot_dimension_numbers<[1], [0], [0], [1], [0, 0, 1, 1], [], []>} : vector<8x16xf32>, vector<16x8xf32>, vector<8x8xf32> -> vector<8x8xf32>
      %149 = arith.addf %145, %148 : vector<8x8xf32>
      %150 = vector.extract_strided_slice %127 {offsets = [1, 0], sizes = [8, 16], strides = [1, 1]} : vector<10x16xf32> to vector<8x16xf32>
      %151 = vector.extract_strided_slice %26 {offsets = [64, 0], sizes = [16, 8], strides = [1, 1]} : vector<144x8xf32> to vector<16x8xf32>
      %cst_181 = arith.constant dense<0.000000e+00> : vector<8x8xf32>
      %152 = tpu.matmul %150, %151, %cst_181 {dimension_numbers = #tpu.dot_dimension_numbers<[1], [0], [0], [1], [0, 0, 1, 1], [], []>} : vector<8x16xf32>, vector<16x8xf32>, vector<8x8xf32> -> vector<8x8xf32>
      %153 = arith.addf %149, %152 : vector<8x8xf32>
      %154 = vector.extract_strided_slice %127 {offsets = [2, 0], sizes = [8, 16], strides = [1, 1]} : vector<10x16xf32> to vector<8x16xf32>
      %155 = vector.extract_strided_slice %26 {offsets = [80, 0], sizes = [16, 8], strides = [1, 1]} : vector<144x8xf32> to vector<16x8xf32>
      %cst_182 = arith.constant dense<0.000000e+00> : vector<8x8xf32>
      %156 = tpu.matmul %154, %155, %cst_182 {dimension_numbers = #tpu.dot_dimension_numbers<[1], [0], [0], [1], [0, 0, 1, 1], [], []>} : vector<8x16xf32>, vector<16x8xf32>, vector<8x8xf32> -> vector<8x8xf32>
      %157 = arith.addf %153, %156 : vector<8x8xf32>
      %158 = vector.extract_strided_slice %132 {offsets = [0, 0], sizes = [8, 16], strides = [1, 1]} : vector<10x16xf32> to vector<8x16xf32>
      %159 = vector.extract_strided_slice %26 {offsets = [96, 0], sizes = [16, 8], strides = [1, 1]} : vector<144x8xf32> to vector<16x8xf32>
      %cst_183 = arith.constant dense<0.000000e+00> : vector<8x8xf32>
      %160 = tpu.matmul %158, %159, %cst_183 {dimension_numbers = #tpu.dot_dimension_numbers<[1], [0], [0], [1], [0, 0, 1, 1], [], []>} : vector<8x16xf32>, vector<16x8xf32>, vector<8x8xf32> -> vector<8x8xf32>
      %161 = arith.addf %157, %160 : vector<8x8xf32>
      %162 = vector.extract_strided_slice %132 {offsets = [1, 0], sizes = [8, 16], strides = [1, 1]} : vector<10x16xf32> to vector<8x16xf32>
      %163 = vector.extract_strided_slice %26 {offsets = [112, 0], sizes = [16, 8], strides = [1, 1]} : vector<144x8xf32> to vector<16x8xf32>
      %cst_184 = arith.constant dense<0.000000e+00> : vector<8x8xf32>
      %164 = tpu.matmul %162, %163, %cst_184 {dimension_numbers = #tpu.dot_dimension_numbers<[1], [0], [0], [1], [0, 0, 1, 1], [], []>} : vector<8x16xf32>, vector<16x8xf32>, vector<8x8xf32> -> vector<8x8xf32>
      %165 = arith.addf %161, %164 : vector<8x8xf32>
      %166 = vector.extract_strided_slice %132 {offsets = [2, 0], sizes = [8, 16], strides = [1, 1]} : vector<10x16xf32> to vector<8x16xf32>
      %167 = vector.extract_strided_slice %26 {offsets = [128, 0], sizes = [16, 8], strides = [1, 1]} : vector<144x8xf32> to vector<16x8xf32>
      %cst_185 = arith.constant dense<0.000000e+00> : vector<8x8xf32>
      %168 = tpu.matmul %166, %167, %cst_185 {dimension_numbers = #tpu.dot_dimension_numbers<[1], [0], [0], [1], [0, 0, 1, 1], [], []>} : vector<8x16xf32>, vector<16x8xf32>, vector<8x8xf32> -> vector<8x8xf32>
      %169 = arith.addf %165, %168 : vector<8x8xf32>
      %170 = vector.broadcast %27 : vector<1x8xf32> to vector<8x8xf32>
      %171 = arith.addf %169, %170 : vector<8x8xf32>
      %c8_i32_186 = arith.constant 8 : i32
      %172 = arith.addi %c8_i32_186, %arg29 : i32
      %173 = arith.index_cast %172 : i32 to index
      %c0_187 = arith.constant 0 : index
      %c0_188 = arith.constant 0 : index
      %174 = vector.load %arg19[%173, %c0_187, %c0_188] : memref<16x8x8xf32, #tpu.memory_space<vmem>>, vector<1x8x8xf32>
      %175 = vector.shape_cast %174 : vector<1x8x8xf32> to vector<8x8xf32>
      %176 = vector.shape_cast %171 : vector<8x8xf32> to vector<1x8x8xf32>
      tpu.vector_store %arg19[%173, %c0_187, %c0_188], %176 {strides = array<i32>} : memref<16x8x8xf32, #tpu.memory_space<vmem>>, vector<1x8x8xf32>,
    }
    %c8_i32_50 = arith.constant 8 : i32
    %30 = tpu.iota {dimensions = array<i32: 0>} : vector<4x7xi32>
    %31 = tpu.iota {dimensions = array<i32: 1>} : vector<4x7xi32>
    %c2_i32_51 = arith.constant 2 : i32
    %32 = vector.broadcast %c2_i32_51 : i32 to vector<4x7xi32>
    %33 = arith.muli %32, %30 : vector<4x7xi32>
    %34 = arith.cmpi eq, %31, %33 : vector<4x7xi32>
    %35 = arith.extui %34 : vector<4x7xi1> to vector<4x7xi32>
    %36 = arith.sitofp %35 : vector<4x7xi32> to vector<4x7xf32>
    %cst_52 = arith.constant 0.000000e+00 : f32
    %37 = vector.broadcast %cst_52 : f32 to vector<1x8xf32>
    %c0_i32_53 = arith.constant 0 : i32
    %c4_i32 = arith.constant 4 : i32
    %38 = arith.addi %c0_i32_53, %c4_i32 : i32
    %c1_i32_54 = arith.constant 1 : i32
    scf.for %arg29 = %c0_i32_53 to %38 step %c1_i32_54  : i32 {
      %c2_i32_164 = arith.constant 2 : i32
      %118 = arith.muli %c2_i32_164, %arg29 : i32
      %c0_i32_165 = arith.constant 0 : i32
      %119 = arith.addi %c0_i32_165, %118 : i32
      %120 = arith.index_cast %119 : i32 to index
      %c0_166 = arith.constant 0 : index
      %c0_167 = arith.constant 0 : index
      %121 = vector.load %arg19[%120, %c0_166, %c0_167] : memref<16x8x8xf32, #tpu.memory_space<vmem>>, vector<1x8x8xf32>
      %122 = vector.shape_cast %121 : vector<1x8x8xf32> to vector<8x8xf32>
      %c2_i32_168 = arith.constant 2 : i32
      %123 = arith.muli %c2_i32_168, %arg29 : i32
      %c0_i32_169 = arith.constant 0 : i32
      %124 = arith.addi %c0_i32_169, %123 : i32
      %c1_i32_170 = arith.constant 1 : i32
      %125 = arith.addi %124, %c1_i32_170 : i32
      %126 = arith.index_cast %125 : i32 to index
      %c0_171 = arith.constant 0 : index
      %c0_172 = arith.constant 0 : index
      %127 = vector.load %arg19[%126, %c0_171, %c0_172] : memref<16x8x8xf32, #tpu.memory_space<vmem>>, vector<1x8x8xf32>
      %128 = vector.shape_cast %127 : vector<1x8x8xf32> to vector<8x8xf32>
      %129 = arith.maximumf %122, %128 : vector<8x8xf32>
      %130 = vector.extract_strided_slice %129 {offsets = [0, 0], sizes = [7, 8], strides = [1, 1]} : vector<8x8xf32> to vector<7x8xf32>
      %131 = vector.extract_strided_slice %129 {offsets = [1, 0], sizes = [7, 8], strides = [1, 1]} : vector<8x8xf32> to vector<7x8xf32>
      %132 = arith.maximumf %130, %131 : vector<7x8xf32>
      %cst_173 = arith.constant dense<0.000000e+00> : vector<4x8xf32>
      %133 = tpu.matmul %36, %132, %cst_173 {dimension_numbers = #tpu.dot_dimension_numbers<[1], [0], [0], [1], [0, 0, 1, 1], [], []>} : vector<4x7xf32>, vector<7x8xf32>, vector<4x8xf32> -> vector<4x8xf32>
      %134 = tpu.concatenate %37, %133, %37 in 0 : vector<1x8xf32>, vector<4x8xf32>, vector<1x8xf32> -> vector<6x8xf32>
      %c1_i32_174 = arith.constant 1 : i32
      %135 = arith.addi %c1_i32_174, %arg29 : i32
      %136 = arith.index_cast %135 : i32 to index
      %c0_175 = arith.constant 0 : index
      %c0_176 = arith.constant 0 : index
      %137 = vector.load %arg20[%136, %c0_175, %c0_176] : memref<12x6x8xf32, #tpu.memory_space<vmem>>, vector<1x6x8xf32>
      %138 = vector.shape_cast %137 : vector<1x6x8xf32> to vector<6x8xf32>
      %139 = vector.shape_cast %134 : vector<6x8xf32> to vector<1x6x8xf32>
      tpu.vector_store %arg20[%136, %c0_175, %c0_176], %139 {strides = array<i32>} : memref<12x6x8xf32, #tpu.memory_space<vmem>>, vector<1x6x8xf32>,
    }
    %c4_i32_55 = arith.constant 4 : i32
    %c0_i32_56 = arith.constant 0 : i32
    %c4_i32_57 = arith.constant 4 : i32
    %39 = arith.addi %c0_i32_56, %c4_i32_57 : i32
    %c1_i32_58 = arith.constant 1 : i32
    scf.for %arg29 = %c0_i32_56 to %39 step %c1_i32_58  : i32 {
      %c2_i32_164 = arith.constant 2 : i32
      %118 = arith.muli %c2_i32_164, %arg29 : i32
      %c8_i32_165 = arith.constant 8 : i32
      %119 = arith.addi %c8_i32_165, %118 : i32
      %120 = arith.index_cast %119 : i32 to index
      %c0_166 = arith.constant 0 : index
      %c0_167 = arith.constant 0 : index
      %121 = vector.load %arg19[%120, %c0_166, %c0_167] : memref<16x8x8xf32, #tpu.memory_space<vmem>>, vector<1x8x8xf32>
      %122 = vector.shape_cast %121 : vector<1x8x8xf32> to vector<8x8xf32>
      %c2_i32_168 = arith.constant 2 : i32
      %123 = arith.muli %c2_i32_168, %arg29 : i32
      %c8_i32_169 = arith.constant 8 : i32
      %124 = arith.addi %c8_i32_169, %123 : i32
      %c1_i32_170 = arith.constant 1 : i32
      %125 = arith.addi %124, %c1_i32_170 : i32
      %126 = arith.index_cast %125 : i32 to index
      %c0_171 = arith.constant 0 : index
      %c0_172 = arith.constant 0 : index
      %127 = vector.load %arg19[%126, %c0_171, %c0_172] : memref<16x8x8xf32, #tpu.memory_space<vmem>>, vector<1x8x8xf32>
      %128 = vector.shape_cast %127 : vector<1x8x8xf32> to vector<8x8xf32>
      %129 = arith.maximumf %122, %128 : vector<8x8xf32>
      %130 = vector.extract_strided_slice %129 {offsets = [0, 0], sizes = [7, 8], strides = [1, 1]} : vector<8x8xf32> to vector<7x8xf32>
      %131 = vector.extract_strided_slice %129 {offsets = [1, 0], sizes = [7, 8], strides = [1, 1]} : vector<8x8xf32> to vector<7x8xf32>
      %132 = arith.maximumf %130, %131 : vector<7x8xf32>
      %cst_173 = arith.constant dense<0.000000e+00> : vector<4x8xf32>
      %133 = tpu.matmul %36, %132, %cst_173 {dimension_numbers = #tpu.dot_dimension_numbers<[1], [0], [0], [1], [0, 0, 1, 1], [], []>} : vector<4x7xf32>, vector<7x8xf32>, vector<4x8xf32> -> vector<4x8xf32>
      %134 = tpu.concatenate %37, %133, %37 in 0 : vector<1x8xf32>, vector<4x8xf32>, vector<1x8xf32> -> vector<6x8xf32>
      %c7_i32 = arith.constant 7 : i32
      %135 = arith.addi %c7_i32, %arg29 : i32
      %136 = arith.index_cast %135 : i32 to index
      %c0_174 = arith.constant 0 : index
      %c0_175 = arith.constant 0 : index
      %137 = vector.load %arg20[%136, %c0_174, %c0_175] : memref<12x6x8xf32, #tpu.memory_space<vmem>>, vector<1x6x8xf32>
      %138 = vector.shape_cast %137 : vector<1x6x8xf32> to vector<6x8xf32>
      %139 = vector.shape_cast %134 : vector<6x8xf32> to vector<1x6x8xf32>
      tpu.vector_store %arg20[%136, %c0_174, %c0_175], %139 {strides = array<i32>} : memref<12x6x8xf32, #tpu.memory_space<vmem>>, vector<1x6x8xf32>,
    }
    %c4_i32_59 = arith.constant 4 : i32
    %c0_60 = arith.constant 0 : index
    %c0_61 = arith.constant 0 : index
    %40 = vector.load %arg6[%c0_60, %c0_61] : memref<72x8xf32, #tpu.memory_space<vmem>>, vector<72x8xf32>
    %c0_62 = arith.constant 0 : index
    %c0_63 = arith.constant 0 : index
    %41 = vector.load %arg7[%c0_62, %c0_63] : memref<1x8xf32, #tpu.memory_space<vmem>>, vector<1x8xf32>
    %c0_i32_64 = arith.constant 0 : i32
    %c4_i32_65 = arith.constant 4 : i32
    %42 = arith.addi %c0_i32_64, %c4_i32_65 : i32
    %c1_i32_66 = arith.constant 1 : i32
    scf.for %arg29 = %c0_i32_64 to %42 step %c1_i32_66  : i32 {
      %c0_i32_164 = arith.constant 0 : i32
      %118 = arith.addi %c0_i32_164, %arg29 : i32
      %c0_i32_165 = arith.constant 0 : i32
      %119 = arith.addi %118, %c0_i32_165 : i32
      %120 = arith.index_cast %119 : i32 to index
      %c0_166 = arith.constant 0 : index
      %c0_167 = arith.constant 0 : index
      %121 = vector.load %arg20[%120, %c0_166, %c0_167] : memref<12x6x8xf32, #tpu.memory_space<vmem>>, vector<1x6x8xf32>
      %122 = vector.shape_cast %121 : vector<1x6x8xf32> to vector<6x8xf32>
      %c0_i32_168 = arith.constant 0 : i32
      %123 = arith.addi %c0_i32_168, %arg29 : i32
      %c1_i32_169 = arith.constant 1 : i32
      %124 = arith.addi %123, %c1_i32_169 : i32
      %125 = arith.index_cast %124 : i32 to index
      %c0_170 = arith.constant 0 : index
      %c0_171 = arith.constant 0 : index
      %126 = vector.load %arg20[%125, %c0_170, %c0_171] : memref<12x6x8xf32, #tpu.memory_space<vmem>>, vector<1x6x8xf32>
      %127 = vector.shape_cast %126 : vector<1x6x8xf32> to vector<6x8xf32>
      %c0_i32_172 = arith.constant 0 : i32
      %128 = arith.addi %c0_i32_172, %arg29 : i32
      %c2_i32_173 = arith.constant 2 : i32
      %129 = arith.addi %128, %c2_i32_173 : i32
      %130 = arith.index_cast %129 : i32 to index
      %c0_174 = arith.constant 0 : index
      %c0_175 = arith.constant 0 : index
      %131 = vector.load %arg20[%130, %c0_174, %c0_175] : memref<12x6x8xf32, #tpu.memory_space<vmem>>, vector<1x6x8xf32>
      %132 = vector.shape_cast %131 : vector<1x6x8xf32> to vector<6x8xf32>
      %cst_176 = arith.constant 0.000000e+00 : f32
      %133 = vector.broadcast %cst_176 : f32 to vector<4x8xf32>
      %134 = vector.extract_strided_slice %122 {offsets = [0, 0], sizes = [4, 8], strides = [1, 1]} : vector<6x8xf32> to vector<4x8xf32>
      %135 = vector.extract_strided_slice %40 {offsets = [0, 0], sizes = [8, 8], strides = [1, 1]} : vector<72x8xf32> to vector<8x8xf32>
      %cst_177 = arith.constant dense<0.000000e+00> : vector<4x8xf32>
      %136 = tpu.matmul %134, %135, %cst_177 {dimension_numbers = #tpu.dot_dimension_numbers<[1], [0], [0], [1], [0, 0, 1, 1], [], []>} : vector<4x8xf32>, vector<8x8xf32>, vector<4x8xf32> -> vector<4x8xf32>
      %137 = arith.addf %133, %136 : vector<4x8xf32>
      %138 = vector.extract_strided_slice %122 {offsets = [1, 0], sizes = [4, 8], strides = [1, 1]} : vector<6x8xf32> to vector<4x8xf32>
      %139 = vector.extract_strided_slice %40 {offsets = [8, 0], sizes = [8, 8], strides = [1, 1]} : vector<72x8xf32> to vector<8x8xf32>
      %cst_178 = arith.constant dense<0.000000e+00> : vector<4x8xf32>
      %140 = tpu.matmul %138, %139, %cst_178 {dimension_numbers = #tpu.dot_dimension_numbers<[1], [0], [0], [1], [0, 0, 1, 1], [], []>} : vector<4x8xf32>, vector<8x8xf32>, vector<4x8xf32> -> vector<4x8xf32>
      %141 = arith.addf %137, %140 : vector<4x8xf32>
      %142 = vector.extract_strided_slice %122 {offsets = [2, 0], sizes = [4, 8], strides = [1, 1]} : vector<6x8xf32> to vector<4x8xf32>
      %143 = vector.extract_strided_slice %40 {offsets = [16, 0], sizes = [8, 8], strides = [1, 1]} : vector<72x8xf32> to vector<8x8xf32>
      %cst_179 = arith.constant dense<0.000000e+00> : vector<4x8xf32>
      %144 = tpu.matmul %142, %143, %cst_179 {dimension_numbers = #tpu.dot_dimension_numbers<[1], [0], [0], [1], [0, 0, 1, 1], [], []>} : vector<4x8xf32>, vector<8x8xf32>, vector<4x8xf32> -> vector<4x8xf32>
      %145 = arith.addf %141, %144 : vector<4x8xf32>
      %146 = vector.extract_strided_slice %127 {offsets = [0, 0], sizes = [4, 8], strides = [1, 1]} : vector<6x8xf32> to vector<4x8xf32>
      %147 = vector.extract_strided_slice %40 {offsets = [24, 0], sizes = [8, 8], strides = [1, 1]} : vector<72x8xf32> to vector<8x8xf32>
      %cst_180 = arith.constant dense<0.000000e+00> : vector<4x8xf32>
      %148 = tpu.matmul %146, %147, %cst_180 {dimension_numbers = #tpu.dot_dimension_numbers<[1], [0], [0], [1], [0, 0, 1, 1], [], []>} : vector<4x8xf32>, vector<8x8xf32>, vector<4x8xf32> -> vector<4x8xf32>
      %149 = arith.addf %145, %148 : vector<4x8xf32>
      %150 = vector.extract_strided_slice %127 {offsets = [1, 0], sizes = [4, 8], strides = [1, 1]} : vector<6x8xf32> to vector<4x8xf32>
      %151 = vector.extract_strided_slice %40 {offsets = [32, 0], sizes = [8, 8], strides = [1, 1]} : vector<72x8xf32> to vector<8x8xf32>
      %cst_181 = arith.constant dense<0.000000e+00> : vector<4x8xf32>
      %152 = tpu.matmul %150, %151, %cst_181 {dimension_numbers = #tpu.dot_dimension_numbers<[1], [0], [0], [1], [0, 0, 1, 1], [], []>} : vector<4x8xf32>, vector<8x8xf32>, vector<4x8xf32> -> vector<4x8xf32>
      %153 = arith.addf %149, %152 : vector<4x8xf32>
      %154 = vector.extract_strided_slice %127 {offsets = [2, 0], sizes = [4, 8], strides = [1, 1]} : vector<6x8xf32> to vector<4x8xf32>
      %155 = vector.extract_strided_slice %40 {offsets = [40, 0], sizes = [8, 8], strides = [1, 1]} : vector<72x8xf32> to vector<8x8xf32>
      %cst_182 = arith.constant dense<0.000000e+00> : vector<4x8xf32>
      %156 = tpu.matmul %154, %155, %cst_182 {dimension_numbers = #tpu.dot_dimension_numbers<[1], [0], [0], [1], [0, 0, 1, 1], [], []>} : vector<4x8xf32>, vector<8x8xf32>, vector<4x8xf32> -> vector<4x8xf32>
      %157 = arith.addf %153, %156 : vector<4x8xf32>
      %158 = vector.extract_strided_slice %132 {offsets = [0, 0], sizes = [4, 8], strides = [1, 1]} : vector<6x8xf32> to vector<4x8xf32>
      %159 = vector.extract_strided_slice %40 {offsets = [48, 0], sizes = [8, 8], strides = [1, 1]} : vector<72x8xf32> to vector<8x8xf32>
      %cst_183 = arith.constant dense<0.000000e+00> : vector<4x8xf32>
      %160 = tpu.matmul %158, %159, %cst_183 {dimension_numbers = #tpu.dot_dimension_numbers<[1], [0], [0], [1], [0, 0, 1, 1], [], []>} : vector<4x8xf32>, vector<8x8xf32>, vector<4x8xf32> -> vector<4x8xf32>
      %161 = arith.addf %157, %160 : vector<4x8xf32>
      %162 = vector.extract_strided_slice %132 {offsets = [1, 0], sizes = [4, 8], strides = [1, 1]} : vector<6x8xf32> to vector<4x8xf32>
      %163 = vector.extract_strided_slice %40 {offsets = [56, 0], sizes = [8, 8], strides = [1, 1]} : vector<72x8xf32> to vector<8x8xf32>
      %cst_184 = arith.constant dense<0.000000e+00> : vector<4x8xf32>
      %164 = tpu.matmul %162, %163, %cst_184 {dimension_numbers = #tpu.dot_dimension_numbers<[1], [0], [0], [1], [0, 0, 1, 1], [], []>} : vector<4x8xf32>, vector<8x8xf32>, vector<4x8xf32> -> vector<4x8xf32>
      %165 = arith.addf %161, %164 : vector<4x8xf32>
      %166 = vector.extract_strided_slice %132 {offsets = [2, 0], sizes = [4, 8], strides = [1, 1]} : vector<6x8xf32> to vector<4x8xf32>
      %167 = vector.extract_strided_slice %40 {offsets = [64, 0], sizes = [8, 8], strides = [1, 1]} : vector<72x8xf32> to vector<8x8xf32>
      %cst_185 = arith.constant dense<0.000000e+00> : vector<4x8xf32>
      %168 = tpu.matmul %166, %167, %cst_185 {dimension_numbers = #tpu.dot_dimension_numbers<[1], [0], [0], [1], [0, 0, 1, 1], [], []>} : vector<4x8xf32>, vector<8x8xf32>, vector<4x8xf32> -> vector<4x8xf32>
      %169 = arith.addf %165, %168 : vector<4x8xf32>
      %170 = vector.broadcast %41 : vector<1x8xf32> to vector<4x8xf32>
      %171 = arith.addf %169, %170 : vector<4x8xf32>
      %c0_i32_186 = arith.constant 0 : i32
      %172 = arith.addi %c0_i32_186, %arg29 : i32
      %173 = arith.index_cast %172 : i32 to index
      %c0_187 = arith.constant 0 : index
      %c0_188 = arith.constant 0 : index
      %174 = vector.load %arg21[%173, %c0_187, %c0_188] : memref<8x4x8xf32, #tpu.memory_space<vmem>>, vector<1x4x8xf32>
      %175 = vector.shape_cast %174 : vector<1x4x8xf32> to vector<4x8xf32>
      %176 = vector.shape_cast %171 : vector<4x8xf32> to vector<1x4x8xf32>
      tpu.vector_store %arg21[%173, %c0_187, %c0_188], %176 {strides = array<i32>} : memref<8x4x8xf32, #tpu.memory_space<vmem>>, vector<1x4x8xf32>,
    }
    %c4_i32_67 = arith.constant 4 : i32
    %c0_i32_68 = arith.constant 0 : i32
    %c4_i32_69 = arith.constant 4 : i32
    %43 = arith.addi %c0_i32_68, %c4_i32_69 : i32
    %c1_i32_70 = arith.constant 1 : i32
    scf.for %arg29 = %c0_i32_68 to %43 step %c1_i32_70  : i32 {
      %c6_i32 = arith.constant 6 : i32
      %118 = arith.addi %c6_i32, %arg29 : i32
      %c0_i32_164 = arith.constant 0 : i32
      %119 = arith.addi %118, %c0_i32_164 : i32
      %120 = arith.index_cast %119 : i32 to index
      %c0_165 = arith.constant 0 : index
      %c0_166 = arith.constant 0 : index
      %121 = vector.load %arg20[%120, %c0_165, %c0_166] : memref<12x6x8xf32, #tpu.memory_space<vmem>>, vector<1x6x8xf32>
      %122 = vector.shape_cast %121 : vector<1x6x8xf32> to vector<6x8xf32>
      %c6_i32_167 = arith.constant 6 : i32
      %123 = arith.addi %c6_i32_167, %arg29 : i32
      %c1_i32_168 = arith.constant 1 : i32
      %124 = arith.addi %123, %c1_i32_168 : i32
      %125 = arith.index_cast %124 : i32 to index
      %c0_169 = arith.constant 0 : index
      %c0_170 = arith.constant 0 : index
      %126 = vector.load %arg20[%125, %c0_169, %c0_170] : memref<12x6x8xf32, #tpu.memory_space<vmem>>, vector<1x6x8xf32>
      %127 = vector.shape_cast %126 : vector<1x6x8xf32> to vector<6x8xf32>
      %c6_i32_171 = arith.constant 6 : i32
      %128 = arith.addi %c6_i32_171, %arg29 : i32
      %c2_i32_172 = arith.constant 2 : i32
      %129 = arith.addi %128, %c2_i32_172 : i32
      %130 = arith.index_cast %129 : i32 to index
      %c0_173 = arith.constant 0 : index
      %c0_174 = arith.constant 0 : index
      %131 = vector.load %arg20[%130, %c0_173, %c0_174] : memref<12x6x8xf32, #tpu.memory_space<vmem>>, vector<1x6x8xf32>
      %132 = vector.shape_cast %131 : vector<1x6x8xf32> to vector<6x8xf32>
      %cst_175 = arith.constant 0.000000e+00 : f32
      %133 = vector.broadcast %cst_175 : f32 to vector<4x8xf32>
      %134 = vector.extract_strided_slice %122 {offsets = [0, 0], sizes = [4, 8], strides = [1, 1]} : vector<6x8xf32> to vector<4x8xf32>
      %135 = vector.extract_strided_slice %40 {offsets = [0, 0], sizes = [8, 8], strides = [1, 1]} : vector<72x8xf32> to vector<8x8xf32>
      %cst_176 = arith.constant dense<0.000000e+00> : vector<4x8xf32>
      %136 = tpu.matmul %134, %135, %cst_176 {dimension_numbers = #tpu.dot_dimension_numbers<[1], [0], [0], [1], [0, 0, 1, 1], [], []>} : vector<4x8xf32>, vector<8x8xf32>, vector<4x8xf32> -> vector<4x8xf32>
      %137 = arith.addf %133, %136 : vector<4x8xf32>
      %138 = vector.extract_strided_slice %122 {offsets = [1, 0], sizes = [4, 8], strides = [1, 1]} : vector<6x8xf32> to vector<4x8xf32>
      %139 = vector.extract_strided_slice %40 {offsets = [8, 0], sizes = [8, 8], strides = [1, 1]} : vector<72x8xf32> to vector<8x8xf32>
      %cst_177 = arith.constant dense<0.000000e+00> : vector<4x8xf32>
      %140 = tpu.matmul %138, %139, %cst_177 {dimension_numbers = #tpu.dot_dimension_numbers<[1], [0], [0], [1], [0, 0, 1, 1], [], []>} : vector<4x8xf32>, vector<8x8xf32>, vector<4x8xf32> -> vector<4x8xf32>
      %141 = arith.addf %137, %140 : vector<4x8xf32>
      %142 = vector.extract_strided_slice %122 {offsets = [2, 0], sizes = [4, 8], strides = [1, 1]} : vector<6x8xf32> to vector<4x8xf32>
      %143 = vector.extract_strided_slice %40 {offsets = [16, 0], sizes = [8, 8], strides = [1, 1]} : vector<72x8xf32> to vector<8x8xf32>
      %cst_178 = arith.constant dense<0.000000e+00> : vector<4x8xf32>
      %144 = tpu.matmul %142, %143, %cst_178 {dimension_numbers = #tpu.dot_dimension_numbers<[1], [0], [0], [1], [0, 0, 1, 1], [], []>} : vector<4x8xf32>, vector<8x8xf32>, vector<4x8xf32> -> vector<4x8xf32>
      %145 = arith.addf %141, %144 : vector<4x8xf32>
      %146 = vector.extract_strided_slice %127 {offsets = [0, 0], sizes = [4, 8], strides = [1, 1]} : vector<6x8xf32> to vector<4x8xf32>
      %147 = vector.extract_strided_slice %40 {offsets = [24, 0], sizes = [8, 8], strides = [1, 1]} : vector<72x8xf32> to vector<8x8xf32>
      %cst_179 = arith.constant dense<0.000000e+00> : vector<4x8xf32>
      %148 = tpu.matmul %146, %147, %cst_179 {dimension_numbers = #tpu.dot_dimension_numbers<[1], [0], [0], [1], [0, 0, 1, 1], [], []>} : vector<4x8xf32>, vector<8x8xf32>, vector<4x8xf32> -> vector<4x8xf32>
      %149 = arith.addf %145, %148 : vector<4x8xf32>
      %150 = vector.extract_strided_slice %127 {offsets = [1, 0], sizes = [4, 8], strides = [1, 1]} : vector<6x8xf32> to vector<4x8xf32>
      %151 = vector.extract_strided_slice %40 {offsets = [32, 0], sizes = [8, 8], strides = [1, 1]} : vector<72x8xf32> to vector<8x8xf32>
      %cst_180 = arith.constant dense<0.000000e+00> : vector<4x8xf32>
      %152 = tpu.matmul %150, %151, %cst_180 {dimension_numbers = #tpu.dot_dimension_numbers<[1], [0], [0], [1], [0, 0, 1, 1], [], []>} : vector<4x8xf32>, vector<8x8xf32>, vector<4x8xf32> -> vector<4x8xf32>
      %153 = arith.addf %149, %152 : vector<4x8xf32>
      %154 = vector.extract_strided_slice %127 {offsets = [2, 0], sizes = [4, 8], strides = [1, 1]} : vector<6x8xf32> to vector<4x8xf32>
      %155 = vector.extract_strided_slice %40 {offsets = [40, 0], sizes = [8, 8], strides = [1, 1]} : vector<72x8xf32> to vector<8x8xf32>
      %cst_181 = arith.constant dense<0.000000e+00> : vector<4x8xf32>
      %156 = tpu.matmul %154, %155, %cst_181 {dimension_numbers = #tpu.dot_dimension_numbers<[1], [0], [0], [1], [0, 0, 1, 1], [], []>} : vector<4x8xf32>, vector<8x8xf32>, vector<4x8xf32> -> vector<4x8xf32>
      %157 = arith.addf %153, %156 : vector<4x8xf32>
      %158 = vector.extract_strided_slice %132 {offsets = [0, 0], sizes = [4, 8], strides = [1, 1]} : vector<6x8xf32> to vector<4x8xf32>
      %159 = vector.extract_strided_slice %40 {offsets = [48, 0], sizes = [8, 8], strides = [1, 1]} : vector<72x8xf32> to vector<8x8xf32>
      %cst_182 = arith.constant dense<0.000000e+00> : vector<4x8xf32>
      %160 = tpu.matmul %158, %159, %cst_182 {dimension_numbers = #tpu.dot_dimension_numbers<[1], [0], [0], [1], [0, 0, 1, 1], [], []>} : vector<4x8xf32>, vector<8x8xf32>, vector<4x8xf32> -> vector<4x8xf32>
      %161 = arith.addf %157, %160 : vector<4x8xf32>
      %162 = vector.extract_strided_slice %132 {offsets = [1, 0], sizes = [4, 8], strides = [1, 1]} : vector<6x8xf32> to vector<4x8xf32>
      %163 = vector.extract_strided_slice %40 {offsets = [56, 0], sizes = [8, 8], strides = [1, 1]} : vector<72x8xf32> to vector<8x8xf32>
      %cst_183 = arith.constant dense<0.000000e+00> : vector<4x8xf32>
      %164 = tpu.matmul %162, %163, %cst_183 {dimension_numbers = #tpu.dot_dimension_numbers<[1], [0], [0], [1], [0, 0, 1, 1], [], []>} : vector<4x8xf32>, vector<8x8xf32>, vector<4x8xf32> -> vector<4x8xf32>
      %165 = arith.addf %161, %164 : vector<4x8xf32>
      %166 = vector.extract_strided_slice %132 {offsets = [2, 0], sizes = [4, 8], strides = [1, 1]} : vector<6x8xf32> to vector<4x8xf32>
      %167 = vector.extract_strided_slice %40 {offsets = [64, 0], sizes = [8, 8], strides = [1, 1]} : vector<72x8xf32> to vector<8x8xf32>
      %cst_184 = arith.constant dense<0.000000e+00> : vector<4x8xf32>
      %168 = tpu.matmul %166, %167, %cst_184 {dimension_numbers = #tpu.dot_dimension_numbers<[1], [0], [0], [1], [0, 0, 1, 1], [], []>} : vector<4x8xf32>, vector<8x8xf32>, vector<4x8xf32> -> vector<4x8xf32>
      %169 = arith.addf %165, %168 : vector<4x8xf32>
      %170 = vector.broadcast %41 : vector<1x8xf32> to vector<4x8xf32>
      %171 = arith.addf %169, %170 : vector<4x8xf32>
      %c4_i32_185 = arith.constant 4 : i32
      %172 = arith.addi %c4_i32_185, %arg29 : i32
      %173 = arith.index_cast %172 : i32 to index
      %c0_186 = arith.constant 0 : index
      %c0_187 = arith.constant 0 : index
      %174 = vector.load %arg21[%173, %c0_186, %c0_187] : memref<8x4x8xf32, #tpu.memory_space<vmem>>, vector<1x4x8xf32>
      %175 = vector.shape_cast %174 : vector<1x4x8xf32> to vector<4x8xf32>
      %176 = vector.shape_cast %171 : vector<4x8xf32> to vector<1x4x8xf32>
      tpu.vector_store %arg21[%173, %c0_186, %c0_187], %176 {strides = array<i32>} : memref<8x4x8xf32, #tpu.memory_space<vmem>>, vector<1x4x8xf32>,
    }
    %c4_i32_71 = arith.constant 4 : i32
    %44 = tpu.iota {dimensions = array<i32: 0>} : vector<2x3xi32>
    %45 = tpu.iota {dimensions = array<i32: 1>} : vector<2x3xi32>
    %c2_i32_72 = arith.constant 2 : i32
    %46 = vector.broadcast %c2_i32_72 : i32 to vector<2x3xi32>
    %47 = arith.muli %46, %44 : vector<2x3xi32>
    %48 = arith.cmpi eq, %45, %47 : vector<2x3xi32>
    %49 = arith.extui %48 : vector<2x3xi1> to vector<2x3xi32>
    %50 = arith.sitofp %49 : vector<2x3xi32> to vector<2x3xf32>
    %cst_73 = arith.constant 0.000000e+00 : f32
    %51 = vector.broadcast %cst_73 : f32 to vector<1x8xf32>
    %c0_i32_74 = arith.constant 0 : i32
    %c2_i32_75 = arith.constant 2 : i32
    %52 = arith.addi %c0_i32_74, %c2_i32_75 : i32
    %c1_i32_76 = arith.constant 1 : i32
    scf.for %arg29 = %c0_i32_74 to %52 step %c1_i32_76  : i32 {
      %c2_i32_164 = arith.constant 2 : i32
      %118 = arith.muli %c2_i32_164, %arg29 : i32
      %c0_i32_165 = arith.constant 0 : i32
      %119 = arith.addi %c0_i32_165, %118 : i32
      %120 = arith.index_cast %119 : i32 to index
      %c0_166 = arith.constant 0 : index
      %c0_167 = arith.constant 0 : index
      %121 = vector.load %arg21[%120, %c0_166, %c0_167] : memref<8x4x8xf32, #tpu.memory_space<vmem>>, vector<1x4x8xf32>
      %122 = vector.shape_cast %121 : vector<1x4x8xf32> to vector<4x8xf32>
      %c2_i32_168 = arith.constant 2 : i32
      %123 = arith.muli %c2_i32_168, %arg29 : i32
      %c0_i32_169 = arith.constant 0 : i32
      %124 = arith.addi %c0_i32_169, %123 : i32
      %c1_i32_170 = arith.constant 1 : i32
      %125 = arith.addi %124, %c1_i32_170 : i32
      %126 = arith.index_cast %125 : i32 to index
      %c0_171 = arith.constant 0 : index
      %c0_172 = arith.constant 0 : index
      %127 = vector.load %arg21[%126, %c0_171, %c0_172] : memref<8x4x8xf32, #tpu.memory_space<vmem>>, vector<1x4x8xf32>
      %128 = vector.shape_cast %127 : vector<1x4x8xf32> to vector<4x8xf32>
      %129 = arith.maximumf %122, %128 : vector<4x8xf32>
      %130 = vector.extract_strided_slice %129 {offsets = [0, 0], sizes = [3, 8], strides = [1, 1]} : vector<4x8xf32> to vector<3x8xf32>
      %131 = vector.extract_strided_slice %129 {offsets = [1, 0], sizes = [3, 8], strides = [1, 1]} : vector<4x8xf32> to vector<3x8xf32>
      %132 = arith.maximumf %130, %131 : vector<3x8xf32>
      %cst_173 = arith.constant dense<0.000000e+00> : vector<2x8xf32>
      %133 = tpu.matmul %50, %132, %cst_173 {dimension_numbers = #tpu.dot_dimension_numbers<[1], [0], [0], [1], [0, 0, 1, 1], [], []>} : vector<2x3xf32>, vector<3x8xf32>, vector<2x8xf32> -> vector<2x8xf32>
      %134 = tpu.concatenate %51, %133, %51 in 0 : vector<1x8xf32>, vector<2x8xf32>, vector<1x8xf32> -> vector<4x8xf32>
      %c1_i32_174 = arith.constant 1 : i32
      %135 = arith.addi %c1_i32_174, %arg29 : i32
      %136 = arith.index_cast %135 : i32 to index
      %c0_175 = arith.constant 0 : index
      %c0_176 = arith.constant 0 : index
      %137 = vector.load %arg22[%136, %c0_175, %c0_176] : memref<8x4x8xf32, #tpu.memory_space<vmem>>, vector<1x4x8xf32>
      %138 = vector.shape_cast %137 : vector<1x4x8xf32> to vector<4x8xf32>
      %139 = vector.shape_cast %134 : vector<4x8xf32> to vector<1x4x8xf32>
      tpu.vector_store %arg22[%136, %c0_175, %c0_176], %139 {strides = array<i32>} : memref<8x4x8xf32, #tpu.memory_space<vmem>>, vector<1x4x8xf32>,
    }
    %c2_i32_77 = arith.constant 2 : i32
    %c0_i32_78 = arith.constant 0 : i32
    %c2_i32_79 = arith.constant 2 : i32
    %53 = arith.addi %c0_i32_78, %c2_i32_79 : i32
    %c1_i32_80 = arith.constant 1 : i32
    scf.for %arg29 = %c0_i32_78 to %53 step %c1_i32_80  : i32 {
      %c2_i32_164 = arith.constant 2 : i32
      %118 = arith.muli %c2_i32_164, %arg29 : i32
      %c4_i32_165 = arith.constant 4 : i32
      %119 = arith.addi %c4_i32_165, %118 : i32
      %120 = arith.index_cast %119 : i32 to index
      %c0_166 = arith.constant 0 : index
      %c0_167 = arith.constant 0 : index
      %121 = vector.load %arg21[%120, %c0_166, %c0_167] : memref<8x4x8xf32, #tpu.memory_space<vmem>>, vector<1x4x8xf32>
      %122 = vector.shape_cast %121 : vector<1x4x8xf32> to vector<4x8xf32>
      %c2_i32_168 = arith.constant 2 : i32
      %123 = arith.muli %c2_i32_168, %arg29 : i32
      %c4_i32_169 = arith.constant 4 : i32
      %124 = arith.addi %c4_i32_169, %123 : i32
      %c1_i32_170 = arith.constant 1 : i32
      %125 = arith.addi %124, %c1_i32_170 : i32
      %126 = arith.index_cast %125 : i32 to index
      %c0_171 = arith.constant 0 : index
      %c0_172 = arith.constant 0 : index
      %127 = vector.load %arg21[%126, %c0_171, %c0_172] : memref<8x4x8xf32, #tpu.memory_space<vmem>>, vector<1x4x8xf32>
      %128 = vector.shape_cast %127 : vector<1x4x8xf32> to vector<4x8xf32>
      %129 = arith.maximumf %122, %128 : vector<4x8xf32>
      %130 = vector.extract_strided_slice %129 {offsets = [0, 0], sizes = [3, 8], strides = [1, 1]} : vector<4x8xf32> to vector<3x8xf32>
      %131 = vector.extract_strided_slice %129 {offsets = [1, 0], sizes = [3, 8], strides = [1, 1]} : vector<4x8xf32> to vector<3x8xf32>
      %132 = arith.maximumf %130, %131 : vector<3x8xf32>
      %cst_173 = arith.constant dense<0.000000e+00> : vector<2x8xf32>
      %133 = tpu.matmul %50, %132, %cst_173 {dimension_numbers = #tpu.dot_dimension_numbers<[1], [0], [0], [1], [0, 0, 1, 1], [], []>} : vector<2x3xf32>, vector<3x8xf32>, vector<2x8xf32> -> vector<2x8xf32>
      %134 = tpu.concatenate %51, %133, %51 in 0 : vector<1x8xf32>, vector<2x8xf32>, vector<1x8xf32> -> vector<4x8xf32>
      %c5_i32 = arith.constant 5 : i32
      %135 = arith.addi %c5_i32, %arg29 : i32
      %136 = arith.index_cast %135 : i32 to index
      %c0_174 = arith.constant 0 : index
      %c0_175 = arith.constant 0 : index
      %137 = vector.load %arg22[%136, %c0_174, %c0_175] : memref<8x4x8xf32, #tpu.memory_space<vmem>>, vector<1x4x8xf32>
      %138 = vector.shape_cast %137 : vector<1x4x8xf32> to vector<4x8xf32>
      %139 = vector.shape_cast %134 : vector<4x8xf32> to vector<1x4x8xf32>
      tpu.vector_store %arg22[%136, %c0_174, %c0_175], %139 {strides = array<i32>} : memref<8x4x8xf32, #tpu.memory_space<vmem>>, vector<1x4x8xf32>,
    }
    %c2_i32_81 = arith.constant 2 : i32
    %c0_82 = arith.constant 0 : index
    %c0_83 = arith.constant 0 : index
    %54 = vector.load %arg8[%c0_82, %c0_83] : memref<72x8xf32, #tpu.memory_space<vmem>>, vector<72x8xf32>
    %c0_84 = arith.constant 0 : index
    %c0_85 = arith.constant 0 : index
    %55 = vector.load %arg9[%c0_84, %c0_85] : memref<1x8xf32, #tpu.memory_space<vmem>>, vector<1x8xf32>
    %c0_i32_86 = arith.constant 0 : i32
    %c2_i32_87 = arith.constant 2 : i32
    %56 = arith.addi %c0_i32_86, %c2_i32_87 : i32
    %c1_i32_88 = arith.constant 1 : i32
    scf.for %arg29 = %c0_i32_86 to %56 step %c1_i32_88  : i32 {
      %c0_i32_164 = arith.constant 0 : i32
      %118 = arith.addi %c0_i32_164, %arg29 : i32
      %c0_i32_165 = arith.constant 0 : i32
      %119 = arith.addi %118, %c0_i32_165 : i32
      %120 = arith.index_cast %119 : i32 to index
      %c0_166 = arith.constant 0 : index
      %c0_167 = arith.constant 0 : index
      %121 = vector.load %arg22[%120, %c0_166, %c0_167] : memref<8x4x8xf32, #tpu.memory_space<vmem>>, vector<1x4x8xf32>
      %122 = vector.shape_cast %121 : vector<1x4x8xf32> to vector<4x8xf32>
      %c0_i32_168 = arith.constant 0 : i32
      %123 = arith.addi %c0_i32_168, %arg29 : i32
      %c1_i32_169 = arith.constant 1 : i32
      %124 = arith.addi %123, %c1_i32_169 : i32
      %125 = arith.index_cast %124 : i32 to index
      %c0_170 = arith.constant 0 : index
      %c0_171 = arith.constant 0 : index
      %126 = vector.load %arg22[%125, %c0_170, %c0_171] : memref<8x4x8xf32, #tpu.memory_space<vmem>>, vector<1x4x8xf32>
      %127 = vector.shape_cast %126 : vector<1x4x8xf32> to vector<4x8xf32>
      %c0_i32_172 = arith.constant 0 : i32
      %128 = arith.addi %c0_i32_172, %arg29 : i32
      %c2_i32_173 = arith.constant 2 : i32
      %129 = arith.addi %128, %c2_i32_173 : i32
      %130 = arith.index_cast %129 : i32 to index
      %c0_174 = arith.constant 0 : index
      %c0_175 = arith.constant 0 : index
      %131 = vector.load %arg22[%130, %c0_174, %c0_175] : memref<8x4x8xf32, #tpu.memory_space<vmem>>, vector<1x4x8xf32>
      %132 = vector.shape_cast %131 : vector<1x4x8xf32> to vector<4x8xf32>
      %cst_176 = arith.constant 0.000000e+00 : f32
      %133 = vector.broadcast %cst_176 : f32 to vector<2x8xf32>
      %134 = vector.extract_strided_slice %122 {offsets = [0, 0], sizes = [2, 8], strides = [1, 1]} : vector<4x8xf32> to vector<2x8xf32>
      %135 = vector.extract_strided_slice %54 {offsets = [0, 0], sizes = [8, 8], strides = [1, 1]} : vector<72x8xf32> to vector<8x8xf32>
      %cst_177 = arith.constant dense<0.000000e+00> : vector<2x8xf32>
      %136 = tpu.matmul %134, %135, %cst_177 {dimension_numbers = #tpu.dot_dimension_numbers<[1], [0], [0], [1], [0, 0, 1, 1], [], []>} : vector<2x8xf32>, vector<8x8xf32>, vector<2x8xf32> -> vector<2x8xf32>
      %137 = arith.addf %133, %136 : vector<2x8xf32>
      %138 = vector.extract_strided_slice %122 {offsets = [1, 0], sizes = [2, 8], strides = [1, 1]} : vector<4x8xf32> to vector<2x8xf32>
      %139 = vector.extract_strided_slice %54 {offsets = [8, 0], sizes = [8, 8], strides = [1, 1]} : vector<72x8xf32> to vector<8x8xf32>
      %cst_178 = arith.constant dense<0.000000e+00> : vector<2x8xf32>
      %140 = tpu.matmul %138, %139, %cst_178 {dimension_numbers = #tpu.dot_dimension_numbers<[1], [0], [0], [1], [0, 0, 1, 1], [], []>} : vector<2x8xf32>, vector<8x8xf32>, vector<2x8xf32> -> vector<2x8xf32>
      %141 = arith.addf %137, %140 : vector<2x8xf32>
      %142 = vector.extract_strided_slice %122 {offsets = [2, 0], sizes = [2, 8], strides = [1, 1]} : vector<4x8xf32> to vector<2x8xf32>
      %143 = vector.extract_strided_slice %54 {offsets = [16, 0], sizes = [8, 8], strides = [1, 1]} : vector<72x8xf32> to vector<8x8xf32>
      %cst_179 = arith.constant dense<0.000000e+00> : vector<2x8xf32>
      %144 = tpu.matmul %142, %143, %cst_179 {dimension_numbers = #tpu.dot_dimension_numbers<[1], [0], [0], [1], [0, 0, 1, 1], [], []>} : vector<2x8xf32>, vector<8x8xf32>, vector<2x8xf32> -> vector<2x8xf32>
      %145 = arith.addf %141, %144 : vector<2x8xf32>
      %146 = vector.extract_strided_slice %127 {offsets = [0, 0], sizes = [2, 8], strides = [1, 1]} : vector<4x8xf32> to vector<2x8xf32>
      %147 = vector.extract_strided_slice %54 {offsets = [24, 0], sizes = [8, 8], strides = [1, 1]} : vector<72x8xf32> to vector<8x8xf32>
      %cst_180 = arith.constant dense<0.000000e+00> : vector<2x8xf32>
      %148 = tpu.matmul %146, %147, %cst_180 {dimension_numbers = #tpu.dot_dimension_numbers<[1], [0], [0], [1], [0, 0, 1, 1], [], []>} : vector<2x8xf32>, vector<8x8xf32>, vector<2x8xf32> -> vector<2x8xf32>
      %149 = arith.addf %145, %148 : vector<2x8xf32>
      %150 = vector.extract_strided_slice %127 {offsets = [1, 0], sizes = [2, 8], strides = [1, 1]} : vector<4x8xf32> to vector<2x8xf32>
      %151 = vector.extract_strided_slice %54 {offsets = [32, 0], sizes = [8, 8], strides = [1, 1]} : vector<72x8xf32> to vector<8x8xf32>
      %cst_181 = arith.constant dense<0.000000e+00> : vector<2x8xf32>
      %152 = tpu.matmul %150, %151, %cst_181 {dimension_numbers = #tpu.dot_dimension_numbers<[1], [0], [0], [1], [0, 0, 1, 1], [], []>} : vector<2x8xf32>, vector<8x8xf32>, vector<2x8xf32> -> vector<2x8xf32>
      %153 = arith.addf %149, %152 : vector<2x8xf32>
      %154 = vector.extract_strided_slice %127 {offsets = [2, 0], sizes = [2, 8], strides = [1, 1]} : vector<4x8xf32> to vector<2x8xf32>
      %155 = vector.extract_strided_slice %54 {offsets = [40, 0], sizes = [8, 8], strides = [1, 1]} : vector<72x8xf32> to vector<8x8xf32>
      %cst_182 = arith.constant dense<0.000000e+00> : vector<2x8xf32>
      %156 = tpu.matmul %154, %155, %cst_182 {dimension_numbers = #tpu.dot_dimension_numbers<[1], [0], [0], [1], [0, 0, 1, 1], [], []>} : vector<2x8xf32>, vector<8x8xf32>, vector<2x8xf32> -> vector<2x8xf32>
      %157 = arith.addf %153, %156 : vector<2x8xf32>
      %158 = vector.extract_strided_slice %132 {offsets = [0, 0], sizes = [2, 8], strides = [1, 1]} : vector<4x8xf32> to vector<2x8xf32>
      %159 = vector.extract_strided_slice %54 {offsets = [48, 0], sizes = [8, 8], strides = [1, 1]} : vector<72x8xf32> to vector<8x8xf32>
      %cst_183 = arith.constant dense<0.000000e+00> : vector<2x8xf32>
      %160 = tpu.matmul %158, %159, %cst_183 {dimension_numbers = #tpu.dot_dimension_numbers<[1], [0], [0], [1], [0, 0, 1, 1], [], []>} : vector<2x8xf32>, vector<8x8xf32>, vector<2x8xf32> -> vector<2x8xf32>
      %161 = arith.addf %157, %160 : vector<2x8xf32>
      %162 = vector.extract_strided_slice %132 {offsets = [1, 0], sizes = [2, 8], strides = [1, 1]} : vector<4x8xf32> to vector<2x8xf32>
      %163 = vector.extract_strided_slice %54 {offsets = [56, 0], sizes = [8, 8], strides = [1, 1]} : vector<72x8xf32> to vector<8x8xf32>
      %cst_184 = arith.constant dense<0.000000e+00> : vector<2x8xf32>
      %164 = tpu.matmul %162, %163, %cst_184 {dimension_numbers = #tpu.dot_dimension_numbers<[1], [0], [0], [1], [0, 0, 1, 1], [], []>} : vector<2x8xf32>, vector<8x8xf32>, vector<2x8xf32> -> vector<2x8xf32>
      %165 = arith.addf %161, %164 : vector<2x8xf32>
      %166 = vector.extract_strided_slice %132 {offsets = [2, 0], sizes = [2, 8], strides = [1, 1]} : vector<4x8xf32> to vector<2x8xf32>
      %167 = vector.extract_strided_slice %54 {offsets = [64, 0], sizes = [8, 8], strides = [1, 1]} : vector<72x8xf32> to vector<8x8xf32>
      %cst_185 = arith.constant dense<0.000000e+00> : vector<2x8xf32>
      %168 = tpu.matmul %166, %167, %cst_185 {dimension_numbers = #tpu.dot_dimension_numbers<[1], [0], [0], [1], [0, 0, 1, 1], [], []>} : vector<2x8xf32>, vector<8x8xf32>, vector<2x8xf32> -> vector<2x8xf32>
      %169 = arith.addf %165, %168 : vector<2x8xf32>
      %170 = vector.broadcast %55 : vector<1x8xf32> to vector<2x8xf32>
      %171 = arith.addf %169, %170 : vector<2x8xf32>
      %c0_i32_186 = arith.constant 0 : i32
      %172 = arith.addi %c0_i32_186, %arg29 : i32
      %173 = arith.index_cast %172 : i32 to index
      %c0_187 = arith.constant 0 : index
      %c0_188 = arith.constant 0 : index
      %174 = vector.load %arg23[%173, %c0_187, %c0_188] : memref<4x2x8xf32, #tpu.memory_space<vmem>>, vector<1x2x8xf32>
      %175 = vector.shape_cast %174 : vector<1x2x8xf32> to vector<2x8xf32>
      %176 = vector.shape_cast %171 : vector<2x8xf32> to vector<1x2x8xf32>
      tpu.vector_store %arg23[%173, %c0_187, %c0_188], %176 {strides = array<i32>} : memref<4x2x8xf32, #tpu.memory_space<vmem>>, vector<1x2x8xf32>,
    }
    %c2_i32_89 = arith.constant 2 : i32
    %c0_i32_90 = arith.constant 0 : i32
    %c2_i32_91 = arith.constant 2 : i32
    %57 = arith.addi %c0_i32_90, %c2_i32_91 : i32
    %c1_i32_92 = arith.constant 1 : i32
    scf.for %arg29 = %c0_i32_90 to %57 step %c1_i32_92  : i32 {
      %c4_i32_164 = arith.constant 4 : i32
      %118 = arith.addi %c4_i32_164, %arg29 : i32
      %c0_i32_165 = arith.constant 0 : i32
      %119 = arith.addi %118, %c0_i32_165 : i32
      %120 = arith.index_cast %119 : i32 to index
      %c0_166 = arith.constant 0 : index
      %c0_167 = arith.constant 0 : index
      %121 = vector.load %arg22[%120, %c0_166, %c0_167] : memref<8x4x8xf32, #tpu.memory_space<vmem>>, vector<1x4x8xf32>
      %122 = vector.shape_cast %121 : vector<1x4x8xf32> to vector<4x8xf32>
      %c4_i32_168 = arith.constant 4 : i32
      %123 = arith.addi %c4_i32_168, %arg29 : i32
      %c1_i32_169 = arith.constant 1 : i32
      %124 = arith.addi %123, %c1_i32_169 : i32
      %125 = arith.index_cast %124 : i32 to index
      %c0_170 = arith.constant 0 : index
      %c0_171 = arith.constant 0 : index
      %126 = vector.load %arg22[%125, %c0_170, %c0_171] : memref<8x4x8xf32, #tpu.memory_space<vmem>>, vector<1x4x8xf32>
      %127 = vector.shape_cast %126 : vector<1x4x8xf32> to vector<4x8xf32>
      %c4_i32_172 = arith.constant 4 : i32
      %128 = arith.addi %c4_i32_172, %arg29 : i32
      %c2_i32_173 = arith.constant 2 : i32
      %129 = arith.addi %128, %c2_i32_173 : i32
      %130 = arith.index_cast %129 : i32 to index
      %c0_174 = arith.constant 0 : index
      %c0_175 = arith.constant 0 : index
      %131 = vector.load %arg22[%130, %c0_174, %c0_175] : memref<8x4x8xf32, #tpu.memory_space<vmem>>, vector<1x4x8xf32>
      %132 = vector.shape_cast %131 : vector<1x4x8xf32> to vector<4x8xf32>
      %cst_176 = arith.constant 0.000000e+00 : f32
      %133 = vector.broadcast %cst_176 : f32 to vector<2x8xf32>
      %134 = vector.extract_strided_slice %122 {offsets = [0, 0], sizes = [2, 8], strides = [1, 1]} : vector<4x8xf32> to vector<2x8xf32>
      %135 = vector.extract_strided_slice %54 {offsets = [0, 0], sizes = [8, 8], strides = [1, 1]} : vector<72x8xf32> to vector<8x8xf32>
      %cst_177 = arith.constant dense<0.000000e+00> : vector<2x8xf32>
      %136 = tpu.matmul %134, %135, %cst_177 {dimension_numbers = #tpu.dot_dimension_numbers<[1], [0], [0], [1], [0, 0, 1, 1], [], []>} : vector<2x8xf32>, vector<8x8xf32>, vector<2x8xf32> -> vector<2x8xf32>
      %137 = arith.addf %133, %136 : vector<2x8xf32>
      %138 = vector.extract_strided_slice %122 {offsets = [1, 0], sizes = [2, 8], strides = [1, 1]} : vector<4x8xf32> to vector<2x8xf32>
      %139 = vector.extract_strided_slice %54 {offsets = [8, 0], sizes = [8, 8], strides = [1, 1]} : vector<72x8xf32> to vector<8x8xf32>
      %cst_178 = arith.constant dense<0.000000e+00> : vector<2x8xf32>
      %140 = tpu.matmul %138, %139, %cst_178 {dimension_numbers = #tpu.dot_dimension_numbers<[1], [0], [0], [1], [0, 0, 1, 1], [], []>} : vector<2x8xf32>, vector<8x8xf32>, vector<2x8xf32> -> vector<2x8xf32>
      %141 = arith.addf %137, %140 : vector<2x8xf32>
      %142 = vector.extract_strided_slice %122 {offsets = [2, 0], sizes = [2, 8], strides = [1, 1]} : vector<4x8xf32> to vector<2x8xf32>
      %143 = vector.extract_strided_slice %54 {offsets = [16, 0], sizes = [8, 8], strides = [1, 1]} : vector<72x8xf32> to vector<8x8xf32>
      %cst_179 = arith.constant dense<0.000000e+00> : vector<2x8xf32>
      %144 = tpu.matmul %142, %143, %cst_179 {dimension_numbers = #tpu.dot_dimension_numbers<[1], [0], [0], [1], [0, 0, 1, 1], [], []>} : vector<2x8xf32>, vector<8x8xf32>, vector<2x8xf32> -> vector<2x8xf32>
      %145 = arith.addf %141, %144 : vector<2x8xf32>
      %146 = vector.extract_strided_slice %127 {offsets = [0, 0], sizes = [2, 8], strides = [1, 1]} : vector<4x8xf32> to vector<2x8xf32>
      %147 = vector.extract_strided_slice %54 {offsets = [24, 0], sizes = [8, 8], strides = [1, 1]} : vector<72x8xf32> to vector<8x8xf32>
      %cst_180 = arith.constant dense<0.000000e+00> : vector<2x8xf32>
      %148 = tpu.matmul %146, %147, %cst_180 {dimension_numbers = #tpu.dot_dimension_numbers<[1], [0], [0], [1], [0, 0, 1, 1], [], []>} : vector<2x8xf32>, vector<8x8xf32>, vector<2x8xf32> -> vector<2x8xf32>
      %149 = arith.addf %145, %148 : vector<2x8xf32>
      %150 = vector.extract_strided_slice %127 {offsets = [1, 0], sizes = [2, 8], strides = [1, 1]} : vector<4x8xf32> to vector<2x8xf32>
      %151 = vector.extract_strided_slice %54 {offsets = [32, 0], sizes = [8, 8], strides = [1, 1]} : vector<72x8xf32> to vector<8x8xf32>
      %cst_181 = arith.constant dense<0.000000e+00> : vector<2x8xf32>
      %152 = tpu.matmul %150, %151, %cst_181 {dimension_numbers = #tpu.dot_dimension_numbers<[1], [0], [0], [1], [0, 0, 1, 1], [], []>} : vector<2x8xf32>, vector<8x8xf32>, vector<2x8xf32> -> vector<2x8xf32>
      %153 = arith.addf %149, %152 : vector<2x8xf32>
      %154 = vector.extract_strided_slice %127 {offsets = [2, 0], sizes = [2, 8], strides = [1, 1]} : vector<4x8xf32> to vector<2x8xf32>
      %155 = vector.extract_strided_slice %54 {offsets = [40, 0], sizes = [8, 8], strides = [1, 1]} : vector<72x8xf32> to vector<8x8xf32>
      %cst_182 = arith.constant dense<0.000000e+00> : vector<2x8xf32>
      %156 = tpu.matmul %154, %155, %cst_182 {dimension_numbers = #tpu.dot_dimension_numbers<[1], [0], [0], [1], [0, 0, 1, 1], [], []>} : vector<2x8xf32>, vector<8x8xf32>, vector<2x8xf32> -> vector<2x8xf32>
      %157 = arith.addf %153, %156 : vector<2x8xf32>
      %158 = vector.extract_strided_slice %132 {offsets = [0, 0], sizes = [2, 8], strides = [1, 1]} : vector<4x8xf32> to vector<2x8xf32>
      %159 = vector.extract_strided_slice %54 {offsets = [48, 0], sizes = [8, 8], strides = [1, 1]} : vector<72x8xf32> to vector<8x8xf32>
      %cst_183 = arith.constant dense<0.000000e+00> : vector<2x8xf32>
      %160 = tpu.matmul %158, %159, %cst_183 {dimension_numbers = #tpu.dot_dimension_numbers<[1], [0], [0], [1], [0, 0, 1, 1], [], []>} : vector<2x8xf32>, vector<8x8xf32>, vector<2x8xf32> -> vector<2x8xf32>
      %161 = arith.addf %157, %160 : vector<2x8xf32>
      %162 = vector.extract_strided_slice %132 {offsets = [1, 0], sizes = [2, 8], strides = [1, 1]} : vector<4x8xf32> to vector<2x8xf32>
      %163 = vector.extract_strided_slice %54 {offsets = [56, 0], sizes = [8, 8], strides = [1, 1]} : vector<72x8xf32> to vector<8x8xf32>
      %cst_184 = arith.constant dense<0.000000e+00> : vector<2x8xf32>
      %164 = tpu.matmul %162, %163, %cst_184 {dimension_numbers = #tpu.dot_dimension_numbers<[1], [0], [0], [1], [0, 0, 1, 1], [], []>} : vector<2x8xf32>, vector<8x8xf32>, vector<2x8xf32> -> vector<2x8xf32>
      %165 = arith.addf %161, %164 : vector<2x8xf32>
      %166 = vector.extract_strided_slice %132 {offsets = [2, 0], sizes = [2, 8], strides = [1, 1]} : vector<4x8xf32> to vector<2x8xf32>
      %167 = vector.extract_strided_slice %54 {offsets = [64, 0], sizes = [8, 8], strides = [1, 1]} : vector<72x8xf32> to vector<8x8xf32>
      %cst_185 = arith.constant dense<0.000000e+00> : vector<2x8xf32>
      %168 = tpu.matmul %166, %167, %cst_185 {dimension_numbers = #tpu.dot_dimension_numbers<[1], [0], [0], [1], [0, 0, 1, 1], [], []>} : vector<2x8xf32>, vector<8x8xf32>, vector<2x8xf32> -> vector<2x8xf32>
      %169 = arith.addf %165, %168 : vector<2x8xf32>
      %170 = vector.broadcast %55 : vector<1x8xf32> to vector<2x8xf32>
      %171 = arith.addf %169, %170 : vector<2x8xf32>
      %c2_i32_186 = arith.constant 2 : i32
      %172 = arith.addi %c2_i32_186, %arg29 : i32
      %173 = arith.index_cast %172 : i32 to index
      %c0_187 = arith.constant 0 : index
      %c0_188 = arith.constant 0 : index
      %174 = vector.load %arg23[%173, %c0_187, %c0_188] : memref<4x2x8xf32, #tpu.memory_space<vmem>>, vector<1x2x8xf32>
      %175 = vector.shape_cast %174 : vector<1x2x8xf32> to vector<2x8xf32>
      %176 = vector.shape_cast %171 : vector<2x8xf32> to vector<1x2x8xf32>
      tpu.vector_store %arg23[%173, %c0_187, %c0_188], %176 {strides = array<i32>} : memref<4x2x8xf32, #tpu.memory_space<vmem>>, vector<1x2x8xf32>,
    }
    %c2_i32_93 = arith.constant 2 : i32
    %58 = tpu.iota {dimensions = array<i32: 0>} : vector<4x2xi32>
    %59 = tpu.iota {dimensions = array<i32: 1>} : vector<4x2xi32>
    %c2_i32_94 = arith.constant 2 : i32
    %60 = vector.broadcast %c2_i32_94 : i32 to vector<4x2xi32>
    %61 = arith.muli %60, %59 : vector<4x2xi32>
    %62 = arith.cmpi eq, %58, %61 : vector<4x2xi32>
    %c2_i32_95 = arith.constant 2 : i32
    %63 = vector.broadcast %c2_i32_95 : i32 to vector<4x2xi32>
    %64 = arith.muli %63, %59 : vector<4x2xi32>
    %c1_i32_96 = arith.constant 1 : i32
    %65 = vector.broadcast %c1_i32_96 : i32 to vector<4x2xi32>
    %66 = arith.addi %64, %65 : vector<4x2xi32>
    %67 = arith.cmpi eq, %58, %66 : vector<4x2xi32>
    %68 = arith.ori %62, %67 : vector<4x2xi1>
    %69 = arith.extui %68 : vector<4x2xi1> to vector<4x2xi32>
    %70 = arith.sitofp %69 : vector<4x2xi32> to vector<4x2xf32>
    %cst_97 = arith.constant 0.000000e+00 : f32
    %71 = vector.broadcast %cst_97 : f32 to vector<1x8xf32>
    %c0_i32_98 = arith.constant 0 : i32
    %c2_i32_99 = arith.constant 2 : i32
    %72 = arith.addi %c0_i32_98, %c2_i32_99 : i32
    %c1_i32_100 = arith.constant 1 : i32
    scf.for %arg29 = %c0_i32_98 to %72 step %c1_i32_100  : i32 {
      %c0_i32_164 = arith.constant 0 : i32
      %118 = arith.addi %c0_i32_164, %arg29 : i32
      %119 = arith.index_cast %118 : i32 to index
      %c0_165 = arith.constant 0 : index
      %c0_166 = arith.constant 0 : index
      %120 = vector.load %arg23[%119, %c0_165, %c0_166] : memref<4x2x8xf32, #tpu.memory_space<vmem>>, vector<1x2x8xf32>
      %121 = vector.shape_cast %120 : vector<1x2x8xf32> to vector<2x8xf32>
      %cst_167 = arith.constant dense<0.000000e+00> : vector<4x8xf32>
      %122 = tpu.matmul %70, %121, %cst_167 {dimension_numbers = #tpu.dot_dimension_numbers<[1], [0], [0], [1], [0, 0, 1, 1], [], []>} : vector<4x2xf32>, vector<2x8xf32>, vector<4x8xf32> -> vector<4x8xf32>
      %123 = tpu.concatenate %71, %122, %71 in 0 : vector<1x8xf32>, vector<4x8xf32>, vector<1x8xf32> -> vector<6x8xf32>
      %c2_i32_168 = arith.constant 2 : i32
      %124 = arith.muli %c2_i32_168, %arg29 : i32
      %c1_i32_169 = arith.constant 1 : i32
      %125 = arith.addi %c1_i32_169, %124 : i32
      %126 = arith.index_cast %125 : i32 to index
      %c0_170 = arith.constant 0 : index
      %c0_171 = arith.constant 0 : index
      %127 = vector.load %arg24[%126, %c0_170, %c0_171] : memref<12x6x8xf32, #tpu.memory_space<vmem>>, vector<1x6x8xf32>
      %128 = vector.shape_cast %127 : vector<1x6x8xf32> to vector<6x8xf32>
      %129 = vector.shape_cast %123 : vector<6x8xf32> to vector<1x6x8xf32>
      tpu.vector_store %arg24[%126, %c0_170, %c0_171], %129 {strides = array<i32>} : memref<12x6x8xf32, #tpu.memory_space<vmem>>, vector<1x6x8xf32>,
      %c1_i32_172 = arith.constant 1 : i32
      %130 = arith.addi %125, %c1_i32_172 : i32
      %131 = arith.index_cast %130 : i32 to index
      %c0_173 = arith.constant 0 : index
      %c0_174 = arith.constant 0 : index
      %132 = vector.load %arg24[%131, %c0_173, %c0_174] : memref<12x6x8xf32, #tpu.memory_space<vmem>>, vector<1x6x8xf32>
      %133 = vector.shape_cast %132 : vector<1x6x8xf32> to vector<6x8xf32>
      %134 = vector.shape_cast %123 : vector<6x8xf32> to vector<1x6x8xf32>
      tpu.vector_store %arg24[%131, %c0_173, %c0_174], %134 {strides = array<i32>} : memref<12x6x8xf32, #tpu.memory_space<vmem>>, vector<1x6x8xf32>,
    }
    %c2_i32_101 = arith.constant 2 : i32
    %c0_i32_102 = arith.constant 0 : i32
    %c2_i32_103 = arith.constant 2 : i32
    %73 = arith.addi %c0_i32_102, %c2_i32_103 : i32
    %c1_i32_104 = arith.constant 1 : i32
    scf.for %arg29 = %c0_i32_102 to %73 step %c1_i32_104  : i32 {
      %c2_i32_164 = arith.constant 2 : i32
      %118 = arith.addi %c2_i32_164, %arg29 : i32
      %119 = arith.index_cast %118 : i32 to index
      %c0_165 = arith.constant 0 : index
      %c0_166 = arith.constant 0 : index
      %120 = vector.load %arg23[%119, %c0_165, %c0_166] : memref<4x2x8xf32, #tpu.memory_space<vmem>>, vector<1x2x8xf32>
      %121 = vector.shape_cast %120 : vector<1x2x8xf32> to vector<2x8xf32>
      %cst_167 = arith.constant dense<0.000000e+00> : vector<4x8xf32>
      %122 = tpu.matmul %70, %121, %cst_167 {dimension_numbers = #tpu.dot_dimension_numbers<[1], [0], [0], [1], [0, 0, 1, 1], [], []>} : vector<4x2xf32>, vector<2x8xf32>, vector<4x8xf32> -> vector<4x8xf32>
      %123 = tpu.concatenate %71, %122, %71 in 0 : vector<1x8xf32>, vector<4x8xf32>, vector<1x8xf32> -> vector<6x8xf32>
      %c2_i32_168 = arith.constant 2 : i32
      %124 = arith.muli %c2_i32_168, %arg29 : i32
      %c7_i32 = arith.constant 7 : i32
      %125 = arith.addi %c7_i32, %124 : i32
      %126 = arith.index_cast %125 : i32 to index
      %c0_169 = arith.constant 0 : index
      %c0_170 = arith.constant 0 : index
      %127 = vector.load %arg24[%126, %c0_169, %c0_170] : memref<12x6x8xf32, #tpu.memory_space<vmem>>, vector<1x6x8xf32>
      %128 = vector.shape_cast %127 : vector<1x6x8xf32> to vector<6x8xf32>
      %129 = vector.shape_cast %123 : vector<6x8xf32> to vector<1x6x8xf32>
      tpu.vector_store %arg24[%126, %c0_169, %c0_170], %129 {strides = array<i32>} : memref<12x6x8xf32, #tpu.memory_space<vmem>>, vector<1x6x8xf32>,
      %c1_i32_171 = arith.constant 1 : i32
      %130 = arith.addi %125, %c1_i32_171 : i32
      %131 = arith.index_cast %130 : i32 to index
      %c0_172 = arith.constant 0 : index
      %c0_173 = arith.constant 0 : index
      %132 = vector.load %arg24[%131, %c0_172, %c0_173] : memref<12x6x8xf32, #tpu.memory_space<vmem>>, vector<1x6x8xf32>
      %133 = vector.shape_cast %132 : vector<1x6x8xf32> to vector<6x8xf32>
      %134 = vector.shape_cast %123 : vector<6x8xf32> to vector<1x6x8xf32>
      tpu.vector_store %arg24[%131, %c0_172, %c0_173], %134 {strides = array<i32>} : memref<12x6x8xf32, #tpu.memory_space<vmem>>, vector<1x6x8xf32>,
    }
    %c2_i32_105 = arith.constant 2 : i32
    %c0_106 = arith.constant 0 : index
    %c0_107 = arith.constant 0 : index
    %74 = vector.load %arg10[%c0_106, %c0_107] : memref<72x8xf32, #tpu.memory_space<vmem>>, vector<72x8xf32>
    %c0_108 = arith.constant 0 : index
    %c0_109 = arith.constant 0 : index
    %75 = vector.load %arg11[%c0_108, %c0_109] : memref<1x8xf32, #tpu.memory_space<vmem>>, vector<1x8xf32>
    %c0_i32_110 = arith.constant 0 : i32
    %c4_i32_111 = arith.constant 4 : i32
    %76 = arith.addi %c0_i32_110, %c4_i32_111 : i32
    %c1_i32_112 = arith.constant 1 : i32
    scf.for %arg29 = %c0_i32_110 to %76 step %c1_i32_112  : i32 {
      %c0_i32_164 = arith.constant 0 : i32
      %118 = arith.addi %c0_i32_164, %arg29 : i32
      %c0_i32_165 = arith.constant 0 : i32
      %119 = arith.addi %118, %c0_i32_165 : i32
      %120 = arith.index_cast %119 : i32 to index
      %c0_166 = arith.constant 0 : index
      %c0_167 = arith.constant 0 : index
      %121 = vector.load %arg24[%120, %c0_166, %c0_167] : memref<12x6x8xf32, #tpu.memory_space<vmem>>, vector<1x6x8xf32>
      %122 = vector.shape_cast %121 : vector<1x6x8xf32> to vector<6x8xf32>
      %c0_i32_168 = arith.constant 0 : i32
      %123 = arith.addi %c0_i32_168, %arg29 : i32
      %c1_i32_169 = arith.constant 1 : i32
      %124 = arith.addi %123, %c1_i32_169 : i32
      %125 = arith.index_cast %124 : i32 to index
      %c0_170 = arith.constant 0 : index
      %c0_171 = arith.constant 0 : index
      %126 = vector.load %arg24[%125, %c0_170, %c0_171] : memref<12x6x8xf32, #tpu.memory_space<vmem>>, vector<1x6x8xf32>
      %127 = vector.shape_cast %126 : vector<1x6x8xf32> to vector<6x8xf32>
      %c0_i32_172 = arith.constant 0 : i32
      %128 = arith.addi %c0_i32_172, %arg29 : i32
      %c2_i32_173 = arith.constant 2 : i32
      %129 = arith.addi %128, %c2_i32_173 : i32
      %130 = arith.index_cast %129 : i32 to index
      %c0_174 = arith.constant 0 : index
      %c0_175 = arith.constant 0 : index
      %131 = vector.load %arg24[%130, %c0_174, %c0_175] : memref<12x6x8xf32, #tpu.memory_space<vmem>>, vector<1x6x8xf32>
      %132 = vector.shape_cast %131 : vector<1x6x8xf32> to vector<6x8xf32>
      %cst_176 = arith.constant 0.000000e+00 : f32
      %133 = vector.broadcast %cst_176 : f32 to vector<4x8xf32>
      %134 = vector.extract_strided_slice %122 {offsets = [0, 0], sizes = [4, 8], strides = [1, 1]} : vector<6x8xf32> to vector<4x8xf32>
      %135 = vector.extract_strided_slice %74 {offsets = [0, 0], sizes = [8, 8], strides = [1, 1]} : vector<72x8xf32> to vector<8x8xf32>
      %cst_177 = arith.constant dense<0.000000e+00> : vector<4x8xf32>
      %136 = tpu.matmul %134, %135, %cst_177 {dimension_numbers = #tpu.dot_dimension_numbers<[1], [0], [0], [1], [0, 0, 1, 1], [], []>} : vector<4x8xf32>, vector<8x8xf32>, vector<4x8xf32> -> vector<4x8xf32>
      %137 = arith.addf %133, %136 : vector<4x8xf32>
      %138 = vector.extract_strided_slice %122 {offsets = [1, 0], sizes = [4, 8], strides = [1, 1]} : vector<6x8xf32> to vector<4x8xf32>
      %139 = vector.extract_strided_slice %74 {offsets = [8, 0], sizes = [8, 8], strides = [1, 1]} : vector<72x8xf32> to vector<8x8xf32>
      %cst_178 = arith.constant dense<0.000000e+00> : vector<4x8xf32>
      %140 = tpu.matmul %138, %139, %cst_178 {dimension_numbers = #tpu.dot_dimension_numbers<[1], [0], [0], [1], [0, 0, 1, 1], [], []>} : vector<4x8xf32>, vector<8x8xf32>, vector<4x8xf32> -> vector<4x8xf32>
      %141 = arith.addf %137, %140 : vector<4x8xf32>
      %142 = vector.extract_strided_slice %122 {offsets = [2, 0], sizes = [4, 8], strides = [1, 1]} : vector<6x8xf32> to vector<4x8xf32>
      %143 = vector.extract_strided_slice %74 {offsets = [16, 0], sizes = [8, 8], strides = [1, 1]} : vector<72x8xf32> to vector<8x8xf32>
      %cst_179 = arith.constant dense<0.000000e+00> : vector<4x8xf32>
      %144 = tpu.matmul %142, %143, %cst_179 {dimension_numbers = #tpu.dot_dimension_numbers<[1], [0], [0], [1], [0, 0, 1, 1], [], []>} : vector<4x8xf32>, vector<8x8xf32>, vector<4x8xf32> -> vector<4x8xf32>
      %145 = arith.addf %141, %144 : vector<4x8xf32>
      %146 = vector.extract_strided_slice %127 {offsets = [0, 0], sizes = [4, 8], strides = [1, 1]} : vector<6x8xf32> to vector<4x8xf32>
      %147 = vector.extract_strided_slice %74 {offsets = [24, 0], sizes = [8, 8], strides = [1, 1]} : vector<72x8xf32> to vector<8x8xf32>
      %cst_180 = arith.constant dense<0.000000e+00> : vector<4x8xf32>
      %148 = tpu.matmul %146, %147, %cst_180 {dimension_numbers = #tpu.dot_dimension_numbers<[1], [0], [0], [1], [0, 0, 1, 1], [], []>} : vector<4x8xf32>, vector<8x8xf32>, vector<4x8xf32> -> vector<4x8xf32>
      %149 = arith.addf %145, %148 : vector<4x8xf32>
      %150 = vector.extract_strided_slice %127 {offsets = [1, 0], sizes = [4, 8], strides = [1, 1]} : vector<6x8xf32> to vector<4x8xf32>
      %151 = vector.extract_strided_slice %74 {offsets = [32, 0], sizes = [8, 8], strides = [1, 1]} : vector<72x8xf32> to vector<8x8xf32>
      %cst_181 = arith.constant dense<0.000000e+00> : vector<4x8xf32>
      %152 = tpu.matmul %150, %151, %cst_181 {dimension_numbers = #tpu.dot_dimension_numbers<[1], [0], [0], [1], [0, 0, 1, 1], [], []>} : vector<4x8xf32>, vector<8x8xf32>, vector<4x8xf32> -> vector<4x8xf32>
      %153 = arith.addf %149, %152 : vector<4x8xf32>
      %154 = vector.extract_strided_slice %127 {offsets = [2, 0], sizes = [4, 8], strides = [1, 1]} : vector<6x8xf32> to vector<4x8xf32>
      %155 = vector.extract_strided_slice %74 {offsets = [40, 0], sizes = [8, 8], strides = [1, 1]} : vector<72x8xf32> to vector<8x8xf32>
      %cst_182 = arith.constant dense<0.000000e+00> : vector<4x8xf32>
      %156 = tpu.matmul %154, %155, %cst_182 {dimension_numbers = #tpu.dot_dimension_numbers<[1], [0], [0], [1], [0, 0, 1, 1], [], []>} : vector<4x8xf32>, vector<8x8xf32>, vector<4x8xf32> -> vector<4x8xf32>
      %157 = arith.addf %153, %156 : vector<4x8xf32>
      %158 = vector.extract_strided_slice %132 {offsets = [0, 0], sizes = [4, 8], strides = [1, 1]} : vector<6x8xf32> to vector<4x8xf32>
      %159 = vector.extract_strided_slice %74 {offsets = [48, 0], sizes = [8, 8], strides = [1, 1]} : vector<72x8xf32> to vector<8x8xf32>
      %cst_183 = arith.constant dense<0.000000e+00> : vector<4x8xf32>
      %160 = tpu.matmul %158, %159, %cst_183 {dimension_numbers = #tpu.dot_dimension_numbers<[1], [0], [0], [1], [0, 0, 1, 1], [], []>} : vector<4x8xf32>, vector<8x8xf32>, vector<4x8xf32> -> vector<4x8xf32>
      %161 = arith.addf %157, %160 : vector<4x8xf32>
      %162 = vector.extract_strided_slice %132 {offsets = [1, 0], sizes = [4, 8], strides = [1, 1]} : vector<6x8xf32> to vector<4x8xf32>
      %163 = vector.extract_strided_slice %74 {offsets = [56, 0], sizes = [8, 8], strides = [1, 1]} : vector<72x8xf32> to vector<8x8xf32>
      %cst_184 = arith.constant dense<0.000000e+00> : vector<4x8xf32>
      %164 = tpu.matmul %162, %163, %cst_184 {dimension_numbers = #tpu.dot_dimension_numbers<[1], [0], [0], [1], [0, 0, 1, 1], [], []>} : vector<4x8xf32>, vector<8x8xf32>, vector<4x8xf32> -> vector<4x8xf32>
      %165 = arith.addf %161, %164 : vector<4x8xf32>
      %166 = vector.extract_strided_slice %132 {offsets = [2, 0], sizes = [4, 8], strides = [1, 1]} : vector<6x8xf32> to vector<4x8xf32>
      %167 = vector.extract_strided_slice %74 {offsets = [64, 0], sizes = [8, 8], strides = [1, 1]} : vector<72x8xf32> to vector<8x8xf32>
      %cst_185 = arith.constant dense<0.000000e+00> : vector<4x8xf32>
      %168 = tpu.matmul %166, %167, %cst_185 {dimension_numbers = #tpu.dot_dimension_numbers<[1], [0], [0], [1], [0, 0, 1, 1], [], []>} : vector<4x8xf32>, vector<8x8xf32>, vector<4x8xf32> -> vector<4x8xf32>
      %169 = arith.addf %165, %168 : vector<4x8xf32>
      %170 = vector.broadcast %75 : vector<1x8xf32> to vector<4x8xf32>
      %171 = arith.addf %169, %170 : vector<4x8xf32>
      %c0_i32_186 = arith.constant 0 : i32
      %172 = arith.addi %c0_i32_186, %arg29 : i32
      %173 = arith.index_cast %172 : i32 to index
      %c0_187 = arith.constant 0 : index
      %c0_188 = arith.constant 0 : index
      %174 = vector.load %arg25[%173, %c0_187, %c0_188] : memref<8x4x8xf32, #tpu.memory_space<vmem>>, vector<1x4x8xf32>
      %175 = vector.shape_cast %174 : vector<1x4x8xf32> to vector<4x8xf32>
      %176 = vector.shape_cast %171 : vector<4x8xf32> to vector<1x4x8xf32>
      tpu.vector_store %arg25[%173, %c0_187, %c0_188], %176 {strides = array<i32>} : memref<8x4x8xf32, #tpu.memory_space<vmem>>, vector<1x4x8xf32>,
    }
    %c4_i32_113 = arith.constant 4 : i32
    %c0_i32_114 = arith.constant 0 : i32
    %c4_i32_115 = arith.constant 4 : i32
    %77 = arith.addi %c0_i32_114, %c4_i32_115 : i32
    %c1_i32_116 = arith.constant 1 : i32
    scf.for %arg29 = %c0_i32_114 to %77 step %c1_i32_116  : i32 {
      %c6_i32 = arith.constant 6 : i32
      %118 = arith.addi %c6_i32, %arg29 : i32
      %c0_i32_164 = arith.constant 0 : i32
      %119 = arith.addi %118, %c0_i32_164 : i32
      %120 = arith.index_cast %119 : i32 to index
      %c0_165 = arith.constant 0 : index
      %c0_166 = arith.constant 0 : index
      %121 = vector.load %arg24[%120, %c0_165, %c0_166] : memref<12x6x8xf32, #tpu.memory_space<vmem>>, vector<1x6x8xf32>
      %122 = vector.shape_cast %121 : vector<1x6x8xf32> to vector<6x8xf32>
      %c6_i32_167 = arith.constant 6 : i32
      %123 = arith.addi %c6_i32_167, %arg29 : i32
      %c1_i32_168 = arith.constant 1 : i32
      %124 = arith.addi %123, %c1_i32_168 : i32
      %125 = arith.index_cast %124 : i32 to index
      %c0_169 = arith.constant 0 : index
      %c0_170 = arith.constant 0 : index
      %126 = vector.load %arg24[%125, %c0_169, %c0_170] : memref<12x6x8xf32, #tpu.memory_space<vmem>>, vector<1x6x8xf32>
      %127 = vector.shape_cast %126 : vector<1x6x8xf32> to vector<6x8xf32>
      %c6_i32_171 = arith.constant 6 : i32
      %128 = arith.addi %c6_i32_171, %arg29 : i32
      %c2_i32_172 = arith.constant 2 : i32
      %129 = arith.addi %128, %c2_i32_172 : i32
      %130 = arith.index_cast %129 : i32 to index
      %c0_173 = arith.constant 0 : index
      %c0_174 = arith.constant 0 : index
      %131 = vector.load %arg24[%130, %c0_173, %c0_174] : memref<12x6x8xf32, #tpu.memory_space<vmem>>, vector<1x6x8xf32>
      %132 = vector.shape_cast %131 : vector<1x6x8xf32> to vector<6x8xf32>
      %cst_175 = arith.constant 0.000000e+00 : f32
      %133 = vector.broadcast %cst_175 : f32 to vector<4x8xf32>
      %134 = vector.extract_strided_slice %122 {offsets = [0, 0], sizes = [4, 8], strides = [1, 1]} : vector<6x8xf32> to vector<4x8xf32>
      %135 = vector.extract_strided_slice %74 {offsets = [0, 0], sizes = [8, 8], strides = [1, 1]} : vector<72x8xf32> to vector<8x8xf32>
      %cst_176 = arith.constant dense<0.000000e+00> : vector<4x8xf32>
      %136 = tpu.matmul %134, %135, %cst_176 {dimension_numbers = #tpu.dot_dimension_numbers<[1], [0], [0], [1], [0, 0, 1, 1], [], []>} : vector<4x8xf32>, vector<8x8xf32>, vector<4x8xf32> -> vector<4x8xf32>
      %137 = arith.addf %133, %136 : vector<4x8xf32>
      %138 = vector.extract_strided_slice %122 {offsets = [1, 0], sizes = [4, 8], strides = [1, 1]} : vector<6x8xf32> to vector<4x8xf32>
      %139 = vector.extract_strided_slice %74 {offsets = [8, 0], sizes = [8, 8], strides = [1, 1]} : vector<72x8xf32> to vector<8x8xf32>
      %cst_177 = arith.constant dense<0.000000e+00> : vector<4x8xf32>
      %140 = tpu.matmul %138, %139, %cst_177 {dimension_numbers = #tpu.dot_dimension_numbers<[1], [0], [0], [1], [0, 0, 1, 1], [], []>} : vector<4x8xf32>, vector<8x8xf32>, vector<4x8xf32> -> vector<4x8xf32>
      %141 = arith.addf %137, %140 : vector<4x8xf32>
      %142 = vector.extract_strided_slice %122 {offsets = [2, 0], sizes = [4, 8], strides = [1, 1]} : vector<6x8xf32> to vector<4x8xf32>
      %143 = vector.extract_strided_slice %74 {offsets = [16, 0], sizes = [8, 8], strides = [1, 1]} : vector<72x8xf32> to vector<8x8xf32>
      %cst_178 = arith.constant dense<0.000000e+00> : vector<4x8xf32>
      %144 = tpu.matmul %142, %143, %cst_178 {dimension_numbers = #tpu.dot_dimension_numbers<[1], [0], [0], [1], [0, 0, 1, 1], [], []>} : vector<4x8xf32>, vector<8x8xf32>, vector<4x8xf32> -> vector<4x8xf32>
      %145 = arith.addf %141, %144 : vector<4x8xf32>
      %146 = vector.extract_strided_slice %127 {offsets = [0, 0], sizes = [4, 8], strides = [1, 1]} : vector<6x8xf32> to vector<4x8xf32>
      %147 = vector.extract_strided_slice %74 {offsets = [24, 0], sizes = [8, 8], strides = [1, 1]} : vector<72x8xf32> to vector<8x8xf32>
      %cst_179 = arith.constant dense<0.000000e+00> : vector<4x8xf32>
      %148 = tpu.matmul %146, %147, %cst_179 {dimension_numbers = #tpu.dot_dimension_numbers<[1], [0], [0], [1], [0, 0, 1, 1], [], []>} : vector<4x8xf32>, vector<8x8xf32>, vector<4x8xf32> -> vector<4x8xf32>
      %149 = arith.addf %145, %148 : vector<4x8xf32>
      %150 = vector.extract_strided_slice %127 {offsets = [1, 0], sizes = [4, 8], strides = [1, 1]} : vector<6x8xf32> to vector<4x8xf32>
      %151 = vector.extract_strided_slice %74 {offsets = [32, 0], sizes = [8, 8], strides = [1, 1]} : vector<72x8xf32> to vector<8x8xf32>
      %cst_180 = arith.constant dense<0.000000e+00> : vector<4x8xf32>
      %152 = tpu.matmul %150, %151, %cst_180 {dimension_numbers = #tpu.dot_dimension_numbers<[1], [0], [0], [1], [0, 0, 1, 1], [], []>} : vector<4x8xf32>, vector<8x8xf32>, vector<4x8xf32> -> vector<4x8xf32>
      %153 = arith.addf %149, %152 : vector<4x8xf32>
      %154 = vector.extract_strided_slice %127 {offsets = [2, 0], sizes = [4, 8], strides = [1, 1]} : vector<6x8xf32> to vector<4x8xf32>
      %155 = vector.extract_strided_slice %74 {offsets = [40, 0], sizes = [8, 8], strides = [1, 1]} : vector<72x8xf32> to vector<8x8xf32>
      %cst_181 = arith.constant dense<0.000000e+00> : vector<4x8xf32>
      %156 = tpu.matmul %154, %155, %cst_181 {dimension_numbers = #tpu.dot_dimension_numbers<[1], [0], [0], [1], [0, 0, 1, 1], [], []>} : vector<4x8xf32>, vector<8x8xf32>, vector<4x8xf32> -> vector<4x8xf32>
      %157 = arith.addf %153, %156 : vector<4x8xf32>
      %158 = vector.extract_strided_slice %132 {offsets = [0, 0], sizes = [4, 8], strides = [1, 1]} : vector<6x8xf32> to vector<4x8xf32>
      %159 = vector.extract_strided_slice %74 {offsets = [48, 0], sizes = [8, 8], strides = [1, 1]} : vector<72x8xf32> to vector<8x8xf32>
      %cst_182 = arith.constant dense<0.000000e+00> : vector<4x8xf32>
      %160 = tpu.matmul %158, %159, %cst_182 {dimension_numbers = #tpu.dot_dimension_numbers<[1], [0], [0], [1], [0, 0, 1, 1], [], []>} : vector<4x8xf32>, vector<8x8xf32>, vector<4x8xf32> -> vector<4x8xf32>
      %161 = arith.addf %157, %160 : vector<4x8xf32>
      %162 = vector.extract_strided_slice %132 {offsets = [1, 0], sizes = [4, 8], strides = [1, 1]} : vector<6x8xf32> to vector<4x8xf32>
      %163 = vector.extract_strided_slice %74 {offsets = [56, 0], sizes = [8, 8], strides = [1, 1]} : vector<72x8xf32> to vector<8x8xf32>
      %cst_183 = arith.constant dense<0.000000e+00> : vector<4x8xf32>
      %164 = tpu.matmul %162, %163, %cst_183 {dimension_numbers = #tpu.dot_dimension_numbers<[1], [0], [0], [1], [0, 0, 1, 1], [], []>} : vector<4x8xf32>, vector<8x8xf32>, vector<4x8xf32> -> vector<4x8xf32>
      %165 = arith.addf %161, %164 : vector<4x8xf32>
      %166 = vector.extract_strided_slice %132 {offsets = [2, 0], sizes = [4, 8], strides = [1, 1]} : vector<6x8xf32> to vector<4x8xf32>
      %167 = vector.extract_strided_slice %74 {offsets = [64, 0], sizes = [8, 8], strides = [1, 1]} : vector<72x8xf32> to vector<8x8xf32>
      %cst_184 = arith.constant dense<0.000000e+00> : vector<4x8xf32>
      %168 = tpu.matmul %166, %167, %cst_184 {dimension_numbers = #tpu.dot_dimension_numbers<[1], [0], [0], [1], [0, 0, 1, 1], [], []>} : vector<4x8xf32>, vector<8x8xf32>, vector<4x8xf32> -> vector<4x8xf32>
      %169 = arith.addf %165, %168 : vector<4x8xf32>
      %170 = vector.broadcast %75 : vector<1x8xf32> to vector<4x8xf32>
      %171 = arith.addf %169, %170 : vector<4x8xf32>
      %c4_i32_185 = arith.constant 4 : i32
      %172 = arith.addi %c4_i32_185, %arg29 : i32
      %173 = arith.index_cast %172 : i32 to index
      %c0_186 = arith.constant 0 : index
      %c0_187 = arith.constant 0 : index
      %174 = vector.load %arg25[%173, %c0_186, %c0_187] : memref<8x4x8xf32, #tpu.memory_space<vmem>>, vector<1x4x8xf32>
      %175 = vector.shape_cast %174 : vector<1x4x8xf32> to vector<4x8xf32>
      %176 = vector.shape_cast %171 : vector<4x8xf32> to vector<1x4x8xf32>
      tpu.vector_store %arg25[%173, %c0_186, %c0_187], %176 {strides = array<i32>} : memref<8x4x8xf32, #tpu.memory_space<vmem>>, vector<1x4x8xf32>,
    }
    %c4_i32_117 = arith.constant 4 : i32
    %78 = tpu.iota {dimensions = array<i32: 0>} : vector<8x4xi32>
    %79 = tpu.iota {dimensions = array<i32: 1>} : vector<8x4xi32>
    %c2_i32_118 = arith.constant 2 : i32
    %80 = vector.broadcast %c2_i32_118 : i32 to vector<8x4xi32>
    %81 = arith.muli %80, %79 : vector<8x4xi32>
    %82 = arith.cmpi eq, %78, %81 : vector<8x4xi32>
    %c2_i32_119 = arith.constant 2 : i32
    %83 = vector.broadcast %c2_i32_119 : i32 to vector<8x4xi32>
    %84 = arith.muli %83, %79 : vector<8x4xi32>
    %c1_i32_120 = arith.constant 1 : i32
    %85 = vector.broadcast %c1_i32_120 : i32 to vector<8x4xi32>
    %86 = arith.addi %84, %85 : vector<8x4xi32>
    %87 = arith.cmpi eq, %78, %86 : vector<8x4xi32>
    %88 = arith.ori %82, %87 : vector<8x4xi1>
    %89 = arith.extui %88 : vector<8x4xi1> to vector<8x4xi32>
    %90 = arith.sitofp %89 : vector<8x4xi32> to vector<8x4xf32>
    %cst_121 = arith.constant 0.000000e+00 : f32
    %91 = vector.broadcast %cst_121 : f32 to vector<2x8xf32>
    %c0_i32_122 = arith.constant 0 : i32
    %c4_i32_123 = arith.constant 4 : i32
    %92 = arith.addi %c0_i32_122, %c4_i32_123 : i32
    %c1_i32_124 = arith.constant 1 : i32
    scf.for %arg29 = %c0_i32_122 to %92 step %c1_i32_124  : i32 {
      %c0_i32_164 = arith.constant 0 : i32
      %118 = arith.addi %c0_i32_164, %arg29 : i32
      %119 = arith.index_cast %118 : i32 to index
      %c0_165 = arith.constant 0 : index
      %c0_166 = arith.constant 0 : index
      %120 = vector.load %arg25[%119, %c0_165, %c0_166] : memref<8x4x8xf32, #tpu.memory_space<vmem>>, vector<1x4x8xf32>
      %121 = vector.shape_cast %120 : vector<1x4x8xf32> to vector<4x8xf32>
      %cst_167 = arith.constant dense<0.000000e+00> : vector<8x8xf32>
      %122 = tpu.matmul %90, %121, %cst_167 {dimension_numbers = #tpu.dot_dimension_numbers<[1], [0], [0], [1], [0, 0, 1, 1], [], []>} : vector<8x4xf32>, vector<4x8xf32>, vector<8x8xf32> -> vector<8x8xf32>
      %123 = tpu.concatenate %91, %122, %91 in 0 : vector<2x8xf32>, vector<8x8xf32>, vector<2x8xf32> -> vector<12x8xf32>
      %c2_i32_168 = arith.constant 2 : i32
      %124 = arith.muli %c2_i32_168, %arg29 : i32
      %c2_i32_169 = arith.constant 2 : i32
      %125 = arith.addi %c2_i32_169, %124 : i32
      %126 = arith.index_cast %125 : i32 to index
      %c0_170 = arith.constant 0 : index
      %c0_171 = arith.constant 0 : index
      %127 = vector.load %arg26[%126, %c0_170, %c0_171] : memref<24x12x8xf32, #tpu.memory_space<vmem>>, vector<1x12x8xf32>
      %128 = vector.shape_cast %127 : vector<1x12x8xf32> to vector<12x8xf32>
      %129 = vector.shape_cast %123 : vector<12x8xf32> to vector<1x12x8xf32>
      tpu.vector_store %arg26[%126, %c0_170, %c0_171], %129 {strides = array<i32>} : memref<24x12x8xf32, #tpu.memory_space<vmem>>, vector<1x12x8xf32>,
      %c1_i32_172 = arith.constant 1 : i32
      %130 = arith.addi %125, %c1_i32_172 : i32
      %131 = arith.index_cast %130 : i32 to index
      %c0_173 = arith.constant 0 : index
      %c0_174 = arith.constant 0 : index
      %132 = vector.load %arg26[%131, %c0_173, %c0_174] : memref<24x12x8xf32, #tpu.memory_space<vmem>>, vector<1x12x8xf32>
      %133 = vector.shape_cast %132 : vector<1x12x8xf32> to vector<12x8xf32>
      %134 = vector.shape_cast %123 : vector<12x8xf32> to vector<1x12x8xf32>
      tpu.vector_store %arg26[%131, %c0_173, %c0_174], %134 {strides = array<i32>} : memref<24x12x8xf32, #tpu.memory_space<vmem>>, vector<1x12x8xf32>,
    }
    %c4_i32_125 = arith.constant 4 : i32
    %c0_i32_126 = arith.constant 0 : i32
    %c4_i32_127 = arith.constant 4 : i32
    %93 = arith.addi %c0_i32_126, %c4_i32_127 : i32
    %c1_i32_128 = arith.constant 1 : i32
    scf.for %arg29 = %c0_i32_126 to %93 step %c1_i32_128  : i32 {
      %c4_i32_164 = arith.constant 4 : i32
      %118 = arith.addi %c4_i32_164, %arg29 : i32
      %119 = arith.index_cast %118 : i32 to index
      %c0_165 = arith.constant 0 : index
      %c0_166 = arith.constant 0 : index
      %120 = vector.load %arg25[%119, %c0_165, %c0_166] : memref<8x4x8xf32, #tpu.memory_space<vmem>>, vector<1x4x8xf32>
      %121 = vector.shape_cast %120 : vector<1x4x8xf32> to vector<4x8xf32>
      %cst_167 = arith.constant dense<0.000000e+00> : vector<8x8xf32>
      %122 = tpu.matmul %90, %121, %cst_167 {dimension_numbers = #tpu.dot_dimension_numbers<[1], [0], [0], [1], [0, 0, 1, 1], [], []>} : vector<8x4xf32>, vector<4x8xf32>, vector<8x8xf32> -> vector<8x8xf32>
      %123 = tpu.concatenate %91, %122, %91 in 0 : vector<2x8xf32>, vector<8x8xf32>, vector<2x8xf32> -> vector<12x8xf32>
      %c2_i32_168 = arith.constant 2 : i32
      %124 = arith.muli %c2_i32_168, %arg29 : i32
      %c14_i32 = arith.constant 14 : i32
      %125 = arith.addi %c14_i32, %124 : i32
      %126 = arith.index_cast %125 : i32 to index
      %c0_169 = arith.constant 0 : index
      %c0_170 = arith.constant 0 : index
      %127 = vector.load %arg26[%126, %c0_169, %c0_170] : memref<24x12x8xf32, #tpu.memory_space<vmem>>, vector<1x12x8xf32>
      %128 = vector.shape_cast %127 : vector<1x12x8xf32> to vector<12x8xf32>
      %129 = vector.shape_cast %123 : vector<12x8xf32> to vector<1x12x8xf32>
      tpu.vector_store %arg26[%126, %c0_169, %c0_170], %129 {strides = array<i32>} : memref<24x12x8xf32, #tpu.memory_space<vmem>>, vector<1x12x8xf32>,
      %c1_i32_171 = arith.constant 1 : i32
      %130 = arith.addi %125, %c1_i32_171 : i32
      %131 = arith.index_cast %130 : i32 to index
      %c0_172 = arith.constant 0 : index
      %c0_173 = arith.constant 0 : index
      %132 = vector.load %arg26[%131, %c0_172, %c0_173] : memref<24x12x8xf32, #tpu.memory_space<vmem>>, vector<1x12x8xf32>
      %133 = vector.shape_cast %132 : vector<1x12x8xf32> to vector<12x8xf32>
      %134 = vector.shape_cast %123 : vector<12x8xf32> to vector<1x12x8xf32>
      tpu.vector_store %arg26[%131, %c0_172, %c0_173], %134 {strides = array<i32>} : memref<24x12x8xf32, #tpu.memory_space<vmem>>, vector<1x12x8xf32>,
    }
    %c4_i32_129 = arith.constant 4 : i32
    %c0_130 = arith.constant 0 : index
    %c0_131 = arith.constant 0 : index
    %94 = vector.load %arg12[%c0_130, %c0_131] : memref<72x16xf32, #tpu.memory_space<vmem>>, vector<72x16xf32>
    %c0_132 = arith.constant 0 : index
    %c0_133 = arith.constant 0 : index
    %95 = vector.load %arg13[%c0_132, %c0_133] : memref<1x16xf32, #tpu.memory_space<vmem>>, vector<1x16xf32>
    %c0_i32_134 = arith.constant 0 : i32
    %c10_i32 = arith.constant 10 : i32
    %96 = arith.addi %c0_i32_134, %c10_i32 : i32
    %c1_i32_135 = arith.constant 1 : i32
    scf.for %arg29 = %c0_i32_134 to %96 step %c1_i32_135  : i32 {
      %c0_i32_164 = arith.constant 0 : i32
      %118 = arith.addi %c0_i32_164, %arg29 : i32
      %c0_i32_165 = arith.constant 0 : i32
      %119 = arith.addi %118, %c0_i32_165 : i32
      %120 = arith.index_cast %119 : i32 to index
      %c0_166 = arith.constant 0 : index
      %c0_167 = arith.constant 0 : index
      %121 = vector.load %arg26[%120, %c0_166, %c0_167] : memref<24x12x8xf32, #tpu.memory_space<vmem>>, vector<1x12x8xf32>
      %122 = vector.shape_cast %121 : vector<1x12x8xf32> to vector<12x8xf32>
      %c0_i32_168 = arith.constant 0 : i32
      %123 = arith.addi %c0_i32_168, %arg29 : i32
      %c1_i32_169 = arith.constant 1 : i32
      %124 = arith.addi %123, %c1_i32_169 : i32
      %125 = arith.index_cast %124 : i32 to index
      %c0_170 = arith.constant 0 : index
      %c0_171 = arith.constant 0 : index
      %126 = vector.load %arg26[%125, %c0_170, %c0_171] : memref<24x12x8xf32, #tpu.memory_space<vmem>>, vector<1x12x8xf32>
      %127 = vector.shape_cast %126 : vector<1x12x8xf32> to vector<12x8xf32>
      %c0_i32_172 = arith.constant 0 : i32
      %128 = arith.addi %c0_i32_172, %arg29 : i32
      %c2_i32_173 = arith.constant 2 : i32
      %129 = arith.addi %128, %c2_i32_173 : i32
      %130 = arith.index_cast %129 : i32 to index
      %c0_174 = arith.constant 0 : index
      %c0_175 = arith.constant 0 : index
      %131 = vector.load %arg26[%130, %c0_174, %c0_175] : memref<24x12x8xf32, #tpu.memory_space<vmem>>, vector<1x12x8xf32>
      %132 = vector.shape_cast %131 : vector<1x12x8xf32> to vector<12x8xf32>
      %cst_176 = arith.constant 0.000000e+00 : f32
      %133 = vector.broadcast %cst_176 : f32 to vector<10x16xf32>
      %134 = vector.extract_strided_slice %122 {offsets = [0, 0], sizes = [10, 8], strides = [1, 1]} : vector<12x8xf32> to vector<10x8xf32>
      %135 = vector.extract_strided_slice %94 {offsets = [0, 0], sizes = [8, 16], strides = [1, 1]} : vector<72x16xf32> to vector<8x16xf32>
      %cst_177 = arith.constant dense<0.000000e+00> : vector<10x16xf32>
      %136 = tpu.matmul %134, %135, %cst_177 {dimension_numbers = #tpu.dot_dimension_numbers<[1], [0], [0], [1], [0, 0, 1, 1], [], []>} : vector<10x8xf32>, vector<8x16xf32>, vector<10x16xf32> -> vector<10x16xf32>
      %137 = arith.addf %133, %136 : vector<10x16xf32>
      %138 = vector.extract_strided_slice %122 {offsets = [1, 0], sizes = [10, 8], strides = [1, 1]} : vector<12x8xf32> to vector<10x8xf32>
      %139 = vector.extract_strided_slice %94 {offsets = [8, 0], sizes = [8, 16], strides = [1, 1]} : vector<72x16xf32> to vector<8x16xf32>
      %cst_178 = arith.constant dense<0.000000e+00> : vector<10x16xf32>
      %140 = tpu.matmul %138, %139, %cst_178 {dimension_numbers = #tpu.dot_dimension_numbers<[1], [0], [0], [1], [0, 0, 1, 1], [], []>} : vector<10x8xf32>, vector<8x16xf32>, vector<10x16xf32> -> vector<10x16xf32>
      %141 = arith.addf %137, %140 : vector<10x16xf32>
      %142 = vector.extract_strided_slice %122 {offsets = [2, 0], sizes = [10, 8], strides = [1, 1]} : vector<12x8xf32> to vector<10x8xf32>
      %143 = vector.extract_strided_slice %94 {offsets = [16, 0], sizes = [8, 16], strides = [1, 1]} : vector<72x16xf32> to vector<8x16xf32>
      %cst_179 = arith.constant dense<0.000000e+00> : vector<10x16xf32>
      %144 = tpu.matmul %142, %143, %cst_179 {dimension_numbers = #tpu.dot_dimension_numbers<[1], [0], [0], [1], [0, 0, 1, 1], [], []>} : vector<10x8xf32>, vector<8x16xf32>, vector<10x16xf32> -> vector<10x16xf32>
      %145 = arith.addf %141, %144 : vector<10x16xf32>
      %146 = vector.extract_strided_slice %127 {offsets = [0, 0], sizes = [10, 8], strides = [1, 1]} : vector<12x8xf32> to vector<10x8xf32>
      %147 = vector.extract_strided_slice %94 {offsets = [24, 0], sizes = [8, 16], strides = [1, 1]} : vector<72x16xf32> to vector<8x16xf32>
      %cst_180 = arith.constant dense<0.000000e+00> : vector<10x16xf32>
      %148 = tpu.matmul %146, %147, %cst_180 {dimension_numbers = #tpu.dot_dimension_numbers<[1], [0], [0], [1], [0, 0, 1, 1], [], []>} : vector<10x8xf32>, vector<8x16xf32>, vector<10x16xf32> -> vector<10x16xf32>
      %149 = arith.addf %145, %148 : vector<10x16xf32>
      %150 = vector.extract_strided_slice %127 {offsets = [1, 0], sizes = [10, 8], strides = [1, 1]} : vector<12x8xf32> to vector<10x8xf32>
      %151 = vector.extract_strided_slice %94 {offsets = [32, 0], sizes = [8, 16], strides = [1, 1]} : vector<72x16xf32> to vector<8x16xf32>
      %cst_181 = arith.constant dense<0.000000e+00> : vector<10x16xf32>
      %152 = tpu.matmul %150, %151, %cst_181 {dimension_numbers = #tpu.dot_dimension_numbers<[1], [0], [0], [1], [0, 0, 1, 1], [], []>} : vector<10x8xf32>, vector<8x16xf32>, vector<10x16xf32> -> vector<10x16xf32>
      %153 = arith.addf %149, %152 : vector<10x16xf32>
      %154 = vector.extract_strided_slice %127 {offsets = [2, 0], sizes = [10, 8], strides = [1, 1]} : vector<12x8xf32> to vector<10x8xf32>
      %155 = vector.extract_strided_slice %94 {offsets = [40, 0], sizes = [8, 16], strides = [1, 1]} : vector<72x16xf32> to vector<8x16xf32>
      %cst_182 = arith.constant dense<0.000000e+00> : vector<10x16xf32>
      %156 = tpu.matmul %154, %155, %cst_182 {dimension_numbers = #tpu.dot_dimension_numbers<[1], [0], [0], [1], [0, 0, 1, 1], [], []>} : vector<10x8xf32>, vector<8x16xf32>, vector<10x16xf32> -> vector<10x16xf32>
      %157 = arith.addf %153, %156 : vector<10x16xf32>
      %158 = vector.extract_strided_slice %132 {offsets = [0, 0], sizes = [10, 8], strides = [1, 1]} : vector<12x8xf32> to vector<10x8xf32>
      %159 = vector.extract_strided_slice %94 {offsets = [48, 0], sizes = [8, 16], strides = [1, 1]} : vector<72x16xf32> to vector<8x16xf32>
      %cst_183 = arith.constant dense<0.000000e+00> : vector<10x16xf32>
      %160 = tpu.matmul %158, %159, %cst_183 {dimension_numbers = #tpu.dot_dimension_numbers<[1], [0], [0], [1], [0, 0, 1, 1], [], []>} : vector<10x8xf32>, vector<8x16xf32>, vector<10x16xf32> -> vector<10x16xf32>
      %161 = arith.addf %157, %160 : vector<10x16xf32>
      %162 = vector.extract_strided_slice %132 {offsets = [1, 0], sizes = [10, 8], strides = [1, 1]} : vector<12x8xf32> to vector<10x8xf32>
      %163 = vector.extract_strided_slice %94 {offsets = [56, 0], sizes = [8, 16], strides = [1, 1]} : vector<72x16xf32> to vector<8x16xf32>
      %cst_184 = arith.constant dense<0.000000e+00> : vector<10x16xf32>
      %164 = tpu.matmul %162, %163, %cst_184 {dimension_numbers = #tpu.dot_dimension_numbers<[1], [0], [0], [1], [0, 0, 1, 1], [], []>} : vector<10x8xf32>, vector<8x16xf32>, vector<10x16xf32> -> vector<10x16xf32>
      %165 = arith.addf %161, %164 : vector<10x16xf32>
      %166 = vector.extract_strided_slice %132 {offsets = [2, 0], sizes = [10, 8], strides = [1, 1]} : vector<12x8xf32> to vector<10x8xf32>
      %167 = vector.extract_strided_slice %94 {offsets = [64, 0], sizes = [8, 16], strides = [1, 1]} : vector<72x16xf32> to vector<8x16xf32>
      %cst_185 = arith.constant dense<0.000000e+00> : vector<10x16xf32>
      %168 = tpu.matmul %166, %167, %cst_185 {dimension_numbers = #tpu.dot_dimension_numbers<[1], [0], [0], [1], [0, 0, 1, 1], [], []>} : vector<10x8xf32>, vector<8x16xf32>, vector<10x16xf32> -> vector<10x16xf32>
      %169 = arith.addf %165, %168 : vector<10x16xf32>
      %170 = vector.broadcast %95 : vector<1x16xf32> to vector<10x16xf32>
      %171 = arith.addf %169, %170 : vector<10x16xf32>
      %c0_i32_186 = arith.constant 0 : i32
      %172 = arith.addi %c0_i32_186, %arg29 : i32
      %173 = arith.index_cast %172 : i32 to index
      %c0_187 = arith.constant 0 : index
      %c0_188 = arith.constant 0 : index
      %174 = vector.load %arg27[%173, %c0_187, %c0_188] : memref<20x10x16xf32, #tpu.memory_space<vmem>>, vector<1x10x16xf32>
      %175 = vector.shape_cast %174 : vector<1x10x16xf32> to vector<10x16xf32>
      %176 = vector.shape_cast %171 : vector<10x16xf32> to vector<1x10x16xf32>
      tpu.vector_store %arg27[%173, %c0_187, %c0_188], %176 {strides = array<i32>} : memref<20x10x16xf32, #tpu.memory_space<vmem>>, vector<1x10x16xf32>,
    }
    %c10_i32_136 = arith.constant 10 : i32
    %c0_i32_137 = arith.constant 0 : i32
    %c10_i32_138 = arith.constant 10 : i32
    %97 = arith.addi %c0_i32_137, %c10_i32_138 : i32
    %c1_i32_139 = arith.constant 1 : i32
    scf.for %arg29 = %c0_i32_137 to %97 step %c1_i32_139  : i32 {
      %c12_i32 = arith.constant 12 : i32
      %118 = arith.addi %c12_i32, %arg29 : i32
      %c0_i32_164 = arith.constant 0 : i32
      %119 = arith.addi %118, %c0_i32_164 : i32
      %120 = arith.index_cast %119 : i32 to index
      %c0_165 = arith.constant 0 : index
      %c0_166 = arith.constant 0 : index
      %121 = vector.load %arg26[%120, %c0_165, %c0_166] : memref<24x12x8xf32, #tpu.memory_space<vmem>>, vector<1x12x8xf32>
      %122 = vector.shape_cast %121 : vector<1x12x8xf32> to vector<12x8xf32>
      %c12_i32_167 = arith.constant 12 : i32
      %123 = arith.addi %c12_i32_167, %arg29 : i32
      %c1_i32_168 = arith.constant 1 : i32
      %124 = arith.addi %123, %c1_i32_168 : i32
      %125 = arith.index_cast %124 : i32 to index
      %c0_169 = arith.constant 0 : index
      %c0_170 = arith.constant 0 : index
      %126 = vector.load %arg26[%125, %c0_169, %c0_170] : memref<24x12x8xf32, #tpu.memory_space<vmem>>, vector<1x12x8xf32>
      %127 = vector.shape_cast %126 : vector<1x12x8xf32> to vector<12x8xf32>
      %c12_i32_171 = arith.constant 12 : i32
      %128 = arith.addi %c12_i32_171, %arg29 : i32
      %c2_i32_172 = arith.constant 2 : i32
      %129 = arith.addi %128, %c2_i32_172 : i32
      %130 = arith.index_cast %129 : i32 to index
      %c0_173 = arith.constant 0 : index
      %c0_174 = arith.constant 0 : index
      %131 = vector.load %arg26[%130, %c0_173, %c0_174] : memref<24x12x8xf32, #tpu.memory_space<vmem>>, vector<1x12x8xf32>
      %132 = vector.shape_cast %131 : vector<1x12x8xf32> to vector<12x8xf32>
      %cst_175 = arith.constant 0.000000e+00 : f32
      %133 = vector.broadcast %cst_175 : f32 to vector<10x16xf32>
      %134 = vector.extract_strided_slice %122 {offsets = [0, 0], sizes = [10, 8], strides = [1, 1]} : vector<12x8xf32> to vector<10x8xf32>
      %135 = vector.extract_strided_slice %94 {offsets = [0, 0], sizes = [8, 16], strides = [1, 1]} : vector<72x16xf32> to vector<8x16xf32>
      %cst_176 = arith.constant dense<0.000000e+00> : vector<10x16xf32>
      %136 = tpu.matmul %134, %135, %cst_176 {dimension_numbers = #tpu.dot_dimension_numbers<[1], [0], [0], [1], [0, 0, 1, 1], [], []>} : vector<10x8xf32>, vector<8x16xf32>, vector<10x16xf32> -> vector<10x16xf32>
      %137 = arith.addf %133, %136 : vector<10x16xf32>
      %138 = vector.extract_strided_slice %122 {offsets = [1, 0], sizes = [10, 8], strides = [1, 1]} : vector<12x8xf32> to vector<10x8xf32>
      %139 = vector.extract_strided_slice %94 {offsets = [8, 0], sizes = [8, 16], strides = [1, 1]} : vector<72x16xf32> to vector<8x16xf32>
      %cst_177 = arith.constant dense<0.000000e+00> : vector<10x16xf32>
      %140 = tpu.matmul %138, %139, %cst_177 {dimension_numbers = #tpu.dot_dimension_numbers<[1], [0], [0], [1], [0, 0, 1, 1], [], []>} : vector<10x8xf32>, vector<8x16xf32>, vector<10x16xf32> -> vector<10x16xf32>
      %141 = arith.addf %137, %140 : vector<10x16xf32>
      %142 = vector.extract_strided_slice %122 {offsets = [2, 0], sizes = [10, 8], strides = [1, 1]} : vector<12x8xf32> to vector<10x8xf32>
      %143 = vector.extract_strided_slice %94 {offsets = [16, 0], sizes = [8, 16], strides = [1, 1]} : vector<72x16xf32> to vector<8x16xf32>
      %cst_178 = arith.constant dense<0.000000e+00> : vector<10x16xf32>
      %144 = tpu.matmul %142, %143, %cst_178 {dimension_numbers = #tpu.dot_dimension_numbers<[1], [0], [0], [1], [0, 0, 1, 1], [], []>} : vector<10x8xf32>, vector<8x16xf32>, vector<10x16xf32> -> vector<10x16xf32>
      %145 = arith.addf %141, %144 : vector<10x16xf32>
      %146 = vector.extract_strided_slice %127 {offsets = [0, 0], sizes = [10, 8], strides = [1, 1]} : vector<12x8xf32> to vector<10x8xf32>
      %147 = vector.extract_strided_slice %94 {offsets = [24, 0], sizes = [8, 16], strides = [1, 1]} : vector<72x16xf32> to vector<8x16xf32>
      %cst_179 = arith.constant dense<0.000000e+00> : vector<10x16xf32>
      %148 = tpu.matmul %146, %147, %cst_179 {dimension_numbers = #tpu.dot_dimension_numbers<[1], [0], [0], [1], [0, 0, 1, 1], [], []>} : vector<10x8xf32>, vector<8x16xf32>, vector<10x16xf32> -> vector<10x16xf32>
      %149 = arith.addf %145, %148 : vector<10x16xf32>
      %150 = vector.extract_strided_slice %127 {offsets = [1, 0], sizes = [10, 8], strides = [1, 1]} : vector<12x8xf32> to vector<10x8xf32>
      %151 = vector.extract_strided_slice %94 {offsets = [32, 0], sizes = [8, 16], strides = [1, 1]} : vector<72x16xf32> to vector<8x16xf32>
      %cst_180 = arith.constant dense<0.000000e+00> : vector<10x16xf32>
      %152 = tpu.matmul %150, %151, %cst_180 {dimension_numbers = #tpu.dot_dimension_numbers<[1], [0], [0], [1], [0, 0, 1, 1], [], []>} : vector<10x8xf32>, vector<8x16xf32>, vector<10x16xf32> -> vector<10x16xf32>
      %153 = arith.addf %149, %152 : vector<10x16xf32>
      %154 = vector.extract_strided_slice %127 {offsets = [2, 0], sizes = [10, 8], strides = [1, 1]} : vector<12x8xf32> to vector<10x8xf32>
      %155 = vector.extract_strided_slice %94 {offsets = [40, 0], sizes = [8, 16], strides = [1, 1]} : vector<72x16xf32> to vector<8x16xf32>
      %cst_181 = arith.constant dense<0.000000e+00> : vector<10x16xf32>
      %156 = tpu.matmul %154, %155, %cst_181 {dimension_numbers = #tpu.dot_dimension_numbers<[1], [0], [0], [1], [0, 0, 1, 1], [], []>} : vector<10x8xf32>, vector<8x16xf32>, vector<10x16xf32> -> vector<10x16xf32>
      %157 = arith.addf %153, %156 : vector<10x16xf32>
      %158 = vector.extract_strided_slice %132 {offsets = [0, 0], sizes = [10, 8], strides = [1, 1]} : vector<12x8xf32> to vector<10x8xf32>
      %159 = vector.extract_strided_slice %94 {offsets = [48, 0], sizes = [8, 16], strides = [1, 1]} : vector<72x16xf32> to vector<8x16xf32>
      %cst_182 = arith.constant dense<0.000000e+00> : vector<10x16xf32>
      %160 = tpu.matmul %158, %159, %cst_182 {dimension_numbers = #tpu.dot_dimension_numbers<[1], [0], [0], [1], [0, 0, 1, 1], [], []>} : vector<10x8xf32>, vector<8x16xf32>, vector<10x16xf32> -> vector<10x16xf32>
      %161 = arith.addf %157, %160 : vector<10x16xf32>
      %162 = vector.extract_strided_slice %132 {offsets = [1, 0], sizes = [10, 8], strides = [1, 1]} : vector<12x8xf32> to vector<10x8xf32>
      %163 = vector.extract_strided_slice %94 {offsets = [56, 0], sizes = [8, 16], strides = [1, 1]} : vector<72x16xf32> to vector<8x16xf32>
      %cst_183 = arith.constant dense<0.000000e+00> : vector<10x16xf32>
      %164 = tpu.matmul %162, %163, %cst_183 {dimension_numbers = #tpu.dot_dimension_numbers<[1], [0], [0], [1], [0, 0, 1, 1], [], []>} : vector<10x8xf32>, vector<8x16xf32>, vector<10x16xf32> -> vector<10x16xf32>
      %165 = arith.addf %161, %164 : vector<10x16xf32>
      %166 = vector.extract_strided_slice %132 {offsets = [2, 0], sizes = [10, 8], strides = [1, 1]} : vector<12x8xf32> to vector<10x8xf32>
      %167 = vector.extract_strided_slice %94 {offsets = [64, 0], sizes = [8, 16], strides = [1, 1]} : vector<72x16xf32> to vector<8x16xf32>
      %cst_184 = arith.constant dense<0.000000e+00> : vector<10x16xf32>
      %168 = tpu.matmul %166, %167, %cst_184 {dimension_numbers = #tpu.dot_dimension_numbers<[1], [0], [0], [1], [0, 0, 1, 1], [], []>} : vector<10x8xf32>, vector<8x16xf32>, vector<10x16xf32> -> vector<10x16xf32>
      %169 = arith.addf %165, %168 : vector<10x16xf32>
      %170 = vector.broadcast %95 : vector<1x16xf32> to vector<10x16xf32>
      %171 = arith.addf %169, %170 : vector<10x16xf32>
      %c10_i32_185 = arith.constant 10 : i32
      %172 = arith.addi %c10_i32_185, %arg29 : i32
      %173 = arith.index_cast %172 : i32 to index
      %c0_186 = arith.constant 0 : index
      %c0_187 = arith.constant 0 : index
      %174 = vector.load %arg27[%173, %c0_186, %c0_187] : memref<20x10x16xf32, #tpu.memory_space<vmem>>, vector<1x10x16xf32>
      %175 = vector.shape_cast %174 : vector<1x10x16xf32> to vector<10x16xf32>
      %176 = vector.shape_cast %171 : vector<10x16xf32> to vector<1x10x16xf32>
      tpu.vector_store %arg27[%173, %c0_186, %c0_187], %176 {strides = array<i32>} : memref<20x10x16xf32, #tpu.memory_space<vmem>>, vector<1x10x16xf32>,
    }
    %c10_i32_140 = arith.constant 10 : i32
    %98 = tpu.iota {dimensions = array<i32: 0>} : vector<20x10xi32>
    %99 = tpu.iota {dimensions = array<i32: 1>} : vector<20x10xi32>
    %c2_i32_141 = arith.constant 2 : i32
    %100 = vector.broadcast %c2_i32_141 : i32 to vector<20x10xi32>
    %101 = arith.muli %100, %99 : vector<20x10xi32>
    %102 = arith.cmpi eq, %98, %101 : vector<20x10xi32>
    %c2_i32_142 = arith.constant 2 : i32
    %103 = vector.broadcast %c2_i32_142 : i32 to vector<20x10xi32>
    %104 = arith.muli %103, %99 : vector<20x10xi32>
    %c1_i32_143 = arith.constant 1 : i32
    %105 = vector.broadcast %c1_i32_143 : i32 to vector<20x10xi32>
    %106 = arith.addi %104, %105 : vector<20x10xi32>
    %107 = arith.cmpi eq, %98, %106 : vector<20x10xi32>
    %108 = arith.ori %102, %107 : vector<20x10xi1>
    %109 = arith.extui %108 : vector<20x10xi1> to vector<20x10xi32>
    %110 = arith.sitofp %109 : vector<20x10xi32> to vector<20x10xf32>
    %cst_144 = arith.constant 0.000000e+00 : f32
    %111 = vector.broadcast %cst_144 : f32 to vector<1x16xf32>
    %c0_i32_145 = arith.constant 0 : i32
    %c10_i32_146 = arith.constant 10 : i32
    %112 = arith.addi %c0_i32_145, %c10_i32_146 : i32
    %c1_i32_147 = arith.constant 1 : i32
    scf.for %arg29 = %c0_i32_145 to %112 step %c1_i32_147  : i32 {
      %c0_i32_164 = arith.constant 0 : i32
      %118 = arith.addi %c0_i32_164, %arg29 : i32
      %119 = arith.index_cast %118 : i32 to index
      %c0_165 = arith.constant 0 : index
      %c0_166 = arith.constant 0 : index
      %120 = vector.load %arg27[%119, %c0_165, %c0_166] : memref<20x10x16xf32, #tpu.memory_space<vmem>>, vector<1x10x16xf32>
      %121 = vector.shape_cast %120 : vector<1x10x16xf32> to vector<10x16xf32>
      %cst_167 = arith.constant dense<0.000000e+00> : vector<20x16xf32>
      %122 = tpu.matmul %110, %121, %cst_167 {dimension_numbers = #tpu.dot_dimension_numbers<[1], [0], [0], [1], [0, 0, 1, 1], [], []>} : vector<20x10xf32>, vector<10x16xf32>, vector<20x16xf32> -> vector<20x16xf32>
      %123 = tpu.concatenate %111, %122, %111 in 0 : vector<1x16xf32>, vector<20x16xf32>, vector<1x16xf32> -> vector<22x16xf32>
      %c2_i32_168 = arith.constant 2 : i32
      %124 = arith.muli %c2_i32_168, %arg29 : i32
      %c1_i32_169 = arith.constant 1 : i32
      %125 = arith.addi %c1_i32_169, %124 : i32
      %126 = arith.index_cast %125 : i32 to index
      %c0_170 = arith.constant 0 : index
      %c0_171 = arith.constant 0 : index
      %127 = vector.load %arg28[%126, %c0_170, %c0_171] : memref<44x22x16xf32, #tpu.memory_space<vmem>>, vector<1x22x16xf32>
      %128 = vector.shape_cast %127 : vector<1x22x16xf32> to vector<22x16xf32>
      %129 = vector.shape_cast %123 : vector<22x16xf32> to vector<1x22x16xf32>
      tpu.vector_store %arg28[%126, %c0_170, %c0_171], %129 {strides = array<i32>} : memref<44x22x16xf32, #tpu.memory_space<vmem>>, vector<1x22x16xf32>,
      %c1_i32_172 = arith.constant 1 : i32
      %130 = arith.addi %125, %c1_i32_172 : i32
      %131 = arith.index_cast %130 : i32 to index
      %c0_173 = arith.constant 0 : index
      %c0_174 = arith.constant 0 : index
      %132 = vector.load %arg28[%131, %c0_173, %c0_174] : memref<44x22x16xf32, #tpu.memory_space<vmem>>, vector<1x22x16xf32>
      %133 = vector.shape_cast %132 : vector<1x22x16xf32> to vector<22x16xf32>
      %134 = vector.shape_cast %123 : vector<22x16xf32> to vector<1x22x16xf32>
      tpu.vector_store %arg28[%131, %c0_173, %c0_174], %134 {strides = array<i32>} : memref<44x22x16xf32, #tpu.memory_space<vmem>>, vector<1x22x16xf32>,
    }
    %c10_i32_148 = arith.constant 10 : i32
    %c0_i32_149 = arith.constant 0 : i32
    %c10_i32_150 = arith.constant 10 : i32
    %113 = arith.addi %c0_i32_149, %c10_i32_150 : i32
    %c1_i32_151 = arith.constant 1 : i32
    scf.for %arg29 = %c0_i32_149 to %113 step %c1_i32_151  : i32 {
      %c10_i32_164 = arith.constant 10 : i32
      %118 = arith.addi %c10_i32_164, %arg29 : i32
      %119 = arith.index_cast %118 : i32 to index
      %c0_165 = arith.constant 0 : index
      %c0_166 = arith.constant 0 : index
      %120 = vector.load %arg27[%119, %c0_165, %c0_166] : memref<20x10x16xf32, #tpu.memory_space<vmem>>, vector<1x10x16xf32>
      %121 = vector.shape_cast %120 : vector<1x10x16xf32> to vector<10x16xf32>
      %cst_167 = arith.constant dense<0.000000e+00> : vector<20x16xf32>
      %122 = tpu.matmul %110, %121, %cst_167 {dimension_numbers = #tpu.dot_dimension_numbers<[1], [0], [0], [1], [0, 0, 1, 1], [], []>} : vector<20x10xf32>, vector<10x16xf32>, vector<20x16xf32> -> vector<20x16xf32>
      %123 = tpu.concatenate %111, %122, %111 in 0 : vector<1x16xf32>, vector<20x16xf32>, vector<1x16xf32> -> vector<22x16xf32>
      %c2_i32_168 = arith.constant 2 : i32
      %124 = arith.muli %c2_i32_168, %arg29 : i32
      %c23_i32 = arith.constant 23 : i32
      %125 = arith.addi %c23_i32, %124 : i32
      %126 = arith.index_cast %125 : i32 to index
      %c0_169 = arith.constant 0 : index
      %c0_170 = arith.constant 0 : index
      %127 = vector.load %arg28[%126, %c0_169, %c0_170] : memref<44x22x16xf32, #tpu.memory_space<vmem>>, vector<1x22x16xf32>
      %128 = vector.shape_cast %127 : vector<1x22x16xf32> to vector<22x16xf32>
      %129 = vector.shape_cast %123 : vector<22x16xf32> to vector<1x22x16xf32>
      tpu.vector_store %arg28[%126, %c0_169, %c0_170], %129 {strides = array<i32>} : memref<44x22x16xf32, #tpu.memory_space<vmem>>, vector<1x22x16xf32>,
      %c1_i32_171 = arith.constant 1 : i32
      %130 = arith.addi %125, %c1_i32_171 : i32
      %131 = arith.index_cast %130 : i32 to index
      %c0_172 = arith.constant 0 : index
      %c0_173 = arith.constant 0 : index
      %132 = vector.load %arg28[%131, %c0_172, %c0_173] : memref<44x22x16xf32, #tpu.memory_space<vmem>>, vector<1x22x16xf32>
      %133 = vector.shape_cast %132 : vector<1x22x16xf32> to vector<22x16xf32>
      %134 = vector.shape_cast %123 : vector<22x16xf32> to vector<1x22x16xf32>
      tpu.vector_store %arg28[%131, %c0_172, %c0_173], %134 {strides = array<i32>} : memref<44x22x16xf32, #tpu.memory_space<vmem>>, vector<1x22x16xf32>,
    }
    %c10_i32_152 = arith.constant 10 : i32
    %c0_153 = arith.constant 0 : index
    %c0_154 = arith.constant 0 : index
    %114 = vector.load %arg14[%c0_153, %c0_154] : memref<144x1xf32, #tpu.memory_space<vmem>>, vector<144x1xf32>
    %c0_155 = arith.constant 0 : index
    %c0_156 = arith.constant 0 : index
    %115 = vector.load %arg15[%c0_155, %c0_156] : memref<1x1xf32, #tpu.memory_space<vmem>>, vector<1x1xf32>
    %c0_i32_157 = arith.constant 0 : i32
    %c20_i32 = arith.constant 20 : i32
    %116 = arith.addi %c0_i32_157, %c20_i32 : i32
    %c1_i32_158 = arith.constant 1 : i32
    scf.for %arg29 = %c0_i32_157 to %116 step %c1_i32_158  : i32 {
      %c0_i32_164 = arith.constant 0 : i32
      %118 = arith.addi %c0_i32_164, %arg29 : i32
      %c0_i32_165 = arith.constant 0 : i32
      %119 = arith.addi %118, %c0_i32_165 : i32
      %120 = arith.index_cast %119 : i32 to index
      %c0_166 = arith.constant 0 : index
      %c0_167 = arith.constant 0 : index
      %121 = vector.load %arg28[%120, %c0_166, %c0_167] : memref<44x22x16xf32, #tpu.memory_space<vmem>>, vector<1x22x16xf32>
      %122 = vector.shape_cast %121 : vector<1x22x16xf32> to vector<22x16xf32>
      %c0_i32_168 = arith.constant 0 : i32
      %123 = arith.addi %c0_i32_168, %arg29 : i32
      %c1_i32_169 = arith.constant 1 : i32
      %124 = arith.addi %123, %c1_i32_169 : i32
      %125 = arith.index_cast %124 : i32 to index
      %c0_170 = arith.constant 0 : index
      %c0_171 = arith.constant 0 : index
      %126 = vector.load %arg28[%125, %c0_170, %c0_171] : memref<44x22x16xf32, #tpu.memory_space<vmem>>, vector<1x22x16xf32>
      %127 = vector.shape_cast %126 : vector<1x22x16xf32> to vector<22x16xf32>
      %c0_i32_172 = arith.constant 0 : i32
      %128 = arith.addi %c0_i32_172, %arg29 : i32
      %c2_i32_173 = arith.constant 2 : i32
      %129 = arith.addi %128, %c2_i32_173 : i32
      %130 = arith.index_cast %129 : i32 to index
      %c0_174 = arith.constant 0 : index
      %c0_175 = arith.constant 0 : index
      %131 = vector.load %arg28[%130, %c0_174, %c0_175] : memref<44x22x16xf32, #tpu.memory_space<vmem>>, vector<1x22x16xf32>
      %132 = vector.shape_cast %131 : vector<1x22x16xf32> to vector<22x16xf32>
      %cst_176 = arith.constant 0.000000e+00 : f32
      %133 = vector.broadcast %cst_176 : f32 to vector<20x1xf32>
      %134 = vector.extract_strided_slice %122 {offsets = [0, 0], sizes = [20, 16], strides = [1, 1]} : vector<22x16xf32> to vector<20x16xf32>
      %135 = vector.extract_strided_slice %114 {offsets = [0, 0], sizes = [16, 1], strides = [1, 1]} : vector<144x1xf32> to vector<16x1xf32>
      %cst_177 = arith.constant dense<0.000000e+00> : vector<20x1xf32>
      %136 = tpu.matmul %134, %135, %cst_177 {dimension_numbers = #tpu.dot_dimension_numbers<[1], [0], [0], [1], [0, 0, 1, 1], [], []>} : vector<20x16xf32>, vector<16x1xf32>, vector<20x1xf32> -> vector<20x1xf32>
      %137 = arith.addf %133, %136 : vector<20x1xf32>
      %138 = vector.extract_strided_slice %122 {offsets = [1, 0], sizes = [20, 16], strides = [1, 1]} : vector<22x16xf32> to vector<20x16xf32>
      %139 = vector.extract_strided_slice %114 {offsets = [16, 0], sizes = [16, 1], strides = [1, 1]} : vector<144x1xf32> to vector<16x1xf32>
      %cst_178 = arith.constant dense<0.000000e+00> : vector<20x1xf32>
      %140 = tpu.matmul %138, %139, %cst_178 {dimension_numbers = #tpu.dot_dimension_numbers<[1], [0], [0], [1], [0, 0, 1, 1], [], []>} : vector<20x16xf32>, vector<16x1xf32>, vector<20x1xf32> -> vector<20x1xf32>
      %141 = arith.addf %137, %140 : vector<20x1xf32>
      %142 = vector.extract_strided_slice %122 {offsets = [2, 0], sizes = [20, 16], strides = [1, 1]} : vector<22x16xf32> to vector<20x16xf32>
      %143 = vector.extract_strided_slice %114 {offsets = [32, 0], sizes = [16, 1], strides = [1, 1]} : vector<144x1xf32> to vector<16x1xf32>
      %cst_179 = arith.constant dense<0.000000e+00> : vector<20x1xf32>
      %144 = tpu.matmul %142, %143, %cst_179 {dimension_numbers = #tpu.dot_dimension_numbers<[1], [0], [0], [1], [0, 0, 1, 1], [], []>} : vector<20x16xf32>, vector<16x1xf32>, vector<20x1xf32> -> vector<20x1xf32>
      %145 = arith.addf %141, %144 : vector<20x1xf32>
      %146 = vector.extract_strided_slice %127 {offsets = [0, 0], sizes = [20, 16], strides = [1, 1]} : vector<22x16xf32> to vector<20x16xf32>
      %147 = vector.extract_strided_slice %114 {offsets = [48, 0], sizes = [16, 1], strides = [1, 1]} : vector<144x1xf32> to vector<16x1xf32>
      %cst_180 = arith.constant dense<0.000000e+00> : vector<20x1xf32>
      %148 = tpu.matmul %146, %147, %cst_180 {dimension_numbers = #tpu.dot_dimension_numbers<[1], [0], [0], [1], [0, 0, 1, 1], [], []>} : vector<20x16xf32>, vector<16x1xf32>, vector<20x1xf32> -> vector<20x1xf32>
      %149 = arith.addf %145, %148 : vector<20x1xf32>
      %150 = vector.extract_strided_slice %127 {offsets = [1, 0], sizes = [20, 16], strides = [1, 1]} : vector<22x16xf32> to vector<20x16xf32>
      %151 = vector.extract_strided_slice %114 {offsets = [64, 0], sizes = [16, 1], strides = [1, 1]} : vector<144x1xf32> to vector<16x1xf32>
      %cst_181 = arith.constant dense<0.000000e+00> : vector<20x1xf32>
      %152 = tpu.matmul %150, %151, %cst_181 {dimension_numbers = #tpu.dot_dimension_numbers<[1], [0], [0], [1], [0, 0, 1, 1], [], []>} : vector<20x16xf32>, vector<16x1xf32>, vector<20x1xf32> -> vector<20x1xf32>
      %153 = arith.addf %149, %152 : vector<20x1xf32>
      %154 = vector.extract_strided_slice %127 {offsets = [2, 0], sizes = [20, 16], strides = [1, 1]} : vector<22x16xf32> to vector<20x16xf32>
      %155 = vector.extract_strided_slice %114 {offsets = [80, 0], sizes = [16, 1], strides = [1, 1]} : vector<144x1xf32> to vector<16x1xf32>
      %cst_182 = arith.constant dense<0.000000e+00> : vector<20x1xf32>
      %156 = tpu.matmul %154, %155, %cst_182 {dimension_numbers = #tpu.dot_dimension_numbers<[1], [0], [0], [1], [0, 0, 1, 1], [], []>} : vector<20x16xf32>, vector<16x1xf32>, vector<20x1xf32> -> vector<20x1xf32>
      %157 = arith.addf %153, %156 : vector<20x1xf32>
      %158 = vector.extract_strided_slice %132 {offsets = [0, 0], sizes = [20, 16], strides = [1, 1]} : vector<22x16xf32> to vector<20x16xf32>
      %159 = vector.extract_strided_slice %114 {offsets = [96, 0], sizes = [16, 1], strides = [1, 1]} : vector<144x1xf32> to vector<16x1xf32>
      %cst_183 = arith.constant dense<0.000000e+00> : vector<20x1xf32>
      %160 = tpu.matmul %158, %159, %cst_183 {dimension_numbers = #tpu.dot_dimension_numbers<[1], [0], [0], [1], [0, 0, 1, 1], [], []>} : vector<20x16xf32>, vector<16x1xf32>, vector<20x1xf32> -> vector<20x1xf32>
      %161 = arith.addf %157, %160 : vector<20x1xf32>
      %162 = vector.extract_strided_slice %132 {offsets = [1, 0], sizes = [20, 16], strides = [1, 1]} : vector<22x16xf32> to vector<20x16xf32>
      %163 = vector.extract_strided_slice %114 {offsets = [112, 0], sizes = [16, 1], strides = [1, 1]} : vector<144x1xf32> to vector<16x1xf32>
      %cst_184 = arith.constant dense<0.000000e+00> : vector<20x1xf32>
      %164 = tpu.matmul %162, %163, %cst_184 {dimension_numbers = #tpu.dot_dimension_numbers<[1], [0], [0], [1], [0, 0, 1, 1], [], []>} : vector<20x16xf32>, vector<16x1xf32>, vector<20x1xf32> -> vector<20x1xf32>
      %165 = arith.addf %161, %164 : vector<20x1xf32>
      %166 = vector.extract_strided_slice %132 {offsets = [2, 0], sizes = [20, 16], strides = [1, 1]} : vector<22x16xf32> to vector<20x16xf32>
      %167 = vector.extract_strided_slice %114 {offsets = [128, 0], sizes = [16, 1], strides = [1, 1]} : vector<144x1xf32> to vector<16x1xf32>
      %cst_185 = arith.constant dense<0.000000e+00> : vector<20x1xf32>
      %168 = tpu.matmul %166, %167, %cst_185 {dimension_numbers = #tpu.dot_dimension_numbers<[1], [0], [0], [1], [0, 0, 1, 1], [], []>} : vector<20x16xf32>, vector<16x1xf32>, vector<20x1xf32> -> vector<20x1xf32>
      %169 = arith.addf %165, %168 : vector<20x1xf32>
      %170 = vector.broadcast %115 : vector<1x1xf32> to vector<20x1xf32>
      %171 = arith.addf %169, %170 : vector<20x1xf32>
      %172 = arith.negf %171 : vector<20x1xf32>
      %173 = math.exp %172 : vector<20x1xf32>
      %cst_186 = arith.constant 1.000000e+00 : f32
      %174 = vector.broadcast %cst_186 : f32 to vector<20x1xf32>
      %175 = arith.addf %174, %173 : vector<20x1xf32>
      %176 = arith.divf %174, %175 : vector<20x1xf32>
      %c0_i32_187 = arith.constant 0 : i32
      %177 = arith.addi %c0_i32_187, %arg29 : i32
      %178 = arith.index_cast %177 : i32 to index
      %c0_188 = arith.constant 0 : index
      %c0_189 = arith.constant 0 : index
      %179 = vector.load %arg16[%178, %c0_188, %c0_189] : memref<40x20x1xf32, #tpu.memory_space<vmem>>, vector<1x20x1xf32>
      %180 = vector.shape_cast %179 : vector<1x20x1xf32> to vector<20x1xf32>
      %181 = vector.shape_cast %176 : vector<20x1xf32> to vector<1x20x1xf32>
      tpu.vector_store %arg16[%178, %c0_188, %c0_189], %181 {strides = array<i32>} : memref<40x20x1xf32, #tpu.memory_space<vmem>>, vector<1x20x1xf32>,
    }
    %c20_i32_159 = arith.constant 20 : i32
    %c0_i32_160 = arith.constant 0 : i32
    %c20_i32_161 = arith.constant 20 : i32
    %117 = arith.addi %c0_i32_160, %c20_i32_161 : i32
    %c1_i32_162 = arith.constant 1 : i32
    scf.for %arg29 = %c0_i32_160 to %117 step %c1_i32_162  : i32 {
      %c22_i32 = arith.constant 22 : i32
      %118 = arith.addi %c22_i32, %arg29 : i32
      %c0_i32_164 = arith.constant 0 : i32
      %119 = arith.addi %118, %c0_i32_164 : i32
      %120 = arith.index_cast %119 : i32 to index
      %c0_165 = arith.constant 0 : index
      %c0_166 = arith.constant 0 : index
      %121 = vector.load %arg28[%120, %c0_165, %c0_166] : memref<44x22x16xf32, #tpu.memory_space<vmem>>, vector<1x22x16xf32>
      %122 = vector.shape_cast %121 : vector<1x22x16xf32> to vector<22x16xf32>
      %c22_i32_167 = arith.constant 22 : i32
      %123 = arith.addi %c22_i32_167, %arg29 : i32
      %c1_i32_168 = arith.constant 1 : i32
      %124 = arith.addi %123, %c1_i32_168 : i32
      %125 = arith.index_cast %124 : i32 to index
      %c0_169 = arith.constant 0 : index
      %c0_170 = arith.constant 0 : index
      %126 = vector.load %arg28[%125, %c0_169, %c0_170] : memref<44x22x16xf32, #tpu.memory_space<vmem>>, vector<1x22x16xf32>
      %127 = vector.shape_cast %126 : vector<1x22x16xf32> to vector<22x16xf32>
      %c22_i32_171 = arith.constant 22 : i32
      %128 = arith.addi %c22_i32_171, %arg29 : i32
      %c2_i32_172 = arith.constant 2 : i32
      %129 = arith.addi %128, %c2_i32_172 : i32
      %130 = arith.index_cast %129 : i32 to index
      %c0_173 = arith.constant 0 : index
      %c0_174 = arith.constant 0 : index
      %131 = vector.load %arg28[%130, %c0_173, %c0_174] : memref<44x22x16xf32, #tpu.memory_space<vmem>>, vector<1x22x16xf32>
      %132 = vector.shape_cast %131 : vector<1x22x16xf32> to vector<22x16xf32>
      %cst_175 = arith.constant 0.000000e+00 : f32
      %133 = vector.broadcast %cst_175 : f32 to vector<20x1xf32>
      %134 = vector.extract_strided_slice %122 {offsets = [0, 0], sizes = [20, 16], strides = [1, 1]} : vector<22x16xf32> to vector<20x16xf32>
      %135 = vector.extract_strided_slice %114 {offsets = [0, 0], sizes = [16, 1], strides = [1, 1]} : vector<144x1xf32> to vector<16x1xf32>
      %cst_176 = arith.constant dense<0.000000e+00> : vector<20x1xf32>
      %136 = tpu.matmul %134, %135, %cst_176 {dimension_numbers = #tpu.dot_dimension_numbers<[1], [0], [0], [1], [0, 0, 1, 1], [], []>} : vector<20x16xf32>, vector<16x1xf32>, vector<20x1xf32> -> vector<20x1xf32>
      %137 = arith.addf %133, %136 : vector<20x1xf32>
      %138 = vector.extract_strided_slice %122 {offsets = [1, 0], sizes = [20, 16], strides = [1, 1]} : vector<22x16xf32> to vector<20x16xf32>
      %139 = vector.extract_strided_slice %114 {offsets = [16, 0], sizes = [16, 1], strides = [1, 1]} : vector<144x1xf32> to vector<16x1xf32>
      %cst_177 = arith.constant dense<0.000000e+00> : vector<20x1xf32>
      %140 = tpu.matmul %138, %139, %cst_177 {dimension_numbers = #tpu.dot_dimension_numbers<[1], [0], [0], [1], [0, 0, 1, 1], [], []>} : vector<20x16xf32>, vector<16x1xf32>, vector<20x1xf32> -> vector<20x1xf32>
      %141 = arith.addf %137, %140 : vector<20x1xf32>
      %142 = vector.extract_strided_slice %122 {offsets = [2, 0], sizes = [20, 16], strides = [1, 1]} : vector<22x16xf32> to vector<20x16xf32>
      %143 = vector.extract_strided_slice %114 {offsets = [32, 0], sizes = [16, 1], strides = [1, 1]} : vector<144x1xf32> to vector<16x1xf32>
      %cst_178 = arith.constant dense<0.000000e+00> : vector<20x1xf32>
      %144 = tpu.matmul %142, %143, %cst_178 {dimension_numbers = #tpu.dot_dimension_numbers<[1], [0], [0], [1], [0, 0, 1, 1], [], []>} : vector<20x16xf32>, vector<16x1xf32>, vector<20x1xf32> -> vector<20x1xf32>
      %145 = arith.addf %141, %144 : vector<20x1xf32>
      %146 = vector.extract_strided_slice %127 {offsets = [0, 0], sizes = [20, 16], strides = [1, 1]} : vector<22x16xf32> to vector<20x16xf32>
      %147 = vector.extract_strided_slice %114 {offsets = [48, 0], sizes = [16, 1], strides = [1, 1]} : vector<144x1xf32> to vector<16x1xf32>
      %cst_179 = arith.constant dense<0.000000e+00> : vector<20x1xf32>
      %148 = tpu.matmul %146, %147, %cst_179 {dimension_numbers = #tpu.dot_dimension_numbers<[1], [0], [0], [1], [0, 0, 1, 1], [], []>} : vector<20x16xf32>, vector<16x1xf32>, vector<20x1xf32> -> vector<20x1xf32>
      %149 = arith.addf %145, %148 : vector<20x1xf32>
      %150 = vector.extract_strided_slice %127 {offsets = [1, 0], sizes = [20, 16], strides = [1, 1]} : vector<22x16xf32> to vector<20x16xf32>
      %151 = vector.extract_strided_slice %114 {offsets = [64, 0], sizes = [16, 1], strides = [1, 1]} : vector<144x1xf32> to vector<16x1xf32>
      %cst_180 = arith.constant dense<0.000000e+00> : vector<20x1xf32>
      %152 = tpu.matmul %150, %151, %cst_180 {dimension_numbers = #tpu.dot_dimension_numbers<[1], [0], [0], [1], [0, 0, 1, 1], [], []>} : vector<20x16xf32>, vector<16x1xf32>, vector<20x1xf32> -> vector<20x1xf32>
      %153 = arith.addf %149, %152 : vector<20x1xf32>
      %154 = vector.extract_strided_slice %127 {offsets = [2, 0], sizes = [20, 16], strides = [1, 1]} : vector<22x16xf32> to vector<20x16xf32>
      %155 = vector.extract_strided_slice %114 {offsets = [80, 0], sizes = [16, 1], strides = [1, 1]} : vector<144x1xf32> to vector<16x1xf32>
      %cst_181 = arith.constant dense<0.000000e+00> : vector<20x1xf32>
      %156 = tpu.matmul %154, %155, %cst_181 {dimension_numbers = #tpu.dot_dimension_numbers<[1], [0], [0], [1], [0, 0, 1, 1], [], []>} : vector<20x16xf32>, vector<16x1xf32>, vector<20x1xf32> -> vector<20x1xf32>
      %157 = arith.addf %153, %156 : vector<20x1xf32>
      %158 = vector.extract_strided_slice %132 {offsets = [0, 0], sizes = [20, 16], strides = [1, 1]} : vector<22x16xf32> to vector<20x16xf32>
      %159 = vector.extract_strided_slice %114 {offsets = [96, 0], sizes = [16, 1], strides = [1, 1]} : vector<144x1xf32> to vector<16x1xf32>
      %cst_182 = arith.constant dense<0.000000e+00> : vector<20x1xf32>
      %160 = tpu.matmul %158, %159, %cst_182 {dimension_numbers = #tpu.dot_dimension_numbers<[1], [0], [0], [1], [0, 0, 1, 1], [], []>} : vector<20x16xf32>, vector<16x1xf32>, vector<20x1xf32> -> vector<20x1xf32>
      %161 = arith.addf %157, %160 : vector<20x1xf32>
      %162 = vector.extract_strided_slice %132 {offsets = [1, 0], sizes = [20, 16], strides = [1, 1]} : vector<22x16xf32> to vector<20x16xf32>
      %163 = vector.extract_strided_slice %114 {offsets = [112, 0], sizes = [16, 1], strides = [1, 1]} : vector<144x1xf32> to vector<16x1xf32>
      %cst_183 = arith.constant dense<0.000000e+00> : vector<20x1xf32>
      %164 = tpu.matmul %162, %163, %cst_183 {dimension_numbers = #tpu.dot_dimension_numbers<[1], [0], [0], [1], [0, 0, 1, 1], [], []>} : vector<20x16xf32>, vector<16x1xf32>, vector<20x1xf32> -> vector<20x1xf32>
      %165 = arith.addf %161, %164 : vector<20x1xf32>
      %166 = vector.extract_strided_slice %132 {offsets = [2, 0], sizes = [20, 16], strides = [1, 1]} : vector<22x16xf32> to vector<20x16xf32>
      %167 = vector.extract_strided_slice %114 {offsets = [128, 0], sizes = [16, 1], strides = [1, 1]} : vector<144x1xf32> to vector<16x1xf32>
      %cst_184 = arith.constant dense<0.000000e+00> : vector<20x1xf32>
      %168 = tpu.matmul %166, %167, %cst_184 {dimension_numbers = #tpu.dot_dimension_numbers<[1], [0], [0], [1], [0, 0, 1, 1], [], []>} : vector<20x16xf32>, vector<16x1xf32>, vector<20x1xf32> -> vector<20x1xf32>
      %169 = arith.addf %165, %168 : vector<20x1xf32>
      %170 = vector.broadcast %115 : vector<1x1xf32> to vector<20x1xf32>
      %171 = arith.addf %169, %170 : vector<20x1xf32>
      %172 = arith.negf %171 : vector<20x1xf32>
      %173 = math.exp %172 : vector<20x1xf32>
      %cst_185 = arith.constant 1.000000e+00 : f32
      %174 = vector.broadcast %cst_185 : f32 to vector<20x1xf32>
      %175 = arith.addf %174, %173 : vector<20x1xf32>
      %176 = arith.divf %174, %175 : vector<20x1xf32>
      %c20_i32_186 = arith.constant 20 : i32
      %177 = arith.addi %c20_i32_186, %arg29 : i32
      %178 = arith.index_cast %177 : i32 to index
      %c0_187 = arith.constant 0 : index
      %c0_188 = arith.constant 0 : index
      %179 = vector.load %arg16[%178, %c0_187, %c0_188] : memref<40x20x1xf32, #tpu.memory_space<vmem>>, vector<1x20x1xf32>
      %180 = vector.shape_cast %179 : vector<1x20x1xf32> to vector<20x1xf32>
      %181 = vector.shape_cast %176 : vector<20x1xf32> to vector<1x20x1xf32>
      tpu.vector_store %arg16[%178, %c0_187, %c0_188], %181 {strides = array<i32>} : memref<40x20x1xf32, #tpu.memory_space<vmem>>, vector<1x20x1xf32>,
    }
    %c20_i32_163 = arith.constant 20 : i32
    return
  }
  func.func @transform_0(%arg0: i32) -> (i32, i32, i32) {
    %c0_i32 = arith.constant 0 : i32
    %c0_i32_0 = arith.constant 0 : i32
    %c0_i32_1 = arith.constant 0 : i32
    %c0_i32_2 = arith.constant 0 : i32
    return %c0_i32, %c0_i32_0, %c0_i32_1 : i32, i32, i32
  }
  func.func @transform_1(%arg0: i32) -> (i32, i32) {
    %c0_i32 = arith.constant 0 : i32
    %c0_i32_0 = arith.constant 0 : i32
    %c0_i32_1 = arith.constant 0 : i32
    return %c0_i32, %c0_i32_0 : i32, i32
  }
  func.func @transform_2(%arg0: i32) -> (i32, i32) {
    %c0_i32 = arith.constant 0 : i32
    %c0_i32_0 = arith.constant 0 : i32
    %c0_i32_1 = arith.constant 0 : i32
    return %c0_i32, %c0_i32_0 : i32, i32
  }
  func.func @transform_3(%arg0: i32) -> (i32, i32) {
    %c0_i32 = arith.constant 0 : i32
    %c0_i32_0 = arith.constant 0 : i32
    %c0_i32_1 = arith.constant 0 : i32
    return %c0_i32, %c0_i32_0 : i32, i32
  }
  func.func @transform_4(%arg0: i32) -> (i32, i32) {
    %c0_i32 = arith.constant 0 : i32
    %c0_i32_0 = arith.constant 0 : i32
    %c0_i32_1 = arith.constant 0 : i32
    return %c0_i32, %c0_i32_0 : i32, i32
  }
  func.func @transform_5(%arg0: i32) -> (i32, i32) {
    %c0_i32 = arith.constant 0 : i32
    %c0_i32_0 = arith.constant 0 : i32
    %c0_i32_1 = arith.constant 0 : i32
    return %c0_i32, %c0_i32_0 : i32, i32
  }
  func.func @transform_6(%arg0: i32) -> (i32, i32) {
    %c0_i32 = arith.constant 0 : i32
    %c0_i32_0 = arith.constant 0 : i32
    %c0_i32_1 = arith.constant 0 : i32
    return %c0_i32, %c0_i32_0 : i32, i32
  }
  func.func @transform_7(%arg0: i32) -> (i32, i32) {
    %c0_i32 = arith.constant 0 : i32
    %c0_i32_0 = arith.constant 0 : i32
    %c0_i32_1 = arith.constant 0 : i32
    return %c0_i32, %c0_i32_0 : i32, i32
  }
  func.func @transform_8(%arg0: i32) -> (i32, i32) {
    %c0_i32 = arith.constant 0 : i32
    %c0_i32_0 = arith.constant 0 : i32
    %c0_i32_1 = arith.constant 0 : i32
    return %c0_i32, %c0_i32_0 : i32, i32
  }
  func.func @transform_9(%arg0: i32) -> (i32, i32) {
    %c0_i32 = arith.constant 0 : i32
    %c0_i32_0 = arith.constant 0 : i32
    %c0_i32_1 = arith.constant 0 : i32
    return %c0_i32, %c0_i32_0 : i32, i32
  }
  func.func @transform_10(%arg0: i32) -> (i32, i32) {
    %c0_i32 = arith.constant 0 : i32
    %c0_i32_0 = arith.constant 0 : i32
    %c0_i32_1 = arith.constant 0 : i32
    return %c0_i32, %c0_i32_0 : i32, i32
  }
  func.func @transform_11(%arg0: i32) -> (i32, i32) {
    %c0_i32 = arith.constant 0 : i32
    %c0_i32_0 = arith.constant 0 : i32
    %c0_i32_1 = arith.constant 0 : i32
    return %c0_i32, %c0_i32_0 : i32, i32
  }
  func.func @transform_12(%arg0: i32) -> (i32, i32) {
    %c0_i32 = arith.constant 0 : i32
    %c0_i32_0 = arith.constant 0 : i32
    %c0_i32_1 = arith.constant 0 : i32
    return %c0_i32, %c0_i32_0 : i32, i32
  }
  func.func @transform_13(%arg0: i32) -> (i32, i32) {
    %c0_i32 = arith.constant 0 : i32
    %c0_i32_0 = arith.constant 0 : i32
    %c0_i32_1 = arith.constant 0 : i32
    return %c0_i32, %c0_i32_0 : i32, i32
  }
  func.func @transform_14(%arg0: i32) -> (i32, i32) {
    %c0_i32 = arith.constant 0 : i32
    %c0_i32_0 = arith.constant 0 : i32
    %c0_i32_1 = arith.constant 0 : i32
    return %c0_i32, %c0_i32_0 : i32, i32
  }
  func.func @transform_15(%arg0: i32) -> (i32, i32, i32) {
    %c0_i32 = arith.constant 0 : i32
    %c0_i32_0 = arith.constant 0 : i32
    %c0_i32_1 = arith.constant 0 : i32
    %c0_i32_2 = arith.constant 0 : i32
    return %c0_i32, %c0_i32_0, %c0_i32_1 : i32, i32, i32
  }
}

</mosaic_0001>

<bundles_post_ra>
// kernel: ae_forward.1
= control target key start
LH: loop header
LB: loop body
LE: loop exit
PB: predicated region body
PF: predicated region fallthrough
CT: control target
= control target key end

     0   :  { %vm52_vm0 = vcmask 130048   ;;  %v6326_v1 = vmov 0.0   ;;  %vm54_vm1 = vcmask 123904   ;;  %vm94_vm2 = vcmask 62464   ;;  %s8221_s0 = inlined_call_operand.vmem [shape: f32[36,18,1], index: 0, kind: input, shape index: {}]   ;;  %s8222_s3 = inlined_call_operand.vmem [shape: f32[144,8], index: 3, kind: input, shape index: {}]   ;;  %s8223_s4 = inlined_call_operand.vmem [shape: f32[1,8], index: 4, kind: input, shape index: {}]   ;;  %s8224_s5 = inlined_call_operand.vmem [shape: f32[72,8], index: 5, kind: input, shape index: {}]   ;;  %s8225_s6 = inlined_call_operand.vmem [shape: f32[1,8], index: 6, kind: input, shape index: {}]   ;;  %s8226_s7 = inlined_call_operand.vmem [shape: f32[72,8], index: 7, kind: input, shape index: {}]   ;;  %s8227_s8 = inlined_call_operand.vmem [shape: f32[1,8], index: 8, kind: input, shape index: {}]   ;;  %s8228_s9 = inlined_call_operand.vmem [shape: f32[72,8], index: 9, kind: input, shape index: {}]   ;;  %s8229_s10 = inlined_call_operand.vmem [shape: f32[1,8], index: 10, kind: input, shape index: {}]   ;;  %s8230_s11 = inlined_call_operand.vmem [shape: f32[72,16], index: 11, kind: input, shape index: {}]   ;;  %s8231_s12 = inlined_call_operand.vmem [shape: f32[1,16], index: 12, kind: input, shape index: {}]   ;;  %s8232_s13 = inlined_call_operand.vmem [shape: f32[144,1], index: 13, kind: input, shape index: {}]   ;;  %s8233_s14 = inlined_call_operand.<no memory space> [shape: f32[1,1], index: 14, kind: input, shape index: {}]   ;;  %s8234_s15 = inlined_call_operand.vmem [shape: f32[40,20,1], index: 15, kind: output, shape index: {}]   ;;  %s8235_s1 = inlined_call_operand.vmem [shape: f32[9,16], index: 1, kind: input, shape index: {}]   ;;  %s8236_s2 = inlined_call_operand.vmem [shape: f32[1,16], index: 2, kind: input, shape index: {}]  }
   0x1   :  { %v20_v0 = vstv %s8233_s14  ;;  %53 = vst.msk [vmem:[#allocation3] sm:$0xff] %vm52_vm0, %v6326_v1  ;;  %v6607_v2 = vld [vmem:[%s8235_s1] sm:$0xff]  ;;  %v6612_v3 = vld [vmem:[%s8235_s1 + $0x8] sm:$0x1]  ;;  %vm107_vm3 = vcmask 60416   ;;  %vm128_vm4 = vcmask 64512  }
   0x2   :  { %21 = vst [vmem:[#allocation14] sm:$0x1] %v20_v0  ;;  %v6617_v4 = vld [vmem:[%s8236_s2] sm:$0x1]  ;;  %vm179_vm5 = vcmask 128000   ;;  %s6931_s1 = smov 0  }
   0x3   :  { %56 = vst.msk [vmem:[#allocation3 + $0x10] sm:$0xff] %vm52_vm0, %v6326_v1 }
   0x4   :  { %58 = vst.msk [vmem:[#allocation3 + $0x20] sm:$0xff] %vm52_vm0, %v6326_v1 }
   0x5   :  { %60 = vst.msk [vmem:[#allocation3 + $0x30] sm:$0xff] %vm52_vm0, %v6326_v1 }
   0x6   :  { %62 = vst.msk [vmem:[#allocation3 + $0x40] sm:$0xff] %vm52_vm0, %v6326_v1 }
   0x7   :  { %64 = vst.msk [vmem:[#allocation3 + $0x50] sm:$0xff] %vm52_vm0, %v6326_v1 }
   0x8   :  { %66 = vst.msk [vmem:[#allocation3 + $0x60] sm:$0xff] %vm52_vm0, %v6326_v1 }
   0x9   :  { %68 = vst.msk [vmem:[#allocation3 + $0x70] sm:$0xff] %vm52_vm0, %v6326_v1 }
   0xa   :  { %70 = vst.msk [vmem:[#allocation3 + $0x80] sm:$0xff] %vm52_vm0, %v6326_v1 }
   0xb   :  { %72 = vst.msk [vmem:[#allocation3 + $0x90] sm:$0xff] %vm52_vm0, %v6326_v1 }
   0xc   :  { %74 = vst.msk [vmem:[#allocation3 + $0xa0] sm:$0xff] %vm52_vm0, %v6326_v1 }
   0xd   :  { %76 = vst.msk [vmem:[#allocation3 + $0xb0] sm:$0xff] %vm52_vm0, %v6326_v1 }
   0xe   :  { %78 = vst.msk [vmem:[#allocation3 + $0xc0] sm:$0xff] %vm52_vm0, %v6326_v1 }
   0xf   :  { %80 = vst.msk [vmem:[#allocation3 + $0xd0] sm:$0xff] %vm52_vm0, %v6326_v1 }
  0x10   :  { %82 = vst.msk [vmem:[#allocation3 + $0xe0] sm:$0xff] %vm52_vm0, %v6326_v1 }
  0x11   :  { %84 = vst.msk [vmem:[#allocation3 + $0xf0] sm:$0xff] %vm52_vm0, %v6326_v1 }
  0x12   :  { %86 = vst.msk [vmem:[#allocation3 + $0x100] sm:$0xff] %vm52_vm0, %v6326_v1 }
  0x13   :  { %88 = vst.msk [vmem:[#allocation3 + $0x110] sm:$0xff] %vm52_vm0, %v6326_v1 }
  0x14   :  { %90 = vst.msk [vmem:[#allocation3 + $0x120] sm:$0xff] %vm52_vm0, %v6326_v1 }
  0x15   :  { %92 = vst.msk [vmem:[#allocation3 + $0x130] sm:$0xff] %vm52_vm0, %v6326_v1 }
  0x16   :  { %177 = vst.msk [vmem:[#allocation13] sm:$0xff] %vm52_vm0, %v6326_v1 }
  0x17   :  { %178 = vst.msk [vmem:[#allocation13 + $0x8] sm:$0xff] %vm52_vm0, %v6326_v1 }
  0x18   :  { %181 = vst.msk [vmem:[#allocation13 + $0x18] sm:$0xff] %vm52_vm0, %v6326_v1 }
  0x19   :  { %182 = vst.msk [vmem:[#allocation13 + $0x20] sm:$0xff] %vm52_vm0, %v6326_v1 }
  0x1a   :  { %184 = vst.msk [vmem:[#allocation13 + $0x30] sm:$0xff] %vm52_vm0, %v6326_v1 }
  0x1b   :  { %185 = vst.msk [vmem:[#allocation13 + $0x38] sm:$0xff] %vm52_vm0, %v6326_v1 }
  0x1c   :  { %187 = vst.msk [vmem:[#allocation13 + $0x48] sm:$0xff] %vm52_vm0, %v6326_v1 }
  0x1d   :  { %188 = vst.msk [vmem:[#allocation13 + $0x50] sm:$0xff] %vm52_vm0, %v6326_v1 }
  0x1e   :  { %190 = vst.msk [vmem:[#allocation13 + $0x60] sm:$0xff] %vm52_vm0, %v6326_v1 }
  0x1f   :  { %191 = vst.msk [vmem:[#allocation13 + $0x68] sm:$0xff] %vm52_vm0, %v6326_v1 }
  0x20   :  { %193 = vst.msk [vmem:[#allocation13 + $0x78] sm:$0xff] %vm52_vm0, %v6326_v1 }
  0x21   :  { %194 = vst.msk [vmem:[#allocation13 + $0x80] sm:$0xff] %vm52_vm0, %v6326_v1 }
  0x22   :  { %196 = vst.msk [vmem:[#allocation13 + $0x90] sm:$0xff] %vm52_vm0, %v6326_v1 }
  0x23   :  { %197 = vst.msk [vmem:[#allocation13 + $0x98] sm:$0xff] %vm52_vm0, %v6326_v1 }
  0x24   :  { %199 = vst.msk [vmem:[#allocation13 + $0xa8] sm:$0xff] %vm52_vm0, %v6326_v1 }
  0x25   :  { %200 = vst.msk [vmem:[#allocation13 + $0xb0] sm:$0xff] %vm52_vm0, %v6326_v1 }
  0x26   :  { %202 = vst.msk [vmem:[#allocation13 + $0xc0] sm:$0xff] %vm52_vm0, %v6326_v1 }
  0x27   :  { %203 = vst.msk [vmem:[#allocation13 + $0xc8] sm:$0xff] %vm52_vm0, %v6326_v1 }
  0x28   :  { %205 = vst.msk [vmem:[#allocation13 + $0xd8] sm:$0xff] %vm52_vm0, %v6326_v1 }
  0x29   :  { %206 = vst.msk [vmem:[#allocation13 + $0xe0] sm:$0xff] %vm52_vm0, %v6326_v1 }
  0x2a   :  { %208 = vst.msk [vmem:[#allocation13 + $0xf0] sm:$0xff] %vm52_vm0, %v6326_v1 }
  0x2b   :  { %209 = vst.msk [vmem:[#allocation13 + $0xf8] sm:$0xff] %vm52_vm0, %v6326_v1 }
  0x2c   :  { %211 = vst.msk [vmem:[#allocation13 + $0x108] sm:$0xff] %vm52_vm0, %v6326_v1 }
  0x2d   :  { %212 = vst.msk [vmem:[#allocation13 + $0x110] sm:$0xff] %vm52_vm0, %v6326_v1 }
  0x2e   :  { %214 = vst.msk [vmem:[#allocation13 + $0x120] sm:$0xff] %vm52_vm0, %v6326_v1 }
  0x2f   :  { %215 = vst.msk [vmem:[#allocation13 + $0x128] sm:$0xff] %vm52_vm0, %v6326_v1 }
  0x30   :  { %217 = vst.msk [vmem:[#allocation13 + $0x138] sm:$0xff] %vm52_vm0, %v6326_v1 }
  0x31   :  { %218 = vst.msk [vmem:[#allocation13 + $0x140] sm:$0xff] %vm52_vm0, %v6326_v1 }
  0x32   :  { %220 = vst.msk [vmem:[#allocation13 + $0x150] sm:$0xff] %vm52_vm0, %v6326_v1 }
  0x33   :  { %221 = vst.msk [vmem:[#allocation13 + $0x158] sm:$0xff] %vm52_vm0, %v6326_v1 }
  0x34   :  { %223 = vst.msk [vmem:[#allocation13 + $0x168] sm:$0xff] %vm52_vm0, %v6326_v1 }
  0x35   :  { %224 = vst.msk [vmem:[#allocation13 + $0x170] sm:$0xff] %vm52_vm0, %v6326_v1 }
  0x36   :  { %226 = vst.msk [vmem:[#allocation13 + $0x180] sm:$0xff] %vm52_vm0, %v6326_v1 }
  0x37   :  { %227 = vst.msk [vmem:[#allocation13 + $0x188] sm:$0xff] %vm52_vm0, %v6326_v1 }
  0x38   :  { %229 = vst.msk [vmem:[#allocation13 + $0x198] sm:$0xff] %vm52_vm0, %v6326_v1 }
  0x39   :  { %230 = vst.msk [vmem:[#allocation13 + $0x1a0] sm:$0xff] %vm52_vm0, %v6326_v1 }
  0x3a   :  { %232 = vst.msk [vmem:[#allocation13 + $0x1b0] sm:$0xff] %vm52_vm0, %v6326_v1 }
  0x3b   :  { %233 = vst.msk [vmem:[#allocation13 + $0x1b8] sm:$0xff] %vm52_vm0, %v6326_v1 }
  0x3c   :  { %235 = vst.msk [vmem:[#allocation13 + $0x1c8] sm:$0xff] %vm52_vm0, %v6326_v1 }
  0x3d   :  { %236 = vst.msk [vmem:[#allocation13 + $0x1d0] sm:$0xff] %vm52_vm0, %v6326_v1 }
  0x3e   :  { %238 = vst.msk [vmem:[#allocation13 + $0x1e0] sm:$0xff] %vm52_vm0, %v6326_v1 }
  0x3f   :  { %239 = vst.msk [vmem:[#allocation13 + $0x1e8] sm:$0xff] %vm52_vm0, %v6326_v1 }
  0x40   :  { %241 = vst.msk [vmem:[#allocation13 + $0x1f8] sm:$0xff] %vm52_vm0, %v6326_v1 }
  0x41   :  { %242 = vst.msk [vmem:[#allocation13 + $0x200] sm:$0xff] %vm52_vm0, %v6326_v1 }
  0x42   :  { %244 = vst.msk [vmem:[#allocation13 + $0x210] sm:$0xff] %vm52_vm0, %v6326_v1 }
  0x43   :  { %245 = vst.msk [vmem:[#allocation13 + $0x218] sm:$0xff] %vm52_vm0, %v6326_v1 }
  0x44   :  { %247 = vst.msk [vmem:[#allocation13 + $0x228] sm:$0xff] %vm52_vm0, %v6326_v1 }
  0x45   :  { %248 = vst.msk [vmem:[#allocation13 + $0x230] sm:$0xff] %vm52_vm0, %v6326_v1 }
  0x46   :  { %250 = vst.msk [vmem:[#allocation13 + $0x240] sm:$0xff] %vm52_vm0, %v6326_v1 }
  0x47   :  { %251 = vst.msk [vmem:[#allocation13 + $0x248] sm:$0xff] %vm52_vm0, %v6326_v1 }
  0x48   :  { %253 = vst.msk [vmem:[#allocation13 + $0x258] sm:$0xff] %vm52_vm0, %v6326_v1 }
  0x49   :  { %254 = vst.msk [vmem:[#allocation13 + $0x260] sm:$0xff] %vm52_vm0, %v6326_v1 }
  0x4a   :  { %256 = vst.msk [vmem:[#allocation13 + $0x270] sm:$0xff] %vm52_vm0, %v6326_v1 }
  0x4b   :  { %257 = vst.msk [vmem:[#allocation13 + $0x278] sm:$0xff] %vm52_vm0, %v6326_v1 }
  0x4c   :  { %259 = vst.msk [vmem:[#allocation13 + $0x288] sm:$0xff] %vm52_vm0, %v6326_v1 }
  0x4d   :  { %260 = vst.msk [vmem:[#allocation13 + $0x290] sm:$0xff] %vm52_vm0, %v6326_v1 }
  0x4e   :  { %262 = vst.msk [vmem:[#allocation13 + $0x2a0] sm:$0xff] %vm52_vm0, %v6326_v1 }
  0x4f   :  { %263 = vst.msk [vmem:[#allocation13 + $0x2a8] sm:$0xff] %vm52_vm0, %v6326_v1 }
  0x50   :  { %265 = vst.msk [vmem:[#allocation13 + $0x2b8] sm:$0xff] %vm52_vm0, %v6326_v1 }
  0x51   :  { %266 = vst.msk [vmem:[#allocation13 + $0x2c0] sm:$0xff] %vm52_vm0, %v6326_v1 }
  0x52   :  { %268 = vst.msk [vmem:[#allocation13 + $0x2d0] sm:$0xff] %vm52_vm0, %v6326_v1 }
  0x53   :  { %269 = vst.msk [vmem:[#allocation13 + $0x2d8] sm:$0xff] %vm52_vm0, %v6326_v1 }
  0x54   :  { %271 = vst.msk [vmem:[#allocation13 + $0x2e8] sm:$0xff] %vm52_vm0, %v6326_v1 }
  0x55   :  { %272 = vst.msk [vmem:[#allocation13 + $0x2f0] sm:$0xff] %vm52_vm0, %v6326_v1 }
  0x56   :  { %274 = vst.msk [vmem:[#allocation13 + $0x300] sm:$0xff] %vm52_vm0, %v6326_v1 }
  0x57   :  { %275 = vst.msk [vmem:[#allocation13 + $0x308] sm:$0xff] %vm52_vm0, %v6326_v1 }
  0x58   :  { %277 = vst.msk [vmem:[#allocation13 + $0x318] sm:$0xff] %vm52_vm0, %v6326_v1 }
  0x59   :  { %278 = vst.msk [vmem:[#allocation13 + $0x320] sm:$0xff] %vm52_vm0, %v6326_v1 }
  0x5a   :  { %280 = vst.msk [vmem:[#allocation13 + $0x330] sm:$0xff] %vm52_vm0, %v6326_v1 }
  0x5b   :  { %281 = vst.msk [vmem:[#allocation13 + $0x338] sm:$0xff] %vm52_vm0, %v6326_v1 }
  0x5c   :  { %283 = vst.msk [vmem:[#allocation13 + $0x348] sm:$0xff] %vm52_vm0, %v6326_v1 }
  0x5d   :  { %284 = vst.msk [vmem:[#allocation13 + $0x350] sm:$0xff] %vm52_vm0, %v6326_v1 }
  0x5e   :  { %286 = vst.msk [vmem:[#allocation13 + $0x360] sm:$0xff] %vm52_vm0, %v6326_v1 }
  0x5f   :  { %287 = vst.msk [vmem:[#allocation13 + $0x368] sm:$0xff] %vm52_vm0, %v6326_v1 }
  0x60   :  { %289 = vst.msk [vmem:[#allocation13 + $0x378] sm:$0xff] %vm52_vm0, %v6326_v1 }
  0x61   :  { %290 = vst.msk [vmem:[#allocation13 + $0x380] sm:$0xff] %vm52_vm0, %v6326_v1 }
  0x62   :  { %292 = vst.msk [vmem:[#allocation13 + $0x390] sm:$0xff] %vm52_vm0, %v6326_v1 }
  0x63   :  { %293 = vst.msk [vmem:[#allocation13 + $0x398] sm:$0xff] %vm52_vm0, %v6326_v1 }
  0x64   :  { %295 = vst.msk [vmem:[#allocation13 + $0x3a8] sm:$0xff] %vm52_vm0, %v6326_v1 }
  0x65   :  { %296 = vst.msk [vmem:[#allocation13 + $0x3b0] sm:$0xff] %vm52_vm0, %v6326_v1 }
  0x66   :  { %298 = vst.msk [vmem:[#allocation13 + $0x3c0] sm:$0xff] %vm52_vm0, %v6326_v1 }
  0x67   :  { %299 = vst.msk [vmem:[#allocation13 + $0x3c8] sm:$0xff] %vm52_vm0, %v6326_v1 }
  0x68   :  { %301 = vst.msk [vmem:[#allocation13 + $0x3d8] sm:$0xff] %vm52_vm0, %v6326_v1 }
  0x69   :  { %302 = vst.msk [vmem:[#allocation13 + $0x3e0] sm:$0xff] %vm52_vm0, %v6326_v1 }
  0x6a   :  { %304 = vst.msk [vmem:[#allocation13 + $0x3f0] sm:$0xff] %vm52_vm0, %v6326_v1 }
  0x6b   :  { %305 = vst.msk [vmem:[#allocation13 + $0x3f8] sm:$0xff] %vm52_vm0, %v6326_v1 }
  0x6c   :  { %307 = vst.msk [vmem:[#allocation13 + $0x408] sm:$0xff] %vm52_vm0, %v6326_v1 }
  0x6d   :  { %308 = vst.msk [vmem:[#allocation13 + $0x410] sm:$0xff] %vm52_vm0, %v6326_v1 }
  0x6e   :  { %55 = vst.msk [vmem:[#allocation3 + $0x8] sm:$0x3] %vm54_vm1, %v6326_v1 }
  0x6f   :  { %57 = vst.msk [vmem:[#allocation3 + $0x18] sm:$0x3] %vm54_vm1, %v6326_v1 }
  0x70   :  { %59 = vst.msk [vmem:[#allocation3 + $0x28] sm:$0x3] %vm54_vm1, %v6326_v1 }
  0x71   :  { %61 = vst.msk [vmem:[#allocation3 + $0x38] sm:$0x3] %vm54_vm1, %v6326_v1 }
  0x72   :  { %63 = vst.msk [vmem:[#allocation3 + $0x48] sm:$0x3] %vm54_vm1, %v6326_v1 }
  0x73   :  { %65 = vst.msk [vmem:[#allocation3 + $0x58] sm:$0x3] %vm54_vm1, %v6326_v1 }
  0x74   :  { %67 = vst.msk [vmem:[#allocation3 + $0x68] sm:$0x3] %vm54_vm1, %v6326_v1 }
  0x75   :  { %69 = vst.msk [vmem:[#allocation3 + $0x78] sm:$0x3] %vm54_vm1, %v6326_v1 }
  0x76   :  { %71 = vst.msk [vmem:[#allocation3 + $0x88] sm:$0x3] %vm54_vm1, %v6326_v1 }
  0x77   :  { %73 = vst.msk [vmem:[#allocation3 + $0x98] sm:$0x3] %vm54_vm1, %v6326_v1 }
  0x78   :  { %75 = vst.msk [vmem:[#allocation3 + $0xa8] sm:$0x3] %vm54_vm1, %v6326_v1 }
  0x79   :  { %77 = vst.msk [vmem:[#allocation3 + $0xb8] sm:$0x3] %vm54_vm1, %v6326_v1 }
  0x7a   :  { %79 = vst.msk [vmem:[#allocation3 + $0xc8] sm:$0x3] %vm54_vm1, %v6326_v1 }
  0x7b   :  { %81 = vst.msk [vmem:[#allocation3 + $0xd8] sm:$0x3] %vm54_vm1, %v6326_v1 }
  0x7c   :  { %83 = vst.msk [vmem:[#allocation3 + $0xe8] sm:$0x3] %vm54_vm1, %v6326_v1 }
  0x7d   :  { %85 = vst.msk [vmem:[#allocation3 + $0xf8] sm:$0x3] %vm54_vm1, %v6326_v1 }
  0x7e   :  { %87 = vst.msk [vmem:[#allocation3 + $0x108] sm:$0x3] %vm54_vm1, %v6326_v1 }
  0x7f   :  { %89 = vst.msk [vmem:[#allocation3 + $0x118] sm:$0x3] %vm54_vm1, %v6326_v1 }
  0x80   :  { %91 = vst.msk [vmem:[#allocation3 + $0x128] sm:$0x3] %vm54_vm1, %v6326_v1 }
  0x81   :  { %93 = vst.msk [vmem:[#allocation3 + $0x138] sm:$0x3] %vm54_vm1, %v6326_v1 }
  0x82   :  { %95 = vst.msk [vmem:[#allocation5] sm:$0x3f] %vm94_vm2, %v6326_v1 }
  0x83   :  { %96 = vst.msk [vmem:[#allocation5 + $0x8] sm:$0x3f] %vm94_vm2, %v6326_v1 }
  0x84   :  { %97 = vst.msk [vmem:[#allocation5 + $0x10] sm:$0x3f] %vm94_vm2, %v6326_v1 }
  0x85   :  { %98 = vst.msk [vmem:[#allocation5 + $0x18] sm:$0x3f] %vm94_vm2, %v6326_v1 }
  0x86   :  { %99 = vst.msk [vmem:[#allocation5 + $0x20] sm:$0x3f] %vm94_vm2, %v6326_v1 }
  0x87   :  { %100 = vst.msk [vmem:[#allocation5 + $0x28] sm:$0x3f] %vm94_vm2, %v6326_v1 }
  0x88   :  { %101 = vst.msk [vmem:[#allocation5 + $0x30] sm:$0x3f] %vm94_vm2, %v6326_v1 }
  0x89   :  { %102 = vst.msk [vmem:[#allocation5 + $0x38] sm:$0x3f] %vm94_vm2, %v6326_v1 }
  0x8a   :  { %103 = vst.msk [vmem:[#allocation5 + $0x40] sm:$0x3f] %vm94_vm2, %v6326_v1 }
  0x8b   :  { %104 = vst.msk [vmem:[#allocation5 + $0x48] sm:$0x3f] %vm94_vm2, %v6326_v1 }
  0x8c   :  { %105 = vst.msk [vmem:[#allocation5 + $0x50] sm:$0x3f] %vm94_vm2, %v6326_v1 }
  0x8d   :  { %106 = vst.msk [vmem:[#allocation5 + $0x58] sm:$0x3f] %vm94_vm2, %v6326_v1 }
  0x8e   :  { %116 = vst.msk [vmem:[#allocation9] sm:$0x3f] %vm94_vm2, %v6326_v1 }
  0x8f   :  { %117 = vst.msk [vmem:[#allocation9 + $0x8] sm:$0x3f] %vm94_vm2, %v6326_v1 }
  0x90   :  { %118 = vst.msk [vmem:[#allocation9 + $0x10] sm:$0x3f] %vm94_vm2, %v6326_v1 }
  0x91   :  { %119 = vst.msk [vmem:[#allocation9 + $0x18] sm:$0x3f] %vm94_vm2, %v6326_v1 }
  0x92   :  { %120 = vst.msk [vmem:[#allocation9 + $0x20] sm:$0x3f] %vm94_vm2, %v6326_v1 }
  0x93   :  { %121 = vst.msk [vmem:[#allocation9 + $0x28] sm:$0x3f] %vm94_vm2, %v6326_v1 }
  0x94   :  { %122 = vst.msk [vmem:[#allocation9 + $0x30] sm:$0x3f] %vm94_vm2, %v6326_v1 }
  0x95   :  { %123 = vst.msk [vmem:[#allocation9 + $0x38] sm:$0x3f] %vm94_vm2, %v6326_v1 }
  0x96   :  { %124 = vst.msk [vmem:[#allocation9 + $0x40] sm:$0x3f] %vm94_vm2, %v6326_v1 }
  0x97   :  { %125 = vst.msk [vmem:[#allocation9 + $0x48] sm:$0x3f] %vm94_vm2, %v6326_v1 }
  0x98   :  { %126 = vst.msk [vmem:[#allocation9 + $0x50] sm:$0x3f] %vm94_vm2, %v6326_v1 }
  0x99   :  { %127 = vst.msk [vmem:[#allocation9 + $0x58] sm:$0x3f] %vm94_vm2, %v6326_v1 }
  0x9a   :  { %108 = vst.msk [vmem:[#allocation7] sm:$0xf] %vm107_vm3, %v6326_v1 }
  0x9b   :  { %109 = vst.msk [vmem:[#allocation7 + $0x4] sm:$0xf] %vm107_vm3, %v6326_v1 }
  0x9c   :  { %110 = vst.msk [vmem:[#allocation7 + $0x8] sm:$0xf] %vm107_vm3, %v6326_v1 }
  0x9d   :  { %111 = vst.msk [vmem:[#allocation7 + $0xc] sm:$0xf] %vm107_vm3, %v6326_v1 }
  0x9e   :  { %112 = vst.msk [vmem:[#allocation7 + $0x10] sm:$0xf] %vm107_vm3, %v6326_v1 }
  0x9f   :  { %113 = vst.msk [vmem:[#allocation7 + $0x14] sm:$0xf] %vm107_vm3, %v6326_v1 }
  0xa0   :  { %114 = vst.msk [vmem:[#allocation7 + $0x18] sm:$0xf] %vm107_vm3, %v6326_v1 }
  0xa1   :  { %115 = vst.msk [vmem:[#allocation7 + $0x1c] sm:$0xf] %vm107_vm3, %v6326_v1 }
  0xa2   :  { %130 = vst.msk [vmem:[#allocation11 + $0x8] sm:$0xf] %vm107_vm3, %v6326_v1 }
  0xa3   :  { %132 = vst.msk [vmem:[#allocation11 + $0x18] sm:$0xf] %vm107_vm3, %v6326_v1 }
  0xa4   :  { %134 = vst.msk [vmem:[#allocation11 + $0x28] sm:$0xf] %vm107_vm3, %v6326_v1 }
  0xa5   :  { %136 = vst.msk [vmem:[#allocation11 + $0x38] sm:$0xf] %vm107_vm3, %v6326_v1 }
  0xa6   :  { %138 = vst.msk [vmem:[#allocation11 + $0x48] sm:$0xf] %vm107_vm3, %v6326_v1 }
  0xa7   :  { %140 = vst.msk [vmem:[#allocation11 + $0x58] sm:$0xf] %vm107_vm3, %v6326_v1 }
  0xa8   :  { %142 = vst.msk [vmem:[#allocation11 + $0x68] sm:$0xf] %vm107_vm3, %v6326_v1 }
  0xa9   :  { %144 = vst.msk [vmem:[#allocation11 + $0x78] sm:$0xf] %vm107_vm3, %v6326_v1 }
  0xaa   :  { %146 = vst.msk [vmem:[#allocation11 + $0x88] sm:$0xf] %vm107_vm3, %v6326_v1 }
  0xab   :  { %148 = vst.msk [vmem:[#allocation11 + $0x98] sm:$0xf] %vm107_vm3, %v6326_v1 }
  0xac   :  { %150 = vst.msk [vmem:[#allocation11 + $0xa8] sm:$0xf] %vm107_vm3, %v6326_v1 }
  0xad   :  { %152 = vst.msk [vmem:[#allocation11 + $0xb8] sm:$0xf] %vm107_vm3, %v6326_v1 }
  0xae   :  { %154 = vst.msk [vmem:[#allocation11 + $0xc8] sm:$0xf] %vm107_vm3, %v6326_v1 }
  0xaf   :  { %156 = vst.msk [vmem:[#allocation11 + $0xd8] sm:$0xf] %vm107_vm3, %v6326_v1 }
  0xb0   :  { %158 = vst.msk [vmem:[#allocation11 + $0xe8] sm:$0xf] %vm107_vm3, %v6326_v1 }
  0xb1   :  { %160 = vst.msk [vmem:[#allocation11 + $0xf8] sm:$0xf] %vm107_vm3, %v6326_v1 }
  0xb2   :  { %162 = vst.msk [vmem:[#allocation11 + $0x108] sm:$0xf] %vm107_vm3, %v6326_v1 }
  0xb3   :  { %164 = vst.msk [vmem:[#allocation11 + $0x118] sm:$0xf] %vm107_vm3, %v6326_v1 }
  0xb4   :  { %166 = vst.msk [vmem:[#allocation11 + $0x128] sm:$0xf] %vm107_vm3, %v6326_v1 }
  0xb5   :  { %168 = vst.msk [vmem:[#allocation11 + $0x138] sm:$0xf] %vm107_vm3, %v6326_v1 }
  0xb6   :  { %170 = vst.msk [vmem:[#allocation11 + $0x148] sm:$0xf] %vm107_vm3, %v6326_v1 }
  0xb7   :  { %172 = vst.msk [vmem:[#allocation11 + $0x158] sm:$0xf] %vm107_vm3, %v6326_v1 }
  0xb8   :  { %174 = vst.msk [vmem:[#allocation11 + $0x168] sm:$0xf] %vm107_vm3, %v6326_v1 }
  0xb9   :  { %176 = vst.msk [vmem:[#allocation11 + $0x178] sm:$0xf] %vm107_vm3, %v6326_v1 }
  0xba   :  { %129 = vst.msk [vmem:[#allocation11] sm:$0xff] %vm128_vm4, %v6326_v1 }
  0xbb   :  { %131 = vst.msk [vmem:[#allocation11 + $0x10] sm:$0xff] %vm128_vm4, %v6326_v1 }
  0xbc   :  { %133 = vst.msk [vmem:[#allocation11 + $0x20] sm:$0xff] %vm128_vm4, %v6326_v1 }
  0xbd   :  { %135 = vst.msk [vmem:[#allocation11 + $0x30] sm:$0xff] %vm128_vm4, %v6326_v1 }
  0xbe   :  { %137 = vst.msk [vmem:[#allocation11 + $0x40] sm:$0xff] %vm128_vm4, %v6326_v1 }
  0xbf   :  { %139 = vst.msk [vmem:[#allocation11 + $0x50] sm:$0xff] %vm128_vm4, %v6326_v1 }
  0xc0   :  { %141 = vst.msk [vmem:[#allocation11 + $0x60] sm:$0xff] %vm128_vm4, %v6326_v1 }
  0xc1   :  { %143 = vst.msk [vmem:[#allocation11 + $0x70] sm:$0xff] %vm128_vm4, %v6326_v1 }
  0xc2   :  { %145 = vst.msk [vmem:[#allocation11 + $0x80] sm:$0xff] %vm128_vm4, %v6326_v1 }
  0xc3   :  { %147 = vst.msk [vmem:[#allocation11 + $0x90] sm:$0xff] %vm128_vm4, %v6326_v1 }
  0xc4   :  { %149 = vst.msk [vmem:[#allocation11 + $0xa0] sm:$0xff] %vm128_vm4, %v6326_v1 }
  0xc5   :  { %151 = vst.msk [vmem:[#allocation11 + $0xb0] sm:$0xff] %vm128_vm4, %v6326_v1 }
  0xc6   :  { %153 = vst.msk [vmem:[#allocation11 + $0xc0] sm:$0xff] %vm128_vm4, %v6326_v1 }
  0xc7   :  { %155 = vst.msk [vmem:[#allocation11 + $0xd0] sm:$0xff] %vm128_vm4, %v6326_v1 }
  0xc8   :  { %157 = vst.msk [vmem:[#allocation11 + $0xe0] sm:$0xff] %vm128_vm4, %v6326_v1 }
  0xc9   :  { %159 = vst.msk [vmem:[#allocation11 + $0xf0] sm:$0xff] %vm128_vm4, %v6326_v1 }
  0xca   :  { %161 = vst.msk [vmem:[#allocation11 + $0x100] sm:$0xff] %vm128_vm4, %v6326_v1 }
  0xcb   :  { %163 = vst.msk [vmem:[#allocation11 + $0x110] sm:$0xff] %vm128_vm4, %v6326_v1 }
  0xcc   :  { %165 = vst.msk [vmem:[#allocation11 + $0x120] sm:$0xff] %vm128_vm4, %v6326_v1 }
  0xcd   :  { %167 = vst.msk [vmem:[#allocation11 + $0x130] sm:$0xff] %vm128_vm4, %v6326_v1 }
  0xce   :  { %169 = vst.msk [vmem:[#allocation11 + $0x140] sm:$0xff] %vm128_vm4, %v6326_v1 }
  0xcf   :  { %171 = vst.msk [vmem:[#allocation11 + $0x150] sm:$0xff] %vm128_vm4, %v6326_v1 }
  0xd0   :  { %173 = vst.msk [vmem:[#allocation11 + $0x160] sm:$0xff] %vm128_vm4, %v6326_v1 }
  0xd1   :  { %175 = vst.msk [vmem:[#allocation11 + $0x170] sm:$0xff] %vm128_vm4, %v6326_v1 }
  0xd2   :  { %180 = vst.msk [vmem:[#allocation13 + $0x10] sm:$0x3f] %vm179_vm5, %v6326_v1 }
  0xd3   :  { %183 = vst.msk [vmem:[#allocation13 + $0x28] sm:$0x3f] %vm179_vm5, %v6326_v1 }
  0xd4   :  { %186 = vst.msk [vmem:[#allocation13 + $0x40] sm:$0x3f] %vm179_vm5, %v6326_v1 }
  0xd5   :  { %189 = vst.msk [vmem:[#allocation13 + $0x58] sm:$0x3f] %vm179_vm5, %v6326_v1 }
  0xd6   :  { %192 = vst.msk [vmem:[#allocation13 + $0x70] sm:$0x3f] %vm179_vm5, %v6326_v1 }
  0xd7   :  { %195 = vst.msk [vmem:[#allocation13 + $0x88] sm:$0x3f] %vm179_vm5, %v6326_v1 }
  0xd8   :  { %198 = vst.msk [vmem:[#allocation13 + $0xa0] sm:$0x3f] %vm179_vm5, %v6326_v1 }
  0xd9   :  { %201 = vst.msk [vmem:[#allocation13 + $0xb8] sm:$0x3f] %vm179_vm5, %v6326_v1 }
  0xda   :  { %204 = vst.msk [vmem:[#allocation13 + $0xd0] sm:$0x3f] %vm179_vm5, %v6326_v1 }
  0xdb   :  { %207 = vst.msk [vmem:[#allocation13 + $0xe8] sm:$0x3f] %vm179_vm5, %v6326_v1 }
  0xdc   :  { %210 = vst.msk [vmem:[#allocation13 + $0x100] sm:$0x3f] %vm179_vm5, %v6326_v1 }
  0xdd   :  { %213 = vst.msk [vmem:[#allocation13 + $0x118] sm:$0x3f] %vm179_vm5, %v6326_v1 }
  0xde   :  { %216 = vst.msk [vmem:[#allocation13 + $0x130] sm:$0x3f] %vm179_vm5, %v6326_v1 }
  0xdf   :  { %219 = vst.msk [vmem:[#allocation13 + $0x148] sm:$0x3f] %vm179_vm5, %v6326_v1 }
  0xe0   :  { %222 = vst.msk [vmem:[#allocation13 + $0x160] sm:$0x3f] %vm179_vm5, %v6326_v1 }
  0xe1   :  { %225 = vst.msk [vmem:[#allocation13 + $0x178] sm:$0x3f] %vm179_vm5, %v6326_v1 }
  0xe2   :  { %228 = vst.msk [vmem:[#allocation13 + $0x190] sm:$0x3f] %vm179_vm5, %v6326_v1 }
  0xe3   :  { %231 = vst.msk [vmem:[#allocation13 + $0x1a8] sm:$0x3f] %vm179_vm5, %v6326_v1 }
  0xe4   :  { %234 = vst.msk [vmem:[#allocation13 + $0x1c0] sm:$0x3f] %vm179_vm5, %v6326_v1 }
  0xe5   :  { %237 = vst.msk [vmem:[#allocation13 + $0x1d8] sm:$0x3f] %vm179_vm5, %v6326_v1 }
  0xe6   :  { %240 = vst.msk [vmem:[#allocation13 + $0x1f0] sm:$0x3f] %vm179_vm5, %v6326_v1 }
  0xe7   :  { %243 = vst.msk [vmem:[#allocation13 + $0x208] sm:$0x3f] %vm179_vm5, %v6326_v1 }
  0xe8   :  { %246 = vst.msk [vmem:[#allocation13 + $0x220] sm:$0x3f] %vm179_vm5, %v6326_v1 }
  0xe9   :  { %249 = vst.msk [vmem:[#allocation13 + $0x238] sm:$0x3f] %vm179_vm5, %v6326_v1 }
  0xea   :  { %252 = vst.msk [vmem:[#allocation13 + $0x250] sm:$0x3f] %vm179_vm5, %v6326_v1 }
  0xeb   :  { %255 = vst.msk [vmem:[#allocation13 + $0x268] sm:$0x3f] %vm179_vm5, %v6326_v1 }
  0xec   :  { %258 = vst.msk [vmem:[#allocation13 + $0x280] sm:$0x3f] %vm179_vm5, %v6326_v1 }
  0xed   :  { %261 = vst.msk [vmem:[#allocation13 + $0x298] sm:$0x3f] %vm179_vm5, %v6326_v1 }
  0xee   :  { %264 = vst.msk [vmem:[#allocation13 + $0x2b0] sm:$0x3f] %vm179_vm5, %v6326_v1 }
  0xef   :  { %267 = vst.msk [vmem:[#allocation13 + $0x2c8] sm:$0x3f] %vm179_vm5, %v6326_v1 }
  0xf0   :  { %270 = vst.msk [vmem:[#allocation13 + $0x2e0] sm:$0x3f] %vm179_vm5, %v6326_v1 }
  0xf1   :  { %273 = vst.msk [vmem:[#allocation13 + $0x2f8] sm:$0x3f] %vm179_vm5, %v6326_v1 }
  0xf2   :  { %276 = vst.msk [vmem:[#allocation13 + $0x310] sm:$0x3f] %vm179_vm5, %v6326_v1 }
  0xf3   :  { %279 = vst.msk [vmem:[#allocation13 + $0x328] sm:$0x3f] %vm179_vm5, %v6326_v1 }
  0xf4   :  { %282 = vst.msk [vmem:[#allocation13 + $0x340] sm:$0x3f] %vm179_vm5, %v6326_v1 }
  0xf5   :  { %285 = vst.msk [vmem:[#allocation13 + $0x358] sm:$0x3f] %vm179_vm5, %v6326_v1 }
  0xf6   :  { %288 = vst.msk [vmem:[#allocation13 + $0x370] sm:$0x3f] %vm179_vm5, %v6326_v1 }
  0xf7   :  { %291 = vst.msk [vmem:[#allocation13 + $0x388] sm:$0x3f] %vm179_vm5, %v6326_v1 }
  0xf8   :  { %294 = vst.msk [vmem:[#allocation13 + $0x3a0] sm:$0x3f] %vm179_vm5, %v6326_v1 }
  0xf9   :  { %297 = vst.msk [vmem:[#allocation13 + $0x3b8] sm:$0x3f] %vm179_vm5, %v6326_v1 }
  0xfa   :  { %300 = vst.msk [vmem:[#allocation13 + $0x3d0] sm:$0x3f] %vm179_vm5, %v6326_v1 }
  0xfb   :  { %303 = vst.msk [vmem:[#allocation13 + $0x3e8] sm:$0x3f] %vm179_vm5, %v6326_v1 }
  0xfc   :  { %306 = vst.msk [vmem:[#allocation13 + $0x400] sm:$0x3f] %vm179_vm5, %v6326_v1 }
  0xfd   :  { %309 = vst.msk [vmem:[#allocation13 + $0x418] sm:$0x3f] %vm179_vm5, %v6326_v1 }
  0xfe LB: > { %v6327_v5 = vmov 0   ;;  %s319_s2 = smul.u32 24, %s6224_s1  ;;  %v6941_v18 = vperm.slane %v6607_v2, 1  ;;  %v6944_v19 = vperm.slane %v6607_v2, 3  ;;  %v6947_v20 = vperm.slane %v6607_v2, 2  ;;  %s5420_s28 = sshll.u32 %s6224_s1, 4  ;;  %s6224_s1 = sphi %s6931_s1, %s318_s1  }
  0xff   : > { %6089 = vset.pattern.permute.xlu1 %v6327_v5  ;;  %6088 = vset.pattern.permute.xlu0 %v6327_v5  ;;  %v6950_v21 = vperm.slane %v6607_v2, 4  ;;  %v6953_v22 = vperm.slane %v6607_v2, 5  ;;  %vm363_vm6 = vcmask 1046528   ;;  %v6959_v29 = vperm.slane %v6607_v2, 0  ;;  %s500_s29 = scalar_lea.vmem [#allocation2], %s5420_s28  ;;  %s318_s1 = sadd.s32 1, %s6224_s1  }
 0x100   : > { %6090 = vset.pattern.permute.xlu2 %v6327_v5  ;;  %s320_s27 = scalar_lea.vmem %s8221_s0, %s319_s2  ;;  %v6962_v30 = vperm.slane %v6607_v2, 7  ;;  %vm380_vm7 = vcmask 1045504   ;;  %p315_p0 = scmp.ge.s32.totalorder %s318_s1, 16  }
 0x101   : > { %v323_v6 = vld [vmem:[%s320_s27 + $0x10] sm:$0x3]  ;;  %v321_v7 = vld [vmem:[%s320_s27] sm:$0xff]  ;;  %v5414_v9 = vld [vmem:[%s320_s27 + $0x18] sm:$0xff]  ;;  %s7014_s30 = smov (%p315_p0), 0  }
 0x102   : > { %353 = vperm.xlu1 %6089, %v323_v6   ;;  %338 = vperm.xlu0 %6088, %v321_v7   ;;  %v5415_v8 = vld [vmem:[%s320_s27 + $0x20] sm:$0xff]  ;;  %v322_v10 = vld [vmem:[%s320_s27 + $0x8] sm:$0xff]  ;;  %v5418_v12 = vld [vmem:[%s320_s27 + $0x38] sm:$0xff]  ;;  %v6982_v6 = vperm.slane %v6612_v3, 0 }
 0x103   : > { %397 = vperm.xlu2 %6090, %v5415_v8   ;;  %v5416_v11 = vld [vmem:[%s320_s27 + $0x28] sm:$0x3]  ;;  %v5417_v13 = vld [vmem:[%s320_s27 + $0x30] sm:$0xff]  ;;  %v5419_v14 = vld [vmem:[%s320_s27 + $0x40] sm:$0x3] }
 0x10a   : > { %392 = vperm.xlu1 %6089, %v5414_v9   ;;  %343 = vperm.xlu0 %6088, %v322_v10  }
 0x10b   : > { %407 = vperm.xlu2 %6090, %v5416_v11  }
 0x112   : > { %449 = vperm.xlu1 %6089, %v5418_v12   ;;  %444 = vperm.xlu0 %6088, %v5417_v13   ;;  %v6988_v12 = vperm.slane %v6607_v2, 6 }
 0x113   : > { %459 = vperm.xlu2 %6090, %v5419_v14  }
 0x15d   : > { %v398_v15 = vpop.permute.xlu2 %397 }
 0x15e   : > { %v402_v31 = vmul.f32 %v6944_v19, %v398_v15  ;;  %v412_v35 = vmul.f32 %v6950_v21, %v398_v15  ;;  %v428_v36 = vmul.f32 %v6953_v22, %v398_v15 }
 0x160   : > { %v418_v51 = vrot.slane %v412_v35, 1  ;;  %v434_v55 = vrot.slane %v428_v36, 2 }
 0x165   : > { %v408_v23 = vpop.permute.xlu2 %407 }
 0x166   : > { %v413_v37 = vmul.f32 %v6950_v21, %v408_v23  ;;  %v429_v43 = vmul.f32 %v6953_v22, %v408_v23 }
 0x168   : > { %v420_v52 = vrot.slane %v413_v37, 1  ;;  %v436_v61 = vrot.slane %v429_v43, 2 }
 0x16a   : > { %v421_v10 = vsel %vm363_vm6, %v418_v51, %v420_v52  ;;  %v437_v23 = vsel %vm380_vm7, %v434_v55, %v436_v61 }
 0x16d   : > { %v460_v62 = vpop.permute.xlu2 %459 }
 0x16e   : > { %v465_v14 = vmul.f32 %v6962_v30, %v460_v62 }
 0x170   : > { %v472_v36 = vrot.slane %v465_v14, 1 }
 0x174   : > { %v354_v16 = vpop.permute.xlu1 %353  ;;  %v339_v17 = vpop.permute.xlu0 %338 }
 0x175   : > { %v359_v24 = vmul.f32 %v6941_v18, %v354_v16  ;;  %v357_v25 = vmul.f32 %v6941_v18, %v339_v17  ;;  %v376_v28 = vmul.f32 %v6947_v20, %v354_v16  ;;  %v374_v32 = vmul.f32 %v6947_v20, %v339_v17 }
 0x176   : > { %v347_v45 = vmul.f32 %v6959_v29, %v339_v17 }
 0x177   : > { %v367_v38 = vrot.slane %v359_v24, 1  ;;  %v364_v39 = vrot.slane %v357_v25, 1  ;;  %v384_v44 = vrot.slane %v376_v28, 2  ;;  %v381_v47 = vrot.slane %v374_v32, 2 }
 0x17c   : > { %v393_v26 = vpop.permute.xlu1 %392  ;;  %v344_v27 = vpop.permute.xlu0 %343 }
 0x17d   : > { %v358_v33 = vmul.f32 %v6941_v18, %v344_v27  ;;  %v375_v34 = vmul.f32 %v6947_v20, %v344_v27  ;;  %v411_v40 = vmul.f32 %v6950_v21, %v393_v26  ;;  %v348_v46 = vmul.f32 %v6959_v29, %v344_v27 }
 0x17e   : > { %v427_v48 = vmul.f32 %v6953_v22, %v393_v26  ;;  %v401_v63 = vmul.f32 %v6944_v19, %v393_v26  ;;  %v481_v26 = vmul.f32 %v6982_v6, %v460_v62 }
 0x17f   : > { %v365_v41 = vrot.slane %v358_v33, 1  ;;  %v382_v42 = vrot.slane %v375_v34, 2  ;;  %v417_v56 = vrot.slane %v411_v40, 1 }
 0x180   : > { %v433_v7 = vrot.slane %v427_v48, 2 }
 0x181   : > { %v366_v49 = vsel %vm363_vm6, %v364_v39, %v365_v41  ;;  %v368_v50 = vsel %vm363_vm6, %v365_v41, %v367_v38  ;;  %v383_v57 = vsel %vm380_vm7, %v381_v47, %v382_v42  ;;  %v385_v58 = vsel %vm380_vm7, %v382_v42, %v384_v44 }
 0x182   : > { %v371_v53 = vadd.f32 %v366_v49, %v347_v45  ;;  %v372_v54 = vadd.f32 %v368_v50, %v348_v46  ;;  %v419_v15 = vsel %vm363_vm6, %v417_v56, %v418_v51  ;;  %v435_v28 = vsel %vm380_vm7, %v433_v7, %v434_v55 }
 0x183   : > { %v488_v41 = vrot.slane %v481_v26, 2  ;;  %v7002_v44 = vperm.slane %v6617_v4, 0 }
 0x184   : > { %v450_v59 = vpop.permute.xlu1 %449  ;;  %v445_v60 = vpop.permute.xlu0 %444  ;;  %v388_v0 = vadd.f32 %v383_v57, %v371_v53  ;;  %v389_v5 = vadd.f32 %v385_v58, %v372_v54 }
 0x185   : > { %v464_v8 = vmul.f32 %v6962_v30, %v450_v59  ;;  %v463_v9 = vmul.f32 %v6962_v30, %v445_v60  ;;  %v480_v16 = vmul.f32 %v6982_v6, %v450_v59  ;;  %v479_v17 = vmul.f32 %v6982_v6, %v445_v60 }
 0x186   : > { %v404_v11 = vadd.f32 %v402_v31, %v389_v5  ;;  %v403_v13 = vadd.f32 %v401_v63, %v388_v0  ;;  %v454_v33 = vmul.f32 %v6988_v12, %v450_v59  ;;  %v453_v35 = vmul.f32 %v6988_v12, %v445_v60 }
 0x187   : > { %v470_v27 = vrot.slane %v464_v8, 1  ;;  %v469_v31 = vrot.slane %v463_v9, 1  ;;  %v486_v37 = vrot.slane %v480_v16, 2  ;;  %v485_v38 = vrot.slane %v479_v17, 2 }
 0x188   : > { %v425_v24 = vadd.f32 %v421_v10, %v404_v11  ;;  %v424_v25 = vadd.f32 %v419_v15, %v403_v13 }
 0x189   : > { %v473_v42 = vsel %vm363_vm6, %v470_v27, %v472_v36  ;;  %v471_v43 = vsel %vm363_vm6, %v469_v31, %v470_v27  ;;  %v489_v47 = vsel %vm380_vm7, %v486_v37, %v488_v41  ;;  %v487_v48 = vsel %vm380_vm7, %v485_v38, %v486_v37 }
 0x18a   : > { %v441_v32 = vadd.f32 %v437_v23, %v425_v24  ;;  %v440_v34 = vadd.f32 %v435_v28, %v424_v25 }
 0x18c   : > { %v456_v39 = vadd.f32 %v454_v33, %v441_v32  ;;  %v455_v40 = vadd.f32 %v453_v35, %v440_v34 }
 0x18e   : > { %v477_v45 = vadd.f32 %v473_v42, %v456_v39  ;;  %v476_v46 = vadd.f32 %v471_v43, %v455_v40 }
 0x190   : > { %v493_v49 = vadd.f32 %v489_v47, %v477_v45  ;;  %v492_v50 = vadd.f32 %v487_v48, %v476_v46 }
 0x191   :  { %317 = sbr.rel (!%p315_p0) target bundleno = 254 (0xfe), region = 354 }
 0x192   : > { %v498_v51 = vadd.f32 %v7002_v44, %v493_v49  ;;  %v497_v52 = vadd.f32 %v7002_v44, %v492_v50 }
 0x194   : > { %502 = vst.msk [vmem:[%s500_s29 + $0x8] sm:$0xff] %vm52_vm0, %v498_v51 }
 0x195   : > { %501 = vst.msk [vmem:[%s500_s29] sm:$0xff] %vm52_vm0, %v497_v52 }
 0x196 LB: > { %v6328_v53 = vmov 0   ;;  %s5017_s16 = smul.u32 24, %s6228_s30  ;;  %s5430_s14 = sshll.u32 %s6228_s30, 4  ;;  %s6228_s30 = sphi %s7014_s30, %s508_s30  }
 0x197   : > { %6092 = vset.pattern.permute.xlu1 %v6328_v53  ;;  %6091 = vset.pattern.permute.xlu0 %v6328_v53  ;;  %s5027_s20 = scalar_lea.vmem [#allocation2], %s5430_s14  ;;  %s508_s30 = sadd.s32 1, %s6228_s30  }
 0x198   : > { %6093 = vset.pattern.permute.xlu2 %v6328_v53  ;;  %s5018_s19 = scalar_lea.vmem %s8221_s0, %s5017_s16  ;;  %p505_p1 = scmp.ge.s32.totalorder %s508_s30, 16  }
 0x199   : > { %v5423_v54 = vld [vmem:[%s5018_s19 + $0x1c0] sm:$0x3]  ;;  %v5421_v55 = vld [vmem:[%s5018_s19 + $0x1b0] sm:$0xff]  ;;  %v5424_v3 = vld [vmem:[%s5018_s19 + $0x1c8] sm:$0xff]  ;;  %s7076_s21 = smov (%p505_p1), 0  }
 0x19a   : > { %544 = vperm.xlu1 %6092, %v5423_v54   ;;  %529 = vperm.xlu0 %6091, %v5421_v55   ;;  %v5425_v2 = vld [vmem:[%s5018_s19 + $0x1d0] sm:$0xff]  ;;  %v5422_v4 = vld [vmem:[%s5018_s19 + $0x1b8] sm:$0xff]  ;;  %v5428_v57 = vld [vmem:[%s5018_s19 + $0x1e8] sm:$0xff] }
 0x19b   : > { %588 = vperm.xlu2 %6093, %v5425_v2   ;;  %v5426_v56 = vld [vmem:[%s5018_s19 + $0x1d8] sm:$0x3]  ;;  %v5427_v58 = vld [vmem:[%s5018_s19 + $0x1e0] sm:$0xff]  ;;  %v5429_v59 = vld [vmem:[%s5018_s19 + $0x1f0] sm:$0x3] }
 0x1a2   : > { %583 = vperm.xlu1 %6092, %v5424_v3   ;;  %534 = vperm.xlu0 %6091, %v5422_v4  }
 0x1a3   : > { %598 = vperm.xlu2 %6093, %v5426_v56  }
 0x1aa   : > { %640 = vperm.xlu1 %6092, %v5428_v57   ;;  %635 = vperm.xlu0 %6091, %v5427_v58  }
 0x1ab   : > { %650 = vperm.xlu2 %6093, %v5429_v59  }
 0x1f5   : > { %v589_v60 = vpop.permute.xlu2 %588 }
 0x1f6   : > { %v593_v10 = vmul.f32 %v589_v60, %v6944_v19  ;;  %v603_v15 = vmul.f32 %v589_v60, %v6950_v21  ;;  %v619_v16 = vmul.f32 %v589_v60, %v6953_v22 }
 0x1f8   : > { %v609_v38 = vrot.slane %v603_v15, 1  ;;  %v625_v42 = vrot.slane %v619_v16, 2 }
 0x1fd   : > { %v599_v63 = vpop.permute.xlu2 %598 }
 0x1fe   : > { %v604_v17 = vmul.f32 %v599_v63, %v6950_v21  ;;  %v620_v28 = vmul.f32 %v599_v63, %v6953_v22 }
 0x200   : > { %v611_v39 = vrot.slane %v604_v17, 1  ;;  %v627_v49 = vrot.slane %v620_v28, 2 }
 0x202   : > { %v612_v3 = vsel %vm363_vm6, %v609_v38, %v611_v39 }
 0x205   : > { %v651_v50 = vpop.permute.xlu2 %650 }
 0x206   : > { %v656_v57 = vmul.f32 %v651_v50, %v6962_v30 }
 0x20c   : > { %v545_v61 = vpop.permute.xlu1 %544  ;;  %v530_v62 = vpop.permute.xlu0 %529 }
 0x20d   : > { %v550_v0 = vmul.f32 %v545_v61, %v6941_v18  ;;  %v548_v5 = vmul.f32 %v530_v62, %v6941_v18  ;;  %v567_v9 = vmul.f32 %v545_v61, %v6947_v20  ;;  %v565_v11 = vmul.f32 %v530_v62, %v6947_v20 }
 0x20e   : > { %v538_v32 = vmul.f32 %v530_v62, %v6959_v29  ;;  %v628_v61 = vsel %vm380_vm7, %v625_v42, %v627_v49 }
 0x20f   : > { %v558_v23 = vrot.slane %v550_v0, 1  ;;  %v555_v24 = vrot.slane %v548_v5, 1  ;;  %v575_v31 = vrot.slane %v567_v9, 2  ;;  %v572_v34 = vrot.slane %v565_v11, 2 }
 0x210   : > { %v672_v0 = vmul.f32 %v651_v50, %v6982_v6 }
 0x214   : > { %v584_v7 = vpop.permute.xlu1 %583  ;;  %v535_v8 = vpop.permute.xlu0 %534 }
 0x215   : > { %v549_v13 = vmul.f32 %v535_v8, %v6941_v18  ;;  %v566_v14 = vmul.f32 %v535_v8, %v6947_v20  ;;  %v602_v25 = vmul.f32 %v584_v7, %v6950_v21  ;;  %v539_v33 = vmul.f32 %v535_v8, %v6959_v29 }
 0x216   : > { %v618_v35 = vmul.f32 %v584_v7, %v6953_v22  ;;  %v592_v51 = vmul.f32 %v584_v7, %v6944_v19 }
 0x217   : > { %v556_v26 = vrot.slane %v549_v13, 1  ;;  %v573_v27 = vrot.slane %v566_v14, 2  ;;  %v608_v43 = vrot.slane %v602_v25, 1  ;;  %v663_v14 = vrot.slane %v656_v57, 1 }
 0x218   : > { %v624_v54 = vrot.slane %v618_v35, 2 }
 0x219   : > { %v557_v36 = vsel %vm363_vm6, %v555_v24, %v556_v26  ;;  %v559_v37 = vsel %vm363_vm6, %v556_v26, %v558_v23  ;;  %v574_v45 = vsel %vm380_vm7, %v572_v34, %v573_v27  ;;  %v576_v46 = vsel %vm380_vm7, %v573_v27, %v575_v31 }
 0x21a   : > { %v562_v40 = vadd.f32 %v557_v36, %v538_v32  ;;  %v563_v41 = vadd.f32 %v559_v37, %v539_v33  ;;  %v610_v58 = vsel %vm363_vm6, %v608_v43, %v609_v38  ;;  %v626_v5 = vsel %vm380_vm7, %v624_v54, %v625_v42 }
 0x21b   : > { %v679_v24 = vrot.slane %v672_v0, 2  ;;  %v695_v37 = vlaneseq (%p505_p1) }
 0x21c   : > { %v641_v47 = vpop.permute.xlu1 %640  ;;  %v636_v48 = vpop.permute.xlu0 %635  ;;  %v579_v52 = vadd.f32 %v574_v45, %v562_v40  ;;  %v580_v53 = vadd.f32 %v576_v46, %v563_v41 }
 0x21d   : > { %v655_v55 = vmul.f32 %v641_v47, %v6962_v30  ;;  %v654_v2 = vmul.f32 %v636_v48, %v6962_v30  ;;  %v671_v59 = vmul.f32 %v641_v47, %v6982_v6  ;;  %v670_v60 = vmul.f32 %v636_v48, %v6982_v6 }
 0x21e   : > { %v594_v4 = vadd.f32 %v592_v51, %v579_v52  ;;  %v595_v56 = vadd.f32 %v593_v10, %v580_v53  ;;  %v645_v10 = vmul.f32 %v641_v47, %v6988_v12  ;;  %v644_v13 = vmul.f32 %v636_v48, %v6988_v12 }
 0x21f   : > { %v661_v7 = vrot.slane %v655_v55, 1  ;;  %v660_v8 = vrot.slane %v654_v2, 1  ;;  %v677_v15 = vrot.slane %v671_v59, 2  ;;  %v676_v16 = vrot.slane %v670_v60, 2 }
 0x220   : > { %v616_v62 = vadd.f32 %v612_v3, %v595_v56  ;;  %v615_v63 = vadd.f32 %v610_v58, %v594_v4  ;;  %v7067_v38 = vshrl.u32 (%p505_p1), %v695_v37, 7  ;;  %v7069_v39 = vand.u32 (%p505_p1), 127, %v695_v37 }
 0x221   : > { %v664_v25 = vsel %vm363_vm6, %v661_v7, %v663_v14  ;;  %v662_v26 = vsel %vm363_vm6, %v660_v8, %v661_v7  ;;  %v680_v31 = vsel %vm380_vm7, %v677_v15, %v679_v24  ;;  %v678_v32 = vsel %vm380_vm7, %v676_v16, %v677_v15 }
 0x222   : > { %v632_v9 = vadd.f32 %v628_v61, %v616_v62  ;;  %v631_v11 = vadd.f32 %v626_v5, %v615_v63  ;;  %v699_v40 = vmul.u32 (%p505_p1), 2, %v7067_v38 }
 0x224   : > { %v647_v17 = vadd.f32 %v645_v10, %v632_v9  ;;  %v646_v23 = vadd.f32 %v644_v13, %v631_v11  ;;  %vm700_vm8 = vcmp.eq.s32.totalorder (%p505_p1), %v7069_v39, %v699_v40 }
 0x225   :  { %v7074_v41 = vsel (%p505_p1), %vm700_vm8, 1.0, %v6326_v1 }
 0x226   : > { %v668_v27 = vadd.f32 %v664_v25, %v647_v17  ;;  %v667_v28 = vadd.f32 %v662_v26, %v646_v23 }
 0x228   : > { %v684_v33 = vadd.f32 %v680_v31, %v668_v27  ;;  %v683_v34 = vadd.f32 %v678_v32, %v667_v28 }
 0x229   :  { %507 = sbr.rel (!%p505_p1) target bundleno = 406 (0x196), region = 365 }
 0x22a   : > { %v689_v35 = vadd.f32 %v684_v33, %v7002_v44  ;;  %v688_v36 = vadd.f32 %v683_v34, %v7002_v44 }
 0x22c   : > { %5432 = vst.msk [vmem:[%s5027_s20 + $0x108] sm:$0xff] %vm52_vm0, %v689_v35 }
 0x22d   : > { %5431 = vst.msk [vmem:[%s5027_s20 + $0x100] sm:$0xff] %vm52_vm0, %v688_v36 }
 0x22e LB: > { %s5839_s0 = sshll.u32 %s6232_s21, 5  ;;  %vm731_vm9 = vcmask 121856   ;;  %s5442_s23 = sshll.u32 %s6232_s21, 4  ;;  %vm761_vm10 = vcmask 1040384   ;;  %s6232_s21 = sphi %s7076_s21, %s708_s21  }
 0x22f   : > { %s711_s22 = scalar_lea.vmem [#allocation2], %s5839_s0  ;;  %s5036_s24 = scalar_lea.vmem [#allocation3], %s5442_s23 }
 0x230   : > { %s708_s21 = sadd.s32 1, %s6232_s21  }
 0x231   : > { %p705_p2 = scmp.ge.s32.totalorder %s708_s21, 8  }
 0x232   :  { %s7094_s1 = smov (%p705_p2), 0  }
 0x234   : > { %v713_v18 = vld [vmem:[%s711_s22 + $0x8] sm:$0xff]  ;;  %v5439_v19 = vld [vmem:[%s711_s22 + $0x18] sm:$0xff]  ;;  %v712_v20 = vld [vmem:[%s711_s22] sm:$0xff] }
 0x235   : > { %v720_v21 = vmax.f32 %v713_v18, %v5439_v19  ;;  %v5438_v22 = vld [vmem:[%s711_s22 + $0x10] sm:$0xff] }
 0x236   : > { %v719_v29 = vmax.f32 %v712_v20, %v5438_v22 }
 0x237   : > { %v725_v30 = vrot.slane %v720_v21, 1 }
 0x238   : > { %v724_v6 = vrot.slane %v719_v29, 1 }
 0x239   : > { %v730_v12 = vmax.f32 %v720_v21, %v725_v30 }
 0x23a   : > { %v726_v44 = vsel %vm363_vm6, %v724_v6, %v725_v30 }
 0x23b   : > { %5440 = vmatpush.msk.msra.mxu0 %vm363_vm6, %v730_v12  ;;  %v729_v42 = vmax.f32 %v719_v29, %v726_v44 }
 0x23d   : > { %753 = vmatpush.msra.mxu0 %v729_v42 }
 0x23e   : > { %5441 = vmatmul.msk.f32.vlgmr.msra.gmra.mxu0 %vm731_vm9, %v7074_v41 }
 0x2bb   : > { %v755_v43 = vpop.f32.mrf.mxu0 }
 0x2bc   : > { %v759_v45 = vrot.slane %v755_v43, 7  ;;  %707 = sbr.rel (!%p705_p2) target bundleno = 558 (0x22e), region = 376 }
 0x2be   : > { %v762_v46 = vsel %vm761_vm10, 0.0, %v759_v45  ;;  %v763_v47 = vsel %vm761_vm10, %v759_v45, 0.0 }
 0x2bf   : > { %5443 = vst.msk [vmem:[%s5036_s24 + $0x10] sm:$0xff] %vm52_vm0, %v762_v46 }
 0x2c0   : > { %5444 = vst.msk [vmem:[%s5036_s24 + $0x18] sm:$0x3] %vm54_vm1, %v763_v47 }
 0x2c1 LB: > { %s5841_s2 = sshll.u32 %s6236_s1, 5  ;;  %s5455_s26 = sshll.u32 %s6236_s1, 4  ;;  %s6236_s1 = sphi %s7094_s1, %s774_s1  }
 0x2c2   : > { %s5040_s25 = scalar_lea.vmem [#allocation2], %s5841_s2  ;;  %s5047_s27 = scalar_lea.vmem [#allocation3], %s5455_s26 }
 0x2c3   : > { %v5448_v48 = vld [vmem:[%s5040_s25 + $0x108] sm:$0xff]  ;;  %v5452_v49 = vld [vmem:[%s5040_s25 + $0x118] sm:$0xff]  ;;  %v5447_v50 = vld [vmem:[%s5040_s25 + $0x100] sm:$0xff]  ;;  %s774_s1 = sadd.s32 1, %s6236_s1  }
 0x2c4   : > { %v787_v51 = vmax.f32 %v5448_v48, %v5452_v49  ;;  %v5451_v52 = vld [vmem:[%s5040_s25 + $0x110] sm:$0xff]  ;;  %p771_p3 = scmp.ge.s32.totalorder %s774_s1, 8  }
 0x2c5   : > { %v786_v53 = vmax.f32 %v5447_v50, %v5451_v52  ;;  %v7110_v60 = vld [vmem:[%s8222_s3] sm:$0xff] (%p771_p3)  ;;  %v7115_v61 = vld [vmem:[%s8222_s3 + $0x8] sm:$0xff] (%p771_p3)  ;;  %v7120_v62 = vld [vmem:[%s8222_s3 + $0x10] sm:$0xff] (%p771_p3)  ;;  %s7202_s28 = smov (%p771_p3), 0  }
 0x2c6   : > { %v792_v54 = vrot.slane %v787_v51, 1  ;;  %v7125_v63 = vld [vmem:[%s8222_s3 + $0x18] sm:$0xff] (%p771_p3)  ;;  %v7130_v0 = vld [vmem:[%s8222_s3 + $0x20] sm:$0xff] (%p771_p3)  ;;  %v7135_v5 = vld [vmem:[%s8222_s3 + $0x28] sm:$0xff] (%p771_p3) }
 0x2c7   : > { %v791_v55 = vrot.slane %v786_v53, 1  ;;  %v7140_v7 = vld [vmem:[%s8222_s3 + $0x30] sm:$0xff] (%p771_p3)  ;;  %v7145_v8 = vld [vmem:[%s8222_s3 + $0x38] sm:$0xff] (%p771_p3)  ;;  %v7150_v9 = vld [vmem:[%s8222_s3 + $0x40] sm:$0xff] (%p771_p3) }
 0x2c8   : > { %v797_v2 = vmax.f32 %v787_v51, %v792_v54  ;;  %v7155_v10 = vld [vmem:[%s8222_s3 + $0x48] sm:$0xff] (%p771_p3)  ;;  %v7160_v11 = vld [vmem:[%s8222_s3 + $0x50] sm:$0xff] (%p771_p3)  ;;  %v7165_v13 = vld [vmem:[%s8222_s3 + $0x58] sm:$0xff] (%p771_p3) }
 0x2c9   : > { %v793_v3 = vsel %vm363_vm6, %v791_v55, %v792_v54  ;;  %v7170_v14 = vld [vmem:[%s8222_s3 + $0x60] sm:$0xff] (%p771_p3)  ;;  %v7175_v15 = vld [vmem:[%s8222_s3 + $0x68] sm:$0xff] (%p771_p3)  ;;  %v7180_v16 = vld [vmem:[%s8222_s3 + $0x70] sm:$0xff] (%p771_p3) }
 0x2ca   : > { %5453 = vmatpush.msk.msra.mxu0 %vm363_vm6, %v797_v2  ;;  %v796_v4 = vmax.f32 %v786_v53, %v793_v3  ;;  %v7185_v17 = vld [vmem:[%s8222_s3 + $0x78] sm:$0xff] (%p771_p3)  ;;  %v7190_v23 = vld [vmem:[%s8222_s3 + $0x80] sm:$0xff] (%p771_p3)  ;;  %v7195_v24 = vld [vmem:[%s8222_s3 + $0x88] sm:$0xff] (%p771_p3) }
 0x2cb   :  { %v7200_v25 = vld [vmem:[%s8223_s4] sm:$0x1] (%p771_p3) }
 0x2cc   : > { %820 = vmatpush.msra.mxu0 %v796_v4 }
 0x2cd   : > { %5454 = vmatmul.msk.f32.vlgmr.msra.gmra.mxu0 %vm731_vm9, %v7074_v41 }
 0x34a   : > { %v822_v56 = vpop.f32.mrf.mxu0 }
 0x34b   : > { %v826_v57 = vrot.slane %v822_v56, 7  ;;  %773 = sbr.rel (!%p771_p3) target bundleno = 705 (0x2c1), region = 387 }
 0x34d   : > { %v829_v58 = vsel %vm761_vm10, 0.0, %v826_v57  ;;  %v830_v59 = vsel %vm761_vm10, %v826_v57, 0.0 }
 0x34e   : > { %5456 = vst.msk [vmem:[%s5047_s27 + $0xb0] sm:$0xff] %vm52_vm0, %v829_v58 }
 0x34f   : > { %5457 = vst.msk [vmem:[%s5047_s27 + $0xb8] sm:$0x3] %vm54_vm1, %v830_v59 }
 0x350 LB: > { %945 = vmatpush.msra.mxu2 %v7135_v5  ;;  %897 = vmatpush.msra.mxu0 %v7125_v63  ;;  %s5458_s3 = sshll.u32 %s6240_s28, 4  ;;  %v1107_v59 = vperm.slane %v7200_v25, 0  ;;  %s5474_s29 = sshll.u32 %s6240_s28, 3  ;;  %s6240_s28 = sphi %s7202_s28, %s860_s28  }
 0x351   : > { %919 = vmatpush.msra.mxu1 %v7115_v61  ;;  %969 = vmatpush.msra.mxu3 %v7145_v8  ;;  %s862_s4 = scalar_lea.vmem [#allocation3], %s5458_s3  ;;  %s1111_s30 = scalar_lea.vmem [#allocation4], %s5474_s29 }
 0x352   : > { %946 = vmatpush.msra.mxu2 %v7130_v0  ;;  %898 = vmatpush.msra.mxu0 %v7120_v62  ;;  %s860_s28 = sadd.s32 1, %s6240_s28  }
 0x353   : > { %920 = vmatpush.msra.mxu1 %v7110_v60  ;;  %970 = vmatpush.msra.mxu3 %v7140_v7  ;;  %p857_p4 = scmp.ge.s32.totalorder %s860_s28, 8  }
 0x354   : > { %1046 = vmatpush.msrb.mxu2 %v7175_v15  ;;  %996 = vmatpush.msrb.mxu0 %v7155_v10  ;;  %s7249_s16 = smov (%p857_p4), 0  }
 0x355   : > { %1073 = vmatpush.msrb.mxu3 %v7185_v17  ;;  %1022 = vmatpush.msrb.mxu1 %v7165_v13 }
 0x356   : > { %v863_v26 = vld [vmem:[%s862_s4] sm:$0xff]  ;;  %v864_v27 = vld [vmem:[%s862_s4 + $0x8] sm:$0x3]  ;;  %v5460_v28 = vld [vmem:[%s862_s4 + $0x10] sm:$0xff]  ;;  %1047 = vmatpush.msrb.mxu2 %v7170_v14  ;;  %997 = vmatpush.msrb.mxu0 %v7150_v9 }
 0x357   : > { %v926_v31 = vrot.slane %v863_v26, 2  ;;  %v927_v32 = vrot.slane %v864_v27, 2  ;;  %v878_v33 = vrot.slane %v863_v26, 1  ;;  %v879_v34 = vrot.slane %v864_v27, 1  ;;  %5466 = vmatmul.msk.f32.vlgmr.msra.gmra.mxu1 %vm52_vm0, %v863_v26  ;;  %5468 = vmatmul.msk.f32.vlgmr.msra.gmra.mxu3 %vm52_vm0, %v5460_v28  ;;  %v5463_v35 = vld [vmem:[%s862_s4 + $0x20] sm:$0xff] }
 0x358   : > { %v5461_v36 = vld [vmem:[%s862_s4 + $0x18] sm:$0x3]  ;;  %v5464_v37 = vld [vmem:[%s862_s4 + $0x28] sm:$0x3]  ;;  %v1054_v19 = vrot.slane %v5463_v35, 1  ;;  %v1003_v21 = vrot.slane %v5460_v28, 2  ;;  %1074 = vmatpush.msrb.mxu3 %v7180_v16  ;;  %1023 = vmatpush.msrb.mxu1 %v7160_v11 }
 0x359   : > { %v928_v40 = vsel %vm380_vm7, %v926_v31, %v927_v32  ;;  %v880_v18 = vsel %vm363_vm6, %v878_v33, %v879_v34  ;;  %v1055_v20 = vrot.slane %v5464_v37, 1  ;;  %v1004_v22 = vrot.slane %v5461_v36, 2 }
 0x35a   : > { %5467 = vmatmul.msk.f32.vlgmr.msra.gmra.mxu2 %vm52_vm0, %v928_v40  ;;  %5465 = vmatmul.msk.f32.vlgmr.msra.gmra.mxu0 %vm52_vm0, %v880_v18  ;;  %v977_v29 = vrot.slane %v5460_v28, 1  ;;  %v978_v30 = vrot.slane %v5461_v36, 1  ;;  %v1080_v42 = vrot.slane %v5463_v35, 2  ;;  %v1081_v43 = vrot.slane %v5464_v37, 2 }
 0x35b   : > { %v1056_v6 = vsel %vm363_vm6, %v1054_v19, %v1055_v20  ;;  %1099 = vmatpush.msra.mxu0 %v7195_v24  ;;  %v1005_v12 = vsel %vm380_vm7, %v1003_v21, %v1004_v22 }
 0x35c   : > { %v979_v44 = vsel %vm363_vm6, %v977_v29, %v978_v30  ;;  %v1082_v45 = vsel %vm380_vm7, %v1080_v42, %v1081_v43 }
 0x35d   : > { %1100 = vmatpush.msra.mxu0 %v7190_v23 }
 0x35f   : > { %5472 = vmatmul.msk.f32.vlgmr.msrb.gmra.mxu3 %vm52_vm0, %v1056_v6  ;;  %5470 = vmatmul.msk.f32.vlgmr.msrb.gmra.mxu1 %vm52_vm0, %v1005_v12 }
 0x362   : > { %5471 = vmatmul.msk.f32.vlgmr.msrb.gmra.mxu2 %vm52_vm0, %v5463_v35  ;;  %5469 = vmatmul.msk.f32.vlgmr.msrb.gmra.mxu0 %vm52_vm0, %v979_v44 }
 0x36a   : > { %5473 = vmatmul.msk.f32.vlgmr.msra.gmra.mxu0 %vm52_vm0, %v1082_v45 }
 0x3d4   : > { %v922_v47 = vpop.f32.mrf.mxu1 }
 0x3d7   : > { %v900_v46 = vpop.f32.mrf.mxu0 }
 0x3d8   : > { %v923_v49 = vadd.f32 %v922_v47, %v900_v46 }
 0x3da   : > { %v972_v48 = vpop.f32.mrf.mxu3 }
 0x3dc   : > { %v1025_v54 = vpop.f32.mrf.mxu1 }
 0x3dd   : > { %v948_v50 = vpop.f32.mrf.mxu2 }
 0x3de   : > { %v951_v51 = vadd.f32 %v948_v50, %v923_v49 }
 0x3df   : > { %v999_v52 = vpop.f32.mrf.mxu0 }
 0x3e0   : > { %v975_v53 = vadd.f32 %v972_v48, %v951_v51 }
 0x3e2   : > { %v1002_v55 = vadd.f32 %v999_v52, %v975_v53  ;;  %v1076_v4 = vpop.f32.mrf.mxu3 }
 0x3e4   : > { %v1028_v2 = vadd.f32 %v1025_v54, %v1002_v55 }
 0x3e5   : > { %v1049_v3 = vpop.f32.mrf.mxu2 }
 0x3e6   : > { %v1052_v56 = vadd.f32 %v1049_v3, %v1028_v2 }
 0x3e7   : > { %v1102_v57 = vpop.f32.mrf.mxu0 }
 0x3e8   : > { %v1079_v58 = vadd.f32 %v1076_v4, %v1052_v56 }
 0x3ea   : > { %v1105_v26 = vadd.f32 %v1102_v57, %v1079_v58  ;;  %859 = sbr.rel (!%p857_p4) target bundleno = 848 (0x350), region = 398 }
 0x3ec   : > { %v1109_v27 = vadd.f32 %v1107_v59, %v1105_v26 }
 0x3ee   : > { %1112 = vst.msk [vmem:[%s1111_s30] sm:$0xff] %vm128_vm4, %v1109_v27 }
 0x3ef LB: > { %1204 = vmatpush.msra.mxu2 %v7135_v5  ;;  %1156 = vmatpush.msra.mxu0 %v7125_v63  ;;  %s5475_s17 = sshll.u32 %s6244_s16, 4  ;;  %s5493_s19 = sshll.u32 %s6244_s16, 3  ;;  %s6244_s16 = sphi %s7249_s16, %s1118_s16  }
 0x3f0   : > { %1178 = vmatpush.msra.mxu1 %v7115_v61  ;;  %1228 = vmatpush.msra.mxu3 %v7145_v8  ;;  %s5060_s18 = scalar_lea.vmem [#allocation3], %s5475_s17  ;;  %s5069_s14 = scalar_lea.vmem [#allocation4], %s5493_s19 }
 0x3f1   : > { %1205 = vmatpush.msra.mxu2 %v7130_v0  ;;  %1157 = vmatpush.msra.mxu0 %v7120_v62  ;;  %v5476_v28 = vld [vmem:[%s5060_s18 + $0xa0] sm:$0xff]  ;;  %v5477_v31 = vld [vmem:[%s5060_s18 + $0xa8] sm:$0x3]  ;;  %v5479_v32 = vld [vmem:[%s5060_s18 + $0xb0] sm:$0xff]  ;;  %s1118_s16 = sadd.s32 1, %s6244_s16  }
 0x3f2   : > { %1179 = vmatpush.msra.mxu1 %v7110_v60  ;;  %1229 = vmatpush.msra.mxu3 %v7140_v7  ;;  %v1185_v33 = vrot.slane %v5476_v28, 2  ;;  %v1186_v34 = vrot.slane %v5477_v31, 2  ;;  %v1137_v35 = vrot.slane %v5476_v28, 1  ;;  %v1138_v36 = vrot.slane %v5477_v31, 1  ;;  %v5482_v37 = vld [vmem:[%s5060_s18 + $0xc0] sm:$0xff]  ;;  %p1115_p5 = scmp.ge.s32.totalorder %s1118_s16, 8  }
 0x3f3   : > { %1305 = vmatpush.msrb.mxu2 %v7175_v15  ;;  %1255 = vmatpush.msrb.mxu0 %v7155_v10  ;;  %v5480_v40 = vld [vmem:[%s5060_s18 + $0xb8] sm:$0x3]  ;;  %v5483_v18 = vld [vmem:[%s5060_s18 + $0xc8] sm:$0x3]  ;;  %v1313_v21 = vrot.slane %v5482_v37, 1  ;;  %v1262_v29 = vrot.slane %v5479_v32, 2 }
 0x3f4   : > { %5485 = vmatmul.msk.f32.vlgmr.msra.gmra.mxu1 %vm52_vm0, %v5476_v28  ;;  %5487 = vmatmul.msk.f32.vlgmr.msra.gmra.mxu3 %vm52_vm0, %v5479_v32  ;;  %v1187_v19 = vsel %vm380_vm7, %v1185_v33, %v1186_v34  ;;  %v1139_v20 = vsel %vm363_vm6, %v1137_v35, %v1138_v36  ;;  %v1314_v22 = vrot.slane %v5483_v18, 1  ;;  %v1263_v30 = vrot.slane %v5480_v40, 2  ;;  %s6246_s20 = smov (%p1115_p5), 0  }
 0x3f5   : > { %1332 = vmatpush.msrb.mxu3 %v7185_v17  ;;  %1281 = vmatpush.msrb.mxu1 %v7165_v13  ;;  %v1236_v6 = vrot.slane %v5479_v32, 1  ;;  %v1237_v12 = vrot.slane %v5480_v40, 1  ;;  %v1339_v45 = vrot.slane %v5482_v37, 2  ;;  %v1340_v46 = vrot.slane %v5483_v18, 2 }
 0x3f6   : > { %1306 = vmatpush.msrb.mxu2 %v7170_v14  ;;  %1256 = vmatpush.msrb.mxu0 %v7150_v9  ;;  %v1315_v44 = vsel %vm363_vm6, %v1313_v21, %v1314_v22  ;;  %v1264_v42 = vsel %vm380_vm7, %v1262_v29, %v1263_v30 }
 0x3f7   : > { %5486 = vmatmul.msk.f32.vlgmr.msra.gmra.mxu2 %vm52_vm0, %v1187_v19  ;;  %5484 = vmatmul.msk.f32.vlgmr.msra.gmra.mxu0 %vm52_vm0, %v1139_v20  ;;  %v1238_v43 = vsel %vm363_vm6, %v1236_v6, %v1237_v12  ;;  %v1341_v47 = vsel %vm380_vm7, %v1339_v45, %v1340_v46 }
 0x3f8   : > { %1333 = vmatpush.msrb.mxu3 %v7180_v16  ;;  %1282 = vmatpush.msrb.mxu1 %v7160_v11 }
 0x3f9   : > { %1358 = vmatpush.msra.mxu0 %v7195_v24 }
 0x3fb   : > { %1359 = vmatpush.msra.mxu0 %v7190_v23 }
 0x3fc   : > { %5491 = vmatmul.msk.f32.vlgmr.msrb.gmra.mxu3 %vm52_vm0, %v1315_v44  ;;  %5489 = vmatmul.msk.f32.vlgmr.msrb.gmra.mxu1 %vm52_vm0, %v1264_v42 }
 0x3ff   : > { %5490 = vmatmul.msk.f32.vlgmr.msrb.gmra.mxu2 %vm52_vm0, %v5482_v37  ;;  %5488 = vmatmul.msk.f32.vlgmr.msrb.gmra.mxu0 %vm52_vm0, %v1238_v43 }
 0x407   : > { %5492 = vmatmul.msk.f32.vlgmr.msra.gmra.mxu0 %vm52_vm0, %v1341_v47 }
 0x471   : > { %v1181_v49 = vpop.f32.mrf.mxu1 }
 0x474   : > { %v1159_v48 = vpop.f32.mrf.mxu0 }
 0x475   : > { %v1182_v51 = vadd.f32 %v1181_v49, %v1159_v48 }
 0x477   : > { %v1231_v50 = vpop.f32.mrf.mxu3 }
 0x479   : > { %v1284_v2 = vpop.f32.mrf.mxu1 }
 0x47a   : > { %v1207_v52 = vpop.f32.mrf.mxu2 }
 0x47b   : > { %v1210_v53 = vadd.f32 %v1207_v52, %v1182_v51 }
 0x47c   : > { %v1258_v54 = vpop.f32.mrf.mxu0 }
 0x47d   : > { %v1234_v55 = vadd.f32 %v1231_v50, %v1210_v53 }
 0x47f   : > { %v1261_v3 = vadd.f32 %v1258_v54, %v1234_v55  ;;  %v1335_v57 = vpop.f32.mrf.mxu3 }
 0x481   : > { %v1287_v4 = vadd.f32 %v1284_v2, %v1261_v3 }
 0x482   : > { %v1308_v56 = vpop.f32.mrf.mxu2 }
 0x483   : > { %v1311_v58 = vadd.f32 %v1308_v56, %v1287_v4 }
 0x484   : > { %v1361_v26 = vpop.f32.mrf.mxu0 }
 0x485   : > { %v1338_v27 = vadd.f32 %v1335_v57, %v1311_v58 }
 0x487   : > { %v1364_v28 = vadd.f32 %v1361_v26, %v1338_v27  ;;  %1117 = sbr.rel (!%p1115_p5) target bundleno = 1007 (0x3ef), region = 409 }
 0x489   : > { %v1368_v31 = vadd.f32 %v1364_v28, %v1107_v59 }
 0x48b   : > { %5494 = vst.msk [vmem:[%s5069_s14 + $0x40] sm:$0xff] %vm128_vm4, %v1368_v31 }
 0x48c LB: > { %s5843_s21 = sshll.u32 %s6248_s20, 4  ;;  %vm1392_vm11 = vcmask 56320   ;;  %s5502_s22 = sshll.u32 %s6248_s20, 3  ;;  %vm1425_vm12 = vcmask 1044480   ;;  %s6248_s20 = sphi %s6246_s20, %s1378_s20  }
 0x48d   : > { %s1381_s0 = scalar_lea.vmem [#allocation4], %s5843_s21  ;;  %s5078_s23 = scalar_lea.vmem [#allocation5], %s5502_s22 }
 0x48e   : > { %s1378_s20 = sadd.s32 1, %s6248_s20  }
 0x48f   : > { %p1375_p6 = scmp.ge.s32.totalorder %s1378_s20, 4  }
 0x490   :  { %s6250_s24 = smov (%p1375_p6), 0  }
 0x492   : > { %v1382_v32 = vld [vmem:[%s1381_s0] sm:$0xff]  ;;  %v5499_v33 = vld [vmem:[%s1381_s0 + $0x8] sm:$0xff] }
 0x493   : > { %v1387_v34 = vmax.f32 %v1382_v32, %v5499_v33 }
 0x495   : > { %v1389_v35 = vrot.slane %v1387_v34, 1 }
 0x497   : > { %v1391_v36 = vmax.f32 %v1387_v34, %v1389_v35 }
 0x499   : > { %5500 = vmatpush.msk.msra.mxu0 %vm363_vm6, %v1391_v36 }
 0x49a   : > { %5501 = vmatmul.msk.f32.vlgmr.msra.gmra.mxu0 %vm1392_vm11, %v7074_v41 }
 0x517   : > { %v1417_v37 = vpop.f32.mrf.mxu0 }
 0x518   : > { %v1421_v40 = vrot.slane %v1417_v37, 7  ;;  %1377 = sbr.rel (!%p1375_p6) target bundleno = 1164 (0x48c), region = 420 }
 0x51a   : > { %v1424_v60 = vsel %vm761_vm10, 0.0, %v1421_v40 }
 0x51b   : > { %v1426_v61 = vsel %vm1425_vm12, %v1424_v60, 0.0 }
 0x51c   : > { %5503 = vst.msk [vmem:[%s5078_s23 + $0x8] sm:$0x3f] %vm94_vm2, %v1426_v61 }
 0x51d LB: > { %s5845_s1 = sshll.u32 %s6252_s24, 4  ;;  %s5512_s25 = sshll.u32 %s6252_s24, 3  ;;  %s6252_s24 = sphi %s6250_s24, %s1436_s24  }
 0x51e   : > { %s5082_s2 = scalar_lea.vmem [#allocation4], %s5845_s1  ;;  %s5089_s26 = scalar_lea.vmem [#allocation5], %s5512_s25 }
 0x51f   : > { %v5506_v62 = vld [vmem:[%s5082_s2 + $0x40] sm:$0xff]  ;;  %v5509_v63 = vld [vmem:[%s5082_s2 + $0x48] sm:$0xff]  ;;  %s1436_s24 = sadd.s32 1, %s6252_s24  }
 0x520   : > { %v1446_v0 = vmax.f32 %v5506_v62, %v5509_v63  ;;  %p1433_p7 = scmp.ge.s32.totalorder %s1436_s24, 4  }
 0x521   :  { %v7310_v13 = vld [vmem:[%s8224_s5] sm:$0xff] (%p1433_p7)  ;;  %v7315_v14 = vld [vmem:[%s8224_s5 + $0x8] sm:$0xff] (%p1433_p7)  ;;  %v7320_v15 = vld [vmem:[%s8224_s5 + $0x10] sm:$0xff] (%p1433_p7) }
 0x522   : > { %v1448_v5 = vrot.slane %v1446_v0, 1  ;;  %v7325_v16 = vld [vmem:[%s8224_s5 + $0x18] sm:$0xff] (%p1433_p7)  ;;  %v7330_v17 = vld [vmem:[%s8224_s5 + $0x20] sm:$0xff] (%p1433_p7)  ;;  %v7335_v23 = vld [vmem:[%s8224_s5 + $0x28] sm:$0xff] (%p1433_p7) }
 0x523   :  { %v7340_v24 = vld [vmem:[%s8224_s5 + $0x30] sm:$0xff] (%p1433_p7)  ;;  %v7345_v25 = vld [vmem:[%s8224_s5 + $0x38] sm:$0xff] (%p1433_p7)  ;;  %v7350_v59 = vld [vmem:[%s8224_s5 + $0x40] sm:$0xff] (%p1433_p7) }
 0x524   : > { %v1450_v7 = vmax.f32 %v1446_v0, %v1448_v5  ;;  %v7355_v18 = vld [vmem:[%s8225_s6] sm:$0x1] (%p1433_p7) }
 0x526   : > { %5510 = vmatpush.msk.msra.mxu0 %vm363_vm6, %v1450_v7 }
 0x527   : > { %5511 = vmatmul.msk.f32.vlgmr.msra.gmra.mxu0 %vm1392_vm11, %v7074_v41 }
 0x5a4   : > { %v1476_v8 = vpop.f32.mrf.mxu0 }
 0x5a5   : > { %v1480_v9 = vrot.slane %v1476_v8, 7  ;;  %1435 = sbr.rel (!%p1433_p7) target bundleno = 1309 (0x51d), region = 431 }
 0x5a7   : > { %v1483_v10 = vsel %vm761_vm10, 0.0, %v1480_v9 }
 0x5a8   : > { %v1485_v11 = vsel %vm1425_vm12, %v1483_v10, 0.0 }
 0x5a9   : > { %5513 = vst.msk [vmem:[%s5089_s26 + $0x38] sm:$0x3f] %vm94_vm2, %v1485_v11  ;;  %s7357_s26 = smov (%p1433_p7), 0  }
 0x5aa LB: > { %1581 = vmatpush.msra.mxu2 %v7320_v15  ;;  %1536 = vmatpush.msra.mxu0 %v7315_v14  ;;  %s5514_s5 = sshll.u32 %s6256_s26, 3  ;;  %v1732_v56 = vperm.slane %v7355_v18, 0  ;;  %s5528_s27 = sshll.u32 %s6256_s26, 2  ;;  %s6256_s26 = sphi %s7357_s26, %s1505_s26  }
 0x5ab   : > { %1558 = vmatpush.msra.mxu1 %v7310_v13  ;;  %1605 = vmatpush.msra.mxu3 %v7325_v16  ;;  %s1507_s6 = scalar_lea.vmem [#allocation5], %s5514_s5  ;;  %s1736_s28 = scalar_lea.vmem [#allocation6], %s5528_s27 }
 0x5ac   : > { %1677 = vmatpush.msrb.mxu2 %v7340_v24  ;;  %1629 = vmatpush.msrb.mxu0 %v7330_v17  ;;  %s1505_s26 = sadd.s32 1, %s6256_s26  }
 0x5ad   : > { %1701 = vmatpush.msrb.mxu3 %v7345_v25  ;;  %1653 = vmatpush.msrb.mxu1 %v7335_v23  ;;  %p1502_p8 = scmp.ge.s32.totalorder %s1505_s26, 4  }
 0x5ae   :  { %s7389_s3 = smov (%p1502_p8), 0  }
 0x5b0   : > { %v1508_v19 = vld [vmem:[%s1507_s6] sm:$0x3f]  ;;  %v5516_v20 = vld [vmem:[%s1507_s6 + $0x8] sm:$0x3f]  ;;  %v5518_v29 = vld [vmem:[%s1507_s6 + $0x10] sm:$0x3f] }
 0x5b1   : > { %v1563_v21 = vrot.slane %v1508_v19, 2  ;;  %v1518_v22 = vrot.slane %v1508_v19, 1  ;;  %5520 = vmatmul.msk.f32.vlgmr.msra.gmra.mxu1 %vm128_vm4, %v1508_v19  ;;  %5522 = vmatmul.msk.f32.vlgmr.msra.gmra.mxu3 %vm128_vm4, %v5516_v20  ;;  %v1683_v30 = vrot.slane %v5518_v29, 1  ;;  %v1635_v6 = vrot.slane %v5516_v20, 2 }
 0x5b2   : > { %v1611_v12 = vrot.slane %v5516_v20, 1  ;;  %v1707_v44 = vrot.slane %v5518_v29, 2 }
 0x5b3   : > { %5521 = vmatmul.msk.f32.vlgmr.msra.gmra.mxu2 %vm128_vm4, %v1563_v21  ;;  %5519 = vmatmul.msk.f32.vlgmr.msra.gmra.mxu0 %vm128_vm4, %v1518_v22 }
 0x5b4   : > { %1725 = vmatpush.msra.mxu0 %v7350_v59 }
 0x5b9   : > { %5526 = vmatmul.msk.f32.vlgmr.msrb.gmra.mxu3 %vm128_vm4, %v1683_v30  ;;  %5524 = vmatmul.msk.f32.vlgmr.msrb.gmra.mxu1 %vm128_vm4, %v1635_v6 }
 0x5bb   : > { %5525 = vmatmul.msk.f32.vlgmr.msrb.gmra.mxu2 %vm128_vm4, %v5518_v29  ;;  %5523 = vmatmul.msk.f32.vlgmr.msrb.gmra.mxu0 %vm128_vm4, %v1611_v12 }
 0x5c3   : > { %5527 = vmatmul.msk.f32.vlgmr.msra.gmra.mxu0 %vm128_vm4, %v1707_v44 }
 0x62e   : > { %v1560_v43 = vpop.f32.mrf.mxu1 }
 0x630   : > { %v1538_v42 = vpop.f32.mrf.mxu0 }
 0x631   : > { %v1561_v46 = vadd.f32 %v1560_v43, %v1538_v42 }
 0x634   : > { %v1607_v45 = vpop.f32.mrf.mxu3 }
 0x636   : > { %v1583_v47 = vpop.f32.mrf.mxu2  ;;  %v1655_v51 = vpop.f32.mrf.mxu1 }
 0x637   : > { %v1586_v48 = vadd.f32 %v1583_v47, %v1561_v46 }
 0x638   : > { %v1631_v49 = vpop.f32.mrf.mxu0 }
 0x639   : > { %v1610_v50 = vadd.f32 %v1607_v45, %v1586_v48 }
 0x63b   : > { %v1634_v52 = vadd.f32 %v1631_v49, %v1610_v50 }
 0x63c   : > { %v1703_v55 = vpop.f32.mrf.mxu3 }
 0x63d   : > { %v1658_v53 = vadd.f32 %v1655_v51, %v1634_v52 }
 0x63e   : > { %v1679_v54 = vpop.f32.mrf.mxu2 }
 0x63f   : > { %v1682_v2 = vadd.f32 %v1679_v54, %v1658_v53 }
 0x640   : > { %v1727_v3 = vpop.f32.mrf.mxu0 }
 0x641   : > { %v1706_v4 = vadd.f32 %v1703_v55, %v1682_v2 }
 0x643   : > { %v1730_v57 = vadd.f32 %v1727_v3, %v1706_v4  ;;  %1504 = sbr.rel (!%p1502_p8) target bundleno = 1450 (0x5aa), region = 442 }
 0x645   : > { %v1734_v58 = vadd.f32 %v1732_v56, %v1730_v57 }
 0x647   : > { %1737 = vst.msk [vmem:[%s1736_s28] sm:$0xf] %vm107_vm3, %v1734_v58 }
 0x648 LB: > { %1820 = vmatpush.msra.mxu2 %v7320_v15  ;;  %1775 = vmatpush.msra.mxu0 %v7315_v14  ;;  %s5529_s4 = sshll.u32 %s6260_s3, 3  ;;  %s5544_s30 = sshll.u32 %s6260_s3, 2  ;;  %s6260_s3 = sphi %s7389_s3, %s1743_s3  }
 0x649   : > { %1797 = vmatpush.msra.mxu1 %v7310_v13  ;;  %1844 = vmatpush.msra.mxu3 %v7325_v16  ;;  %s5102_s29 = scalar_lea.vmem [#allocation5], %s5529_s4  ;;  %s5111_s16 = scalar_lea.vmem [#allocation6], %s5544_s30 }
 0x64a   : > { %1916 = vmatpush.msrb.mxu2 %v7340_v24  ;;  %1868 = vmatpush.msrb.mxu0 %v7330_v17  ;;  %v5530_v26 = vld [vmem:[%s5102_s29 + $0x30] sm:$0x3f]  ;;  %v5532_v27 = vld [vmem:[%s5102_s29 + $0x38] sm:$0x3f]  ;;  %v5534_v32 = vld [vmem:[%s5102_s29 + $0x40] sm:$0x3f] }
 0x64b   : > { %1940 = vmatpush.msrb.mxu3 %v7345_v25  ;;  %1892 = vmatpush.msrb.mxu1 %v7335_v23  ;;  %v1802_v28 = vrot.slane %v5530_v26, 2  ;;  %v1757_v31 = vrot.slane %v5530_v26, 1  ;;  %v1922_v33 = vrot.slane %v5534_v32, 1  ;;  %v1874_v34 = vrot.slane %v5532_v27, 2  ;;  %s1743_s3 = sadd.s32 1, %s6260_s3  }
 0x64c   : > { %5536 = vmatmul.msk.f32.vlgmr.msra.gmra.mxu1 %vm128_vm4, %v5530_v26  ;;  %5538 = vmatmul.msk.f32.vlgmr.msra.gmra.mxu3 %vm128_vm4, %v5532_v27  ;;  %v1850_v35 = vrot.slane %v5532_v27, 1  ;;  %v1946_v36 = vrot.slane %v5534_v32, 2  ;;  %p1740_p9 = scmp.ge.s32.totalorder %s1743_s3, 4  }
 0x64d   : > { %5537 = vmatmul.msk.f32.vlgmr.msra.gmra.mxu2 %vm128_vm4, %v1802_v28  ;;  %5535 = vmatmul.msk.f32.vlgmr.msra.gmra.mxu0 %vm128_vm4, %v1757_v31  ;;  %s6262_s17 = smov (%p1740_p9), 0  }
 0x64e   : > { %1964 = vmatpush.msra.mxu0 %v7350_v59 }
 0x654   : > { %5542 = vmatmul.msk.f32.vlgmr.msrb.gmra.mxu3 %vm128_vm4, %v1922_v33  ;;  %5540 = vmatmul.msk.f32.vlgmr.msrb.gmra.mxu1 %vm128_vm4, %v1874_v34 }
 0x655   : > { %5541 = vmatmul.msk.f32.vlgmr.msrb.gmra.mxu2 %vm128_vm4, %v5534_v32  ;;  %5539 = vmatmul.msk.f32.vlgmr.msrb.gmra.mxu0 %vm128_vm4, %v1850_v35 }
 0x65d   : > { %5543 = vmatmul.msk.f32.vlgmr.msra.gmra.mxu0 %vm128_vm4, %v1946_v36 }
 0x6c9   : > { %v1799_v40 = vpop.f32.mrf.mxu1 }
 0x6ca   : > { %v1777_v37 = vpop.f32.mrf.mxu0 }
 0x6cb   : > { %v1800_v61 = vadd.f32 %v1799_v40, %v1777_v37 }
 0x6cf   : > { %v1846_v60 = vpop.f32.mrf.mxu3 }
 0x6d0   : > { %v1822_v62 = vpop.f32.mrf.mxu2 }
 0x6d1   : > { %v1825_v63 = vadd.f32 %v1822_v62, %v1800_v61  ;;  %v1894_v7 = vpop.f32.mrf.mxu1 }
 0x6d2   : > { %v1870_v0 = vpop.f32.mrf.mxu0 }
 0x6d3   : > { %v1849_v5 = vadd.f32 %v1846_v60, %v1825_v63 }
 0x6d5   : > { %v1873_v8 = vadd.f32 %v1870_v0, %v1849_v5 }
 0x6d7   : > { %v1897_v9 = vadd.f32 %v1894_v7, %v1873_v8  ;;  %v1942_v11 = vpop.f32.mrf.mxu3 }
 0x6d8   : > { %v1918_v10 = vpop.f32.mrf.mxu2 }
 0x6d9   : > { %v1921_v19 = vadd.f32 %v1918_v10, %v1897_v9 }
 0x6da   : > { %v1966_v20 = vpop.f32.mrf.mxu0 }
 0x6db   : > { %v1945_v21 = vadd.f32 %v1942_v11, %v1921_v19 }
 0x6dd   : > { %v1969_v22 = vadd.f32 %v1966_v20, %v1945_v21  ;;  %1742 = sbr.rel (!%p1740_p9) target bundleno = 1608 (0x648), region = 453 }
 0x6df   : > { %v1973_v29 = vadd.f32 %v1969_v22, %v1732_v56 }
 0x6e1   : > { %5545 = vst.msk [vmem:[%s5111_s16 + $0x10] sm:$0xf] %vm107_vm3, %v1973_v29 }
 0x6e2 LB: > { %s5847_s18 = sshll.u32 %s6264_s17, 3  ;;  %vm2001_vm13 = vcmask 1042432   ;;  %vm1997_vm14 = vcmask 23552   ;;  %s5553_s14 = sshll.u32 %s6264_s17, 2  ;;  %s6264_s17 = sphi %s6262_s17, %s1983_s17  }
 0x6e3   : > { %s1986_s19 = scalar_lea.vmem [#allocation6], %s5847_s18  ;;  %s5120_s20 = scalar_lea.vmem [#allocation7], %s5553_s14 }
 0x6e4   : > { %s1983_s17 = sadd.s32 1, %s6264_s17  }
 0x6e5   : > { %p1980_p10 = scmp.ge.s32.totalorder %s1983_s17, 2  }
 0x6e6   :  { %s6266_s21 = smov (%p1980_p10), 0  }
 0x6e8   : > { %v1987_v30 = vld [vmem:[%s1986_s19] sm:$0xf]  ;;  %v5550_v6 = vld [vmem:[%s1986_s19 + $0x4] sm:$0xf] }
 0x6e9   : > { %v1992_v12 = vmax.f32 %v1987_v30, %v5550_v6 }
 0x6eb   : > { %v1994_v44 = vrot.slane %v1992_v12, 1 }
 0x6ed   : > { %v1996_v42 = vmax.f32 %v1992_v12, %v1994_v44 }
 0x6ef   : > { %5551 = vmatpush.msk.msra.mxu0 %vm2001_vm13, %v1996_v42 }
 0x6f0   : > { %5552 = vmatmul.msk.f32.vlgmr.msra.gmra.mxu0 %vm1997_vm14, %v7074_v41 }
 0x76d   : > { %v2022_v43 = vpop.f32.mrf.mxu0 }
 0x76e   : > { %v2026_v13 = vrot.slane %v2022_v43, 7  ;;  %1982 = sbr.rel (!%p1980_p10) target bundleno = 1762 (0x6e2), region = 464 }
 0x770   : > { %v2029_v14 = vsel %vm761_vm10, 0.0, %v2026_v13 }
 0x771   : > { %v2030_v15 = vsel %vm2001_vm13, %v2029_v14, 0.0 }
 0x772   : > { %5554 = vst.msk [vmem:[%s5120_s20 + $0x4] sm:$0xf] %vm107_vm3, %v2030_v15 }
 0x773 LB: > { %s5849_s0 = sshll.u32 %s6268_s21, 3  ;;  %s5563_s23 = sshll.u32 %s6268_s21, 2  ;;  %s6268_s21 = sphi %s6266_s21, %s2040_s21  }
 0x774   : > { %s5124_s22 = scalar_lea.vmem [#allocation6], %s5849_s0  ;;  %s5131_s24 = scalar_lea.vmem [#allocation7], %s5563_s23 }
 0x775   : > { %v5557_v16 = vld [vmem:[%s5124_s22 + $0x10] sm:$0xf]  ;;  %v5560_v17 = vld [vmem:[%s5124_s22 + $0x14] sm:$0xf]  ;;  %s2040_s21 = sadd.s32 1, %s6268_s21  }
 0x776   : > { %v2050_v23 = vmax.f32 %v5557_v16, %v5560_v17  ;;  %p2037_p11 = scmp.ge.s32.totalorder %s2040_s21, 2  }
 0x777   :  { %v7435_v47 = vld [vmem:[%s8226_s7] sm:$0xff] (%p2037_p11)  ;;  %v7440_v48 = vld [vmem:[%s8226_s7 + $0x8] sm:$0xff] (%p2037_p11)  ;;  %v7445_v49 = vld [vmem:[%s8226_s7 + $0x10] sm:$0xff] (%p2037_p11)  ;;  %s7482_s22 = smov (%p2037_p11), 0  }
 0x778   : > { %v2052_v24 = vrot.slane %v2050_v23, 1  ;;  %v7450_v50 = vld [vmem:[%s8226_s7 + $0x18] sm:$0xff] (%p2037_p11)  ;;  %v7460_v51 = vld [vmem:[%s8226_s7 + $0x28] sm:$0xff] (%p2037_p11)  ;;  %v7465_v52 = vld [vmem:[%s8226_s7 + $0x30] sm:$0xff] (%p2037_p11) }
 0x779   :  { %v7470_v53 = vld [vmem:[%s8226_s7 + $0x38] sm:$0xff] (%p2037_p11)  ;;  %v7475_v54 = vld [vmem:[%s8226_s7 + $0x40] sm:$0xff] (%p2037_p11) }
 0x77a   : > { %v2054_v25 = vmax.f32 %v2050_v23, %v2052_v24  ;;  %v7480_v55 = vld [vmem:[%s8227_s8] sm:$0x1] (%p2037_p11) }
 0x77c   : > { %5561 = vmatpush.msk.msra.mxu0 %vm2001_vm13, %v2054_v25 }
 0x77d   : > { %5562 = vmatmul.msk.f32.vlgmr.msra.gmra.mxu0 %vm1997_vm14, %v7074_v41  ;;  %v7455_v41 = vld [vmem:[%s8226_s7 + $0x20] sm:$0xff] (%p2037_p11) }
 0x7fa   : > { %v2080_v59 = vpop.f32.mrf.mxu0 }
 0x7fb   : > { %v2084_v18 = vrot.slane %v2080_v59, 7  ;;  %2039 = sbr.rel (!%p2037_p11) target bundleno = 1907 (0x773), region = 475 }
 0x7fd   : > { %v2087_v45 = vsel %vm761_vm10, 0.0, %v2084_v18 }
 0x7fe   : > { %v2088_v46 = vsel %vm2001_vm13, %v2087_v45, 0.0 }
 0x7ff   : > { %5564 = vst.msk [vmem:[%s5131_s24 + $0x14] sm:$0xf] %vm107_vm3, %v2088_v46 }
 0x800 LB: > { %2184 = vmatpush.msra.mxu2 %v7445_v49  ;;  %2139 = vmatpush.msra.mxu0 %v7440_v48  ;;  %s5565_s7 = sshll.u32 %s6272_s22, 2  ;;  %s5579_s23 = sshll.u32 %s6272_s22, 1  ;;  %v2335_v9 = vperm.slane %v7480_v55, 0  ;;  %vm2340_vm15 = vcmask 58368   ;;  %s6272_s22 = sphi %s7482_s22, %s2108_s22  }
 0x801   : > { %2161 = vmatpush.msra.mxu1 %v7435_v47  ;;  %2208 = vmatpush.msra.mxu3 %v7450_v50  ;;  %s2110_s8 = scalar_lea.vmem [#allocation7], %s5565_s7  ;;  %s2339_s24 = scalar_lea.vmem [#allocation8], %s5579_s23 }
 0x802   : > { %2280 = vmatpush.msrb.mxu2 %v7465_v52  ;;  %2232 = vmatpush.msrb.mxu0 %v7455_v41  ;;  %s2108_s22 = sadd.s32 1, %s6272_s22  }
 0x803   : > { %2304 = vmatpush.msrb.mxu3 %v7470_v53  ;;  %2256 = vmatpush.msrb.mxu1 %v7460_v51  ;;  %p2105_p12 = scmp.ge.s32.totalorder %s2108_s22, 2  }
 0x804   :  { %s7514_s1 = smov (%p2105_p12), 0  }
 0x806   : > { %v2111_v2 = vld [vmem:[%s2110_s8] sm:$0xf]  ;;  %v5567_v3 = vld [vmem:[%s2110_s8 + $0x4] sm:$0xf]  ;;  %v5569_v57 = vld [vmem:[%s2110_s8 + $0x8] sm:$0xf] }
 0x807   : > { %v2166_v4 = vrot.slane %v2111_v2, 2  ;;  %v2121_v56 = vrot.slane %v2111_v2, 1  ;;  %5571 = vmatmul.msk.f32.vlgmr.msra.gmra.mxu1 %vm128_vm4, %v2111_v2  ;;  %5573 = vmatmul.msk.f32.vlgmr.msra.gmra.mxu3 %vm128_vm4, %v5567_v3  ;;  %v2286_v58 = vrot.slane %v5569_v57, 1  ;;  %v2238_v26 = vrot.slane %v5567_v3, 2 }
 0x808   : > { %v2214_v27 = vrot.slane %v5567_v3, 1  ;;  %v2310_v28 = vrot.slane %v5569_v57, 2 }
 0x809   : > { %5572 = vmatmul.msk.f32.vlgmr.msra.gmra.mxu2 %vm128_vm4, %v2166_v4  ;;  %5570 = vmatmul.msk.f32.vlgmr.msra.gmra.mxu0 %vm128_vm4, %v2121_v56 }
 0x80a   : > { %2328 = vmatpush.msra.mxu0 %v7475_v54 }
 0x80f   : > { %5577 = vmatmul.msk.f32.vlgmr.msrb.gmra.mxu3 %vm128_vm4, %v2286_v58  ;;  %5575 = vmatmul.msk.f32.vlgmr.msrb.gmra.mxu1 %vm128_vm4, %v2238_v26 }
 0x811   : > { %5576 = vmatmul.msk.f32.vlgmr.msrb.gmra.mxu2 %vm128_vm4, %v5569_v57  ;;  %5574 = vmatmul.msk.f32.vlgmr.msrb.gmra.mxu0 %vm128_vm4, %v2214_v27 }
 0x819   : > { %5578 = vmatmul.msk.f32.vlgmr.msra.gmra.mxu0 %vm128_vm4, %v2310_v28 }
 0x884   : > { %v2163_v32 = vpop.f32.mrf.mxu1 }
 0x886   : > { %v2141_v31 = vpop.f32.mrf.mxu0 }
 0x887   : > { %v2164_v34 = vadd.f32 %v2163_v32, %v2141_v31 }
 0x88a   : > { %v2210_v33 = vpop.f32.mrf.mxu3 }
 0x88c   : > { %v2186_v35 = vpop.f32.mrf.mxu2  ;;  %v2258_v60 = vpop.f32.mrf.mxu1 }
 0x88d   : > { %v2189_v36 = vadd.f32 %v2186_v35, %v2164_v34 }
 0x88e   : > { %v2234_v37 = vpop.f32.mrf.mxu0 }
 0x88f   : > { %v2213_v40 = vadd.f32 %v2210_v33, %v2189_v36 }
 0x891   : > { %v2237_v61 = vadd.f32 %v2234_v37, %v2213_v40 }
 0x892   : > { %v2306_v0 = vpop.f32.mrf.mxu3 }
 0x893   : > { %v2261_v62 = vadd.f32 %v2258_v60, %v2237_v61 }
 0x894   : > { %v2282_v63 = vpop.f32.mrf.mxu2 }
 0x895   : > { %v2285_v5 = vadd.f32 %v2282_v63, %v2261_v62 }
 0x896   : > { %v2330_v7 = vpop.f32.mrf.mxu0 }
 0x897   : > { %v2309_v8 = vadd.f32 %v2306_v0, %v2285_v5 }
 0x899   : > { %v2333_v10 = vadd.f32 %v2330_v7, %v2309_v8  ;;  %2107 = sbr.rel (!%p2105_p12) target bundleno = 2048 (0x800), region = 486 }
 0x89b   : > { %v2337_v11 = vadd.f32 %v2335_v9, %v2333_v10 }
 0x89d   : > { %2341 = vst.msk [vmem:[%s2339_s24] sm:$0x3] %vm2340_vm15, %v2337_v11 }
 0x89e LB: > { %2424 = vmatpush.msra.mxu2 %v7445_v49  ;;  %2379 = vmatpush.msra.mxu0 %v7440_v48  ;;  %s5580_s2 = sshll.u32 %s6276_s1, 2  ;;  %s5595_s26 = sshll.u32 %s6276_s1, 1  ;;  %s6276_s1 = sphi %s7514_s1, %s2347_s1  }
 0x89f   : > { %2401 = vmatpush.msra.mxu1 %v7435_v47  ;;  %2448 = vmatpush.msra.mxu3 %v7450_v50  ;;  %s5144_s25 = scalar_lea.vmem [#allocation7], %s5580_s2  ;;  %s5153_s5 = scalar_lea.vmem [#allocation8], %s5595_s26 }
 0x8a0   : > { %2520 = vmatpush.msrb.mxu2 %v7465_v52  ;;  %2472 = vmatpush.msrb.mxu0 %v7455_v41  ;;  %v5581_v19 = vld [vmem:[%s5144_s25 + $0x10] sm:$0xf]  ;;  %v5583_v20 = vld [vmem:[%s5144_s25 + $0x14] sm:$0xf]  ;;  %v5585_v29 = vld [vmem:[%s5144_s25 + $0x18] sm:$0xf] }
 0x8a1   : > { %2544 = vmatpush.msrb.mxu3 %v7470_v53  ;;  %2496 = vmatpush.msrb.mxu1 %v7460_v51  ;;  %v2406_v21 = vrot.slane %v5581_v19, 2  ;;  %v2361_v22 = vrot.slane %v5581_v19, 1  ;;  %v2526_v30 = vrot.slane %v5585_v29, 1  ;;  %v2478_v6 = vrot.slane %v5583_v20, 2  ;;  %s2347_s1 = sadd.s32 1, %s6276_s1  }
 0x8a2   : > { %5587 = vmatmul.msk.f32.vlgmr.msra.gmra.mxu1 %vm128_vm4, %v5581_v19  ;;  %5589 = vmatmul.msk.f32.vlgmr.msra.gmra.mxu3 %vm128_vm4, %v5583_v20  ;;  %v2454_v12 = vrot.slane %v5583_v20, 1  ;;  %v2550_v44 = vrot.slane %v5585_v29, 2  ;;  %p2344_p13 = scmp.ge.s32.totalorder %s2347_s1, 2  }
 0x8a3   : > { %5588 = vmatmul.msk.f32.vlgmr.msra.gmra.mxu2 %vm128_vm4, %v2406_v21  ;;  %5586 = vmatmul.msk.f32.vlgmr.msra.gmra.mxu0 %vm128_vm4, %v2361_v22  ;;  %v7546_v57 = vmul.u32 (%p2344_p13), 2, %v7069_v39  ;;  %s6278_s6 = smov (%p2344_p13), 0  }
 0x8a4   : > { %2568 = vmatpush.msra.mxu0 %v7475_v54 }
 0x8a5   :  { %vm2584_vm8 = vcmp.eq.s32.totalorder (%p2344_p13), %v7067_v38, %v7546_v57  ;;  %v7551_v58 = vadd.s32 (%p2344_p13), 1, %v7546_v57 }
 0x8a7   :  { %vm2586_vm9 = vcmp.eq.s32.totalorder (%p2344_p13), %v7067_v38, %v7551_v58 }
 0x8a8   :  { %vm2587_vm11 = vmor (%p2344_p13), %vm2584_vm8, %vm2586_vm9 }
 0x8a9   :  { %v7556_v26 = vsel (%p2344_p13), %vm2587_vm11, 1.0, %v6326_v1 }
 0x8aa   : > { %5593 = vmatmul.msk.f32.vlgmr.msrb.gmra.mxu3 %vm128_vm4, %v2526_v30  ;;  %5591 = vmatmul.msk.f32.vlgmr.msrb.gmra.mxu1 %vm128_vm4, %v2478_v6 }
 0x8ab   : > { %5592 = vmatmul.msk.f32.vlgmr.msrb.gmra.mxu2 %vm128_vm4, %v5585_v29  ;;  %5590 = vmatmul.msk.f32.vlgmr.msrb.gmra.mxu0 %vm128_vm4, %v2454_v12 }
 0x8b3   : > { %5594 = vmatmul.msk.f32.vlgmr.msra.gmra.mxu0 %vm128_vm4, %v2550_v44 }
 0x91f   : > { %v2403_v43 = vpop.f32.mrf.mxu1 }
 0x920   : > { %v2381_v42 = vpop.f32.mrf.mxu0 }
 0x921   : > { %v2404_v14 = vadd.f32 %v2403_v43, %v2381_v42 }
 0x925   : > { %v2450_v13 = vpop.f32.mrf.mxu3 }
 0x926   : > { %v2426_v15 = vpop.f32.mrf.mxu2 }
 0x927   : > { %v2429_v16 = vadd.f32 %v2426_v15, %v2404_v14  ;;  %v2498_v24 = vpop.f32.mrf.mxu1 }
 0x928   : > { %v2474_v17 = vpop.f32.mrf.mxu0 }
 0x929   : > { %v2453_v23 = vadd.f32 %v2450_v13, %v2429_v16 }
 0x92b   : > { %v2477_v25 = vadd.f32 %v2474_v17, %v2453_v23 }
 0x92d   : > { %v2501_v59 = vadd.f32 %v2498_v24, %v2477_v25  ;;  %v2546_v45 = vpop.f32.mrf.mxu3 }
 0x92e   : > { %v2522_v18 = vpop.f32.mrf.mxu2 }
 0x92f   : > { %v2525_v46 = vadd.f32 %v2522_v18, %v2501_v59 }
 0x930   : > { %v2570_v2 = vpop.f32.mrf.mxu0 }
 0x931   : > { %v2549_v3 = vadd.f32 %v2546_v45, %v2525_v46 }
 0x933   : > { %v2573_v4 = vadd.f32 %v2570_v2, %v2549_v3  ;;  %2346 = sbr.rel (!%p2344_p13) target bundleno = 2206 (0x89e), region = 497 }
 0x935   : > { %v2577_v56 = vadd.f32 %v2573_v4, %v2335_v9 }
 0x937   : > { %5596 = vst.msk [vmem:[%s5153_s5 + $0x4] sm:$0x3] %vm2340_vm15, %v2577_v56 }
 0x938 LB: > { %s5598_s27 = sshll.u32 %s6280_s6, 1  ;;  %vm2603_vm13 = vcmask 1041408   ;;  %vm2599_vm14 = vcmask 15360   ;;  %s5851_s3 = sshll.u32 %s6280_s6, 4  ;;  %s6280_s6 = sphi %s6278_s6, %s2595_s6  }
 0x939   : > { %s2597_s28 = scalar_lea.vmem [#allocation8], %s5598_s27  ;;  %s5159_s4 = scalar_lea.vmem [#allocation9], %s5851_s3 }
 0x93a   : > { %s2595_s6 = sadd.s32 1, %s6280_s6  }
 0x93b   : > { %p2592_p0 = scmp.ge.s32.totalorder %s2595_s6, 2  }
 0x93c   :  { %s6282_s29 = smov (%p2592_p0), 0  }
 0x93e   : > { %v2598_v39 = vld [vmem:[%s2597_s28] sm:$0x3] }
 0x93f   : > { %5599 = vmatpush.msk.msra.mxu0 %vm2603_vm13, %v2598_v39 }
 0x940   : > { %5600 = vmatmul.msk.f32.vlgmr.msra.gmra.mxu0 %vm2599_vm14, %v7556_v26 }
 0x9bd   : > { %v2624_v47 = vpop.f32.mrf.mxu0 }
 0x9be   : > { %v2628_v48 = vrot.slane %v2624_v47, 7 }
 0x9bf   :  { %2594 = sbr.rel (!%p2592_p0) target bundleno = 2360 (0x938), region = 508 }
 0x9c0   : > { %v2631_v49 = vsel %vm761_vm10, 0.0, %v2628_v48 }
 0x9c1   : > { %v2633_v50 = vsel %vm1425_vm12, %v2631_v49, 0.0 }
 0x9c2   : > { %5603 = vst.msk [vmem:[%s5159_s4 + $0x8] sm:$0x3f] %vm94_vm2, %v2633_v50 }
 0x9c3   : > { %5606 = vst.msk [vmem:[%s5159_s4 + $0x10] sm:$0x3f] %vm94_vm2, %v2633_v50 }
 0x9c4 LB: > { %s5607_s30 = sshll.u32 %s6284_s29, 1  ;;  %s5853_s17 = sshll.u32 %s6284_s29, 4  ;;  %s6284_s29 = sphi %s6282_s29, %s2647_s29  }
 0x9c5   : > { %s5166_s16 = scalar_lea.vmem [#allocation8], %s5607_s30  ;;  %s5170_s18 = scalar_lea.vmem [#allocation9], %s5853_s17 }
 0x9c6   : > { %v5608_v41 = vld [vmem:[%s5166_s16 + $0x4] sm:$0x3]  ;;  %s2647_s29 = sadd.s32 1, %s6284_s29  }
 0x9c7   : > { %5609 = vmatpush.msk.msra.mxu0 %vm2603_vm13, %v5608_v41  ;;  %p2644_p1 = scmp.ge.s32.totalorder %s2647_s29, 2  }
 0x9c8   : > { %5610 = vmatmul.msk.f32.vlgmr.msra.gmra.mxu0 %vm2599_vm14, %v7556_v26  ;;  %v7575_v55 = vld [vmem:[%s8228_s9] sm:$0xff] (%p2644_p1)  ;;  %v7580_v27 = vld [vmem:[%s8228_s9 + $0x8] sm:$0xff] (%p2644_p1)  ;;  %v7585_v28 = vld [vmem:[%s8228_s9 + $0x10] sm:$0xff] (%p2644_p1)  ;;  %s7622_s29 = smov (%p2644_p1), 0  }
 0x9c9   :  { %v7590_v31 = vld [vmem:[%s8228_s9 + $0x18] sm:$0xff] (%p2644_p1)  ;;  %v7595_v32 = vld [vmem:[%s8228_s9 + $0x20] sm:$0xff] (%p2644_p1)  ;;  %v7600_v33 = vld [vmem:[%s8228_s9 + $0x28] sm:$0xff] (%p2644_p1) }
 0x9ca   :  { %v7605_v34 = vld [vmem:[%s8228_s9 + $0x30] sm:$0xff] (%p2644_p1)  ;;  %v7610_v35 = vld [vmem:[%s8228_s9 + $0x38] sm:$0xff] (%p2644_p1)  ;;  %v7615_v36 = vld [vmem:[%s8228_s9 + $0x40] sm:$0xff] (%p2644_p1) }
 0x9cb   :  { %v7620_v37 = vld [vmem:[%s8229_s10] sm:$0x1] (%p2644_p1) }
 0xa45   : > { %v2677_v51 = vpop.f32.mrf.mxu0 }
 0xa46   : > { %v2681_v52 = vrot.slane %v2677_v51, 7 }
 0xa47   :  { %2646 = sbr.rel (!%p2644_p1) target bundleno = 2500 (0x9c4), region = 519 }
 0xa48   : > { %v2684_v53 = vsel %vm761_vm10, 0.0, %v2681_v52 }
 0xa49   : > { %v2686_v54 = vsel %vm1425_vm12, %v2684_v53, 0.0 }
 0xa4a   : > { %5613 = vst.msk [vmem:[%s5170_s18 + $0x38] sm:$0x3f] %vm94_vm2, %v2686_v54 }
 0xa4b   : > { %5616 = vst.msk [vmem:[%s5170_s18 + $0x40] sm:$0x3f] %vm94_vm2, %v2686_v54 }
 0xa4c LB: > { %2787 = vmatpush.msra.mxu2 %v7585_v28  ;;  %2742 = vmatpush.msra.mxu0 %v7580_v27  ;;  %s5617_s9 = sshll.u32 %s6288_s29, 3  ;;  %v2938_v15 = vperm.slane %v7620_v37, 0  ;;  %s5631_s30 = sshll.u32 %s6288_s29, 2  ;;  %s6288_s29 = sphi %s7622_s29, %s2711_s29  }
 0xa4d   : > { %2764 = vmatpush.msra.mxu1 %v7575_v55  ;;  %2811 = vmatpush.msra.mxu3 %v7590_v31  ;;  %s2713_s10 = scalar_lea.vmem [#allocation9], %s5617_s9  ;;  %s2942_s16 = scalar_lea.vmem [#allocation10], %s5631_s30 }
 0xa4e   : > { %2883 = vmatpush.msrb.mxu2 %v7605_v34  ;;  %2835 = vmatpush.msrb.mxu0 %v7595_v32  ;;  %s2711_s29 = sadd.s32 1, %s6288_s29  }
 0xa4f   : > { %2907 = vmatpush.msrb.mxu3 %v7610_v35  ;;  %2859 = vmatpush.msrb.mxu1 %v7600_v33  ;;  %p2708_p2 = scmp.ge.s32.totalorder %s2711_s29, 4  }
 0xa50   :  { %s7654_s17 = smov (%p2708_p2), 0  }
 0xa52   : > { %v2714_v40 = vld [vmem:[%s2713_s10] sm:$0x3f]  ;;  %v5619_v60 = vld [vmem:[%s2713_s10 + $0x8] sm:$0x3f]  ;;  %v5621_v63 = vld [vmem:[%s2713_s10 + $0x10] sm:$0x3f] }
 0xa53   : > { %v2769_v61 = vrot.slane %v2714_v40, 2  ;;  %v2724_v62 = vrot.slane %v2714_v40, 1  ;;  %5623 = vmatmul.msk.f32.vlgmr.msra.gmra.mxu1 %vm128_vm4, %v2714_v40  ;;  %5625 = vmatmul.msk.f32.vlgmr.msra.gmra.mxu3 %vm128_vm4, %v5619_v60  ;;  %v2889_v0 = vrot.slane %v5621_v63, 1  ;;  %v2841_v5 = vrot.slane %v5619_v60, 2 }
 0xa54   : > { %v2817_v7 = vrot.slane %v5619_v60, 1  ;;  %v2913_v8 = vrot.slane %v5621_v63, 2 }
 0xa55   : > { %5624 = vmatmul.msk.f32.vlgmr.msra.gmra.mxu2 %vm128_vm4, %v2769_v61  ;;  %5622 = vmatmul.msk.f32.vlgmr.msra.gmra.mxu0 %vm128_vm4, %v2724_v62 }
 0xa56   : > { %2931 = vmatpush.msra.mxu0 %v7615_v36 }
 0xa5b   : > { %5629 = vmatmul.msk.f32.vlgmr.msrb.gmra.mxu3 %vm128_vm4, %v2889_v0  ;;  %5627 = vmatmul.msk.f32.vlgmr.msrb.gmra.mxu1 %vm128_vm4, %v2841_v5 }
 0xa5d   : > { %5628 = vmatmul.msk.f32.vlgmr.msrb.gmra.mxu2 %vm128_vm4, %v5621_v63  ;;  %5626 = vmatmul.msk.f32.vlgmr.msrb.gmra.mxu0 %vm128_vm4, %v2817_v7 }
 0xa65   : > { %5630 = vmatmul.msk.f32.vlgmr.msra.gmra.mxu0 %vm128_vm4, %v2913_v8 }
 0xad0   : > { %v2766_v10 = vpop.f32.mrf.mxu1 }
 0xad2   : > { %v2744_v9 = vpop.f32.mrf.mxu0 }
 0xad3   : > { %v2767_v19 = vadd.f32 %v2766_v10, %v2744_v9 }
 0xad6   : > { %v2813_v11 = vpop.f32.mrf.mxu3 }
 0xad8   : > { %v2789_v20 = vpop.f32.mrf.mxu2  ;;  %v2861_v30 = vpop.f32.mrf.mxu1 }
 0xad9   : > { %v2792_v21 = vadd.f32 %v2789_v20, %v2767_v19 }
 0xada   : > { %v2837_v22 = vpop.f32.mrf.mxu0 }
 0xadb   : > { %v2816_v29 = vadd.f32 %v2813_v11, %v2792_v21 }
 0xadd   : > { %v2840_v6 = vadd.f32 %v2837_v22, %v2816_v29 }
 0xade   : > { %v2909_v42 = vpop.f32.mrf.mxu3 }
 0xadf   : > { %v2864_v12 = vadd.f32 %v2861_v30, %v2840_v6 }
 0xae0   : > { %v2885_v44 = vpop.f32.mrf.mxu2 }
 0xae1   : > { %v2888_v43 = vadd.f32 %v2885_v44, %v2864_v12 }
 0xae2   : > { %v2933_v13 = vpop.f32.mrf.mxu0 }
 0xae3   : > { %v2912_v14 = vadd.f32 %v2909_v42, %v2888_v43 }
 0xae5   : > { %v2936_v16 = vadd.f32 %v2933_v13, %v2912_v14  ;;  %2710 = sbr.rel (!%p2708_p2) target bundleno = 2636 (0xa4c), region = 530 }
 0xae7   : > { %v2940_v17 = vadd.f32 %v2938_v15, %v2936_v16 }
 0xae9   : > { %2943 = vst.msk [vmem:[%s2942_s16] sm:$0xf] %vm107_vm3, %v2940_v17 }
 0xaea LB: > { %3026 = vmatpush.msra.mxu2 %v7585_v28  ;;  %2981 = vmatpush.msra.mxu0 %v7580_v27  ;;  %s5632_s18 = sshll.u32 %s6292_s17, 3  ;;  %s5647_s14 = sshll.u32 %s6292_s17, 2  ;;  %s6292_s17 = sphi %s7654_s17, %s2949_s17  }
 0xaeb   : > { %3003 = vmatpush.msra.mxu1 %v7575_v55  ;;  %3050 = vmatpush.msra.mxu3 %v7590_v31  ;;  %s5187_s19 = scalar_lea.vmem [#allocation9], %s5632_s18  ;;  %s5196_s20 = scalar_lea.vmem [#allocation10], %s5647_s14 }
 0xaec   : > { %3122 = vmatpush.msrb.mxu2 %v7605_v34  ;;  %3074 = vmatpush.msrb.mxu0 %v7595_v32  ;;  %v5633_v23 = vld [vmem:[%s5187_s19 + $0x30] sm:$0x3f]  ;;  %v5635_v24 = vld [vmem:[%s5187_s19 + $0x38] sm:$0x3f]  ;;  %v5637_v18 = vld [vmem:[%s5187_s19 + $0x40] sm:$0x3f] }
 0xaed   : > { %3146 = vmatpush.msrb.mxu3 %v7610_v35  ;;  %3098 = vmatpush.msrb.mxu1 %v7600_v33  ;;  %v3008_v25 = vrot.slane %v5633_v23, 2  ;;  %v2963_v59 = vrot.slane %v5633_v23, 1  ;;  %v3128_v45 = vrot.slane %v5637_v18, 1  ;;  %v3080_v46 = vrot.slane %v5635_v24, 2  ;;  %s2949_s17 = sadd.s32 1, %s6292_s17  }
 0xaee   : > { %5639 = vmatmul.msk.f32.vlgmr.msra.gmra.mxu1 %vm128_vm4, %v5633_v23  ;;  %5641 = vmatmul.msk.f32.vlgmr.msra.gmra.mxu3 %vm128_vm4, %v5635_v24  ;;  %v3056_v2 = vrot.slane %v5635_v24, 1  ;;  %v3152_v3 = vrot.slane %v5637_v18, 2  ;;  %p2946_p3 = scmp.ge.s32.totalorder %s2949_s17, 4  }
 0xaef   : > { %5640 = vmatmul.msk.f32.vlgmr.msra.gmra.mxu2 %vm128_vm4, %v3008_v25  ;;  %5638 = vmatmul.msk.f32.vlgmr.msra.gmra.mxu0 %vm128_vm4, %v2963_v59  ;;  %s6294_s21 = smov (%p2946_p3), 0  }
 0xaf0   : > { %3170 = vmatpush.msra.mxu0 %v7615_v36 }
 0xaf6   : > { %5645 = vmatmul.msk.f32.vlgmr.msrb.gmra.mxu3 %vm128_vm4, %v3128_v45  ;;  %5643 = vmatmul.msk.f32.vlgmr.msrb.gmra.mxu1 %vm128_vm4, %v3080_v46 }
 0xaf7   : > { %5644 = vmatmul.msk.f32.vlgmr.msrb.gmra.mxu2 %vm128_vm4, %v5637_v18  ;;  %5642 = vmatmul.msk.f32.vlgmr.msrb.gmra.mxu0 %vm128_vm4, %v3056_v2 }
 0xaff   : > { %5646 = vmatmul.msk.f32.vlgmr.msra.gmra.mxu0 %vm128_vm4, %v3152_v3 }
 0xb6b   : > { %v3005_v56 = vpop.f32.mrf.mxu1 }
 0xb6c   : > { %v2983_v4 = vpop.f32.mrf.mxu0 }
 0xb6d   : > { %v3006_v47 = vadd.f32 %v3005_v56, %v2983_v4 }
 0xb71   : > { %v3052_v39 = vpop.f32.mrf.mxu3 }
 0xb72   : > { %v3028_v48 = vpop.f32.mrf.mxu2 }
 0xb73   : > { %v3031_v49 = vadd.f32 %v3028_v48, %v3006_v47  ;;  %v3100_v51 = vpop.f32.mrf.mxu1 }
 0xb74   : > { %v3076_v50 = vpop.f32.mrf.mxu0 }
 0xb75   : > { %v3055_v41 = vadd.f32 %v3052_v39, %v3031_v49 }
 0xb77   : > { %v3079_v52 = vadd.f32 %v3076_v50, %v3055_v41 }
 0xb79   : > { %v3103_v53 = vadd.f32 %v3100_v51, %v3079_v52  ;;  %v3148_v40 = vpop.f32.mrf.mxu3 }
 0xb7a   : > { %v3124_v54 = vpop.f32.mrf.mxu2 }
 0xb7b   : > { %v3127_v60 = vadd.f32 %v3124_v54, %v3103_v53 }
 0xb7c   : > { %v3172_v61 = vpop.f32.mrf.mxu0 }
 0xb7d   : > { %v3151_v62 = vadd.f32 %v3148_v40, %v3127_v60 }
 0xb7f   : > { %v3175_v63 = vadd.f32 %v3172_v61, %v3151_v62  ;;  %2948 = sbr.rel (!%p2946_p3) target bundleno = 2794 (0xaea), region = 541 }
 0xb81   : > { %v3179_v0 = vadd.f32 %v3175_v63, %v2938_v15 }
 0xb83   : > { %5648 = vst.msk [vmem:[%s5196_s20 + $0x10] sm:$0xf] %vm107_vm3, %v3179_v0 }
 0xb84 LB: > { %s5649_s0 = sshll.u32 %s6296_s21, 2  ;;  %vm3197_vm2 = vcmask 1043456   ;;  %vm3193_vm15 = vcmask 31744   ;;  %s5855_s7 = sshll.u32 %s6296_s21, 5  ;;  %s6296_s21 = sphi %s6294_s21, %s3189_s21  }
 0xb85   : > { %s3191_s22 = scalar_lea.vmem [#allocation10], %s5649_s0  ;;  %s5202_s8 = scalar_lea.vmem [#allocation11], %s5855_s7 }
 0xb86   : > { %s3189_s21 = sadd.s32 1, %s6296_s21  }
 0xb87   : > { %p3186_p4 = scmp.ge.s32.totalorder %s3189_s21, 4  }
 0xb88   :  { %s6298_s23 = smov (%p3186_p4), 0  }
 0xb8a   : > { %v3192_v5 = vld [vmem:[%s3191_s22] sm:$0xf] }
 0xb8b   : > { %5650 = vmatpush.msk.msra.mxu0 %vm3197_vm2, %v3192_v5 }
 0xb8c   : > { %5651 = vmatmul.msk.f32.vlgmr.msra.gmra.mxu0 %vm3193_vm15, %v7556_v26 }
 0xc09   : > { %v3218_v7 = vpop.f32.mrf.mxu0 }
 0xc0a   : > { %v3222_v8 = vrot.slane %v3218_v7, 6 }
 0xc0c   : > { %v3225_v9 = vsel %vm2603_vm13, 0.0, %v3222_v8  ;;  %v3226_v55 = vsel %vm2603_vm13, %v3222_v8, 0.0  ;;  %3188 = sbr.rel (!%p3186_p4) target bundleno = 2948 (0xb84), region = 552 }
 0xc0d   : > { %5654 = vst.msk [vmem:[%s5202_s8 + $0x20] sm:$0xff] %vm128_vm4, %v3225_v9 }
 0xc0e   : > { %5655 = vst.msk [vmem:[%s5202_s8 + $0x28] sm:$0xf] %vm107_vm3, %v3226_v55 }
 0xc0f   : > { %5658 = vst.msk [vmem:[%s5202_s8 + $0x30] sm:$0xff] %vm128_vm4, %v3225_v9 }
 0xc10   : > { %5659 = vst.msk [vmem:[%s5202_s8 + $0x38] sm:$0xf] %vm107_vm3, %v3226_v55 }
 0xc11 LB: > { %s5660_s24 = sshll.u32 %s6300_s23, 2  ;;  %s5857_s2 = sshll.u32 %s6300_s23, 5  ;;  %s6300_s23 = sphi %s6298_s23, %s3243_s23  }
 0xc12   : > { %s5209_s1 = scalar_lea.vmem [#allocation10], %s5660_s24  ;;  %s5213_s25 = scalar_lea.vmem [#allocation11], %s5857_s2 }
 0xc13   : > { %v5661_v27 = vld [vmem:[%s5209_s1 + $0x10] sm:$0xf]  ;;  %s3243_s23 = sadd.s32 1, %s6300_s23  }
 0xc14   : > { %5662 = vmatpush.msk.msra.mxu0 %vm3197_vm2, %v5661_v27  ;;  %p3240_p5 = scmp.ge.s32.totalorder %s3243_s23, 4  }
 0xc15   : > { %5663 = vmatmul.msk.f32.vlgmr.msra.gmra.mxu0 %vm3193_vm15, %v7556_v26  ;;  %v7706_v34 = vld [vmem:[%s8230_s11] sm:$0xff] (%p3240_p5)  ;;  %v7711_v35 = vld [vmem:[%s8230_s11 + $0x8] sm:$0xff] (%p3240_p5)  ;;  %v7716_v36 = vld [vmem:[%s8230_s11 + $0x10] sm:$0xff] (%p3240_p5)  ;;  %s7753_s7 = smov (%p3240_p5), 0  }
 0xc16   :  { %v7721_v37 = vld [vmem:[%s8230_s11 + $0x18] sm:$0xff] (%p3240_p5)  ;;  %v7726_v10 = vld [vmem:[%s8230_s11 + $0x20] sm:$0xff] (%p3240_p5)  ;;  %v7731_v11 = vld [vmem:[%s8230_s11 + $0x28] sm:$0xff] (%p3240_p5) }
 0xc17   :  { %v7736_v19 = vld [vmem:[%s8230_s11 + $0x30] sm:$0xff] (%p3240_p5)  ;;  %v7741_v20 = vld [vmem:[%s8230_s11 + $0x38] sm:$0xff] (%p3240_p5)  ;;  %v7746_v21 = vld [vmem:[%s8230_s11 + $0x40] sm:$0xff] (%p3240_p5) }
 0xc18   :  { %v7751_v22 = vld [vmem:[%s8231_s12] sm:$0x1] (%p3240_p5) }
 0xc92   : > { %v3273_v28 = vpop.f32.mrf.mxu0 }
 0xc93   : > { %v3277_v31 = vrot.slane %v3273_v28, 6 }
 0xc95   : > { %v3280_v32 = vsel %vm2603_vm13, 0.0, %v3277_v31  ;;  %v3281_v33 = vsel %vm2603_vm13, %v3277_v31, 0.0  ;;  %3242 = sbr.rel (!%p3240_p5) target bundleno = 3089 (0xc11), region = 563 }
 0xc96   : > { %5666 = vst.msk [vmem:[%s5213_s25 + $0xe0] sm:$0xff] %vm128_vm4, %v3280_v32 }
 0xc97   : > { %5667 = vst.msk [vmem:[%s5213_s25 + $0xe8] sm:$0xf] %vm107_vm3, %v3281_v33 }
 0xc98   : > { %5670 = vst.msk [vmem:[%s5213_s25 + $0xf0] sm:$0xff] %vm128_vm4, %v3280_v32 }
 0xc99   : > { %5671 = vst.msk [vmem:[%s5213_s25 + $0xf8] sm:$0xf] %vm107_vm3, %v3281_v33 }
 0xc9a LB: > { %5859 = vmatpush.msra.mxu1 %v7711_v35  ;;  %3406 = vmatpush.msra.mxu2 %v7716_v36  ;;  %s5672_s11 = sshll.u32 %s6304_s7, 4  ;;  %v7796_v33 = vperm.slane %v7751_v22, 0  ;;  %s3308_s7 = sadd.s32 1, %s6304_s7   ;;  %s6304_s7 = sphi %s7753_s7, %s3308_s7  }
 0xc9b   : > { %3348 = vmatpush.msra.mxu0 %v7711_v35  ;;  %3437 = vmatpush.msra.mxu3 %v7721_v37  ;;  %s3310_s12 = scalar_lea.vmem [#allocation11], %s5672_s11  ;;  %s3611_s8 = scalar_lea.vmem [#allocation12], %s5672_s11 }
 0xc9c   : > { %3375 = vmatpush.msrb.mxu1 %v7706_v34  ;;  %3532 = vmatpush.msrb.mxu2 %v7736_v19  ;;  %p3305_p6 = scmp.ge.s32.totalorder %s3308_s7, 10  }
 0xc9d   : > { %3469 = vmatpush.msrb.mxu0 %v7726_v10  ;;  %3564 = vmatpush.msrb.mxu3 %v7741_v20  ;;  %s7807_s23 = smov (%p3305_p6), 0  }
 0xca0   : > { %v3312_v29 = vld [vmem:[%s3310_s12 + $0x8] sm:$0xf]  ;;  %v3311_v30 = vld [vmem:[%s3310_s12] sm:$0xff]  ;;  %v5674_v6 = vld [vmem:[%s3310_s12 + $0x10] sm:$0xff] }
 0xca1   : > { %v3327_v12 = vrot.slane %v3312_v29, 1  ;;  %v3384_v44 = vrot.slane %v3311_v30, 2  ;;  %v3385_v42 = vrot.slane %v3312_v29, 2  ;;  %v3326_v43 = vrot.slane %v3311_v30, 1  ;;  %5685 = vmatmul.msk.f32.vlgmr.msra.gmra.mxu3 %vm128_vm4, %v5674_v6  ;;  %v5675_v13 = vld [vmem:[%s3310_s12 + $0x18] sm:$0xf] }
 0xca2   : > { %v3447_v16 = vrot.slane %v5674_v6, 1  ;;  %v3448_v17 = vrot.slane %v5675_v13, 1  ;;  %v5677_v23 = vld [vmem:[%s3310_s12 + $0x20] sm:$0xff]  ;;  %v5678_v24 = vld [vmem:[%s3310_s12 + $0x28] sm:$0xf]  ;;  %v3479_v46 = vrot.slane %v5674_v6, 2 }
 0xca3   : > { %5680 = vmatmul.msk.f32.vlgmr.msra.gmra.mxu1 %vm128_vm4, %v3327_v12  ;;  %v3386_v14 = vsel %vm380_vm7, %v3384_v44, %v3385_v42  ;;  %v3328_v15 = vsel %vm363_vm6, %v3326_v43, %v3327_v12  ;;  %v3542_v59 = vrot.slane %v5677_v23, 1  ;;  %v3543_v18 = vrot.slane %v5678_v24, 1 }
 0xca4   : > { %5683 = vmatmul.msk.f32.vlgmr.msra.gmra.mxu2 %vm128_vm4, %v3386_v14  ;;  %5679 = vmatmul.msk.f32.vlgmr.msra.gmra.mxu0 %vm128_vm4, %v3328_v15  ;;  %v3449_v25 = vsel %vm363_vm6, %v3447_v16, %v3448_v17  ;;  %v3480_v2 = vrot.slane %v5675_v13, 2  ;;  %v3574_v3 = vrot.slane %v5677_v23, 2  ;;  %v3575_v4 = vrot.slane %v5678_v24, 2 }
 0xca5   : > { %3501 = vmatpush.msra.mxu1 %v7731_v11  ;;  %3596 = vmatpush.msra.mxu0 %v7746_v21  ;;  %v3544_v45 = vsel %vm363_vm6, %v3542_v59, %v3543_v18 }
 0xca6   : > { %v3481_v56 = vsel %vm380_vm7, %v3479_v46, %v3480_v2  ;;  %v3576_v39 = vsel %vm380_vm7, %v3574_v3, %v3575_v4 }
 0xca9   : > { %5686 = vmatmul.msk.f32.gmra.mxu3 %vm128_vm4, %v5675_v13 }
 0xcab   : > { %5681 = vmatmul.msk.f32.vlgmr.msrb.gmra.mxu1 %vm128_vm4, %v3311_v30 }
 0xcac   : > { %5684 = vmatmul.msk.f32.gmra.mxu2 %vm128_vm4, %v3385_v42  ;;  %5687 = vmatmul.msk.f32.vlgmr.msrb.gmra.mxu0 %vm128_vm4, %v3449_v25 }
 0xcb1   : > { %5693 = vmatmul.msk.f32.vlgmr.msrb.gmra.mxu3 %vm128_vm4, %v3544_v45 }
 0xcb3   : > { %5682 = vmatmul.msk.f32.gmra.mxu1 %vm128_vm4, %v3312_v29 }
 0xcb4   : > { %5691 = vmatmul.msk.f32.vlgmr.msrb.gmra.mxu2 %vm128_vm4, %v5677_v23  ;;  %5688 = vmatmul.msk.f32.gmra.mxu0 %vm128_vm4, %v3448_v17 }
 0xcb9   : > { %5694 = vmatmul.msk.f32.gmra.mxu3 %vm128_vm4, %v3543_v18 }
 0xcbb   : > { %5689 = vmatmul.msk.f32.vlgmr.msra.gmra.mxu1 %vm128_vm4, %v3481_v56 }
 0xcbc   : > { %5692 = vmatmul.msk.f32.gmra.mxu2 %vm128_vm4, %v5678_v24  ;;  %5695 = vmatmul.msk.f32.vlgmr.msra.gmra.mxu0 %vm128_vm4, %v3576_v39 }
 0xcc3   : > { %5690 = vmatmul.msk.f32.gmra.mxu1 %vm128_vm4, %v3480_v2 }
 0xcc4   : > { %5696 = vmatmul.msk.f32.gmra.mxu0 %vm128_vm4, %v3575_v4 }
 0xd20   : > { %v3353_v47 = vpop.f32.mrf.mxu1 }
 0xd21   : > { %v3350_v48 = vpop.f32.mrf.mxu0 }
 0xd24   : > { %v3439_v49 = vpop.f32.mrf.mxu3 }
 0xd27   : > { %v3408_v50 = vpop.f32.mrf.mxu2 }
 0xd28   : > { %v3377_v41 = vpop.f32.mrf.mxu1 }
 0xd29   : > { %v3471_v51 = vpop.f32.mrf.mxu0  ;;  %v3378_v52 = vadd.f32 %v3377_v41, %v3350_v48 }
 0xd2b   : > { %v3414_v54 = vadd.f32 %v3408_v50, %v3378_v52 }
 0xd2c   : > { %v3442_v53 = vpop.f32.mrf.mxu3 }
 0xd2d   : > { %v3445_v62 = vadd.f32 %v3439_v49, %v3414_v54 }
 0xd2f   : > { %v3411_v40 = vpop.f32.mrf.mxu2  ;;  %v3477_v0 = vadd.f32 %v3471_v51, %v3445_v62 }
 0xd30   : > { %v3380_v60 = vpop.f32.mrf.mxu1 }
 0xd31   : > { %v3474_v61 = vpop.f32.mrf.mxu0  ;;  %v3381_v63 = vadd.f32 %v3380_v60, %v3353_v47 }
 0xd33   : > { %v3415_v5 = vadd.f32 %v3411_v40, %v3381_v63 }
 0xd34   : > { %v3566_v9 = vpop.f32.mrf.mxu3 }
 0xd35   : > { %v3446_v28 = vadd.f32 %v3442_v53, %v3415_v5 }
 0xd37   : > { %v3534_v7 = vpop.f32.mrf.mxu2  ;;  %v3478_v29 = vadd.f32 %v3474_v61, %v3446_v28 }
 0xd38   : > { %v3503_v8 = vpop.f32.mrf.mxu1 }
 0xd39   : > { %v3509_v55 = vadd.f32 %v3503_v8, %v3477_v0  ;;  %v3598_v27 = vpop.f32.mrf.mxu0 }
 0xd3b   : > { %v3540_v31 = vadd.f32 %v3534_v7, %v3509_v55 }
 0xd3c   : > { %v3569_v43 = vpop.f32.mrf.mxu3 }
 0xd3d   : > { %v3572_v32 = vadd.f32 %v3566_v9, %v3540_v31 }
 0xd3f   : > { %v3604_v30 = vadd.f32 %v3598_v27, %v3572_v32  ;;  %v3537_v12 = vpop.f32.mrf.mxu2 }
 0xd40   : > { %v3506_v6 = vpop.f32.mrf.mxu1 }
 0xd41   : > { %v3609_v44 = vadd.f32 %v7796_v33, %v3604_v30  ;;  %v3510_v42 = vadd.f32 %v3506_v6, %v3478_v29  ;;  %v3601_v14 = vpop.f32.mrf.mxu0 }
 0xd43   : > { %3612 = vst.msk [vmem:[%s3611_s8] sm:$0xff] %vm52_vm0, %v3609_v44  ;;  %v3541_v13 = vadd.f32 %v3537_v12, %v3510_v42 }
 0xd45   : > { %v3573_v15 = vadd.f32 %v3569_v43, %v3541_v13 }
 0xd47   : > { %v3605_v16 = vadd.f32 %v3601_v14, %v3573_v15  ;;  %3307 = sbr.rel (!%p3305_p6) target bundleno = 3226 (0xc9a), region = 574 }
 0xd49   : > { %v3610_v17 = vadd.f32 %v7796_v33, %v3605_v16 }
 0xd4b   : > { %3613 = vst.msk [vmem:[%s3611_s8 + $0x8] sm:$0x3] %vm54_vm1, %v3610_v17 }
 0xd4c LB: > { %5860 = vmatpush.msra.mxu1 %v7711_v35  ;;  %3718 = vmatpush.msra.mxu2 %v7716_v36  ;;  %s5697_s24 = sshll.u32 %s6308_s23, 4  ;;  %s3619_s23 = sadd.s32 1, %s6308_s23   ;;  %s6308_s23 = sphi %s7807_s23, %s3619_s23  }
 0xd4d   : > { %3660 = vmatpush.msra.mxu0 %v7711_v35  ;;  %3749 = vmatpush.msra.mxu3 %v7721_v37  ;;  %s5230_s1 = scalar_lea.vmem [#allocation11], %s5697_s24  ;;  %s5239_s2 = scalar_lea.vmem [#allocation12], %s5697_s24 }
 0xd4e   : > { %3687 = vmatpush.msrb.mxu1 %v7706_v34  ;;  %3844 = vmatpush.msrb.mxu2 %v7736_v19  ;;  %v5699_v22 = vld [vmem:[%s5230_s1 + $0xc8] sm:$0xf]  ;;  %v5698_v23 = vld [vmem:[%s5230_s1 + $0xc0] sm:$0xff]  ;;  %v5701_v24 = vld [vmem:[%s5230_s1 + $0xd0] sm:$0xff]  ;;  %p3616_p7 = scmp.ge.s32.totalorder %s3619_s23, 10  }
 0xd4f   : > { %3781 = vmatpush.msrb.mxu0 %v7726_v10  ;;  %3876 = vmatpush.msrb.mxu3 %v7741_v20  ;;  %v3639_v25 = vrot.slane %v5699_v22, 1  ;;  %v3696_v59 = vrot.slane %v5698_v23, 2  ;;  %v3697_v18 = vrot.slane %v5699_v22, 2  ;;  %v3638_v45 = vrot.slane %v5698_v23, 1  ;;  %v5702_v46 = vld [vmem:[%s5230_s1 + $0xd8] sm:$0xf] }
 0xd50   : > { %5712 = vmatmul.msk.f32.vlgmr.msra.gmra.mxu3 %vm128_vm4, %v5701_v24  ;;  %v3759_v4 = vrot.slane %v5701_v24, 1  ;;  %v3760_v56 = vrot.slane %v5702_v46, 1  ;;  %v5704_v39 = vld [vmem:[%s5230_s1 + $0xe0] sm:$0xff]  ;;  %v5705_v47 = vld [vmem:[%s5230_s1 + $0xe8] sm:$0xf]  ;;  %v3791_v51 = vrot.slane %v5701_v24, 2 }
 0xd51   : > { %5707 = vmatmul.msk.f32.vlgmr.msra.gmra.mxu1 %vm128_vm4, %v3639_v25  ;;  %v3698_v2 = vsel %vm380_vm7, %v3696_v59, %v3697_v18  ;;  %v3640_v3 = vsel %vm363_vm6, %v3638_v45, %v3639_v25  ;;  %v3854_v49 = vrot.slane %v5704_v39, 1  ;;  %v3855_v50 = vrot.slane %v5705_v47, 1  ;;  %s7870_s25 = smov (%p3616_p7), 0  }
 0xd52   : > { %5710 = vmatmul.msk.f32.vlgmr.msra.gmra.mxu2 %vm128_vm4, %v3698_v2  ;;  %5706 = vmatmul.msk.f32.vlgmr.msra.gmra.mxu0 %vm128_vm4, %v3640_v3  ;;  %v3761_v48 = vsel %vm363_vm6, %v3759_v4, %v3760_v56  ;;  %v3792_v52 = vrot.slane %v5702_v46, 2  ;;  %v3886_v53 = vrot.slane %v5704_v39, 2  ;;  %v3887_v54 = vrot.slane %v5705_v47, 2 }
 0xd53   : > { %3813 = vmatpush.msra.mxu1 %v7731_v11  ;;  %3908 = vmatpush.msra.mxu0 %v7746_v21  ;;  %v3856_v41 = vsel %vm363_vm6, %v3854_v49, %v3855_v50 }
 0xd54   : > { %v3793_v40 = vsel %vm380_vm7, %v3791_v51, %v3792_v52  ;;  %v3888_v60 = vsel %vm380_vm7, %v3886_v53, %v3887_v54 }
 0xd58   : > { %5713 = vmatmul.msk.f32.gmra.mxu3 %vm128_vm4, %v5702_v46 }
 0xd59   : > { %5708 = vmatmul.msk.f32.vlgmr.msrb.gmra.mxu1 %vm128_vm4, %v5698_v23 }
 0xd5a   : > { %5711 = vmatmul.msk.f32.gmra.mxu2 %vm128_vm4, %v3697_v18  ;;  %5714 = vmatmul.msk.f32.vlgmr.msrb.gmra.mxu0 %vm128_vm4, %v3761_v48 }
 0xd60   : > { %5720 = vmatmul.msk.f32.vlgmr.msrb.gmra.mxu3 %vm128_vm4, %v3856_v41 }
 0xd61   : > { %5709 = vmatmul.msk.f32.gmra.mxu1 %vm128_vm4, %v5699_v22 }
 0xd62   : > { %5718 = vmatmul.msk.f32.vlgmr.msrb.gmra.mxu2 %vm128_vm4, %v5704_v39  ;;  %5715 = vmatmul.msk.f32.gmra.mxu0 %vm128_vm4, %v3760_v56  ;;  %v3928_v56 = vadd.s32 (%p3616_p7), 8, %v7067_v38  ;;  %v3929_v39 = vadd.s32 (%p3616_p7), 16, %v7067_v38 }
 0xd64   :  { %vm3930_vm3 = vcmp.eq.s32.totalorder (%p3616_p7), %v3928_v56, %v7546_v57  ;;  %vm3931_vm8 = vcmp.eq.s32.totalorder (%p3616_p7), %v3929_v39, %v7546_v57  ;;  %vm3932_vm9 = vcmp.eq.s32.totalorder (%p3616_p7), %v3928_v56, %v7551_v58  ;;  %vm3933_vm11 = vcmp.eq.s32.totalorder (%p3616_p7), %v3929_v39, %v7551_v58 }
 0xd65   :  { %vm3934_vm14 = vmor (%p3616_p7), %vm3930_vm3, %vm3932_vm9 }
 0xd66   :  { %vm3935_vm2 = vmor (%p3616_p7), %vm3931_vm8, %vm3933_vm11 }
 0xd67   :  { %v7868_v48 = vsel (%p3616_p7), %vm3935_vm2, 1.0, %v6326_v1 }
 0xd68   : > { %5721 = vmatmul.msk.f32.gmra.mxu3 %vm128_vm4, %v3855_v50 }
 0xd69   : > { %5716 = vmatmul.msk.f32.vlgmr.msra.gmra.mxu1 %vm128_vm4, %v3793_v40 }
 0xd6a   : > { %5719 = vmatmul.msk.f32.gmra.mxu2 %vm128_vm4, %v5705_v47  ;;  %5722 = vmatmul.msk.f32.vlgmr.msra.gmra.mxu0 %vm128_vm4, %v3888_v60  ;;  %v7865_v47 = vsel (%p3616_p7), %vm3934_vm14, 1.0, %v6326_v1 }
 0xd71   : > { %5717 = vmatmul.msk.f32.gmra.mxu1 %vm128_vm4, %v3792_v52 }
 0xd72   : > { %5723 = vmatmul.msk.f32.gmra.mxu0 %vm128_vm4, %v3887_v54 }
 0xdce   : > { %v3665_v61 = vpop.f32.mrf.mxu1 }
 0xdcf   : > { %v3662_v62 = vpop.f32.mrf.mxu0 }
 0xdd3   : > { %v3751_v63 = vpop.f32.mrf.mxu3 }
 0xdd5   : > { %v3720_v0 = vpop.f32.mrf.mxu2 }
 0xdd6   : > { %v3689_v5 = vpop.f32.mrf.mxu1 }
 0xdd7   : > { %v3783_v7 = vpop.f32.mrf.mxu0  ;;  %v3690_v8 = vadd.f32 %v3689_v5, %v3662_v62 }
 0xdd9   : > { %v3726_v55 = vadd.f32 %v3720_v0, %v3690_v8 }
 0xddb   : > { %v3754_v9 = vpop.f32.mrf.mxu3  ;;  %v3757_v32 = vadd.f32 %v3751_v63, %v3726_v55 }
 0xddd   : > { %v3723_v27 = vpop.f32.mrf.mxu2  ;;  %v3789_v30 = vadd.f32 %v3783_v7, %v3757_v32 }
 0xdde   : > { %v3692_v28 = vpop.f32.mrf.mxu1 }
 0xddf   : > { %v3786_v31 = vpop.f32.mrf.mxu0  ;;  %v3693_v29 = vadd.f32 %v3692_v28, %v3665_v61 }
 0xde1   : > { %v3727_v6 = vadd.f32 %v3723_v27, %v3693_v29 }
 0xde3   : > { %v3878_v42 = vpop.f32.mrf.mxu3  ;;  %v3758_v14 = vadd.f32 %v3754_v9, %v3727_v6 }
 0xde5   : > { %v3846_v12 = vpop.f32.mrf.mxu2  ;;  %v3790_v17 = vadd.f32 %v3786_v31, %v3758_v14 }
 0xde6   : > { %v3815_v44 = vpop.f32.mrf.mxu1 }
 0xde7   : > { %v3821_v43 = vadd.f32 %v3815_v44, %v3789_v30  ;;  %v3910_v13 = vpop.f32.mrf.mxu0 }
 0xde9   : > { %v3852_v15 = vadd.f32 %v3846_v12, %v3821_v43 }
 0xdeb   : > { %v3884_v16 = vadd.f32 %v3878_v42, %v3852_v15  ;;  %v3881_v18 = vpop.f32.mrf.mxu3 }
 0xded   : > { %v3916_v22 = vadd.f32 %v3910_v13, %v3884_v16  ;;  %v3849_v24 = vpop.f32.mrf.mxu2 }
 0xdee   : > { %v3818_v23 = vpop.f32.mrf.mxu1 }
 0xdef   : > { %v3921_v25 = vadd.f32 %v3916_v22, %v7796_v33  ;;  %v3822_v59 = vadd.f32 %v3818_v23, %v3790_v17  ;;  %v3913_v46 = vpop.f32.mrf.mxu0 }
 0xdf1   : > { %5725 = vst.msk [vmem:[%s5239_s2 + $0xa0] sm:$0xff] %vm52_vm0, %v3921_v25  ;;  %v3853_v45 = vadd.f32 %v3849_v24, %v3822_v59 }
 0xdf3   : > { %v3885_v2 = vadd.f32 %v3881_v18, %v3853_v45 }
 0xdf5   : > { %v3917_v3 = vadd.f32 %v3913_v46, %v3885_v2  ;;  %3618 = sbr.rel (!%p3616_p7) target bundleno = 3404 (0xd4c), region = 585 }
 0xdf7   : > { %v3922_v4 = vadd.f32 %v3917_v3, %v7796_v33 }
 0xdf9   : > { %5726 = vst.msk [vmem:[%s5239_s2 + $0xa8] sm:$0x3] %vm54_vm1, %v3922_v4 }
 0xdfa LB: > { %s5729_s26 = sshll.u32 %s6312_s25, 4  ;;  %vm3950_vm1 = vcmask 80896   ;;  %s5735_s6 = smul.u32 48, %s6312_s25  ;;  %s6312_s25 = sphi %s7870_s25, %s3945_s25  }
 0xdfb   : > { %s3947_s5 = scalar_lea.vmem [#allocation12], %s5729_s26  ;;  %s3945_s25 = sadd.s32 1, %s6312_s25  }
 0xdfc   : > { %s5245_s27 = scalar_lea.vmem [#allocation13], %s5735_s6  ;;  %p3942_p8 = scmp.ge.s32.totalorder %s3945_s25, 10  }
 0xdfd   :  { %s7899_s28 = smov (%p3942_p8), 0  }
 0xe00   : > { %v3949_v38 = vld [vmem:[%s3947_s5 + $0x8] sm:$0x3]  ;;  %v3948_v57 = vld [vmem:[%s3947_s5] sm:$0xff] }
 0xe01   : > { %5862 = vmatpush.msk.msra.mxu2 %vm2603_vm13, %v3949_v38  ;;  %5730 = vmatpush.msk.msra.mxu0 %vm2603_vm13, %v3949_v38 }
 0xe02   : > { %5861 = vmatpush.msk.msra.mxu1 %vm2603_vm13, %v3949_v38 }
 0xe03   : > { %5864 = vmatpush.msra.mxu2 %v3948_v57  ;;  %3979 = vmatpush.msra.mxu0 %v3948_v57 }
 0xe04   : > { %5733 = vmatmul.msk.f32.vlgmr.msra.gmra.mxu2 %vm3950_vm1, %v7868_v48  ;;  %5863 = vmatpush.msra.mxu1 %v3948_v57 }
 0xe05   : > { %5731 = vmatmul.msk.f32.vlgmr.msra.gmra.mxu0 %vm3950_vm1, %v7556_v26  ;;  %5732 = vmatmul.msk.f32.vlgmr.msra.gmra.mxu1 %vm3950_vm1, %v7865_v47 }
 0xe82   : > { %v3981_v1 = vpop.f32.mrf.mxu0  ;;  %v3984_v58 = vpop.f32.mrf.mxu1 }
 0xe83   : > { %v3994_v34 = vrot.slane %v3981_v1, 7  ;;  %v3995_v35 = vrot.slane %v3984_v58, 7 }
 0xe85   : > { %v4002_v36 = vsel %vm761_vm10, 0.0, %v3994_v34  ;;  %v3996_v37 = vsel %vm761_vm10, %v3994_v34, %v3995_v35 }
 0xe86   : > { %5736 = vst.msk [vmem:[%s5245_s27 + $0x18] sm:$0xff] %vm52_vm0, %v4002_v36 }
 0xe87   : > { %5741 = vst.msk [vmem:[%s5245_s27 + $0x30] sm:$0xff] %vm52_vm0, %v4002_v36  ;;  %v3987_v10 = vpop.f32.mrf.mxu2 }
 0xe88   : > { %5737 = vst.msk [vmem:[%s5245_s27 + $0x20] sm:$0xff] %vm52_vm0, %v3996_v37  ;;  %v3997_v11 = vrot.slane %v3987_v10, 7 }
 0xe89   : > { %5742 = vst.msk [vmem:[%s5245_s27 + $0x38] sm:$0xff] %vm52_vm0, %v3996_v37  ;;  %3944 = sbr.rel (!%p3942_p8) target bundleno = 3578 (0xdfa), region = 596 }
 0xe8a   : > { %v3998_v19 = vsel %vm761_vm10, %v3995_v35, %v3997_v11 }
 0xe8b   : > { %v4004_v20 = vsel %vm1425_vm12, %v3998_v19, 0.0 }
 0xe8c   : > { %5738 = vst.msk [vmem:[%s5245_s27 + $0x28] sm:$0x3f] %vm179_vm5, %v4004_v20 }
 0xe8d   : > { %5743 = vst.msk [vmem:[%s5245_s27 + $0x40] sm:$0x3f] %vm179_vm5, %v4004_v20 }
 0xe8e LB: > { %s5744_s3 = sshll.u32 %s6316_s28, 4  ;;  %s5752_s29 = smul.u32 48, %s6316_s28  ;;  %s6316_s28 = sphi %s7899_s28, %s4023_s28  }
 0xe8f   : > { %s5252_s4 = scalar_lea.vmem [#allocation12], %s5744_s3  ;;  %s4023_s28 = sadd.s32 1, %s6316_s28  }
 0xe90   : > { %v5746_v21 = vld [vmem:[%s5252_s4 + $0xa8] sm:$0x3]  ;;  %v5745_v33 = vld [vmem:[%s5252_s4 + $0xa0] sm:$0xff]  ;;  %s5256_s9 = scalar_lea.vmem [#allocation13], %s5752_s29  ;;  %p4020_p9 = scmp.ge.s32.totalorder %s4023_s28, 10  }
 0xe91   : > { %5866 = vmatpush.msk.msra.mxu2 %vm2603_vm13, %v5746_v21  ;;  %5747 = vmatpush.msk.msra.mxu0 %vm2603_vm13, %v5746_v21  ;;  %v7931_v62 = vld [vmem:[%s8232_s13] sm:$0xff] (%p4020_p9)  ;;  %v7936_v63 = vld [vmem:[%s8232_s13 + $0x8] sm:$0xff] (%p4020_p9)  ;;  %v7941_v0 = vld [vmem:[%s8232_s13 + $0x10] sm:$0xff] (%p4020_p9)  ;;  %s8020_s20 = smov (%p4020_p9), 0  }
 0xe92   : > { %5865 = vmatpush.msk.msra.mxu1 %vm2603_vm13, %v5746_v21  ;;  %v7946_v5 = vld [vmem:[%s8232_s13 + $0x18] sm:$0xff] (%p4020_p9)  ;;  %v7956_v7 = vld [vmem:[%s8232_s13 + $0x28] sm:$0xff] (%p4020_p9)  ;;  %v7961_v8 = vld [vmem:[%s8232_s13 + $0x30] sm:$0xff] (%p4020_p9) }
 0xe93   : > { %5868 = vmatpush.msra.mxu2 %v5745_v33  ;;  %4058 = vmatpush.msra.mxu0 %v5745_v33  ;;  %v7966_v9 = vld [vmem:[%s8232_s13 + $0x38] sm:$0xff] (%p4020_p9)  ;;  %v7971_v55 = vld [vmem:[%s8232_s13 + $0x40] sm:$0xff] (%p4020_p9)  ;;  %v7976_v27 = vld [vmem:[%s8232_s13 + $0x48] sm:$0xff] (%p4020_p9) }
 0xe94   : > { %5750 = vmatmul.msk.f32.vlgmr.msra.gmra.mxu2 %vm3950_vm1, %v7868_v48  ;;  %5867 = vmatpush.msra.mxu1 %v5745_v33  ;;  %v7981_v28 = vld [vmem:[%s8232_s13 + $0x50] sm:$0xff] (%p4020_p9)  ;;  %v7986_v31 = vld [vmem:[%s8232_s13 + $0x58] sm:$0xff] (%p4020_p9)  ;;  %v7991_v32 = vld [vmem:[%s8232_s13 + $0x60] sm:$0xff] (%p4020_p9) }
 0xe95   : > { %5748 = vmatmul.msk.f32.vlgmr.msra.gmra.mxu0 %vm3950_vm1, %v7556_v26  ;;  %5749 = vmatmul.msk.f32.vlgmr.msra.gmra.mxu1 %vm3950_vm1, %v7865_v47  ;;  %v7951_v26 = vld [vmem:[%s8232_s13 + $0x20] sm:$0xff] (%p4020_p9)  ;;  %v7996_v29 = vld [vmem:[%s8232_s13 + $0x68] sm:$0xff] (%p4020_p9)  ;;  %v8001_v30 = vld [vmem:[%s8232_s13 + $0x70] sm:$0xff] (%p4020_p9) }
 0xe96   :  { %v8006_v6 = vld [vmem:[%s8232_s13 + $0x78] sm:$0xff] (%p4020_p9)  ;;  %v8011_v12 = vld [vmem:[%s8232_s13 + $0x80] sm:$0xff] (%p4020_p9)  ;;  %v8016_v44 = vld [vmem:[%s8232_s13 + $0x88] sm:$0xff] (%p4020_p9) }
 0xe97   :  { %v8018_v42 = vld [vmem:[#allocation14] sm:$0x1] (%p4020_p9) }
 0xf12   : > { %v4060_v49 = vpop.f32.mrf.mxu0  ;;  %v4063_v50 = vpop.f32.mrf.mxu1 }
 0xf13   : > { %v4073_v41 = vrot.slane %v4060_v49, 7  ;;  %v4074_v51 = vrot.slane %v4063_v50, 7 }
 0xf15   : > { %v4081_v52 = vsel %vm761_vm10, 0.0, %v4073_v41  ;;  %v4075_v53 = vsel %vm761_vm10, %v4073_v41, %v4074_v51 }
 0xf16   : > { %5753 = vst.msk [vmem:[%s5256_s9 + $0x228] sm:$0xff] %vm52_vm0, %v4081_v52 }
 0xf17   : > { %5758 = vst.msk [vmem:[%s5256_s9 + $0x240] sm:$0xff] %vm52_vm0, %v4081_v52  ;;  %v4066_v54 = vpop.f32.mrf.mxu2 }
 0xf18   : > { %5754 = vst.msk [vmem:[%s5256_s9 + $0x230] sm:$0xff] %vm52_vm0, %v4075_v53  ;;  %v4076_v40 = vrot.slane %v4066_v54, 7 }
 0xf19   : > { %5759 = vst.msk [vmem:[%s5256_s9 + $0x248] sm:$0xff] %vm52_vm0, %v4075_v53  ;;  %4022 = sbr.rel (!%p4020_p9) target bundleno = 3726 (0xe8e), region = 607 }
 0xf1a   : > { %v4077_v60 = vsel %vm761_vm10, %v4074_v51, %v4076_v40 }
 0xf1b   : > { %v4083_v61 = vsel %vm1425_vm12, %v4077_v60, 0.0 }
 0xf1c   : > { %5755 = vst.msk [vmem:[%s5256_s9 + $0x238] sm:$0x3f] %vm179_vm5, %v4083_v61 }
 0xf1d   : > { %5760 = vst.msk [vmem:[%s5256_s9 + $0x250] sm:$0x3f] %vm179_vm5, %v4083_v61 }
 0xf1e LB: > { %5870 = vmatpush.msra.mxu2 %v7946_v5  ;;  %5869 = vmatpush.msra.mxu1 %v7946_v5  ;;  %s4122_s13 = smul.u32 24, %s6320_s20  ;;  %vm4553_vm12 = vcmask 7168   ;;  %vm4556_vm1 = vcmask 3072   ;;  %s4121_s20 = sadd.s32 1, %s6320_s20   ;;  %s6320_s20 = sphi %s8020_s20, %s4121_s20  }
 0xf1f   : > { %4168 = vmatpush.msra.mxu0 %v7946_v5  ;;  %4276 = vmatpush.msra.mxu3 %v7966_v9  ;;  %p4118_p10 = scmp.ge.s32.totalorder %s4121_s20, 20  }
 0xf20   : > { %5872 = vmatpush.msra.mxu2 %v7941_v0  ;;  %5871 = vmatpush.msra.mxu1 %v7941_v0  ;;  %s8038_s21 = scalar_lea.vmem [#allocation13], %s4122_s13  ;;  %s8111_s7 = scalar_lea.vmem %s8234_s15, %s4122_s13 }
 0xf21   : > { %4169 = vmatpush.msra.mxu0 %v7941_v0  ;;  %4277 = vmatpush.msra.mxu3 %v7961_v8  ;;  %s8122_s11 = smov (%p4118_p10), 0  }
 0xf22   : > { %4238 = vmatpush.msrb.mxu2 %v7956_v7  ;;  %4200 = vmatpush.msrb.mxu1 %v7936_v63 }
 0xf23   : > { %4316 = vmatpush.msrb.mxu0 %v7976_v27  ;;  %4434 = vmatpush.msrb.mxu3 %v8006_v6 }
 0xf24   : > { %v4126_v43 = vld [vmem:[%s8038_s21 + $0x10] sm:$0x3f]  ;;  %v4125_v13 = vld [vmem:[%s8038_s21 + $0x8] sm:$0xff]  ;;  %4239 = vmatpush.msrb.mxu2 %v7951_v26  ;;  %4201 = vmatpush.msrb.mxu1 %v7931_v62  ;;  %v4124_v16 = vld [vmem:[%s8038_s21] sm:$0xff] }
 0xf25   : > { %v4146_v14 = vrot.slane %v4126_v43, 1  ;;  %v4144_v15 = vrot.slane %v4125_v13, 1  ;;  %v5761_v17 = vld [vmem:[%s8038_s21 + $0x18] sm:$0xff]  ;;  %v4143_v22 = vrot.slane %v4124_v16, 1  ;;  %4317 = vmatpush.msrb.mxu0 %v7971_v55  ;;  %v5762_v24 = vld [vmem:[%s8038_s21 + $0x20] sm:$0xff]  ;;  %v4213_v25 = vrot.slane %v4124_v16, 2  ;;  %4435 = vmatpush.msrb.mxu3 %v8001_v30 }
 0xf26   : > { %5776 = vmatmul.msk.f32.vlgmr.msra.gmra.mxu3 %vm52_vm0, %v5761_v17  ;;  %v4214_v59 = vrot.slane %v4125_v13, 2  ;;  %v4291_v45 = vrot.slane %v5761_v17, 1  ;;  %v4292_v46 = vrot.slane %v5762_v24, 1  ;;  %v5763_v4 = vld [vmem:[%s8038_s21 + $0x28] sm:$0x3f]  ;;  %v4216_v56 = vrot.slane %v4126_v43, 2 }
 0xf27   : > { %5769 = vmatmul.msk.f32.vlgmr.msra.gmra.mxu2 %vm52_vm0, %v4146_v14  ;;  %v4147_v23 = vsel %vm363_vm6, %v4144_v15, %v4146_v14  ;;  %v4145_v18 = vsel %vm363_vm6, %v4143_v22, %v4144_v15  ;;  %v4294_v39 = vrot.slane %v5763_v4, 1  ;;  %v5764_v48 = vld [vmem:[%s8038_s21 + $0x30] sm:$0xff]  ;;  %v5765_v38 = vld [vmem:[%s8038_s21 + $0x38] sm:$0xff]  ;;  %v5766_v35 = vld [vmem:[%s8038_s21 + $0x40] sm:$0x3f]  ;;  %v4331_v37 = vrot.slane %v5761_v17, 2 }
 0xf28   : > { %5768 = vmatmul.msk.f32.vlgmr.msra.gmra.mxu1 %vm52_vm0, %v4147_v23  ;;  %4394 = vmatpush.msra.mxu2 %v7996_v29  ;;  %v4215_v2 = vsel %vm380_vm7, %v4213_v25, %v4214_v59  ;;  %v4293_v3 = vsel %vm363_vm6, %v4291_v45, %v4292_v46  ;;  %v4217_v47 = vsel %vm380_vm7, %v4214_v59, %v4216_v56  ;;  %v4409_v1 = vrot.slane %v5764_v48, 1 }
 0xf29   : > { %5767 = vmatmul.msk.f32.vlgmr.msra.gmra.mxu0 %vm52_vm0, %v4145_v18  ;;  %4356 = vmatpush.msra.mxu1 %v7986_v31  ;;  %v4295_v57 = vsel %vm363_vm6, %v4292_v46, %v4294_v39  ;;  %v4410_v58 = vrot.slane %v5765_v38, 1  ;;  %v4412_v36 = vrot.slane %v5766_v35, 1  ;;  %v4332_v10 = vrot.slane %v5762_v24, 2 }
 0xf2a   : > { %4474 = vmatpush.msra.mxu0 %v8016_v44  ;;  %4395 = vmatpush.msra.mxu2 %v7991_v32  ;;  %v4449_v11 = vrot.slane %v5764_v48, 2  ;;  %v4450_v19 = vrot.slane %v5765_v38, 2  ;;  %v4334_v49 = vrot.slane %v5763_v4, 2  ;;  %v4452_v50 = vrot.slane %v5766_v35, 2 }
 0xf2b   : > { %4357 = vmatpush.msra.mxu1 %v7981_v28  ;;  %v4411_v34 = vsel %vm363_vm6, %v4409_v1, %v4410_v58  ;;  %v4413_v20 = vsel %vm363_vm6, %v4410_v58, %v4412_v36  ;;  %v4333_v21 = vsel %vm380_vm7, %v4331_v37, %v4332_v10 }
 0xf2c   : > { %4475 = vmatpush.msra.mxu0 %v8011_v12  ;;  %v4451_v33 = vsel %vm380_vm7, %v4449_v11, %v4450_v19  ;;  %v4335_v41 = vsel %vm380_vm7, %v4332_v10, %v4334_v49  ;;  %v4453_v51 = vsel %vm380_vm7, %v4450_v19, %v4452_v50 }
 0xf2e   : > { %5777 = vmatmul.msk.f32.gmra.mxu3 %vm52_vm0, %v5762_v24 }
 0xf2f   : > { %5773 = vmatmul.msk.f32.vlgmr.msrb.gmra.mxu2 %vm52_vm0, %v4215_v2 }
 0xf30   : > { %5770 = vmatmul.msk.f32.vlgmr.msrb.gmra.mxu1 %vm52_vm0, %v4124_v16 }
 0xf31   : > { %5779 = vmatmul.msk.f32.vlgmr.msrb.gmra.mxu0 %vm52_vm0, %v4293_v3 }
 0xf36   : > { %5778 = vmatmul.msk.f32.gmra.mxu3 %vm52_vm0, %v5763_v4 }
 0xf37   : > { %5774 = vmatmul.msk.f32.gmra.mxu2 %vm52_vm0, %v4217_v47 }
 0xf38   : > { %5771 = vmatmul.msk.f32.gmra.mxu1 %vm52_vm0, %v4125_v13 }
 0xf39   : > { %5780 = vmatmul.msk.f32.gmra.mxu0 %vm52_vm0, %v4295_v57 }
 0xf3e   : > { %5788 = vmatmul.msk.f32.vlgmr.msrb.gmra.mxu3 %vm52_vm0, %v4411_v34  ;;  %v8101_v34 = vperm.slane %v8018_v42, 0 }
 0xf3f   : > { %5775 = vmatmul.msk.f32.gmra.mxu2 %vm52_vm0, %v4216_v56 }
 0xf40   : > { %5772 = vmatmul.msk.f32.gmra.mxu1 %vm52_vm0, %v4126_v43 }
 0xf41   : > { %5781 = vmatmul.msk.f32.gmra.mxu0 %vm52_vm0, %v4294_v39 }
 0xf46   : > { %5789 = vmatmul.msk.f32.gmra.mxu3 %vm52_vm0, %v4413_v20 }
 0xf47   : > { %5785 = vmatmul.msk.f32.vlgmr.msra.gmra.mxu2 %vm52_vm0, %v5764_v48 }
 0xf48   : > { %5782 = vmatmul.msk.f32.vlgmr.msra.gmra.mxu1 %vm52_vm0, %v4333_v21 }
 0xf49   : > { %5791 = vmatmul.msk.f32.vlgmr.msra.gmra.mxu0 %vm52_vm0, %v4451_v33 }
 0xf4e   : > { %5790 = vmatmul.msk.f32.gmra.mxu3 %vm52_vm0, %v4412_v36 }
 0xf4f   : > { %5786 = vmatmul.msk.f32.gmra.mxu2 %vm52_vm0, %v5765_v38 }
 0xf50   : > { %5783 = vmatmul.msk.f32.gmra.mxu1 %vm52_vm0, %v4335_v41 }
 0xf51   : > { %5792 = vmatmul.msk.f32.gmra.mxu0 %vm52_vm0, %v4453_v51 }
 0xf57   : > { %5787 = vmatmul.msk.f32.gmra.mxu2 %vm52_vm0, %v5766_v35 }
 0xf58   : > { %5784 = vmatmul.msk.f32.gmra.mxu1 %vm52_vm0, %v4334_v49 }
 0xf59   : > { %5793 = vmatmul.msk.f32.gmra.mxu0 %vm52_vm0, %v4452_v50 }
 0xfa5   : > { %v4174_v52 = vpop.f32.mrf.mxu1 }
 0xfa6   : > { %v4171_v53 = vpop.f32.mrf.mxu0 }
 0xfa9   : > { %v4279_v54 = vpop.f32.mrf.mxu3 }
 0xfaa   : > { %v4177_v40 = vpop.f32.mrf.mxu2 }
 0xfad   : > { %v4203_v60 = vpop.f32.mrf.mxu1 }
 0xfae   : > { %v4319_v61 = vpop.f32.mrf.mxu0  ;;  %v4204_v22 = vadd.f32 %v4203_v60, %v4171_v53 }
 0xfb1   : > { %v4282_v13 = vpop.f32.mrf.mxu3 }
 0xfb2   : > { %v4241_v43 = vpop.f32.mrf.mxu2 }
 0xfb3   : > { %v4250_v25 = vadd.f32 %v4241_v43, %v4204_v22 }
 0xfb5   : > { %v4206_v14 = vpop.f32.mrf.mxu1  ;;  %v4288_v18 = vadd.f32 %v4279_v54, %v4250_v25 }
 0xfb6   : > { %v4322_v15 = vpop.f32.mrf.mxu0  ;;  %v4207_v45 = vadd.f32 %v4206_v14, %v4174_v52 }
 0xfb7   : > { %v4328_v3 = vadd.f32 %v4319_v61, %v4288_v18 }
 0xfb9   : > { %v4285_v17 = vpop.f32.mrf.mxu3 }
 0xfba   : > { %v4244_v16 = vpop.f32.mrf.mxu2 }
 0xfbb   : > { %v4251_v4 = vadd.f32 %v4244_v16, %v4207_v45 }
 0xfbd   : > { %v4209_v23 = vpop.f32.mrf.mxu1  ;;  %v4289_v48 = vadd.f32 %v4282_v13, %v4251_v4 }
 0xfbe   : > { %v4325_v24 = vpop.f32.mrf.mxu0  ;;  %v4210_v57 = vadd.f32 %v4209_v23, %v4177_v40 }
 0xfbf   : > { %v4329_v35 = vadd.f32 %v4322_v15, %v4289_v48 }
 0xfc1   : > { %v4437_v2 = vpop.f32.mrf.mxu3 }
 0xfc2   : > { %v4247_v59 = vpop.f32.mrf.mxu2 }
 0xfc3   : > { %v4252_v36 = vadd.f32 %v4247_v59, %v4210_v57 }
 0xfc5   : > { %v4359_v46 = vpop.f32.mrf.mxu1  ;;  %v4290_v33 = vadd.f32 %v4285_v17, %v4252_v36 }
 0xfc6   : > { %v4477_v56 = vpop.f32.mrf.mxu0  ;;  %v4368_v39 = vadd.f32 %v4359_v46, %v4328_v3 }
 0xfc7   : > { %v4330_v52 = vadd.f32 %v4325_v24, %v4290_v33 }
 0xfc9   : > { %v4440_v10 = vpop.f32.mrf.mxu3 }
 0xfca   : > { %v4397_v47 = vpop.f32.mrf.mxu2 }
 0xfcb   : > { %v4406_v38 = vadd.f32 %v4397_v47, %v4368_v39 }
 0xfcd   : > { %v4446_v1 = vadd.f32 %v4437_v2, %v4406_v38  ;;  %v4362_v58 = vpop.f32.mrf.mxu1 }
 0xfce   : > { %v4369_v11 = vadd.f32 %v4362_v58, %v4329_v35  ;;  %v4480_v21 = vpop.f32.mrf.mxu0 }
 0xfcf   : > { %v4486_v37 = vadd.f32 %v4477_v56, %v4446_v1 }
 0xfd1   : > { %v4492_v19 = vadd.f32 %v8101_v34, %v4486_v37  ;;  %v4443_v61 = vpop.f32.mrf.mxu3 }
 0xfd2   : > { %v4400_v20 = vpop.f32.mrf.mxu2 }
 0xfd3   : > { %v5794_v49 = vmul.f32 -1.442695, %v4492_v19  ;;  %v4407_v50 = vadd.f32 %v4400_v20, %v4369_v11 }
 0xfd5   : > { %6094 = vpow2.f32 %v5794_v49  ;;  %v4447_v41 = vadd.f32 %v4440_v10, %v4407_v50  ;;  %v4365_v51 = vpop.f32.mrf.mxu1 }
 0xfd6   : > { %v4370_v54 = vadd.f32 %v4365_v51, %v4330_v52  ;;  %v4483_v16 = vpop.f32.mrf.mxu0 }
 0xfd7   : > { %v4487_v53 = vadd.f32 %v4480_v21, %v4447_v41 }
 0xfd9   : > { %v4493_v40 = vadd.f32 %v8101_v34, %v4487_v53 }
 0xfda   : > { %v4403_v60 = vpop.f32.mrf.mxu2 }
 0xfdb   : > { %v6095_v43 = vpop.eup %6094  ;;  %v5795_v13 = vmul.f32 -1.442695, %v4493_v40  ;;  %v4408_v14 = vadd.f32 %v4403_v60, %v4370_v54 }
 0xfdc   : > { %v4504_v15 = vadd.f32 1.0, %v6095_v43 }
 0xfdd   : > { %6096 = vpow2.f32 %v5795_v13  ;;  %v4448_v22 = vadd.f32 %v4443_v61, %v4408_v14 }
 0xfde   : > { %6098 = vrcp.f32 %v4504_v15  ;;  %v4518_v2 = vand.u32 2147483648, %v4504_v15  ;;  %v4516_v4 = vand.u32 2147483647, %v4504_v15  ;;  %vm4512_vm5 = vweird.f32 %v4504_v15 }
 0xfdf   : > { %v4488_v17 = vadd.f32 %v4483_v16, %v4448_v22 }
 0xfe0   : > { %v4519_v48 = vor.u32 1.1754944e-38, %v4518_v2  ;;  %vm4517_vm13 = vcmp.eq.f32.partialorder %v4516_v4, 8.507059e+37 }
 0xfe1   : > { %v4494_v23 = vadd.f32 %v8101_v34, %v4488_v17 }
 0xfe3   : > { %v6097_v25 = vpop.eup %6096  ;;  %v5796_v59 = vmul.f32 -1.442695, %v4494_v23 }
 0xfe4   : > { %v6099_v24 = vpop.eup %6098  ;;  %v4505_v18 = vadd.f32 1.0, %v6097_v25 }
 0xfe5   : > { %v4508_v45 = vmul.f32 %v6099_v24, %v4504_v15  ;;  %6100 = vpow2.f32 %v5796_v59  ;;  %vm4513_vm4 = vweird.f32 %v6099_v24 }
 0xfe6   : > { %6102 = vrcp.f32 %v4505_v18  ;;  %vm4514_vm10 = vmor %vm4512_vm5, %vm4513_vm4  ;;  %v4533_v36 = vand.u32 2147483648, %v4505_v18  ;;  %v4531_v10 = vand.u32 2147483647, %v4505_v18  ;;  %vm4527_vm3 = vweird.f32 %v4505_v18 }
 0xfe7   : > { %v4509_v46 = vsub.f32 1.0, %v4508_v45 }
 0xfe8   : > { %v4534_v20 = vor.u32 1.1754944e-38, %v4533_v36  ;;  %vm4532_vm9 = vcmp.eq.f32.partialorder %v4531_v10, 8.507059e+37 }
 0xfe9   : > { %v4510_v3 = vmul.f32 %v6099_v24, %v4509_v46 }
 0xfeb   : > { %v6101_v56 = vpop.eup %6100  ;;  %v4511_v39 = vadd.f32 %v6099_v24, %v4510_v3 }
 0xfec   : > { %v6103_v47 = vpop.eup %6102  ;;  %v4506_v38 = vadd.f32 1.0, %v6101_v56 }
 0xfed   : > { %v4515_v57 = vsel %vm4514_vm10, %v6099_v24, %v4511_v39  ;;  %v4523_v1 = vmul.f32 %v6103_v47, %v4505_v18  ;;  %vm4528_vm15 = vweird.f32 %v6103_v47 }
 0xfee   : > { %v4520_v58 = vsel %vm4517_vm13, %v4519_v48, %v4515_v57  ;;  %6104 = vrcp.f32 %v4506_v38  ;;  %vm4529_vm8 = vmor %vm4527_vm3, %vm4528_vm15  ;;  %v4548_v41 = vand.u32 2147483648, %v4506_v38  ;;  %v4546_v52 = vand.u32 2147483647, %v4506_v38 }
 0xfef   : > { %4554 = vst.msk [vmem:[%s8111_s7] sm:$0xff] %vm4553_vm12, %v4520_v58  ;;  %v4524_v35 = vsub.f32 1.0, %v4523_v1  ;;  %vm4542_vm14 = vweird.f32 %v4506_v38 }
 0xff0   : > { %v4549_v54 = vor.u32 1.1754944e-38, %v4548_v41  ;;  %vm4547_vm4 = vcmp.eq.f32.partialorder %v4546_v52, 8.507059e+37 }
 0xff1   : > { %v4525_v37 = vmul.f32 %v6103_v47, %v4524_v35 }
 0xff3   : > { %v4526_v11 = vadd.f32 %v6103_v47, %v4525_v37 }
 0xff4   : > { %v6105_v19 = vpop.eup %6104 }
 0xff5   : > { %v4530_v21 = vsel %vm4529_vm8, %v6103_v47, %v4526_v11  ;;  %v4538_v33 = vmul.f32 %v6105_v19, %v4506_v38  ;;  %vm4543_vm11 = vweird.f32 %v6105_v19 }
 0xff6   : > { %v4535_v49 = vsel %vm4532_vm9, %v4534_v20, %v4530_v21  ;;  %vm4544_vm2 = vmor %vm4542_vm14, %vm4543_vm11 }
 0xff7   : > { %4555 = vst.msk [vmem:[%s8111_s7 + $0x8] sm:$0xff] %vm4553_vm12, %v4535_v49  ;;  %v4539_v50 = vsub.f32 1.0, %v4538_v33 }
 0xff9   : > { %v4540_v51 = vmul.f32 %v6105_v19, %v4539_v50 }
 0xffb   : > { %v4541_v53 = vadd.f32 %v6105_v19, %v4540_v51  ;;  %4120 = sbr.rel (!%p4118_p10) target bundleno = 3870 (0xf1e), region = 618 }
 0xffd   : > { %v4545_v40 = vsel %vm4544_vm2, %v6105_v19, %v4541_v53 }
 0xffe   : > { %v4550_v60 = vsel %vm4547_vm4, %v4549_v54, %v4545_v40 }
 0xfff   : > { %4557 = vst.msk [vmem:[%s8111_s7 + $0x10] sm:$0xf] %vm4556_vm1, %v4550_v60 }
0x1000 LB: > { %5874 = vmatpush.msra.mxu2 %v7946_v5  ;;  %5873 = vmatpush.msra.mxu1 %v7946_v5  ;;  %s5272_s12 = smul.u32 24, %s6324_s11  ;;  %s4563_s11 = sadd.s32 1, %s6324_s11   ;;  %s6324_s11 = sphi %s8122_s11, %s4563_s11  }
0x1001   : > { %4611 = vmatpush.msra.mxu0 %v7946_v5  ;;  %4719 = vmatpush.msra.mxu3 %v7966_v9  ;;  %p4560_p11 = scmp.ge.s32.totalorder %s4563_s11, 20  }
0x1002   : > { %5876 = vmatpush.msra.mxu2 %v7941_v0  ;;  %5875 = vmatpush.msra.mxu1 %v7941_v0  ;;  %s8140_s8 = scalar_lea.vmem [#allocation13], %s5272_s12  ;;  %s8210_s1 = scalar_lea.vmem %s8234_s15, %s5272_s12 }
0x1003   : > { %4612 = vmatpush.msra.mxu0 %v7941_v0  ;;  %4720 = vmatpush.msra.mxu3 %v7961_v8  ;;  %v5799_v42 = vld [vmem:[%s8140_s8 + $0x220] sm:$0x3f]  ;;  %v5798_v61 = vld [vmem:[%s8140_s8 + $0x218] sm:$0xff]  ;;  %v5797_v14 = vld [vmem:[%s8140_s8 + $0x210] sm:$0xff] }
0x1004   : > { %4681 = vmatpush.msrb.mxu2 %v7956_v7  ;;  %4643 = vmatpush.msrb.mxu1 %v7936_v63  ;;  %v4589_v43 = vrot.slane %v5799_v42, 1  ;;  %v4587_v13 = vrot.slane %v5798_v61, 1  ;;  %v5800_v15 = vld [vmem:[%s8140_s8 + $0x228] sm:$0xff]  ;;  %v4586_v16 = vrot.slane %v5797_v14, 1  ;;  %v5801_v17 = vld [vmem:[%s8140_s8 + $0x230] sm:$0xff]  ;;  %v4656_v23 = vrot.slane %v5797_v14, 2 }
0x1005   : > { %4759 = vmatpush.msrb.mxu0 %v7976_v27  ;;  %4877 = vmatpush.msrb.mxu3 %v8006_v6  ;;  %v4657_v25 = vrot.slane %v5798_v61, 2  ;;  %v4734_v24 = vrot.slane %v5800_v15, 1  ;;  %v4735_v18 = vrot.slane %v5801_v17, 1  ;;  %v5802_v2 = vld [vmem:[%s8140_s8 + $0x238] sm:$0x3f]  ;;  %v4659_v3 = vrot.slane %v5799_v42, 2 }
0x1006   : > { %4682 = vmatpush.msrb.mxu2 %v7951_v26  ;;  %4644 = vmatpush.msrb.mxu1 %v7931_v62  ;;  %v4590_v22 = vsel %vm363_vm6, %v4587_v13, %v4589_v43  ;;  %v4588_v59 = vsel %vm363_vm6, %v4586_v16, %v4587_v13  ;;  %v4737_v4 = vrot.slane %v5802_v2, 1  ;;  %v5803_v39 = vld [vmem:[%s8140_s8 + $0x240] sm:$0xff]  ;;  %v5804_v47 = vld [vmem:[%s8140_s8 + $0x248] sm:$0xff]  ;;  %v5805_v58 = vld [vmem:[%s8140_s8 + $0x250] sm:$0x3f]  ;;  %v4774_v36 = vrot.slane %v5800_v15, 2 }
0x1007   : > { %5815 = vmatmul.msk.f32.vlgmr.msra.gmra.mxu3 %vm52_vm0, %v5800_v15  ;;  %5808 = vmatmul.msk.f32.vlgmr.msra.gmra.mxu2 %vm52_vm0, %v4589_v43  ;;  %v4658_v45 = vsel %vm380_vm7, %v4656_v23, %v4657_v25  ;;  %v4736_v46 = vsel %vm363_vm6, %v4734_v24, %v4735_v18  ;;  %v4660_v56 = vsel %vm380_vm7, %v4657_v25, %v4659_v3  ;;  %v4852_v38 = vrot.slane %v5803_v39, 1 }
0x1008   : > { %4760 = vmatpush.msrb.mxu0 %v7971_v55  ;;  %5807 = vmatmul.msk.f32.vlgmr.msra.gmra.mxu1 %vm52_vm0, %v4590_v22  ;;  %v4738_v48 = vsel %vm363_vm6, %v4735_v18, %v4737_v4  ;;  %v4853_v57 = vrot.slane %v5804_v47, 1  ;;  %v4855_v35 = vrot.slane %v5805_v58, 1  ;;  %v4775_v37 = vrot.slane %v5801_v17, 2 }
0x1009   : > { %4837 = vmatpush.msra.mxu2 %v7996_v29  ;;  %5806 = vmatmul.msk.f32.vlgmr.msra.gmra.mxu0 %vm52_vm0, %v4588_v59  ;;  %v4892_v10 = vrot.slane %v5803_v39, 2  ;;  %v4893_v11 = vrot.slane %v5804_v47, 2  ;;  %v4777_v33 = vrot.slane %v5802_v2, 2  ;;  %v4895_v49 = vrot.slane %v5805_v58, 2 }
0x100a   : > { %4799 = vmatpush.msra.mxu1 %v7986_v31  ;;  %4917 = vmatpush.msra.mxu0 %v8016_v44  ;;  %v4854_v1 = vsel %vm363_vm6, %v4852_v38, %v4853_v57  ;;  %v4856_v19 = vsel %vm363_vm6, %v4853_v57, %v4855_v35  ;;  %v4776_v20 = vsel %vm380_vm7, %v4774_v36, %v4775_v37 }
0x100b   : > { %4838 = vmatpush.msra.mxu2 %v7991_v32  ;;  %4878 = vmatpush.msrb.mxu3 %v8001_v30  ;;  %v4894_v21 = vsel %vm380_vm7, %v4892_v10, %v4893_v11  ;;  %v4778_v50 = vsel %vm380_vm7, %v4775_v37, %v4777_v33  ;;  %v4896_v41 = vsel %vm380_vm7, %v4893_v11, %v4895_v49 }
0x100c   : > { %4800 = vmatpush.msra.mxu1 %v7981_v28  ;;  %4918 = vmatpush.msra.mxu0 %v8011_v12 }
0x100f   : > { %5816 = vmatmul.msk.f32.gmra.mxu3 %vm52_vm0, %v5801_v17  ;;  %5812 = vmatmul.msk.f32.vlgmr.msrb.gmra.mxu2 %vm52_vm0, %v4658_v45 }
0x1010   : > { %5809 = vmatmul.msk.f32.vlgmr.msrb.gmra.mxu1 %vm52_vm0, %v5797_v14 }
0x1011   : > { %5818 = vmatmul.msk.f32.vlgmr.msrb.gmra.mxu0 %vm52_vm0, %v4736_v46 }
0x1017   : > { %5817 = vmatmul.msk.f32.gmra.mxu3 %vm52_vm0, %v5802_v2  ;;  %5813 = vmatmul.msk.f32.gmra.mxu2 %vm52_vm0, %v4660_v56 }
0x1018   : > { %5810 = vmatmul.msk.f32.gmra.mxu1 %vm52_vm0, %v5798_v61 }
0x1019   : > { %5819 = vmatmul.msk.f32.gmra.mxu0 %vm52_vm0, %v4738_v48 }
0x101f   : > { %5827 = vmatmul.msk.f32.vlgmr.msrb.gmra.mxu3 %vm52_vm0, %v4854_v1  ;;  %5814 = vmatmul.msk.f32.gmra.mxu2 %vm52_vm0, %v4659_v3 }
0x1020   : > { %5811 = vmatmul.msk.f32.gmra.mxu1 %vm52_vm0, %v5799_v42 }
0x1021   : > { %5820 = vmatmul.msk.f32.gmra.mxu0 %vm52_vm0, %v4737_v4 }
0x1027   : > { %5828 = vmatmul.msk.f32.gmra.mxu3 %vm52_vm0, %v4856_v19  ;;  %5824 = vmatmul.msk.f32.vlgmr.msra.gmra.mxu2 %vm52_vm0, %v5803_v39 }
0x1028   : > { %5821 = vmatmul.msk.f32.vlgmr.msra.gmra.mxu1 %vm52_vm0, %v4776_v20 }
0x1029   : > { %5830 = vmatmul.msk.f32.vlgmr.msra.gmra.mxu0 %vm52_vm0, %v4894_v21 }
0x102f   : > { %5829 = vmatmul.msk.f32.gmra.mxu3 %vm52_vm0, %v4855_v35  ;;  %5825 = vmatmul.msk.f32.gmra.mxu2 %vm52_vm0, %v5804_v47 }
0x1030   : > { %5822 = vmatmul.msk.f32.gmra.mxu1 %vm52_vm0, %v4778_v50 }
0x1031   : > { %5831 = vmatmul.msk.f32.gmra.mxu0 %vm52_vm0, %v4896_v41 }
0x1037   : > { %5826 = vmatmul.msk.f32.gmra.mxu2 %vm52_vm0, %v5805_v58 }
0x1038   : > { %5823 = vmatmul.msk.f32.gmra.mxu1 %vm52_vm0, %v4777_v33 }
0x1039   : > { %5832 = vmatmul.msk.f32.gmra.mxu0 %vm52_vm0, %v4895_v49 }
0x1085   : > { %v4617_v51 = vpop.f32.mrf.mxu1 }
0x1086   : > { %v4614_v52 = vpop.f32.mrf.mxu0 }
0x108a   : > { %v4722_v53 = vpop.f32.mrf.mxu3  ;;  %v4620_v54 = vpop.f32.mrf.mxu2 }
0x108d   : > { %v4646_v40 = vpop.f32.mrf.mxu1 }
0x108e   : > { %v4762_v60 = vpop.f32.mrf.mxu0  ;;  %v4647_v16 = vadd.f32 %v4646_v40, %v4614_v52 }
0x1092   : > { %v4684_v42 = vpop.f32.mrf.mxu2  ;;  %v4725_v61 = vpop.f32.mrf.mxu3 }
0x1093   : > { %v4693_v23 = vadd.f32 %v4684_v42, %v4647_v16 }
0x1095   : > { %v4649_v43 = vpop.f32.mrf.mxu1  ;;  %v4731_v59 = vadd.f32 %v4722_v53, %v4693_v23 }
0x1096   : > { %v4765_v13 = vpop.f32.mrf.mxu0  ;;  %v4650_v24 = vadd.f32 %v4649_v43, %v4617_v51 }
0x1097   : > { %v4771_v46 = vadd.f32 %v4762_v60, %v4731_v59 }
0x109a   : > { %v4687_v14 = vpop.f32.mrf.mxu2  ;;  %v4728_v15 = vpop.f32.mrf.mxu3 }
0x109b   : > { %v4694_v2 = vadd.f32 %v4687_v14, %v4650_v24 }
0x109d   : > { %v4652_v22 = vpop.f32.mrf.mxu1  ;;  %v4732_v39 = vadd.f32 %v4725_v61, %v4694_v2 }
0x109e   : > { %v4768_v17 = vpop.f32.mrf.mxu0  ;;  %v4653_v48 = vadd.f32 %v4652_v22, %v4620_v54 }
0x109f   : > { %v4772_v1 = vadd.f32 %v4765_v13, %v4732_v39 }
0x10a2   : > { %v4690_v25 = vpop.f32.mrf.mxu2  ;;  %v4880_v45 = vpop.f32.mrf.mxu3 }
0x10a3   : > { %v4695_v58 = vadd.f32 %v4690_v25, %v4653_v48 }
0x10a5   : > { %v4802_v18 = vpop.f32.mrf.mxu1  ;;  %v4733_v20 = vadd.f32 %v4728_v15, %v4695_v58 }
0x10a6   : > { %v4920_v3 = vpop.f32.mrf.mxu0  ;;  %v4811_v4 = vadd.f32 %v4802_v18, %v4771_v46 }
0x10a7   : > { %v4773_v41 = vadd.f32 %v4768_v17, %v4733_v20 }
0x10aa   : > { %v4840_v56 = vpop.f32.mrf.mxu2  ;;  %v4883_v36 = vpop.f32.mrf.mxu3 }
0x10ab   : > { %v4849_v47 = vadd.f32 %v4840_v56, %v4811_v4 }
0x10ad   : > { %v4889_v38 = vadd.f32 %v4880_v45, %v4849_v47  ;;  %v4805_v57 = vpop.f32.mrf.mxu1 }
0x10ae   : > { %v4812_v37 = vadd.f32 %v4805_v57, %v4772_v1  ;;  %v4923_v19 = vpop.f32.mrf.mxu0 }
0x10af   : > { %v4929_v35 = vadd.f32 %v4920_v3, %v4889_v38 }
0x10b1   : > { %v4935_v10 = vadd.f32 %v4929_v35, %v8101_v34 }
0x10b2   : > { %v4843_v11 = vpop.f32.mrf.mxu2  ;;  %v4886_v40 = vpop.f32.mrf.mxu3 }
0x10b3   : > { %v5833_v21 = vmul.f32 -1.442695, %v4935_v10  ;;  %v4850_v33 = vadd.f32 %v4843_v11, %v4812_v37 }
0x10b5   : > { %6106 = vpow2.f32 %v5833_v21  ;;  %v4890_v49 = vadd.f32 %v4883_v36, %v4850_v33  ;;  %v4808_v50 = vpop.f32.mrf.mxu1 }
0x10b6   : > { %v4813_v52 = vadd.f32 %v4808_v50, %v4773_v41  ;;  %v4926_v13 = vpop.f32.mrf.mxu0 }
0x10b7   : > { %v4930_v51 = vadd.f32 %v4923_v19, %v4890_v49 }
0x10b9   : > { %v4936_v53 = vadd.f32 %v4930_v51, %v8101_v34 }
0x10ba   : > { %v4846_v54 = vpop.f32.mrf.mxu2 }
0x10bb   : > { %v6107_v60 = vpop.eup %6106  ;;  %v5834_v42 = vmul.f32 -1.442695, %v4936_v53  ;;  %v4851_v61 = vadd.f32 %v4846_v54, %v4813_v52 }
0x10bc   : > { %v4947_v43 = vadd.f32 1.0, %v6107_v60 }
0x10bd   : > { %6108 = vpow2.f32 %v5834_v42  ;;  %v4891_v14 = vadd.f32 %v4886_v40, %v4851_v61 }
0x10be   : > { %6110 = vrcp.f32 %v4947_v43  ;;  %v4961_v18 = vand.u32 2147483648, %v4947_v43  ;;  %v4959_v46 = vand.u32 2147483647, %v4947_v43  ;;  %vm4955_vm10 = vweird.f32 %v4947_v43 }
0x10bf   : > { %v4931_v15 = vadd.f32 %v4926_v13, %v4891_v14 }
0x10c0   : > { %v4962_v56 = vor.u32 1.1754944e-38, %v4961_v18  ;;  %vm4960_vm15 = vcmp.eq.f32.partialorder %v4959_v46, 8.507059e+37 }
0x10c1   : > { %v4937_v16 = vadd.f32 %v4931_v15, %v8101_v34 }
0x10c3   : > { %v6109_v22 = vpop.eup %6108  ;;  %v5835_v23 = vmul.f32 -1.442695, %v4937_v16 }
0x10c4   : > { %v6111_v17 = vpop.eup %6110  ;;  %v4948_v25 = vadd.f32 1.0, %v6109_v22 }
0x10c5   : > { %v4951_v59 = vmul.f32 %v6111_v17, %v4947_v43  ;;  %6112 = vpow2.f32 %v5835_v23  ;;  %vm4956_vm5 = vweird.f32 %v6111_v17 }
0x10c6   : > { %6114 = vrcp.f32 %v4948_v25  ;;  %vm4957_vm13 = vmor %vm4955_vm10, %vm4956_vm5  ;;  %v4976_v1 = vand.u32 2147483648, %v4948_v25  ;;  %v4974_v35 = vand.u32 2147483647, %v4948_v25  ;;  %vm4970_vm8 = vweird.f32 %v4948_v25 }
0x10c7   : > { %v4952_v24 = vsub.f32 1.0, %v4951_v59 }
0x10c8   : > { %v4977_v10 = vor.u32 1.1754944e-38, %v4976_v1  ;;  %vm4975_vm11 = vcmp.eq.f32.partialorder %v4974_v35, 8.507059e+37 }
0x10c9   : > { %v4953_v45 = vmul.f32 %v6111_v17, %v4952_v24 }
0x10cb   : > { %v6113_v2 = vpop.eup %6112  ;;  %v4954_v3 = vadd.f32 %v6111_v17, %v4953_v45 }
0x10cc   : > { %v6115_v4 = vpop.eup %6114  ;;  %v4949_v39 = vadd.f32 1.0, %v6113_v2 }
0x10cd   : > { %v4958_v47 = vsel %vm4957_vm13, %v6111_v17, %v4954_v3  ;;  %v4966_v48 = vmul.f32 %v6115_v4, %v4948_v25  ;;  %vm4971_vm3 = vweird.f32 %v6115_v4 }
0x10ce   : > { %v4963_v38 = vsel %vm4960_vm15, %v4962_v56, %v4958_v47  ;;  %6116 = vrcp.f32 %v4949_v39  ;;  %vm4972_vm9 = vmor %vm4970_vm8, %vm4971_vm3  ;;  %v4991_v33 = vand.u32 2147483648, %v4949_v39  ;;  %v4989_v50 = vand.u32 2147483647, %v4949_v39 }
0x10cf   : > { %5836 = vst.msk [vmem:[%s8210_s1 + $0x1e0] sm:$0xff] %vm4553_vm12, %v4963_v38  ;;  %v4967_v57 = vsub.f32 1.0, %v4966_v48  ;;  %vm4985_vm2 = vweird.f32 %v4949_v39 }
0x10d0   : > { %v4992_v51 = vor.u32 1.1754944e-38, %v4991_v33  ;;  %vm4990_vm5 = vcmp.eq.f32.partialorder %v4989_v50, 8.507059e+37 }
0x10d1   : > { %v4968_v58 = vmul.f32 %v6115_v4, %v4967_v57 }
0x10d3   : > { %v4969_v36 = vadd.f32 %v6115_v4, %v4968_v58 }
0x10d4   : > { %v6117_v37 = vpop.eup %6116 }
0x10d5   : > { %v4973_v11 = vsel %vm4972_vm9, %v6115_v4, %v4969_v36  ;;  %v4981_v19 = vmul.f32 %v6117_v37, %v4949_v39  ;;  %vm4986_vm14 = vweird.f32 %v6117_v37 }
0x10d6   : > { %v4978_v20 = vsel %vm4975_vm11, %v4977_v10, %v4973_v11  ;;  %vm4987_vm4 = vmor %vm4985_vm2, %vm4986_vm14 }
0x10d7   : > { %5837 = vst.msk [vmem:[%s8210_s1 + $0x1e8] sm:$0xff] %vm4553_vm12, %v4978_v20  ;;  %v4982_v21 = vsub.f32 1.0, %v4981_v19 }
0x10d9   : > { %v4983_v49 = vmul.f32 %v6117_v37, %v4982_v21 }
0x10db   : > { %v4984_v41 = vadd.f32 %v6117_v37, %v4983_v49  ;;  %4562 = sbr.rel (!%p4560_p11) target bundleno = 4096 (0x1000), region = 629 }
0x10dd   : > { %v4988_v52 = vsel %vm4987_vm4, %v6117_v37, %v4984_v41 }
0x10de   : > { %v4993_v53 = vsel %vm4990_vm5, %v4992_v51, %v4988_v52 }
0x10df   : > { %5838 = vst.msk [vmem:[%s8210_s1 + $0x1f0] sm:$0xf] %vm4556_vm1, %v4993_v53 }

</bundles_post_ra>
